<compile_context>
chip_gen: v6e
topology: v6e:2x2x1
jax: 0.10.0
libtpu: 0.0.40
codegen_flags: <defaults>
</compile_context>

<pallas_src>
import functools

import jax
import jax.numpy as jnp
from jax.experimental import pallas as pl
from jax.experimental.pallas import tpu as pltpu


BN_EPS = 1e-5
LANE = 128
SUBLANE = 8


def _round_up(x, m):
    return (x + m - 1) // m * m


def _qoe_kernel(x_ref, w0_ref, b0_ref, wh_ref, bh_ref, gamma_ref, beta_ref,
                wout_ref, bout_ref,
                out_ref,
                h_full, z_full, sum_acc, sq_acc, scale_sc, shift_sc, c_sc,
                *, n_layers, batch, bp, tile_rows, n_tiles, add0):
    s = pl.program_id(0)              # stage: 0 .. n_layers + 1
    i = pl.program_id(1)              # batch tile
    last_stage = n_layers + 1
    inv_b = 1.0 / float(batch)
    ragged = (batch != bp)            # static: padded batch rows exist
    up_dim = h_full.shape[2]

    # ---- per-stage bookkeeping (first batch tile of each stage) -------------
    @pl.when(jnp.logical_and(s == 0, i == 0))
    def _init_stats():
        sum_acc[...] = jnp.zeros_like(sum_acc)
        sq_acc[...] = jnp.zeros_like(sq_acc)

    @pl.when(jnp.logical_and(s >= 1, i == 0))
    def _finalize_prev_layer_stats():
        # Stats of the Linear run at stage s-1 (= layer s-1), accumulated as
        # moments shifted by that layer's bias (c_sc) to avoid E[h^2]-E[h]^2
        # cancellation.  gamma/beta blocks already hold layer s-1's values.
        m1 = sum_acc[...] * inv_b
        var = jnp.maximum(sq_acc[...] * inv_b - m1 * m1, 0.0)
        mean = c_sc[...] + m1
        scale = gamma_ref[0] * jax.lax.rsqrt(var + BN_EPS)
        scale_sc[...] = scale
        shift_sc[...] = beta_ref[0] - mean * scale
        sum_acc[...] = jnp.zeros_like(sum_acc)
        sq_acc[...] = jnp.zeros_like(sq_acc)

    def accumulate_stats(h, c):
        d = h - c                                    # bias-shifted moments
        if ragged:
            # Only the last tile contains padded rows: mask just that one.
            @pl.when(i == n_tiles - 1)
            def _masked():
                rows = (jax.lax.broadcasted_iota(jnp.int32, (tile_rows, 1), 0)
                        + i * tile_rows)
                valid = (rows < batch).astype(jnp.float32)
                dm = d * valid
                sum_acc[...] += jnp.sum(dm, axis=0, keepdims=True)
                sq_acc[...] += jnp.sum(dm * d, axis=0, keepdims=True)

            @pl.when(i < n_tiles - 1)
            def _unmasked():
                sum_acc[...] += jnp.sum(d, axis=0, keepdims=True)
                sq_acc[...] += jnp.sum(d * d, axis=0, keepdims=True)
        else:
            sum_acc[...] += jnp.sum(d, axis=0, keepdims=True)
            sq_acc[...] += jnp.sum(d * d, axis=0, keepdims=True)

    def bn_silu_residual():
        hn = h_full[i] * scale_sc[...] + shift_sc[...]   # fused BN scale/shift
        return hn * jax.nn.sigmoid(hn) + z_full[i]       # SiLU + residual

    # ---- stage 0: Linear(n_features -> n_units) ------------------------------
    @pl.when(s == 0)
    def _stage_first():
        bias = b0_ref[...]
        h = jnp.dot(x_ref[...].astype(jnp.bfloat16), w0_ref[...],
                    preferred_element_type=jnp.float32) + bias

        @pl.when(i == 0)
        def _():
            c_sc[...] = bias

        accumulate_stats(h, bias)
        h_full[i] = h
        if add0:                                  # static: n_features == n_units
            z_full[i] = x_ref[...]                # residual source is the input
        else:
            z_full[i] = jnp.zeros((tile_rows, up_dim), jnp.float32)

    # ---- stages 1..n_layers: BN+SiLU+residual of layer s-1, Linear layer s ---
    @pl.when(jnp.logical_and(s >= 1, s <= n_layers))
    def _stage_hidden():
        z = bn_silu_residual()
        z_full[i] = z
        bias = bh_ref[0]
        h = jnp.dot(z.astype(jnp.bfloat16), wh_ref[0],
                    preferred_element_type=jnp.float32) + bias

        @pl.when(i == 0)
        def _():
            c_sc[...] = bias

        accumulate_stats(h, bias)
        h_full[i] = h

    # ---- final stage: BN+SiLU+residual of last layer, dropout(0)=id, head ----
    @pl.when(s == last_stage)
    def _stage_out():
        z = bn_silu_residual()
        # dropout(p=0.0) is the identity.
        # Linear(n_units -> 1): VPU broadcast-multiply + lane reduction (an
        # N=1 MXU pass would waste >99% of the array).  Lane-dense (1, tb) row.
        row = jnp.sum(z * wout_ref[...], axis=-1).reshape(1, tile_rows)
        out_ref[...] = (row + bout_ref[...]).astype(out_ref.dtype)


def _build_specs(*, fp, up, lp, n_layers, tb, last_stage, single_buffer_consts):
    def const_spec(shape):
        idx = lambda s, i: (0,) * len(shape)
        if single_buffer_consts:
            # Block index never changes -> one pipeline buffer is enough.
            return pl.BlockSpec(shape, idx, pipeline_mode=pl.Buffered(1))
        return pl.BlockSpec(shape, idx)

    def layer_idx(s):
        # Hidden-layer params used by stage s's Linear; clipped for the stages
        # that do not use them (stage 0 and the output stage).
        return jnp.clip(s - 1, 0, lp - 1)

    def bn_idx(s):
        # BN params of the layer finalized at stage s (layer s-1).
        return jnp.clip(s - 1, 0, n_layers)

    in_specs = [
        pl.BlockSpec((tb, fp), lambda s, i: (jnp.where(s == 0, i, 0), 0)),  # x
        const_spec((fp, up)),                                               # w0
        const_spec((1, up)),                                                # b0
        pl.BlockSpec((1, up, up), lambda s, i: (layer_idx(s), 0, 0)),       # wh (per stage)
        pl.BlockSpec((1, 1, up), lambda s, i: (layer_idx(s), 0, 0)),        # bh (per stage)
        pl.BlockSpec((1, 1, up), lambda s, i: (bn_idx(s), 0, 0)),           # gamma (per stage)
        pl.BlockSpec((1, 1, up), lambda s, i: (bn_idx(s), 0, 0)),           # beta  (per stage)
        const_spec((1, up)),                                                # wout row
        const_spec((1, 1)),                                                 # bout
    ]
    # Only the final stage sweeps the batch tiles -> no garbage write-backs,
    # lane-dense (1, tb) stores.
    out_specs = pl.BlockSpec(
        (1, tb), lambda s, i: (0, jnp.where(s == last_stage, i, 0)))
    return in_specs, out_specs


def qoe_forward(x, padded_params, *, n_features, n_units, n_layers, tile_rows=512):
    w0, b0, wh, bh, gamma, beta, wout, bout = padded_params
    batch = x.shape[0]
    fp = w0.shape[0]                  # padded feature dim (multiple of 128)
    up = w0.shape[1]                  # padded unit dim (multiple of 128)
    lp = wh.shape[0]                  # max(1, n_layers)

    # --- batch tiling: big tiles by default; multi-tile -> multiple of 128 ----
    bru = _round_up(batch, SUBLANE)
    tb = _round_up(max(min(tile_rows, bru), SUBLANE), SUBLANE)
    if tb < bru:
        tb = _round_up(tb, LANE)      # lane-dense output blocks, MXU-friendly M
        if tb >= bru:
            tb = bru                  # collapsed back to a single tile
    bp = _round_up(batch, tb)
    n_tiles = bp // tb
    n_stages = n_layers + 2
    last_stage = n_layers + 1
    add0 = (n_features == n_units)

    # --- generation-aware VMEM budget -----------------------------------------
    try:
        cap = int(pltpu.get_tpu_info().vmem_capacity_bytes)
    except Exception:
        cap = 128 * 1024 * 1024
    budget = max(int(0.80 * cap), 32 * 1024 * 1024)   # ~102 MiB v5e/v6e, ~51 MiB v7x

    resident_bytes = 2 * n_tiles * tb * up * 4                # H + Z streams
    other_bytes = (2 * fp * up * 2       # w0 (worst case: double-buffered bf16)
                   + 2 * up * up * 2     # one hidden-layer weight block, x2 buffers
                   + 2 * tb * fp * 4     # x tile, double-buffered
                   + 2 * tb * 4          # output tile
                   + 16 * up * 4)        # biases / gamma / beta / BN scratch
    needed = resident_bytes + other_bytes
    if needed > budget:
        # TODO(synk): fall back to HBM-staged H/Z with async double-buffered
        # pltpu.make_async_copy (2-slot buffers + DMA semaphores) for batches
        # whose activations do not fit in VMEM.
        raise NotImplementedError(
            f"VMEM-resident activations need {needed} B but budget is {budget} B")

    x_pad = jnp.zeros((bp, fp), jnp.float32).at[:batch, :n_features].set(
        x.astype(jnp.float32))

    kernel = functools.partial(
        _qoe_kernel, n_layers=n_layers, batch=batch, bp=bp, tile_rows=tb,
        n_tiles=n_tiles, add0=add0)

    def run(single_buffer_consts):
        in_specs, out_specs = _build_specs(
            fp=fp, up=up, lp=lp, n_layers=n_layers, tb=tb,
            last_stage=last_stage, single_buffer_consts=single_buffer_consts)
        grid_spec = pltpu.PrefetchScalarGridSpec(
            num_scalar_prefetch=0,
            grid=(n_stages, n_tiles),
            in_specs=in_specs,
            out_specs=out_specs,
            scratch_shapes=[
                pltpu.VMEM((n_tiles, tb, up), jnp.float32),  # H: pre-BN activations
                pltpu.VMEM((n_tiles, tb, up), jnp.float32),  # Z: residual stream
                pltpu.VMEM((1, up), jnp.float32),            # BN sum accumulator
                pltpu.VMEM((1, up), jnp.float32),            # BN sum-sq accumulator
                pltpu.VMEM((1, up), jnp.float32),            # fused BN scale
                pltpu.VMEM((1, up), jnp.float32),            # fused BN shift
                pltpu.VMEM((1, up), jnp.float32),            # shift (bias) for stats
            ],
        )
        out = pl.pallas_call(
            kernel,
            grid_spec=grid_spec,
            out_shape=jax.ShapeDtypeStruct((1, bp), jnp.float32),
            compiler_params=pltpu.CompilerParams(
                # Both axes carry sequential dependencies (layer order; full-
                # batch BN statistics accumulated across batch tiles).
                # TODO(synk): on v7x, split the batch axis across the two
                # TensorCores with an explicit cross-TC BN partial-sum reduce.
                dimension_semantics=("arbitrary", "arbitrary"),
                vmem_limit_bytes=budget,
            ),
        )(x_pad, w0, b0, wh, bh, gamma, beta, wout, bout)
        return jax.block_until_ready(out)

    try:
        out = run(single_buffer_consts=True)     # pl.Buffered(1) on constants
    except Exception:
        out = run(single_buffer_consts=False)    # fallback: default buffering

    return out[0, :batch].reshape(batch, 1)


def make_params(key, n_features, n_units, n_layers):
    """Unpadded f32 parameters (weights stored [in, out], PyTorch semantics)."""
    ks = jax.random.split(key, 8)
    w0 = jax.random.normal(ks[0], (n_features, n_units), jnp.float32) * 0.1
    b0 = jax.random.normal(ks[1], (1, n_units), jnp.float32) * 0.01
    wh = jax.random.normal(ks[2], (n_layers, n_units, n_units), jnp.float32) * 0.1
    bh = jax.random.normal(ks[3], (n_layers, 1, n_units), jnp.float32) * 0.01
    gamma = 1.0 + 0.1 * jax.random.normal(ks[4], (n_layers + 1, 1, n_units), jnp.float32)
    beta = 0.1 * jax.random.normal(ks[5], (n_layers + 1, 1, n_units), jnp.float32)
    wout = jax.random.normal(ks[6], (n_units, 1), jnp.float32) * 0.1
    bout = jax.random.normal(ks[7], (1, 1), jnp.float32) * 0.01
    return (w0, b0, wh, bh, gamma, beta, wout, bout)


def pad_params(raw_params, n_features, n_units, n_layers):
    """Zero-pad to lane-dense (multiples of 128) shapes; bf16 MXU operands."""
    w0, b0, wh, bh, gamma, beta, wout, bout = raw_params
    fp = _round_up(n_features, LANE)
    up = _round_up(n_units, LANE)
    lp = max(1, n_layers)

    w0p = jnp.zeros((fp, up), jnp.float32).at[:n_features, :n_units].set(w0)
    whp = jnp.zeros((lp, up, up), jnp.float32).at[:n_layers, :n_units, :n_units].set(wh)
    b0p = jnp.zeros((1, up), jnp.float32).at[:, :n_units].set(b0)
    bhp = jnp.zeros((lp, 1, up), jnp.float32).at[:n_layers, :, :n_units].set(bh)
    gp = jnp.zeros((n_layers + 1, 1, up), jnp.float32).at[:, :, :n_units].set(gamma)
    bp_ = jnp.zeros((n_layers + 1, 1, up), jnp.float32).at[:, :, :n_units].set(beta)
    woutp = jnp.zeros((1, up), jnp.float32).at[0, :n_units].set(wout[:, 0])
    boutp = bout.reshape(1, 1).astype(jnp.float32)
    # Only MXU operands go to bf16; everything on the VPU path stays f32.
    return (w0p.astype(jnp.bfloat16), b0p, whp.astype(jnp.bfloat16), bhp,
            gp, bp_, woutp, boutp)


def reference_forward(x, raw_params, n_layers):
    """Pure-JAX reference mirroring the PyTorch forward (training-mode BN) with
    the same bf16-operand / f32-accumulate matmul numerics as the kernel."""
    w0, b0, wh, bh, gamma, beta, wout, bout = raw_params

    def dot16(a, w):
        return jnp.dot(a.astype(jnp.bfloat16), w.astype(jnp.bfloat16),
                       preferred_element_type=jnp.float32)

    def bn_silu(h, g, b):
        mean = jnp.mean(h, axis=0, keepdims=True)
        var = jnp.mean((h - mean) ** 2, axis=0, keepdims=True)
        hn = (h - mean) / jnp.sqrt(var + BN_EPS) * g + b
        return hn * jax.nn.sigmoid(hn)

    tmp_in = x
    h = bn_silu(dot16(x, w0) + b0, gamma[0], beta[0])
    if tmp_in.shape == h.shape:
        h = h + tmp_in
    tmp_in = h
    for l in range(n_layers):
        z = bn_silu(dot16(tmp_in, wh[l]) + bh[l], gamma[l + 1], beta[l + 1])
        z = z + tmp_in
        tmp_in = z
    return tmp_in @ wout + bout


if __name__ == "__main__":
    key = jax.random.PRNGKey(0)

    configs = [
        # (n_features, n_units, n_layers, batch, tile_rows)
        (16, 32, 2, 300, 512),   # single 304-row tile (ragged batch)
        (16, 32, 2, 300, 128),   # 3 batch tiles: multi-tile BN stats + ragged mask
        (32, 32, 0, 16, 512),    # n_features == n_units residual path; n_layers == 0
    ]

    for idx, (n_features, n_units, n_layers, batch, tile_rows) in enumerate(configs):
        kx, kp = jax.random.split(jax.random.fold_in(key, idx))
        x = jax.random.normal(kx, (batch, n_features), jnp.float32)

        raw_params = make_params(kp, n_features, n_units, n_layers)
        params = pad_params(raw_params, n_features, n_units, n_layers)

        out = qoe_forward(x, params, n_features=n_features, n_units=n_units,
                          n_layers=n_layers, tile_rows=tile_rows)
        out = jax.block_until_ready(out)

        ref = reference_forward(x, raw_params, n_layers)
        assert out.shape == (batch, 1)
        max_err = float(jnp.max(jnp.abs(out - ref)))
        assert jnp.allclose(out, ref, atol=2e-3, rtol=2e-3), (
            f"config {idx}: mismatch vs reference (max abs err {max_err})")

    print("KERNEL_OK")
</pallas_src>

<mosaic_0001>
module attributes {stable_mosaic.version = 11 : i64} {
  func.func @_qoe_kernel(%arg0: i32, %arg1: i32, %arg2: memref<304x128xf32, #tpu.memory_space<vmem>>, %arg3: memref<128x128xbf16, #tpu.memory_space<vmem>>, %arg4: memref<1x128xf32, #tpu.memory_space<vmem>>, %arg5: memref<1x128x128xbf16, #tpu.memory_space<vmem>>, %arg6: memref<1x1x128xf32, #tpu.memory_space<vmem>>, %arg7: memref<1x1x128xf32, #tpu.memory_space<vmem>>, %arg8: memref<1x1x128xf32, #tpu.memory_space<vmem>>, %arg9: memref<1x128xf32, #tpu.memory_space<vmem>>, %arg10: memref<1x1xf32, #tpu.memory_space<vmem>>, %arg11: memref<1x304xf32, #tpu.memory_space<vmem>>, %arg12: memref<1x304x128xf32, #tpu.memory_space<vmem>>, %arg13: memref<1x304x128xf32, #tpu.memory_space<vmem>>, %arg14: memref<1x128xf32, #tpu.memory_space<vmem>>, %arg15: memref<1x128xf32, #tpu.memory_space<vmem>>, %arg16: memref<1x128xf32, #tpu.memory_space<vmem>>, %arg17: memref<1x128xf32, #tpu.memory_space<vmem>>, %arg18: memref<1x128xf32, #tpu.memory_space<vmem>>) attributes {dimension_semantics = [#tpu.dimension_semantics<arbitrary>, #tpu.dimension_semantics<arbitrary>], iteration_bounds = array<i64: 4, 1>, scalar_prefetch = 0 : i64, scratch_operands = 7 : i64, tpu.core_type = #tpu.core_type<tc>, window_params = [{transform_indices = @transform_0, window_bounds = array<i64: 304, 128>}, {pipeline_mode = #tpu.pipeline_mode<synchronous>, transform_indices = @transform_1, window_bounds = array<i64: 128, 128>}, {pipeline_mode = #tpu.pipeline_mode<synchronous>, transform_indices = @transform_2, window_bounds = array<i64: 1, 128>}, {transform_indices = @transform_3, window_bounds = array<i64: 1, 128, 128>}, {transform_indices = @transform_4, window_bounds = array<i64: 1, 1, 128>}, {transform_indices = @transform_5, window_bounds = array<i64: 1, 1, 128>}, {transform_indices = @transform_6, window_bounds = array<i64: 1, 1, 128>}, {pipeline_mode = #tpu.pipeline_mode<synchronous>, transform_indices = @transform_7, window_bounds = array<i64: 1, 128>}, {pipeline_mode = #tpu.pipeline_mode<synchronous>, transform_indices = @transform_8, window_bounds = array<i64: 1, 1>}, {transform_indices = @transform_9, window_bounds = array<i64: 1, 304>}]} {
    %c0_i32 = arith.constant 0 : i32
    %0 = arith.cmpi eq, %arg0, %c0_i32 : i32
    %c0_i32_0 = arith.constant 0 : i32
    %1 = arith.cmpi eq, %arg1, %c0_i32_0 : i32
    %2 = arith.andi %0, %1 : i1
    %3 = arith.extui %2 : i1 to i32
    %c0_i32_1 = arith.constant 0 : i32
    %4 = arith.cmpi ne, %3, %c0_i32_1 : i32
    scf.if %4 {
      %cst = arith.constant 0.000000e+00 : f32
      %21 = vector.broadcast %cst : f32 to vector<1x128xf32>
      %c0 = arith.constant 0 : index
      %c0_9 = arith.constant 0 : index
      %22 = vector.load %arg14[%c0, %c0_9] : memref<1x128xf32, #tpu.memory_space<vmem>>, vector<1x128xf32>
      tpu.vector_store %arg14[%c0, %c0_9], %21 {strides = array<i32>} : memref<1x128xf32, #tpu.memory_space<vmem>>, vector<1x128xf32>,
      %cst_10 = arith.constant 0.000000e+00 : f32
      %23 = vector.broadcast %cst_10 : f32 to vector<1x128xf32>
      %c0_11 = arith.constant 0 : index
      %c0_12 = arith.constant 0 : index
      %24 = vector.load %arg15[%c0_11, %c0_12] : memref<1x128xf32, #tpu.memory_space<vmem>>, vector<1x128xf32>
      tpu.vector_store %arg15[%c0_11, %c0_12], %23 {strides = array<i32>} : memref<1x128xf32, #tpu.memory_space<vmem>>, vector<1x128xf32>,
    } else {
    }
    %c1_i32 = arith.constant 1 : i32
    %5 = arith.cmpi sge, %arg0, %c1_i32 : i32
    %c0_i32_2 = arith.constant 0 : i32
    %6 = arith.cmpi eq, %arg1, %c0_i32_2 : i32
    %7 = arith.andi %5, %6 : i1
    %8 = arith.extui %7 : i1 to i32
    %c0_i32_3 = arith.constant 0 : i32
    %9 = arith.cmpi ne, %8, %c0_i32_3 : i32
    scf.if %9 {
      %c0 = arith.constant 0 : index
      %c0_9 = arith.constant 0 : index
      %21 = vector.load %arg14[%c0, %c0_9] : memref<1x128xf32, #tpu.memory_space<vmem>>, vector<1x128xf32>
      %cst = arith.constant 0.00333333341 : f32
      %22 = vector.broadcast %cst : f32 to vector<1x128xf32>
      %23 = arith.mulf %21, %22 : vector<1x128xf32>
      %c0_10 = arith.constant 0 : index
      %c0_11 = arith.constant 0 : index
      %24 = vector.load %arg15[%c0_10, %c0_11] : memref<1x128xf32, #tpu.memory_space<vmem>>, vector<1x128xf32>
      %cst_12 = arith.constant 0.00333333341 : f32
      %25 = vector.broadcast %cst_12 : f32 to vector<1x128xf32>
      %26 = arith.mulf %24, %25 : vector<1x128xf32>
      %27 = arith.mulf %23, %23 : vector<1x128xf32>
      %28 = arith.subf %26, %27 : vector<1x128xf32>
      %cst_13 = arith.constant 0.000000e+00 : f32
      %29 = vector.broadcast %cst_13 : f32 to vector<1x128xf32>
      %30 = arith.maximumf %28, %29 : vector<1x128xf32>
      %c0_14 = arith.constant 0 : index
      %c0_15 = arith.constant 0 : index
      %31 = vector.load %arg18[%c0_14, %c0_15] : memref<1x128xf32, #tpu.memory_space<vmem>>, vector<1x128xf32>
      %32 = arith.addf %31, %23 : vector<1x128xf32>
      %c0_16 = arith.constant 0 : index
      %c0_17 = arith.constant 0 : index
      %c0_18 = arith.constant 0 : index
      %33 = vector.load %arg7[%c0_16, %c0_17, %c0_18] : memref<1x1x128xf32, #tpu.memory_space<vmem>>, vector<1x1x128xf32>
      %34 = vector.shape_cast %33 : vector<1x1x128xf32> to vector<1x128xf32>
      %cst_19 = arith.constant 9.99999974E-6 : f32
      %35 = vector.broadcast %cst_19 : f32 to vector<1x128xf32>
      %36 = arith.addf %30, %35 : vector<1x128xf32>
      %37 = math.rsqrt %36 : vector<1x128xf32>
      %38 = arith.mulf %34, %37 : vector<1x128xf32>
      %c0_20 = arith.constant 0 : index
      %c0_21 = arith.constant 0 : index
      %39 = vector.load %arg16[%c0_20, %c0_21] : memref<1x128xf32, #tpu.memory_space<vmem>>, vector<1x128xf32>
      tpu.vector_store %arg16[%c0_20, %c0_21], %38 {strides = array<i32>} : memref<1x128xf32, #tpu.memory_space<vmem>>, vector<1x128xf32>,
      %c0_22 = arith.constant 0 : index
      %c0_23 = arith.constant 0 : index
      %c0_24 = arith.constant 0 : index
      %40 = vector.load %arg8[%c0_22, %c0_23, %c0_24] : memref<1x1x128xf32, #tpu.memory_space<vmem>>, vector<1x1x128xf32>
      %41 = vector.shape_cast %40 : vector<1x1x128xf32> to vector<1x128xf32>
      %42 = arith.mulf %32, %38 : vector<1x128xf32>
      %43 = arith.subf %41, %42 : vector<1x128xf32>
      %c0_25 = arith.constant 0 : index
      %c0_26 = arith.constant 0 : index
      %44 = vector.load %arg17[%c0_25, %c0_26] : memref<1x128xf32, #tpu.memory_space<vmem>>, vector<1x128xf32>
      tpu.vector_store %arg17[%c0_25, %c0_26], %43 {strides = array<i32>} : memref<1x128xf32, #tpu.memory_space<vmem>>, vector<1x128xf32>,
      %cst_27 = arith.constant 0.000000e+00 : f32
      %45 = vector.broadcast %cst_27 : f32 to vector<1x128xf32>
      %c0_28 = arith.constant 0 : index
      %c0_29 = arith.constant 0 : index
      %46 = vector.load %arg14[%c0_28, %c0_29] : memref<1x128xf32, #tpu.memory_space<vmem>>, vector<1x128xf32>
      tpu.vector_store %arg14[%c0_28, %c0_29], %45 {strides = array<i32>} : memref<1x128xf32, #tpu.memory_space<vmem>>, vector<1x128xf32>,
      %cst_30 = arith.constant 0.000000e+00 : f32
      %47 = vector.broadcast %cst_30 : f32 to vector<1x128xf32>
      %c0_31 = arith.constant 0 : index
      %c0_32 = arith.constant 0 : index
      %48 = vector.load %arg15[%c0_31, %c0_32] : memref<1x128xf32, #tpu.memory_space<vmem>>, vector<1x128xf32>
      tpu.vector_store %arg15[%c0_31, %c0_32], %47 {strides = array<i32>} : memref<1x128xf32, #tpu.memory_space<vmem>>, vector<1x128xf32>,
    } else {
    }
    %c0_i32_4 = arith.constant 0 : i32
    %10 = arith.cmpi eq, %arg0, %c0_i32_4 : i32
    %11 = arith.extui %10 : i1 to i32
    %c0_i32_5 = arith.constant 0 : i32
    %12 = arith.cmpi ne, %11, %c0_i32_5 : i32
    scf.if %12 {
      %c0 = arith.constant 0 : index
      %c0_9 = arith.constant 0 : index
      %21 = vector.load %arg4[%c0, %c0_9] : memref<1x128xf32, #tpu.memory_space<vmem>>, vector<1x128xf32>
      %c0_10 = arith.constant 0 : index
      %c0_11 = arith.constant 0 : index
      %22 = vector.load %arg2[%c0_10, %c0_11] : memref<304x128xf32, #tpu.memory_space<vmem>>, vector<304x128xf32>
      %23 = arith.truncf %22 : vector<304x128xf32> to vector<304x128xbf16>
      %c0_12 = arith.constant 0 : index
      %c0_13 = arith.constant 0 : index
      %24 = vector.load %arg3[%c0_12, %c0_13] : memref<128x128xbf16, #tpu.memory_space<vmem>>, vector<128x128xbf16>
      %cst = arith.constant dense<0.000000e+00> : vector<304x128xf32>
      %25 = tpu.matmul %23, %24, %cst {dimension_numbers = #tpu.dot_dimension_numbers<[1], [0], [0], [1], [0, 0, 1, 1], [], []>} : vector<304x128xbf16>, vector<128x128xbf16>, vector<304x128xf32> -> vector<304x128xf32>
      %26 = vector.broadcast %21 : vector<1x128xf32> to vector<304x128xf32>
      %27 = arith.addf %25, %26 : vector<304x128xf32>
      %c0_i32_14 = arith.constant 0 : i32
      %28 = arith.cmpi eq, %arg1, %c0_i32_14 : i32
      %29 = arith.extui %28 : i1 to i32
      %c0_i32_15 = arith.constant 0 : i32
      %30 = arith.cmpi ne, %29, %c0_i32_15 : i32
      scf.if %30 {
        %c0_25 = arith.constant 0 : index
        %c0_26 = arith.constant 0 : index
        %48 = vector.load %arg18[%c0_25, %c0_26] : memref<1x128xf32, #tpu.memory_space<vmem>>, vector<1x128xf32>
        tpu.vector_store %arg18[%c0_25, %c0_26], %21 {strides = array<i32>} : memref<1x128xf32, #tpu.memory_space<vmem>>, vector<1x128xf32>,
      } else {
      }
      %31 = vector.broadcast %21 : vector<1x128xf32> to vector<304x128xf32>
      %32 = arith.subf %27, %31 : vector<304x128xf32>
      %c0_i32_16 = arith.constant 0 : i32
      %33 = arith.cmpi eq, %arg1, %c0_i32_16 : i32
      %34 = arith.extui %33 : i1 to i32
      %c0_i32_17 = arith.constant 0 : i32
      %35 = arith.cmpi ne, %34, %c0_i32_17 : i32
      scf.if %35 {
        %48 = tpu.iota {dimensions = array<i32: 0>} : vector<304x1xi32>
        %c304_i32 = arith.constant 304 : i32
        %49 = arith.muli %arg1, %c304_i32 : i32
        %50 = vector.broadcast %49 : i32 to vector<304x1xi32>
        %51 = arith.addi %48, %50 : vector<304x1xi32>
        %c300_i32 = arith.constant 300 : i32
        %52 = vector.broadcast %c300_i32 : i32 to vector<304x1xi32>
        %53 = arith.cmpi slt, %51, %52 : vector<304x1xi32>
        %54 = arith.extui %53 : vector<304x1xi1> to vector<304x1xi32>
        %55 = arith.sitofp %54 : vector<304x1xi32> to vector<304x1xf32>
        %56 = vector.broadcast %55 : vector<304x1xf32> to vector<304x128xf32>
        %57 = arith.mulf %32, %56 : vector<304x128xf32>
        %c0_25 = arith.constant 0 : index
        %c0_26 = arith.constant 0 : index
        %58 = vector.load %arg14[%c0_25, %c0_26] : memref<1x128xf32, #tpu.memory_space<vmem>>, vector<1x128xf32>
        %cst_27 = arith.constant dense<0.000000e+00> : vector<128xf32>
        %59 = vector.multi_reduction <add>, %57, %cst_27 [0] : vector<304x128xf32> to vector<128xf32>
        %60 = vector.shape_cast %59 : vector<128xf32> to vector<1x128xf32>
        %61 = arith.addf %58, %60 : vector<1x128xf32>
        %c0_28 = arith.constant 0 : index
        %c0_29 = arith.constant 0 : index
        %62 = vector.load %arg14[%c0_28, %c0_29] : memref<1x128xf32, #tpu.memory_space<vmem>>, vector<1x128xf32>
        tpu.vector_store %arg14[%c0_28, %c0_29], %61 {strides = array<i32>} : memref<1x128xf32, #tpu.memory_space<vmem>>, vector<1x128xf32>,
        %c0_30 = arith.constant 0 : index
        %c0_31 = arith.constant 0 : index
        %63 = vector.load %arg15[%c0_30, %c0_31] : memref<1x128xf32, #tpu.memory_space<vmem>>, vector<1x128xf32>
        %64 = arith.mulf %57, %32 : vector<304x128xf32>
        %cst_32 = arith.constant dense<0.000000e+00> : vector<128xf32>
        %65 = vector.multi_reduction <add>, %64, %cst_32 [0] : vector<304x128xf32> to vector<128xf32>
        %66 = vector.shape_cast %65 : vector<128xf32> to vector<1x128xf32>
        %67 = arith.addf %63, %66 : vector<1x128xf32>
        %c0_33 = arith.constant 0 : index
        %c0_34 = arith.constant 0 : index
        %68 = vector.load %arg15[%c0_33, %c0_34] : memref<1x128xf32, #tpu.memory_space<vmem>>, vector<1x128xf32>
        tpu.vector_store %arg15[%c0_33, %c0_34], %67 {strides = array<i32>} : memref<1x128xf32, #tpu.memory_space<vmem>>, vector<1x128xf32>,
      } else {
      }
      %c0_i32_18 = arith.constant 0 : i32
      %36 = arith.cmpi slt, %arg1, %c0_i32_18 : i32
      %37 = arith.extui %36 : i1 to i32
      %c0_i32_19 = arith.constant 0 : i32
      %38 = arith.cmpi ne, %37, %c0_i32_19 : i32
      scf.if %38 {
        %c0_25 = arith.constant 0 : index
        %c0_26 = arith.constant 0 : index
        %48 = vector.load %arg14[%c0_25, %c0_26] : memref<1x128xf32, #tpu.memory_space<vmem>>, vector<1x128xf32>
        %cst_27 = arith.constant dense<0.000000e+00> : vector<128xf32>
        %49 = vector.multi_reduction <add>, %32, %cst_27 [0] : vector<304x128xf32> to vector<128xf32>
        %50 = vector.shape_cast %49 : vector<128xf32> to vector<1x128xf32>
        %51 = arith.addf %48, %50 : vector<1x128xf32>
        %c0_28 = arith.constant 0 : index
        %c0_29 = arith.constant 0 : index
        %52 = vector.load %arg14[%c0_28, %c0_29] : memref<1x128xf32, #tpu.memory_space<vmem>>, vector<1x128xf32>
        tpu.vector_store %arg14[%c0_28, %c0_29], %51 {strides = array<i32>} : memref<1x128xf32, #tpu.memory_space<vmem>>, vector<1x128xf32>,
        %c0_30 = arith.constant 0 : index
        %c0_31 = arith.constant 0 : index
        %53 = vector.load %arg15[%c0_30, %c0_31] : memref<1x128xf32, #tpu.memory_space<vmem>>, vector<1x128xf32>
        %54 = arith.mulf %32, %32 : vector<304x128xf32>
        %cst_32 = arith.constant dense<0.000000e+00> : vector<128xf32>
        %55 = vector.multi_reduction <add>, %54, %cst_32 [0] : vector<304x128xf32> to vector<128xf32>
        %56 = vector.shape_cast %55 : vector<128xf32> to vector<1x128xf32>
        %57 = arith.addf %53, %56 : vector<1x128xf32>
        %c0_33 = arith.constant 0 : index
        %c0_34 = arith.constant 0 : index
        %58 = vector.load %arg15[%c0_33, %c0_34] : memref<1x128xf32, #tpu.memory_space<vmem>>, vector<1x128xf32>
        tpu.vector_store %arg15[%c0_33, %c0_34], %57 {strides = array<i32>} : memref<1x128xf32, #tpu.memory_space<vmem>>, vector<1x128xf32>,
      } else {
      }
      %39 = arith.index_cast %arg1 : i32 to index
      %c0_20 = arith.constant 0 : index
      %c0_21 = arith.constant 0 : index
      %40 = vector.load %arg12[%39, %c0_20, %c0_21] : memref<1x304x128xf32, #tpu.memory_space<vmem>>, vector<1x304x128xf32>
      %41 = vector.shape_cast %40 : vector<1x304x128xf32> to vector<304x128xf32>
      %42 = vector.shape_cast %27 : vector<304x128xf32> to vector<1x304x128xf32>
      tpu.vector_store %arg12[%39, %c0_20, %c0_21], %42 {strides = array<i32>} : memref<1x304x128xf32, #tpu.memory_space<vmem>>, vector<1x304x128xf32>,
      %cst_22 = arith.constant 0.000000e+00 : f32
      %43 = vector.broadcast %cst_22 : f32 to vector<304x128xf32>
      %44 = arith.index_cast %arg1 : i32 to index
      %c0_23 = arith.constant 0 : index
      %c0_24 = arith.constant 0 : index
      %45 = vector.load %arg13[%44, %c0_23, %c0_24] : memref<1x304x128xf32, #tpu.memory_space<vmem>>, vector<1x304x128xf32>
      %46 = vector.shape_cast %45 : vector<1x304x128xf32> to vector<304x128xf32>
      %47 = vector.shape_cast %43 : vector<304x128xf32> to vector<1x304x128xf32>
      tpu.vector_store %arg13[%44, %c0_23, %c0_24], %47 {strides = array<i32>} : memref<1x304x128xf32, #tpu.memory_space<vmem>>, vector<1x304x128xf32>,
    } else {
    }
    %c1_i32_6 = arith.constant 1 : i32
    %13 = arith.cmpi sge, %arg0, %c1_i32_6 : i32
    %c2_i32 = arith.constant 2 : i32
    %14 = arith.cmpi sle, %arg0, %c2_i32 : i32
    %15 = arith.andi %13, %14 : i1
    %16 = arith.extui %15 : i1 to i32
    %c0_i32_7 = arith.constant 0 : i32
    %17 = arith.cmpi ne, %16, %c0_i32_7 : i32
    scf.if %17 {
      %21 = arith.index_cast %arg1 : i32 to index
      %c0 = arith.constant 0 : index
      %c0_9 = arith.constant 0 : index
      %22 = vector.load %arg12[%21, %c0, %c0_9] : memref<1x304x128xf32, #tpu.memory_space<vmem>>, vector<1x304x128xf32>
      %23 = vector.shape_cast %22 : vector<1x304x128xf32> to vector<304x128xf32>
      %c0_10 = arith.constant 0 : index
      %c0_11 = arith.constant 0 : index
      %24 = vector.load %arg16[%c0_10, %c0_11] : memref<1x128xf32, #tpu.memory_space<vmem>>, vector<1x128xf32>
      %25 = vector.broadcast %24 : vector<1x128xf32> to vector<304x128xf32>
      %26 = arith.mulf %23, %25 : vector<304x128xf32>
      %c0_12 = arith.constant 0 : index
      %c0_13 = arith.constant 0 : index
      %27 = vector.load %arg17[%c0_12, %c0_13] : memref<1x128xf32, #tpu.memory_space<vmem>>, vector<1x128xf32>
      %28 = vector.broadcast %27 : vector<1x128xf32> to vector<304x128xf32>
      %29 = arith.addf %26, %28 : vector<304x128xf32>
      %30 = arith.negf %29 : vector<304x128xf32>
      %31 = math.exp %30 : vector<304x128xf32>
      %cst = arith.constant 1.000000e+00 : f32
      %32 = vector.broadcast %cst : f32 to vector<304x128xf32>
      %33 = arith.addf %32, %31 : vector<304x128xf32>
      %34 = arith.divf %32, %33 : vector<304x128xf32>
      %35 = arith.mulf %29, %34 : vector<304x128xf32>
      %36 = arith.index_cast %arg1 : i32 to index
      %c0_14 = arith.constant 0 : index
      %c0_15 = arith.constant 0 : index
      %37 = vector.load %arg13[%36, %c0_14, %c0_15] : memref<1x304x128xf32, #tpu.memory_space<vmem>>, vector<1x304x128xf32>
      %38 = vector.shape_cast %37 : vector<1x304x128xf32> to vector<304x128xf32>
      %39 = arith.addf %35, %38 : vector<304x128xf32>
      %40 = arith.index_cast %arg1 : i32 to index
      %c0_16 = arith.constant 0 : index
      %c0_17 = arith.constant 0 : index
      %41 = vector.load %arg13[%40, %c0_16, %c0_17] : memref<1x304x128xf32, #tpu.memory_space<vmem>>, vector<1x304x128xf32>
      %42 = vector.shape_cast %41 : vector<1x304x128xf32> to vector<304x128xf32>
      %43 = vector.shape_cast %39 : vector<304x128xf32> to vector<1x304x128xf32>
      tpu.vector_store %arg13[%40, %c0_16, %c0_17], %43 {strides = array<i32>} : memref<1x304x128xf32, #tpu.memory_space<vmem>>, vector<1x304x128xf32>,
      %c0_18 = arith.constant 0 : index
      %c0_19 = arith.constant 0 : index
      %c0_20 = arith.constant 0 : index
      %44 = vector.load %arg6[%c0_18, %c0_19, %c0_20] : memref<1x1x128xf32, #tpu.memory_space<vmem>>, vector<1x1x128xf32>
      %45 = vector.shape_cast %44 : vector<1x1x128xf32> to vector<1x128xf32>
      %46 = arith.truncf %39 : vector<304x128xf32> to vector<304x128xbf16>
      %c0_21 = arith.constant 0 : index
      %c0_22 = arith.constant 0 : index
      %c0_23 = arith.constant 0 : index
      %47 = vector.load %arg5[%c0_21, %c0_22, %c0_23] : memref<1x128x128xbf16, #tpu.memory_space<vmem>>, vector<1x128x128xbf16>
      %48 = vector.shape_cast %47 : vector<1x128x128xbf16> to vector<128x128xbf16>
      %cst_24 = arith.constant dense<0.000000e+00> : vector<304x128xf32>
      %49 = tpu.matmul %46, %48, %cst_24 {dimension_numbers = #tpu.dot_dimension_numbers<[1], [0], [0], [1], [0, 0, 1, 1], [], []>} : vector<304x128xbf16>, vector<128x128xbf16>, vector<304x128xf32> -> vector<304x128xf32>
      %50 = vector.broadcast %45 : vector<1x128xf32> to vector<304x128xf32>
      %51 = arith.addf %49, %50 : vector<304x128xf32>
      %c0_i32_25 = arith.constant 0 : i32
      %52 = arith.cmpi eq, %arg1, %c0_i32_25 : i32
      %53 = arith.extui %52 : i1 to i32
      %c0_i32_26 = arith.constant 0 : i32
      %54 = arith.cmpi ne, %53, %c0_i32_26 : i32
      scf.if %54 {
        %c0_33 = arith.constant 0 : index
        %c0_34 = arith.constant 0 : index
        %67 = vector.load %arg18[%c0_33, %c0_34] : memref<1x128xf32, #tpu.memory_space<vmem>>, vector<1x128xf32>
        tpu.vector_store %arg18[%c0_33, %c0_34], %45 {strides = array<i32>} : memref<1x128xf32, #tpu.memory_space<vmem>>, vector<1x128xf32>,
      } else {
      }
      %55 = vector.broadcast %45 : vector<1x128xf32> to vector<304x128xf32>
      %56 = arith.subf %51, %55 : vector<304x128xf32>
      %c0_i32_27 = arith.constant 0 : i32
      %57 = arith.cmpi eq, %arg1, %c0_i32_27 : i32
      %58 = arith.extui %57 : i1 to i32
      %c0_i32_28 = arith.constant 0 : i32
      %59 = arith.cmpi ne, %58, %c0_i32_28 : i32
      scf.if %59 {
        %67 = tpu.iota {dimensions = array<i32: 0>} : vector<304x1xi32>
        %c304_i32 = arith.constant 304 : i32
        %68 = arith.muli %arg1, %c304_i32 : i32
        %69 = vector.broadcast %68 : i32 to vector<304x1xi32>
        %70 = arith.addi %67, %69 : vector<304x1xi32>
        %c300_i32 = arith.constant 300 : i32
        %71 = vector.broadcast %c300_i32 : i32 to vector<304x1xi32>
        %72 = arith.cmpi slt, %70, %71 : vector<304x1xi32>
        %73 = arith.extui %72 : vector<304x1xi1> to vector<304x1xi32>
        %74 = arith.sitofp %73 : vector<304x1xi32> to vector<304x1xf32>
        %75 = vector.broadcast %74 : vector<304x1xf32> to vector<304x128xf32>
        %76 = arith.mulf %56, %75 : vector<304x128xf32>
        %c0_33 = arith.constant 0 : index
        %c0_34 = arith.constant 0 : index
        %77 = vector.load %arg14[%c0_33, %c0_34] : memref<1x128xf32, #tpu.memory_space<vmem>>, vector<1x128xf32>
        %cst_35 = arith.constant dense<0.000000e+00> : vector<128xf32>
        %78 = vector.multi_reduction <add>, %76, %cst_35 [0] : vector<304x128xf32> to vector<128xf32>
        %79 = vector.shape_cast %78 : vector<128xf32> to vector<1x128xf32>
        %80 = arith.addf %77, %79 : vector<1x128xf32>
        %c0_36 = arith.constant 0 : index
        %c0_37 = arith.constant 0 : index
        %81 = vector.load %arg14[%c0_36, %c0_37] : memref<1x128xf32, #tpu.memory_space<vmem>>, vector<1x128xf32>
        tpu.vector_store %arg14[%c0_36, %c0_37], %80 {strides = array<i32>} : memref<1x128xf32, #tpu.memory_space<vmem>>, vector<1x128xf32>,
        %c0_38 = arith.constant 0 : index
        %c0_39 = arith.constant 0 : index
        %82 = vector.load %arg15[%c0_38, %c0_39] : memref<1x128xf32, #tpu.memory_space<vmem>>, vector<1x128xf32>
        %83 = arith.mulf %76, %56 : vector<304x128xf32>
        %cst_40 = arith.constant dense<0.000000e+00> : vector<128xf32>
        %84 = vector.multi_reduction <add>, %83, %cst_40 [0] : vector<304x128xf32> to vector<128xf32>
        %85 = vector.shape_cast %84 : vector<128xf32> to vector<1x128xf32>
        %86 = arith.addf %82, %85 : vector<1x128xf32>
        %c0_41 = arith.constant 0 : index
        %c0_42 = arith.constant 0 : index
        %87 = vector.load %arg15[%c0_41, %c0_42] : memref<1x128xf32, #tpu.memory_space<vmem>>, vector<1x128xf32>
        tpu.vector_store %arg15[%c0_41, %c0_42], %86 {strides = array<i32>} : memref<1x128xf32, #tpu.memory_space<vmem>>, vector<1x128xf32>,
      } else {
      }
      %c0_i32_29 = arith.constant 0 : i32
      %60 = arith.cmpi slt, %arg1, %c0_i32_29 : i32
      %61 = arith.extui %60 : i1 to i32
      %c0_i32_30 = arith.constant 0 : i32
      %62 = arith.cmpi ne, %61, %c0_i32_30 : i32
      scf.if %62 {
        %c0_33 = arith.constant 0 : index
        %c0_34 = arith.constant 0 : index
        %67 = vector.load %arg14[%c0_33, %c0_34] : memref<1x128xf32, #tpu.memory_space<vmem>>, vector<1x128xf32>
        %cst_35 = arith.constant dense<0.000000e+00> : vector<128xf32>
        %68 = vector.multi_reduction <add>, %56, %cst_35 [0] : vector<304x128xf32> to vector<128xf32>
        %69 = vector.shape_cast %68 : vector<128xf32> to vector<1x128xf32>
        %70 = arith.addf %67, %69 : vector<1x128xf32>
        %c0_36 = arith.constant 0 : index
        %c0_37 = arith.constant 0 : index
        %71 = vector.load %arg14[%c0_36, %c0_37] : memref<1x128xf32, #tpu.memory_space<vmem>>, vector<1x128xf32>
        tpu.vector_store %arg14[%c0_36, %c0_37], %70 {strides = array<i32>} : memref<1x128xf32, #tpu.memory_space<vmem>>, vector<1x128xf32>,
        %c0_38 = arith.constant 0 : index
        %c0_39 = arith.constant 0 : index
        %72 = vector.load %arg15[%c0_38, %c0_39] : memref<1x128xf32, #tpu.memory_space<vmem>>, vector<1x128xf32>
        %73 = arith.mulf %56, %56 : vector<304x128xf32>
        %cst_40 = arith.constant dense<0.000000e+00> : vector<128xf32>
        %74 = vector.multi_reduction <add>, %73, %cst_40 [0] : vector<304x128xf32> to vector<128xf32>
        %75 = vector.shape_cast %74 : vector<128xf32> to vector<1x128xf32>
        %76 = arith.addf %72, %75 : vector<1x128xf32>
        %c0_41 = arith.constant 0 : index
        %c0_42 = arith.constant 0 : index
        %77 = vector.load %arg15[%c0_41, %c0_42] : memref<1x128xf32, #tpu.memory_space<vmem>>, vector<1x128xf32>
        tpu.vector_store %arg15[%c0_41, %c0_42], %76 {strides = array<i32>} : memref<1x128xf32, #tpu.memory_space<vmem>>, vector<1x128xf32>,
      } else {
      }
      %63 = arith.index_cast %arg1 : i32 to index
      %c0_31 = arith.constant 0 : index
      %c0_32 = arith.constant 0 : index
      %64 = vector.load %arg12[%63, %c0_31, %c0_32] : memref<1x304x128xf32, #tpu.memory_space<vmem>>, vector<1x304x128xf32>
      %65 = vector.shape_cast %64 : vector<1x304x128xf32> to vector<304x128xf32>
      %66 = vector.shape_cast %51 : vector<304x128xf32> to vector<1x304x128xf32>
      tpu.vector_store %arg12[%63, %c0_31, %c0_32], %66 {strides = array<i32>} : memref<1x304x128xf32, #tpu.memory_space<vmem>>, vector<1x304x128xf32>,
    } else {
    }
    %c3_i32 = arith.constant 3 : i32
    %18 = arith.cmpi eq, %arg0, %c3_i32 : i32
    %19 = arith.extui %18 : i1 to i32
    %c0_i32_8 = arith.constant 0 : i32
    %20 = arith.cmpi ne, %19, %c0_i32_8 : i32
    scf.if %20 {
      %21 = arith.index_cast %arg1 : i32 to index
      %c0 = arith.constant 0 : index
      %c0_9 = arith.constant 0 : index
      %22 = vector.load %arg12[%21, %c0, %c0_9] : memref<1x304x128xf32, #tpu.memory_space<vmem>>, vector<1x304x128xf32>
      %23 = vector.shape_cast %22 : vector<1x304x128xf32> to vector<304x128xf32>
      %c0_10 = arith.constant 0 : index
      %c0_11 = arith.constant 0 : index
      %24 = vector.load %arg16[%c0_10, %c0_11] : memref<1x128xf32, #tpu.memory_space<vmem>>, vector<1x128xf32>
      %25 = vector.broadcast %24 : vector<1x128xf32> to vector<304x128xf32>
      %26 = arith.mulf %23, %25 : vector<304x128xf32>
      %c0_12 = arith.constant 0 : index
      %c0_13 = arith.constant 0 : index
      %27 = vector.load %arg17[%c0_12, %c0_13] : memref<1x128xf32, #tpu.memory_space<vmem>>, vector<1x128xf32>
      %28 = vector.broadcast %27 : vector<1x128xf32> to vector<304x128xf32>
      %29 = arith.addf %26, %28 : vector<304x128xf32>
      %30 = arith.negf %29 : vector<304x128xf32>
      %31 = math.exp %30 : vector<304x128xf32>
      %cst = arith.constant 1.000000e+00 : f32
      %32 = vector.broadcast %cst : f32 to vector<304x128xf32>
      %33 = arith.addf %32, %31 : vector<304x128xf32>
      %34 = arith.divf %32, %33 : vector<304x128xf32>
      %35 = arith.mulf %29, %34 : vector<304x128xf32>
      %36 = arith.index_cast %arg1 : i32 to index
      %c0_14 = arith.constant 0 : index
      %c0_15 = arith.constant 0 : index
      %37 = vector.load %arg13[%36, %c0_14, %c0_15] : memref<1x304x128xf32, #tpu.memory_space<vmem>>, vector<1x304x128xf32>
      %38 = vector.shape_cast %37 : vector<1x304x128xf32> to vector<304x128xf32>
      %39 = arith.addf %35, %38 : vector<304x128xf32>
      %c0_16 = arith.constant 0 : index
      %c0_17 = arith.constant 0 : index
      %40 = vector.load %arg9[%c0_16, %c0_17] : memref<1x128xf32, #tpu.memory_space<vmem>>, vector<1x128xf32>
      %41 = vector.broadcast %40 : vector<1x128xf32> to vector<304x128xf32>
      %42 = arith.mulf %39, %41 : vector<304x128xf32>
      %cst_18 = arith.constant dense<0.000000e+00> : vector<304xf32>
      %43 = vector.multi_reduction <add>, %42, %cst_18 [1] : vector<304x128xf32> to vector<304xf32>
      %44 = vector.shape_cast %43 : vector<304xf32> to vector<1x304xf32>
      %c0_19 = arith.constant 0 : index
      %c0_20 = arith.constant 0 : index
      %45 = vector.load %arg10[%c0_19, %c0_20] : memref<1x1xf32, #tpu.memory_space<vmem>>, vector<1x1xf32>
      %46 = vector.broadcast %45 : vector<1x1xf32> to vector<1x304xf32>
      %47 = arith.addf %44, %46 : vector<1x304xf32>
      %c0_21 = arith.constant 0 : index
      %c0_22 = arith.constant 0 : index
      %48 = vector.load %arg11[%c0_21, %c0_22] : memref<1x304xf32, #tpu.memory_space<vmem>>, vector<1x304xf32>
      tpu.vector_store %arg11[%c0_21, %c0_22], %47 {strides = array<i32>} : memref<1x304xf32, #tpu.memory_space<vmem>>, vector<1x304xf32>,
    } else {
    }
    return
  }
  func.func @transform_0(%arg0: i32, %arg1: i32) -> (i32, i32) {
    %c0_i32 = arith.constant 0 : i32
    %0 = arith.cmpi eq, %arg0, %c0_i32 : i32
    %c0_i32_0 = arith.constant 0 : i32
    %1 = arith.select %0, %arg1, %c0_i32_0 : i32
    %c0_i32_1 = arith.constant 0 : i32
    %c0_i32_2 = arith.constant 0 : i32
    return %1, %c0_i32_1 : i32, i32
  }
  func.func @transform_1(%arg0: i32, %arg1: i32) -> (i32, i32) {
    %c0_i32 = arith.constant 0 : i32
    %c0_i32_0 = arith.constant 0 : i32
    %c0_i32_1 = arith.constant 0 : i32
    return %c0_i32, %c0_i32_0 : i32, i32
  }
  func.func @transform_2(%arg0: i32, %arg1: i32) -> (i32, i32) {
    %c0_i32 = arith.constant 0 : i32
    %c0_i32_0 = arith.constant 0 : i32
    %c0_i32_1 = arith.constant 0 : i32
    return %c0_i32, %c0_i32_0 : i32, i32
  }
  func.func @transform_3(%arg0: i32, %arg1: i32) -> (i32, i32, i32) {
    %c1_i32 = arith.constant 1 : i32
    %0 = arith.subi %arg0, %c1_i32 : i32
    %c0_i32 = arith.constant 0 : i32
    %c1_i32_0 = arith.constant 1 : i32
    %1 = arith.maxsi %c0_i32, %0 : i32
    %2 = arith.minsi %c1_i32_0, %1 : i32
    %c0_i32_1 = arith.constant 0 : i32
    %c0_i32_2 = arith.constant 0 : i32
    %c0_i32_3 = arith.constant 0 : i32
    return %2, %c0_i32_1, %c0_i32_2 : i32, i32, i32
  }
  func.func @transform_4(%arg0: i32, %arg1: i32) -> (i32, i32, i32) {
    %c1_i32 = arith.constant 1 : i32
    %0 = arith.subi %arg0, %c1_i32 : i32
    %c0_i32 = arith.constant 0 : i32
    %c1_i32_0 = arith.constant 1 : i32
    %1 = arith.maxsi %c0_i32, %0 : i32
    %2 = arith.minsi %c1_i32_0, %1 : i32
    %c0_i32_1 = arith.constant 0 : i32
    %c0_i32_2 = arith.constant 0 : i32
    %c0_i32_3 = arith.constant 0 : i32
    return %2, %c0_i32_1, %c0_i32_2 : i32, i32, i32
  }
  func.func @transform_5(%arg0: i32, %arg1: i32) -> (i32, i32, i32) {
    %c1_i32 = arith.constant 1 : i32
    %0 = arith.subi %arg0, %c1_i32 : i32
    %c0_i32 = arith.constant 0 : i32
    %c2_i32 = arith.constant 2 : i32
    %1 = arith.maxsi %c0_i32, %0 : i32
    %2 = arith.minsi %c2_i32, %1 : i32
    %c0_i32_0 = arith.constant 0 : i32
    %c0_i32_1 = arith.constant 0 : i32
    %c0_i32_2 = arith.constant 0 : i32
    return %2, %c0_i32_0, %c0_i32_1 : i32, i32, i32
  }
  func.func @transform_6(%arg0: i32, %arg1: i32) -> (i32, i32, i32) {
    %c1_i32 = arith.constant 1 : i32
    %0 = arith.subi %arg0, %c1_i32 : i32
    %c0_i32 = arith.constant 0 : i32
    %c2_i32 = arith.constant 2 : i32
    %1 = arith.maxsi %c0_i32, %0 : i32
    %2 = arith.minsi %c2_i32, %1 : i32
    %c0_i32_0 = arith.constant 0 : i32
    %c0_i32_1 = arith.constant 0 : i32
    %c0_i32_2 = arith.constant 0 : i32
    return %2, %c0_i32_0, %c0_i32_1 : i32, i32, i32
  }
  func.func @transform_7(%arg0: i32, %arg1: i32) -> (i32, i32) {
    %c0_i32 = arith.constant 0 : i32
    %c0_i32_0 = arith.constant 0 : i32
    %c0_i32_1 = arith.constant 0 : i32
    return %c0_i32, %c0_i32_0 : i32, i32
  }
  func.func @transform_8(%arg0: i32, %arg1: i32) -> (i32, i32) {
    %c0_i32 = arith.constant 0 : i32
    %c0_i32_0 = arith.constant 0 : i32
    %c0_i32_1 = arith.constant 0 : i32
    return %c0_i32, %c0_i32_0 : i32, i32
  }
  func.func @transform_9(%arg0: i32, %arg1: i32) -> (i32, i32) {
    %c3_i32 = arith.constant 3 : i32
    %0 = arith.cmpi eq, %arg0, %c3_i32 : i32
    %c0_i32 = arith.constant 0 : i32
    %1 = arith.select %0, %arg1, %c0_i32 : i32
    %c0_i32_0 = arith.constant 0 : i32
    %c0_i32_1 = arith.constant 0 : i32
    return %c0_i32_0, %1 : i32, i32
  }
}

module attributes {stable_mosaic.version = 11 : i64} {
  func.func @_qoe_kernel(%arg0: i32, %arg1: i32, %arg2: memref<304x128xf32, #tpu.memory_space<vmem>>, %arg3: memref<128x128xbf16, #tpu.memory_space<vmem>>, %arg4: memref<1x128xf32, #tpu.memory_space<vmem>>, %arg5: memref<1x128x128xbf16, #tpu.memory_space<vmem>>, %arg6: memref<1x1x128xf32, #tpu.memory_space<vmem>>, %arg7: memref<1x1x128xf32, #tpu.memory_space<vmem>>, %arg8: memref<1x1x128xf32, #tpu.memory_space<vmem>>, %arg9: memref<1x128xf32, #tpu.memory_space<vmem>>, %arg10: memref<1x1xf32, #tpu.memory_space<vmem>>, %arg11: memref<1x304xf32, #tpu.memory_space<vmem>>, %arg12: memref<1x304x128xf32, #tpu.memory_space<vmem>>, %arg13: memref<1x304x128xf32, #tpu.memory_space<vmem>>, %arg14: memref<1x128xf32, #tpu.memory_space<vmem>>, %arg15: memref<1x128xf32, #tpu.memory_space<vmem>>, %arg16: memref<1x128xf32, #tpu.memory_space<vmem>>, %arg17: memref<1x128xf32, #tpu.memory_space<vmem>>, %arg18: memref<1x128xf32, #tpu.memory_space<vmem>>) attributes {dimension_semantics = [#tpu.dimension_semantics<arbitrary>, #tpu.dimension_semantics<arbitrary>], iteration_bounds = array<i64: 4, 1>, scalar_prefetch = 0 : i64, scratch_operands = 7 : i64, tpu.core_type = #tpu.core_type<tc>, window_params = [{transform_indices = @transform_0, window_bounds = array<i64: 304, 128>}, {pipeline_mode = #tpu.pipeline_mode<synchronous>, transform_indices = @transform_1, window_bounds = array<i64: 128, 128>}, {pipeline_mode = #tpu.pipeline_mode<synchronous>, transform_indices = @transform_2, window_bounds = array<i64: 1, 128>}, {transform_indices = @transform_3, window_bounds = array<i64: 1, 128, 128>}, {transform_indices = @transform_4, window_bounds = array<i64: 1, 1, 128>}, {transform_indices = @transform_5, window_bounds = array<i64: 1, 1, 128>}, {transform_indices = @transform_6, window_bounds = array<i64: 1, 1, 128>}, {pipeline_mode = #tpu.pipeline_mode<synchronous>, transform_indices = @transform_7, window_bounds = array<i64: 1, 128>}, {pipeline_mode = #tpu.pipeline_mode<synchronous>, transform_indices = @transform_8, window_bounds = array<i64: 1, 1>}, {transform_indices = @transform_9, window_bounds = array<i64: 1, 304>}]} {
    %c0_i32 = arith.constant 0 : i32
    %0 = arith.cmpi eq, %arg0, %c0_i32 : i32
    %c0_i32_0 = arith.constant 0 : i32
    %1 = arith.cmpi eq, %arg1, %c0_i32_0 : i32
    %2 = arith.andi %0, %1 : i1
    %3 = arith.extui %2 : i1 to i32
    %c0_i32_1 = arith.constant 0 : i32
    %4 = arith.cmpi ne, %3, %c0_i32_1 : i32
    scf.if %4 {
      %cst = arith.constant 0.000000e+00 : f32
      %21 = vector.broadcast %cst : f32 to vector<1x128xf32>
      %c0 = arith.constant 0 : index
      %c0_9 = arith.constant 0 : index
      %22 = vector.load %arg14[%c0, %c0_9] : memref<1x128xf32, #tpu.memory_space<vmem>>, vector<1x128xf32>
      tpu.vector_store %arg14[%c0, %c0_9], %21 {strides = array<i32>} : memref<1x128xf32, #tpu.memory_space<vmem>>, vector<1x128xf32>,
      %cst_10 = arith.constant 0.000000e+00 : f32
      %23 = vector.broadcast %cst_10 : f32 to vector<1x128xf32>
      %c0_11 = arith.constant 0 : index
      %c0_12 = arith.constant 0 : index
      %24 = vector.load %arg15[%c0_11, %c0_12] : memref<1x128xf32, #tpu.memory_space<vmem>>, vector<1x128xf32>
      tpu.vector_store %arg15[%c0_11, %c0_12], %23 {strides = array<i32>} : memref<1x128xf32, #tpu.memory_space<vmem>>, vector<1x128xf32>,
    } else {
    }
    %c1_i32 = arith.constant 1 : i32
    %5 = arith.cmpi sge, %arg0, %c1_i32 : i32
    %c0_i32_2 = arith.constant 0 : i32
    %6 = arith.cmpi eq, %arg1, %c0_i32_2 : i32
    %7 = arith.andi %5, %6 : i1
    %8 = arith.extui %7 : i1 to i32
    %c0_i32_3 = arith.constant 0 : i32
    %9 = arith.cmpi ne, %8, %c0_i32_3 : i32
    scf.if %9 {
      %c0 = arith.constant 0 : index
      %c0_9 = arith.constant 0 : index
      %21 = vector.load %arg14[%c0, %c0_9] : memref<1x128xf32, #tpu.memory_space<vmem>>, vector<1x128xf32>
      %cst = arith.constant 0.00333333341 : f32
      %22 = vector.broadcast %cst : f32 to vector<1x128xf32>
      %23 = arith.mulf %21, %22 : vector<1x128xf32>
      %c0_10 = arith.constant 0 : index
      %c0_11 = arith.constant 0 : index
      %24 = vector.load %arg15[%c0_10, %c0_11] : memref<1x128xf32, #tpu.memory_space<vmem>>, vector<1x128xf32>
      %cst_12 = arith.constant 0.00333333341 : f32
      %25 = vector.broadcast %cst_12 : f32 to vector<1x128xf32>
      %26 = arith.mulf %24, %25 : vector<1x128xf32>
      %27 = arith.mulf %23, %23 : vector<1x128xf32>
      %28 = arith.subf %26, %27 : vector<1x128xf32>
      %cst_13 = arith.constant 0.000000e+00 : f32
      %29 = vector.broadcast %cst_13 : f32 to vector<1x128xf32>
      %30 = arith.maximumf %28, %29 : vector<1x128xf32>
      %c0_14 = arith.constant 0 : index
      %c0_15 = arith.constant 0 : index
      %31 = vector.load %arg18[%c0_14, %c0_15] : memref<1x128xf32, #tpu.memory_space<vmem>>, vector<1x128xf32>
      %32 = arith.addf %31, %23 : vector<1x128xf32>
      %c0_16 = arith.constant 0 : index
      %c0_17 = arith.constant 0 : index
      %c0_18 = arith.constant 0 : index
      %33 = vector.load %arg7[%c0_16, %c0_17, %c0_18] : memref<1x1x128xf32, #tpu.memory_space<vmem>>, vector<1x1x128xf32>
      %34 = vector.shape_cast %33 : vector<1x1x128xf32> to vector<1x128xf32>
      %cst_19 = arith.constant 9.99999974E-6 : f32
      %35 = vector.broadcast %cst_19 : f32 to vector<1x128xf32>
      %36 = arith.addf %30, %35 : vector<1x128xf32>
      %37 = math.rsqrt %36 : vector<1x128xf32>
      %38 = arith.mulf %34, %37 : vector<1x128xf32>
      %c0_20 = arith.constant 0 : index
      %c0_21 = arith.constant 0 : index
      %39 = vector.load %arg16[%c0_20, %c0_21] : memref<1x128xf32, #tpu.memory_space<vmem>>, vector<1x128xf32>
      tpu.vector_store %arg16[%c0_20, %c0_21], %38 {strides = array<i32>} : memref<1x128xf32, #tpu.memory_space<vmem>>, vector<1x128xf32>,
      %c0_22 = arith.constant 0 : index
      %c0_23 = arith.constant 0 : index
      %c0_24 = arith.constant 0 : index
      %40 = vector.load %arg8[%c0_22, %c0_23, %c0_24] : memref<1x1x128xf32, #tpu.memory_space<vmem>>, vector<1x1x128xf32>
      %41 = vector.shape_cast %40 : vector<1x1x128xf32> to vector<1x128xf32>
      %42 = arith.mulf %32, %38 : vector<1x128xf32>
      %43 = arith.subf %41, %42 : vector<1x128xf32>
      %c0_25 = arith.constant 0 : index
      %c0_26 = arith.constant 0 : index
      %44 = vector.load %arg17[%c0_25, %c0_26] : memref<1x128xf32, #tpu.memory_space<vmem>>, vector<1x128xf32>
      tpu.vector_store %arg17[%c0_25, %c0_26], %43 {strides = array<i32>} : memref<1x128xf32, #tpu.memory_space<vmem>>, vector<1x128xf32>,
      %cst_27 = arith.constant 0.000000e+00 : f32
      %45 = vector.broadcast %cst_27 : f32 to vector<1x128xf32>
      %c0_28 = arith.constant 0 : index
      %c0_29 = arith.constant 0 : index
      %46 = vector.load %arg14[%c0_28, %c0_29] : memref<1x128xf32, #tpu.memory_space<vmem>>, vector<1x128xf32>
      tpu.vector_store %arg14[%c0_28, %c0_29], %45 {strides = array<i32>} : memref<1x128xf32, #tpu.memory_space<vmem>>, vector<1x128xf32>,
      %cst_30 = arith.constant 0.000000e+00 : f32
      %47 = vector.broadcast %cst_30 : f32 to vector<1x128xf32>
      %c0_31 = arith.constant 0 : index
      %c0_32 = arith.constant 0 : index
      %48 = vector.load %arg15[%c0_31, %c0_32] : memref<1x128xf32, #tpu.memory_space<vmem>>, vector<1x128xf32>
      tpu.vector_store %arg15[%c0_31, %c0_32], %47 {strides = array<i32>} : memref<1x128xf32, #tpu.memory_space<vmem>>, vector<1x128xf32>,
    } else {
    }
    %c0_i32_4 = arith.constant 0 : i32
    %10 = arith.cmpi eq, %arg0, %c0_i32_4 : i32
    %11 = arith.extui %10 : i1 to i32
    %c0_i32_5 = arith.constant 0 : i32
    %12 = arith.cmpi ne, %11, %c0_i32_5 : i32
    scf.if %12 {
      %c0 = arith.constant 0 : index
      %c0_9 = arith.constant 0 : index
      %21 = vector.load %arg4[%c0, %c0_9] : memref<1x128xf32, #tpu.memory_space<vmem>>, vector<1x128xf32>
      %c0_10 = arith.constant 0 : index
      %c0_11 = arith.constant 0 : index
      %22 = vector.load %arg2[%c0_10, %c0_11] : memref<304x128xf32, #tpu.memory_space<vmem>>, vector<304x128xf32>
      %23 = arith.truncf %22 : vector<304x128xf32> to vector<304x128xbf16>
      %c0_12 = arith.constant 0 : index
      %c0_13 = arith.constant 0 : index
      %24 = vector.load %arg3[%c0_12, %c0_13] : memref<128x128xbf16, #tpu.memory_space<vmem>>, vector<128x128xbf16>
      %cst = arith.constant dense<0.000000e+00> : vector<304x128xf32>
      %25 = tpu.matmul %23, %24, %cst {dimension_numbers = #tpu.dot_dimension_numbers<[1], [0], [0], [1], [0, 0, 1, 1], [], []>} : vector<304x128xbf16>, vector<128x128xbf16>, vector<304x128xf32> -> vector<304x128xf32>
      %26 = vector.broadcast %21 : vector<1x128xf32> to vector<304x128xf32>
      %27 = arith.addf %25, %26 : vector<304x128xf32>
      %c0_i32_14 = arith.constant 0 : i32
      %28 = arith.cmpi eq, %arg1, %c0_i32_14 : i32
      %29 = arith.extui %28 : i1 to i32
      %c0_i32_15 = arith.constant 0 : i32
      %30 = arith.cmpi ne, %29, %c0_i32_15 : i32
      scf.if %30 {
        %c0_25 = arith.constant 0 : index
        %c0_26 = arith.constant 0 : index
        %48 = vector.load %arg18[%c0_25, %c0_26] : memref<1x128xf32, #tpu.memory_space<vmem>>, vector<1x128xf32>
        tpu.vector_store %arg18[%c0_25, %c0_26], %21 {strides = array<i32>} : memref<1x128xf32, #tpu.memory_space<vmem>>, vector<1x128xf32>,
      } else {
      }
      %31 = vector.broadcast %21 : vector<1x128xf32> to vector<304x128xf32>
      %32 = arith.subf %27, %31 : vector<304x128xf32>
      %c0_i32_16 = arith.constant 0 : i32
      %33 = arith.cmpi eq, %arg1, %c0_i32_16 : i32
      %34 = arith.extui %33 : i1 to i32
      %c0_i32_17 = arith.constant 0 : i32
      %35 = arith.cmpi ne, %34, %c0_i32_17 : i32
      scf.if %35 {
        %48 = tpu.iota {dimensions = array<i32: 0>} : vector<304x1xi32>
        %c304_i32 = arith.constant 304 : i32
        %49 = arith.muli %arg1, %c304_i32 : i32
        %50 = vector.broadcast %49 : i32 to vector<304x1xi32>
        %51 = arith.addi %48, %50 : vector<304x1xi32>
        %c300_i32 = arith.constant 300 : i32
        %52 = vector.broadcast %c300_i32 : i32 to vector<304x1xi32>
        %53 = arith.cmpi slt, %51, %52 : vector<304x1xi32>
        %54 = arith.extui %53 : vector<304x1xi1> to vector<304x1xi32>
        %55 = arith.sitofp %54 : vector<304x1xi32> to vector<304x1xf32>
        %56 = vector.broadcast %55 : vector<304x1xf32> to vector<304x128xf32>
        %57 = arith.mulf %32, %56 : vector<304x128xf32>
        %c0_25 = arith.constant 0 : index
        %c0_26 = arith.constant 0 : index
        %58 = vector.load %arg14[%c0_25, %c0_26] : memref<1x128xf32, #tpu.memory_space<vmem>>, vector<1x128xf32>
        %cst_27 = arith.constant dense<0.000000e+00> : vector<128xf32>
        %59 = vector.multi_reduction <add>, %57, %cst_27 [0] : vector<304x128xf32> to vector<128xf32>
        %60 = vector.shape_cast %59 : vector<128xf32> to vector<1x128xf32>
        %61 = arith.addf %58, %60 : vector<1x128xf32>
        %c0_28 = arith.constant 0 : index
        %c0_29 = arith.constant 0 : index
        %62 = vector.load %arg14[%c0_28, %c0_29] : memref<1x128xf32, #tpu.memory_space<vmem>>, vector<1x128xf32>
        tpu.vector_store %arg14[%c0_28, %c0_29], %61 {strides = array<i32>} : memref<1x128xf32, #tpu.memory_space<vmem>>, vector<1x128xf32>,
        %c0_30 = arith.constant 0 : index
        %c0_31 = arith.constant 0 : index
        %63 = vector.load %arg15[%c0_30, %c0_31] : memref<1x128xf32, #tpu.memory_space<vmem>>, vector<1x128xf32>
        %64 = arith.mulf %57, %32 : vector<304x128xf32>
        %cst_32 = arith.constant dense<0.000000e+00> : vector<128xf32>
        %65 = vector.multi_reduction <add>, %64, %cst_32 [0] : vector<304x128xf32> to vector<128xf32>
        %66 = vector.shape_cast %65 : vector<128xf32> to vector<1x128xf32>
        %67 = arith.addf %63, %66 : vector<1x128xf32>
        %c0_33 = arith.constant 0 : index
        %c0_34 = arith.constant 0 : index
        %68 = vector.load %arg15[%c0_33, %c0_34] : memref<1x128xf32, #tpu.memory_space<vmem>>, vector<1x128xf32>
        tpu.vector_store %arg15[%c0_33, %c0_34], %67 {strides = array<i32>} : memref<1x128xf32, #tpu.memory_space<vmem>>, vector<1x128xf32>,
      } else {
      }
      %c0_i32_18 = arith.constant 0 : i32
      %36 = arith.cmpi slt, %arg1, %c0_i32_18 : i32
      %37 = arith.extui %36 : i1 to i32
      %c0_i32_19 = arith.constant 0 : i32
      %38 = arith.cmpi ne, %37, %c0_i32_19 : i32
      scf.if %38 {
        %c0_25 = arith.constant 0 : index
        %c0_26 = arith.constant 0 : index
        %48 = vector.load %arg14[%c0_25, %c0_26] : memref<1x128xf32, #tpu.memory_space<vmem>>, vector<1x128xf32>
        %cst_27 = arith.constant dense<0.000000e+00> : vector<128xf32>
        %49 = vector.multi_reduction <add>, %32, %cst_27 [0] : vector<304x128xf32> to vector<128xf32>
        %50 = vector.shape_cast %49 : vector<128xf32> to vector<1x128xf32>
        %51 = arith.addf %48, %50 : vector<1x128xf32>
        %c0_28 = arith.constant 0 : index
        %c0_29 = arith.constant 0 : index
        %52 = vector.load %arg14[%c0_28, %c0_29] : memref<1x128xf32, #tpu.memory_space<vmem>>, vector<1x128xf32>
        tpu.vector_store %arg14[%c0_28, %c0_29], %51 {strides = array<i32>} : memref<1x128xf32, #tpu.memory_space<vmem>>, vector<1x128xf32>,
        %c0_30 = arith.constant 0 : index
        %c0_31 = arith.constant 0 : index
        %53 = vector.load %arg15[%c0_30, %c0_31] : memref<1x128xf32, #tpu.memory_space<vmem>>, vector<1x128xf32>
        %54 = arith.mulf %32, %32 : vector<304x128xf32>
        %cst_32 = arith.constant dense<0.000000e+00> : vector<128xf32>
        %55 = vector.multi_reduction <add>, %54, %cst_32 [0] : vector<304x128xf32> to vector<128xf32>
        %56 = vector.shape_cast %55 : vector<128xf32> to vector<1x128xf32>
        %57 = arith.addf %53, %56 : vector<1x128xf32>
        %c0_33 = arith.constant 0 : index
        %c0_34 = arith.constant 0 : index
        %58 = vector.load %arg15[%c0_33, %c0_34] : memref<1x128xf32, #tpu.memory_space<vmem>>, vector<1x128xf32>
        tpu.vector_store %arg15[%c0_33, %c0_34], %57 {strides = array<i32>} : memref<1x128xf32, #tpu.memory_space<vmem>>, vector<1x128xf32>,
      } else {
      }
      %39 = arith.index_cast %arg1 : i32 to index
      %c0_20 = arith.constant 0 : index
      %c0_21 = arith.constant 0 : index
      %40 = vector.load %arg12[%39, %c0_20, %c0_21] : memref<1x304x128xf32, #tpu.memory_space<vmem>>, vector<1x304x128xf32>
      %41 = vector.shape_cast %40 : vector<1x304x128xf32> to vector<304x128xf32>
      %42 = vector.shape_cast %27 : vector<304x128xf32> to vector<1x304x128xf32>
      tpu.vector_store %arg12[%39, %c0_20, %c0_21], %42 {strides = array<i32>} : memref<1x304x128xf32, #tpu.memory_space<vmem>>, vector<1x304x128xf32>,
      %cst_22 = arith.constant 0.000000e+00 : f32
      %43 = vector.broadcast %cst_22 : f32 to vector<304x128xf32>
      %44 = arith.index_cast %arg1 : i32 to index
      %c0_23 = arith.constant 0 : index
      %c0_24 = arith.constant 0 : index
      %45 = vector.load %arg13[%44, %c0_23, %c0_24] : memref<1x304x128xf32, #tpu.memory_space<vmem>>, vector<1x304x128xf32>
      %46 = vector.shape_cast %45 : vector<1x304x128xf32> to vector<304x128xf32>
      %47 = vector.shape_cast %43 : vector<304x128xf32> to vector<1x304x128xf32>
      tpu.vector_store %arg13[%44, %c0_23, %c0_24], %47 {strides = array<i32>} : memref<1x304x128xf32, #tpu.memory_space<vmem>>, vector<1x304x128xf32>,
    } else {
    }
    %c1_i32_6 = arith.constant 1 : i32
    %13 = arith.cmpi sge, %arg0, %c1_i32_6 : i32
    %c2_i32 = arith.constant 2 : i32
    %14 = arith.cmpi sle, %arg0, %c2_i32 : i32
    %15 = arith.andi %13, %14 : i1
    %16 = arith.extui %15 : i1 to i32
    %c0_i32_7 = arith.constant 0 : i32
    %17 = arith.cmpi ne, %16, %c0_i32_7 : i32
    scf.if %17 {
      %21 = arith.index_cast %arg1 : i32 to index
      %c0 = arith.constant 0 : index
      %c0_9 = arith.constant 0 : index
      %22 = vector.load %arg12[%21, %c0, %c0_9] : memref<1x304x128xf32, #tpu.memory_space<vmem>>, vector<1x304x128xf32>
      %23 = vector.shape_cast %22 : vector<1x304x128xf32> to vector<304x128xf32>
      %c0_10 = arith.constant 0 : index
      %c0_11 = arith.constant 0 : index
      %24 = vector.load %arg16[%c0_10, %c0_11] : memref<1x128xf32, #tpu.memory_space<vmem>>, vector<1x128xf32>
      %25 = vector.broadcast %24 : vector<1x128xf32> to vector<304x128xf32>
      %26 = arith.mulf %23, %25 : vector<304x128xf32>
      %c0_12 = arith.constant 0 : index
      %c0_13 = arith.constant 0 : index
      %27 = vector.load %arg17[%c0_12, %c0_13] : memref<1x128xf32, #tpu.memory_space<vmem>>, vector<1x128xf32>
      %28 = vector.broadcast %27 : vector<1x128xf32> to vector<304x128xf32>
      %29 = arith.addf %26, %28 : vector<304x128xf32>
      %30 = arith.negf %29 : vector<304x128xf32>
      %31 = math.exp %30 : vector<304x128xf32>
      %cst = arith.constant 1.000000e+00 : f32
      %32 = vector.broadcast %cst : f32 to vector<304x128xf32>
      %33 = arith.addf %32, %31 : vector<304x128xf32>
      %34 = arith.divf %32, %33 : vector<304x128xf32>
      %35 = arith.mulf %29, %34 : vector<304x128xf32>
      %36 = arith.index_cast %arg1 : i32 to index
      %c0_14 = arith.constant 0 : index
      %c0_15 = arith.constant 0 : index
      %37 = vector.load %arg13[%36, %c0_14, %c0_15] : memref<1x304x128xf32, #tpu.memory_space<vmem>>, vector<1x304x128xf32>
      %38 = vector.shape_cast %37 : vector<1x304x128xf32> to vector<304x128xf32>
      %39 = arith.addf %35, %38 : vector<304x128xf32>
      %40 = arith.index_cast %arg1 : i32 to index
      %c0_16 = arith.constant 0 : index
      %c0_17 = arith.constant 0 : index
      %41 = vector.load %arg13[%40, %c0_16, %c0_17] : memref<1x304x128xf32, #tpu.memory_space<vmem>>, vector<1x304x128xf32>
      %42 = vector.shape_cast %41 : vector<1x304x128xf32> to vector<304x128xf32>
      %43 = vector.shape_cast %39 : vector<304x128xf32> to vector<1x304x128xf32>
      tpu.vector_store %arg13[%40, %c0_16, %c0_17], %43 {strides = array<i32>} : memref<1x304x128xf32, #tpu.memory_space<vmem>>, vector<1x304x128xf32>,
      %c0_18 = arith.constant 0 : index
      %c0_19 = arith.constant 0 : index
      %c0_20 = arith.constant 0 : index
      %44 = vector.load %arg6[%c0_18, %c0_19, %c0_20] : memref<1x1x128xf32, #tpu.memory_space<vmem>>, vector<1x1x128xf32>
      %45 = vector.shape_cast %44 : vector<1x1x128xf32> to vector<1x128xf32>
      %46 = arith.truncf %39 : vector<304x128xf32> to vector<304x128xbf16>
      %c0_21 = arith.constant 0 : index
      %c0_22 = arith.constant 0 : index
      %c0_23 = arith.constant 0 : index
      %47 = vector.load %arg5[%c0_21, %c0_22, %c0_23] : memref<1x128x128xbf16, #tpu.memory_space<vmem>>, vector<1x128x128xbf16>
      %48 = vector.shape_cast %47 : vector<1x128x128xbf16> to vector<128x128xbf16>
      %cst_24 = arith.constant dense<0.000000e+00> : vector<304x128xf32>
      %49 = tpu.matmul %46, %48, %cst_24 {dimension_numbers = #tpu.dot_dimension_numbers<[1], [0], [0], [1], [0, 0, 1, 1], [], []>} : vector<304x128xbf16>, vector<128x128xbf16>, vector<304x128xf32> -> vector<304x128xf32>
      %50 = vector.broadcast %45 : vector<1x128xf32> to vector<304x128xf32>
      %51 = arith.addf %49, %50 : vector<304x128xf32>
      %c0_i32_25 = arith.constant 0 : i32
      %52 = arith.cmpi eq, %arg1, %c0_i32_25 : i32
      %53 = arith.extui %52 : i1 to i32
      %c0_i32_26 = arith.constant 0 : i32
      %54 = arith.cmpi ne, %53, %c0_i32_26 : i32
      scf.if %54 {
        %c0_33 = arith.constant 0 : index
        %c0_34 = arith.constant 0 : index
        %67 = vector.load %arg18[%c0_33, %c0_34] : memref<1x128xf32, #tpu.memory_space<vmem>>, vector<1x128xf32>
        tpu.vector_store %arg18[%c0_33, %c0_34], %45 {strides = array<i32>} : memref<1x128xf32, #tpu.memory_space<vmem>>, vector<1x128xf32>,
      } else {
      }
      %55 = vector.broadcast %45 : vector<1x128xf32> to vector<304x128xf32>
      %56 = arith.subf %51, %55 : vector<304x128xf32>
      %c0_i32_27 = arith.constant 0 : i32
      %57 = arith.cmpi eq, %arg1, %c0_i32_27 : i32
      %58 = arith.extui %57 : i1 to i32
      %c0_i32_28 = arith.constant 0 : i32
      %59 = arith.cmpi ne, %58, %c0_i32_28 : i32
      scf.if %59 {
        %67 = tpu.iota {dimensions = array<i32: 0>} : vector<304x1xi32>
        %c304_i32 = arith.constant 304 : i32
        %68 = arith.muli %arg1, %c304_i32 : i32
        %69 = vector.broadcast %68 : i32 to vector<304x1xi32>
        %70 = arith.addi %67, %69 : vector<304x1xi32>
        %c300_i32 = arith.constant 300 : i32
        %71 = vector.broadcast %c300_i32 : i32 to vector<304x1xi32>
        %72 = arith.cmpi slt, %70, %71 : vector<304x1xi32>
        %73 = arith.extui %72 : vector<304x1xi1> to vector<304x1xi32>
        %74 = arith.sitofp %73 : vector<304x1xi32> to vector<304x1xf32>
        %75 = vector.broadcast %74 : vector<304x1xf32> to vector<304x128xf32>
        %76 = arith.mulf %56, %75 : vector<304x128xf32>
        %c0_33 = arith.constant 0 : index
        %c0_34 = arith.constant 0 : index
        %77 = vector.load %arg14[%c0_33, %c0_34] : memref<1x128xf32, #tpu.memory_space<vmem>>, vector<1x128xf32>
        %cst_35 = arith.constant dense<0.000000e+00> : vector<128xf32>
        %78 = vector.multi_reduction <add>, %76, %cst_35 [0] : vector<304x128xf32> to vector<128xf32>
        %79 = vector.shape_cast %78 : vector<128xf32> to vector<1x128xf32>
        %80 = arith.addf %77, %79 : vector<1x128xf32>
        %c0_36 = arith.constant 0 : index
        %c0_37 = arith.constant 0 : index
        %81 = vector.load %arg14[%c0_36, %c0_37] : memref<1x128xf32, #tpu.memory_space<vmem>>, vector<1x128xf32>
        tpu.vector_store %arg14[%c0_36, %c0_37], %80 {strides = array<i32>} : memref<1x128xf32, #tpu.memory_space<vmem>>, vector<1x128xf32>,
        %c0_38 = arith.constant 0 : index
        %c0_39 = arith.constant 0 : index
        %82 = vector.load %arg15[%c0_38, %c0_39] : memref<1x128xf32, #tpu.memory_space<vmem>>, vector<1x128xf32>
        %83 = arith.mulf %76, %56 : vector<304x128xf32>
        %cst_40 = arith.constant dense<0.000000e+00> : vector<128xf32>
        %84 = vector.multi_reduction <add>, %83, %cst_40 [0] : vector<304x128xf32> to vector<128xf32>
        %85 = vector.shape_cast %84 : vector<128xf32> to vector<1x128xf32>
        %86 = arith.addf %82, %85 : vector<1x128xf32>
        %c0_41 = arith.constant 0 : index
        %c0_42 = arith.constant 0 : index
        %87 = vector.load %arg15[%c0_41, %c0_42] : memref<1x128xf32, #tpu.memory_space<vmem>>, vector<1x128xf32>
        tpu.vector_store %arg15[%c0_41, %c0_42], %86 {strides = array<i32>} : memref<1x128xf32, #tpu.memory_space<vmem>>, vector<1x128xf32>,
      } else {
      }
      %c0_i32_29 = arith.constant 0 : i32
      %60 = arith.cmpi slt, %arg1, %c0_i32_29 : i32
      %61 = arith.extui %60 : i1 to i32
      %c0_i32_30 = arith.constant 0 : i32
      %62 = arith.cmpi ne, %61, %c0_i32_30 : i32
      scf.if %62 {
        %c0_33 = arith.constant 0 : index
        %c0_34 = arith.constant 0 : index
        %67 = vector.load %arg14[%c0_33, %c0_34] : memref<1x128xf32, #tpu.memory_space<vmem>>, vector<1x128xf32>
        %cst_35 = arith.constant dense<0.000000e+00> : vector<128xf32>
        %68 = vector.multi_reduction <add>, %56, %cst_35 [0] : vector<304x128xf32> to vector<128xf32>
        %69 = vector.shape_cast %68 : vector<128xf32> to vector<1x128xf32>
        %70 = arith.addf %67, %69 : vector<1x128xf32>
        %c0_36 = arith.constant 0 : index
        %c0_37 = arith.constant 0 : index
        %71 = vector.load %arg14[%c0_36, %c0_37] : memref<1x128xf32, #tpu.memory_space<vmem>>, vector<1x128xf32>
        tpu.vector_store %arg14[%c0_36, %c0_37], %70 {strides = array<i32>} : memref<1x128xf32, #tpu.memory_space<vmem>>, vector<1x128xf32>,
        %c0_38 = arith.constant 0 : index
        %c0_39 = arith.constant 0 : index
        %72 = vector.load %arg15[%c0_38, %c0_39] : memref<1x128xf32, #tpu.memory_space<vmem>>, vector<1x128xf32>
        %73 = arith.mulf %56, %56 : vector<304x128xf32>
        %cst_40 = arith.constant dense<0.000000e+00> : vector<128xf32>
        %74 = vector.multi_reduction <add>, %73, %cst_40 [0] : vector<304x128xf32> to vector<128xf32>
        %75 = vector.shape_cast %74 : vector<128xf32> to vector<1x128xf32>
        %76 = arith.addf %72, %75 : vector<1x128xf32>
        %c0_41 = arith.constant 0 : index
        %c0_42 = arith.constant 0 : index
        %77 = vector.load %arg15[%c0_41, %c0_42] : memref<1x128xf32, #tpu.memory_space<vmem>>, vector<1x128xf32>
        tpu.vector_store %arg15[%c0_41, %c0_42], %76 {strides = array<i32>} : memref<1x128xf32, #tpu.memory_space<vmem>>, vector<1x128xf32>,
      } else {
      }
      %63 = arith.index_cast %arg1 : i32 to index
      %c0_31 = arith.constant 0 : index
      %c0_32 = arith.constant 0 : index
      %64 = vector.load %arg12[%63, %c0_31, %c0_32] : memref<1x304x128xf32, #tpu.memory_space<vmem>>, vector<1x304x128xf32>
      %65 = vector.shape_cast %64 : vector<1x304x128xf32> to vector<304x128xf32>
      %66 = vector.shape_cast %51 : vector<304x128xf32> to vector<1x304x128xf32>
      tpu.vector_store %arg12[%63, %c0_31, %c0_32], %66 {strides = array<i32>} : memref<1x304x128xf32, #tpu.memory_space<vmem>>, vector<1x304x128xf32>,
    } else {
    }
    %c3_i32 = arith.constant 3 : i32
    %18 = arith.cmpi eq, %arg0, %c3_i32 : i32
    %19 = arith.extui %18 : i1 to i32
    %c0_i32_8 = arith.constant 0 : i32
    %20 = arith.cmpi ne, %19, %c0_i32_8 : i32
    scf.if %20 {
      %21 = arith.index_cast %arg1 : i32 to index
      %c0 = arith.constant 0 : index
      %c0_9 = arith.constant 0 : index
      %22 = vector.load %arg12[%21, %c0, %c0_9] : memref<1x304x128xf32, #tpu.memory_space<vmem>>, vector<1x304x128xf32>
      %23 = vector.shape_cast %22 : vector<1x304x128xf32> to vector<304x128xf32>
      %c0_10 = arith.constant 0 : index
      %c0_11 = arith.constant 0 : index
      %24 = vector.load %arg16[%c0_10, %c0_11] : memref<1x128xf32, #tpu.memory_space<vmem>>, vector<1x128xf32>
      %25 = vector.broadcast %24 : vector<1x128xf32> to vector<304x128xf32>
      %26 = arith.mulf %23, %25 : vector<304x128xf32>
      %c0_12 = arith.constant 0 : index
      %c0_13 = arith.constant 0 : index
      %27 = vector.load %arg17[%c0_12, %c0_13] : memref<1x128xf32, #tpu.memory_space<vmem>>, vector<1x128xf32>
      %28 = vector.broadcast %27 : vector<1x128xf32> to vector<304x128xf32>
      %29 = arith.addf %26, %28 : vector<304x128xf32>
      %30 = arith.negf %29 : vector<304x128xf32>
      %31 = math.exp %30 : vector<304x128xf32>
      %cst = arith.constant 1.000000e+00 : f32
      %32 = vector.broadcast %cst : f32 to vector<304x128xf32>
      %33 = arith.addf %32, %31 : vector<304x128xf32>
      %34 = arith.divf %32, %33 : vector<304x128xf32>
      %35 = arith.mulf %29, %34 : vector<304x128xf32>
      %36 = arith.index_cast %arg1 : i32 to index
      %c0_14 = arith.constant 0 : index
      %c0_15 = arith.constant 0 : index
      %37 = vector.load %arg13[%36, %c0_14, %c0_15] : memref<1x304x128xf32, #tpu.memory_space<vmem>>, vector<1x304x128xf32>
      %38 = vector.shape_cast %37 : vector<1x304x128xf32> to vector<304x128xf32>
      %39 = arith.addf %35, %38 : vector<304x128xf32>
      %c0_16 = arith.constant 0 : index
      %c0_17 = arith.constant 0 : index
      %40 = vector.load %arg9[%c0_16, %c0_17] : memref<1x128xf32, #tpu.memory_space<vmem>>, vector<1x128xf32>
      %41 = vector.broadcast %40 : vector<1x128xf32> to vector<304x128xf32>
      %42 = arith.mulf %39, %41 : vector<304x128xf32>
      %cst_18 = arith.constant dense<0.000000e+00> : vector<304xf32>
      %43 = vector.multi_reduction <add>, %42, %cst_18 [1] : vector<304x128xf32> to vector<304xf32>
      %44 = vector.shape_cast %43 : vector<304xf32> to vector<1x304xf32>
      %c0_19 = arith.constant 0 : index
      %c0_20 = arith.constant 0 : index
      %45 = vector.load %arg10[%c0_19, %c0_20] : memref<1x1xf32, #tpu.memory_space<vmem>>, vector<1x1xf32>
      %46 = vector.broadcast %45 : vector<1x1xf32> to vector<1x304xf32>
      %47 = arith.addf %44, %46 : vector<1x304xf32>
      %c0_21 = arith.constant 0 : index
      %c0_22 = arith.constant 0 : index
      %48 = vector.load %arg11[%c0_21, %c0_22] : memref<1x304xf32, #tpu.memory_space<vmem>>, vector<1x304xf32>
      tpu.vector_store %arg11[%c0_21, %c0_22], %47 {strides = array<i32>} : memref<1x304xf32, #tpu.memory_space<vmem>>, vector<1x304xf32>,
    } else {
    }
    return
  }
  func.func @transform_0(%arg0: i32, %arg1: i32) -> (i32, i32) {
    %c0_i32 = arith.constant 0 : i32
    %0 = arith.cmpi eq, %arg0, %c0_i32 : i32
    %c0_i32_0 = arith.constant 0 : i32
    %1 = arith.select %0, %arg1, %c0_i32_0 : i32
    %c0_i32_1 = arith.constant 0 : i32
    %c0_i32_2 = arith.constant 0 : i32
    return %1, %c0_i32_1 : i32, i32
  }
  func.func @transform_1(%arg0: i32, %arg1: i32) -> (i32, i32) {
    %c0_i32 = arith.constant 0 : i32
    %c0_i32_0 = arith.constant 0 : i32
    %c0_i32_1 = arith.constant 0 : i32
    return %c0_i32, %c0_i32_0 : i32, i32
  }
  func.func @transform_2(%arg0: i32, %arg1: i32) -> (i32, i32) {
    %c0_i32 = arith.constant 0 : i32
    %c0_i32_0 = arith.constant 0 : i32
    %c0_i32_1 = arith.constant 0 : i32
    return %c0_i32, %c0_i32_0 : i32, i32
  }
  func.func @transform_3(%arg0: i32, %arg1: i32) -> (i32, i32, i32) {
    %c1_i32 = arith.constant 1 : i32
    %0 = arith.subi %arg0, %c1_i32 : i32
    %c0_i32 = arith.constant 0 : i32
    %c1_i32_0 = arith.constant 1 : i32
    %1 = arith.maxsi %c0_i32, %0 : i32
    %2 = arith.minsi %c1_i32_0, %1 : i32
    %c0_i32_1 = arith.constant 0 : i32
    %c0_i32_2 = arith.constant 0 : i32
    %c0_i32_3 = arith.constant 0 : i32
    return %2, %c0_i32_1, %c0_i32_2 : i32, i32, i32
  }
  func.func @transform_4(%arg0: i32, %arg1: i32) -> (i32, i32, i32) {
    %c1_i32 = arith.constant 1 : i32
    %0 = arith.subi %arg0, %c1_i32 : i32
    %c0_i32 = arith.constant 0 : i32
    %c1_i32_0 = arith.constant 1 : i32
    %1 = arith.maxsi %c0_i32, %0 : i32
    %2 = arith.minsi %c1_i32_0, %1 : i32
    %c0_i32_1 = arith.constant 0 : i32
    %c0_i32_2 = arith.constant 0 : i32
    %c0_i32_3 = arith.constant 0 : i32
    return %2, %c0_i32_1, %c0_i32_2 : i32, i32, i32
  }
  func.func @transform_5(%arg0: i32, %arg1: i32) -> (i32, i32, i32) {
    %c1_i32 = arith.constant 1 : i32
    %0 = arith.subi %arg0, %c1_i32 : i32
    %c0_i32 = arith.constant 0 : i32
    %c2_i32 = arith.constant 2 : i32
    %1 = arith.maxsi %c0_i32, %0 : i32
    %2 = arith.minsi %c2_i32, %1 : i32
    %c0_i32_0 = arith.constant 0 : i32
    %c0_i32_1 = arith.constant 0 : i32
    %c0_i32_2 = arith.constant 0 : i32
    return %2, %c0_i32_0, %c0_i32_1 : i32, i32, i32
  }
  func.func @transform_6(%arg0: i32, %arg1: i32) -> (i32, i32, i32) {
    %c1_i32 = arith.constant 1 : i32
    %0 = arith.subi %arg0, %c1_i32 : i32
    %c0_i32 = arith.constant 0 : i32
    %c2_i32 = arith.constant 2 : i32
    %1 = arith.maxsi %c0_i32, %0 : i32
    %2 = arith.minsi %c2_i32, %1 : i32
    %c0_i32_0 = arith.constant 0 : i32
    %c0_i32_1 = arith.constant 0 : i32
    %c0_i32_2 = arith.constant 0 : i32
    return %2, %c0_i32_0, %c0_i32_1 : i32, i32, i32
  }
  func.func @transform_7(%arg0: i32, %arg1: i32) -> (i32, i32) {
    %c0_i32 = arith.constant 0 : i32
    %c0_i32_0 = arith.constant 0 : i32
    %c0_i32_1 = arith.constant 0 : i32
    return %c0_i32, %c0_i32_0 : i32, i32
  }
  func.func @transform_8(%arg0: i32, %arg1: i32) -> (i32, i32) {
    %c0_i32 = arith.constant 0 : i32
    %c0_i32_0 = arith.constant 0 : i32
    %c0_i32_1 = arith.constant 0 : i32
    return %c0_i32, %c0_i32_0 : i32, i32
  }
  func.func @transform_9(%arg0: i32, %arg1: i32) -> (i32, i32) {
    %c3_i32 = arith.constant 3 : i32
    %0 = arith.cmpi eq, %arg0, %c3_i32 : i32
    %c0_i32 = arith.constant 0 : i32
    %1 = arith.select %0, %arg1, %c0_i32 : i32
    %c0_i32_0 = arith.constant 0 : i32
    %c0_i32_1 = arith.constant 0 : i32
    return %c0_i32_0, %1 : i32, i32
  }
}

</mosaic_0001>

<bundles_post_ra>
// kernel: tpu_custom_call.1
= control target key start
LH: loop header
LB: loop body
LE: loop exit
PB: predicated region body
PF: predicated region fallthrough
CT: control target
= control target key end

     0   :  { %s10810_s0 = inlined_call_operand.hbm [shape: f32[304,128], index: 0, kind: input, shape index: {}]   ;;  %s10811_s1 = inlined_call_operand.hbm [shape: bf16[128,128], index: 1, kind: input, shape index: {}]   ;;  %s10812_s2 = inlined_call_operand.vmem [shape: f32[1,128], index: 2, kind: input, shape index: {}]   ;;  %s10813_s3 = inlined_call_operand.hbm [shape: bf16[2,128,128], index: 3, kind: input, shape index: {}]   ;;  %s10814_s4 = inlined_call_operand.vmem [shape: f32[2,1,128], index: 4, kind: input, shape index: {}]   ;;  %s10815_s5 = inlined_call_operand.vmem [shape: f32[3,1,128], index: 5, kind: input, shape index: {}]   ;;  %s10816_s6 = inlined_call_operand.vmem [shape: f32[3,1,128], index: 6, kind: input, shape index: {}]   ;;  %s10817_s7 = inlined_call_operand.vmem [shape: f32[1,128], index: 7, kind: input, shape index: {}]   ;;  %s10818_s8 = inlined_call_operand.<no memory space> [shape: f32[1,1], index: 8, kind: input, shape index: {}]   ;;  %s10819_s9 = inlined_call_operand.hbm [shape: f32[1,304], index: 9, kind: output, shape index: {}]  }
   0x1   :  { %10837 = sst [smem:[#allocation28_spill]] %s10810_s0  ;;  %v14_v0 = vstv %s10818_s8 }
   0x2   :  { %10838 = sst [smem:[#allocation29_spill]] %s10811_s1  ;;  %15 = vst [vmem:[#allocation9] sm:$0x1] %v14_v0 }
   0x3   :  { %16 = vsyncpa [#allocation11], 0 }
   0x4   :  { %18 = vsyncpa [#allocation11 + $0x1], 0 }
   0x5   :  { %19 = vsyncpa [#allocation14], 0 }
   0x6   :  { %20 = vsyncpa [#allocation12], 0 }
   0x7   :  { %22 = vsyncpa [#allocation12 + $0x1], 0  ;;  %s8375_s11 = smov 0   ;;  %s8377_s12 = smov 0  }
   0x8   :  { %s8379_s13 = smov 0   ;;  %s8381_s14 = smov 0  }
   0x9   :  { %s8383_s15 = smov 0   ;;  %s8385_s16 = smov 0  }
   0xa LB: > { %s8306_s8 = smov [#allocation10]   ;;  %p137_p0 = scmp.eq.s32.totalorder %s8304_s16, 0  ;;  %s8304_s16 = sphi %s8385_s16, %s28_s16   ;;  %s8300_s15 = sphi %s8383_s15, %s10878_s15   ;;  %s8296_s14 = sphi %s8381_s14, %s10877_s14   ;;  %s8292_s13 = sphi %s8379_s13, %s10876_s13   ;;  %s8288_s12 = sphi %s8377_s12, %s10875_s12   ;;  %s8284_s11 = sphi %s8375_s11, %s10874_s11  }
   0xb   : > { %s381_s17 = sshll.u32 %s8306_s8, 4  ;;  %p7744_p1 = scmp.lt.s32.totalorder %s8304_s16, 4  ;;  %s382_s17 = int_to_ptr.vmem [resolvable:$true] %s381_s17 }
   0xc   : > { %s368_s19 = sand.u32 1, %s8304_s16   ;;  %s8149_s22 = scalar_lea.vmem %s382_s17, 4864 }
   0xd   : > { %p8413_p2 = pnand %p7744_p1, %p137_p0  ;;  %s8417_s21 = scalar_lea.sflag [#allocation11], %s368_s19 }
   0xe   : > { %p8150_p4 = scmp.ne.s32.totalorder %s382_s17, %s8149_s22  ;;  %s8156_s23 = scalar_lea.vmem %s382_s17, 9728 }
   0xf   : > { %p8140_p3 = pneg %p8413_p2  ;;  %p8157_p7 = scmp.lt.s32.totalorder %s382_s17, %s382_s17 }
  0x10   : > { %p8158_p8 = scmp.lt.s32.totalorder %s8156_s23, %s8149_s22 }
  0x11   : > { %p8152_p5 = pnand %p8150_p4, %p8140_p3 }
  0x12   : > { %p8159_p9 = por %p8158_p8, %p8157_p7 }
  0x13   : > { %p8153_p6 = pneg %p8152_p5 }
  0x15   : > { %p8160_p10 = pnand %p8159_p9, %p8153_p6 }
  0x17   : > { %8163 = shalt.err (!%p8160_p10)
}
  0x18   : > { %s8307_s24 = smov 128   ;;  %s8308_s25 = smov 8  }
  0x19   : > { %s10840_s0 = sld [smem:[#allocation28_spill]]  ;;  %s8428_s28 = sadd.s32 4294967295, %s8304_s16  }
  0x1a   : > { %p136_p11 = scmp.ne.s32.totalorder %s8292_s13, %s8288_s12  ;;  %p142_p12 = scmp.ne.s32.totalorder %s8288_s12, %s8284_s11 }
  0x1b   : > { %p10823_p13 = scmp.eq.s32.totalorder %s8428_s28, 0  ;;  %p7275_p4 = scmp.ge.s32.totalorder %s8304_s16, 1 }
  0x1c   : > { %p138_p3 = por %p137_p0, %p136_p11  ;;  %p333_p6 = scmp.lt.s32.totalorder %s8304_s16, 5 }
  0x1d   : > { %p8440_p5 = por %p10823_p13, %p142_p12  ;;  %s8309_s10 = smov [#allocation13]  }
  0x1e   : > { %p8445_p7 = pnand %p7275_p4, %p333_p6  ;;  %s345_s8 = sshll.u32 %s8309_s10, 4  ;;  %s346_s8 = int_to_ptr.vmem [resolvable:$true] %s345_s8 }
  0x1f   : > { %7735 = dma.hbm_to_vmem [thread:$0]  (!%p8413_p2), %s10840_s0, 4864, %s382_s17, %s8417_s21, %s8307_s24, %s8307_s24, %s8308_s25  }
  0x20   : > { %s10841_s29 = scalar_select %p8440_p5, 1, 0 }
  0x21   : > { %s10842_s30 = scalar_select %p8445_p7, 1, 0 }
  0x22   : > { %p7728_p2 = pneg %p8445_p7  ;;  %p8453_p8 = pnand %p7744_p1, %p138_p3 }
  0x23   : > { %s40_s19 = sadd.s32 1, %s8300_s15  ;;  %s8175_s22 = scalar_lea.vmem %s346_s8, 1024 }
  0x24   : > { %p8459_p0 = pnand %p7728_p2, %p10823_p13  ;;  %p8464_p9 = scmp.ge.s32.totalorder %s40_s19, 4 }
  0x25   : > { %p8176_p11 = scmp.ne.s32.totalorder %s346_s8, %s8175_s22  ;;  %p8183_p3 = scmp.lt.s32.totalorder %s346_s8, %s346_s8 }
  0x26   : > { %p8166_p10 = pneg %p8459_p0  ;;  %p8184_p4 = scmp.lt.s32.totalorder %s8175_s22, %s8175_s22 }
  0x28   : > { %p8178_p12 = pnand %p8176_p11, %p8166_p10  ;;  %p8185_p6 = por %p8184_p4, %p8183_p3 }
  0x2a   : > { %p8179_p1 = pneg %p8178_p12 }
  0x2c   : > { %p8186_p5 = pnand %p8185_p6, %p8179_p1 }
  0x2e   : > { %8189 = shalt.err (!%p8186_p5)
}
  0x2f   : > { %s10821_s23 = smov 64   ;;  %s10822_s24 = smov 4  }
  0x30   : > { %s10846_s1 = sld [smem:[#allocation29_spill]]  ;;  %s10880_s19 = smov (%p8464_p9, %s40_s19), 0 }
  0x31   : > { %s7227_s27 = sadd.s32 4294967295, %s8300_s15  ;;  %s7233_s22 = sadd.s32 4294967295, %s10880_s19 }
  0x32   : > { %p117_p5 = scmp.gt.s32.totalorder %s7227_s27, 0  ;;  %p7228_p2 = scmp.lt.s32.totalorder %s7227_s27, 1 }
  0x33   : > { %s393_s18 = sand.u32 1, %s8292_s13   ;;  %p122_p10 = scmp.gt.s32.totalorder %s7233_s22, 0 }
  0x34   : > { %s10882_s27 = smov (!%p117_p5, %s7227_s27), 0  ;;  %p7234_p11 = scmp.lt.s32.totalorder %s7233_s22, 1 }
  0x35   : > { %s10884_s27 = smov (!%p7228_p2, %s10882_s27), 1  ;;  %s10886_s22 = smov (!%p122_p10, %s7233_s22), 0 }
  0x36   : > { %7731 = dma.hbm_to_vmem [thread:$0]  (!%p8459_p0), %s10846_s1, 1024, %s346_s8, [#allocation14], %s10821_s23, %s10821_s23, %s10822_s24  }
  0x37   : > { %s7279_s17 = sshll.u32 %s393_s18, 6  ;;  %s7435_s0 = sshll.u32 %s10884_s27, 10 }
  0x38   : > { %s10888_s22 = smov (!%p7234_p11, %s10886_s22), 1  ;;  %s8489_s25 = scalar_lea.hbm %s10813_s3, %s7435_s0 }
  0x39   : > { %s126_s26 = ssub.s32 %s10884_s27, %s10888_s22  ;;  %s395_s10 = scalar_lea.vmem [#allocation15], %s7279_s17 }
  0x3a   : > { %s407_s23 = sshll.u32 %s395_s10, 4  ;;  %p8491_p0 = scmp.eq.s32.totalorder %s126_s26, 0  ;;  %s408_s23 = int_to_ptr.vmem [resolvable:$true] %s407_s23 }
  0x3b   : > { %s8190_s1 = scalar_lea.hbm %s8489_s25, 1024  ;;  %p8192_p12 = pneg %p8453_p8 }
  0x3c   : > { %p8191_p9 = scmp.ne.s32.totalorder %s8489_s25, %s8190_s1  ;;  %s8195_s0 = scalar_lea.hbm %s10813_s3, 2048 }
  0x3d   : > { %p8197_p4 = scmp.lt.s32.totalorder %s8195_s0, %s8190_s1 }
  0x3e   : > { %p8193_p1 = pnand %p8192_p12, %p8191_p9 }
  0x40   : > { %p8194_p3 = pneg %p8193_p1 }
  0x42   : > { %p8199_p6 = pnand %p8197_p4, %p8194_p3 }
  0x44   : > { %8202 = shalt.err (!%p8199_p6)
}
  0x45   : > { %s8203_s27 = scalar_lea.vmem %s408_s23, 1024  ;;  %s8312_s10 = smov [#allocation15]  }
  0x46   : > { %p8204_p5 = scmp.ne.s32.totalorder %s408_s23, %s8203_s27  ;;  %s8208_s22 = sshll.u32 %s8312_s10, 4  ;;  %s8209_s22 = int_to_ptr.vmem [resolvable:$false] %s8208_s22 }
  0x47   : > { %s8210_s17 = scalar_lea.vmem %s8209_s22, 2048  ;;  %p8211_p11 = scmp.lt.s32.totalorder %s408_s23, %s8209_s22 }
  0x48   : > { %p8206_p2 = pnand %p8204_p5, %p8192_p12  ;;  %p8212_p13 = scmp.lt.s32.totalorder %s8210_s17, %s8203_s27 }
  0x4a   : > { %p8207_p10 = pneg %p8206_p2  ;;  %p8213_p7 = por %p8212_p13, %p8211_p11 }
  0x4c   : > { %p8214_p9 = pnand %p8213_p7, %p8207_p10 }
  0x4e   : > { %8217 = shalt.err (!%p8214_p9)
}
  0x4f   : > { %s10848_s20 = smov 4   ;;  %s10849_s26 = smov 64  }
  0x50   : > { %7738 = dma.hbm_to_vmem [thread:$0]  (!%p8453_p8), %s8489_s25, 1024, %s408_s23, %s8417_s21, %s10849_s26, %s10849_s26, %s10848_s20  }
  0x51   : > { %s10850_s1 = sadd.s32 1, %s8292_s13  ;;  %p10851_p12 = scmp.ne.s32.totalorder %s10842_s30, 0 }
  0x52   : > { %s8514_s18 = scalar_select %p8491_p0, %s8292_s13, %s10850_s1  }
  0x53   : > { %467 = sbr.rel (%p10851_p12) target bundleno = 1526 (0x5f6), region = 56  ;;  %s469_s8 = sand.u32 (!%p10851_p12), 1, %s8428_s28  }
  0x54   : > { %s470_s11 = scalar_lea.sflag (!%p10851_p12), [#allocation11], %s469_s8  ;;  %p10852_p13 = scmp.eq.s32.totalorder (!%p10851_p12), %s8428_s28, 0 }
  0x58   : > { %8267 = dma.done.wait (%p10852_p13), %s470_s11, 4864   ;;  %p10853_p7 = pmov %p10852_p13 }
  0x5a   : > { %8269 = vsyncadd (%p10853_p7), %s470_s11, 4294962432  ;;  %p10854_p1 = pmov %p10853_p7 }
  0x5c   : > { %8271 = dma.done.wait (%p10854_p1), [#allocation14], 1024   ;;  %p10855_p8 = pmov %p10854_p1 }
  0x5d   : > { %s484_s21 = sand.u32 1, %s8288_s12   ;;  %p10856_p0 = scmp.ne.s32.totalorder %s10841_s29, 0 }
  0x5e   : > { %8273 = vsyncadd (%p10855_p8), [#allocation14], 4294966272  ;;  %s7291_s30 = sshll.u32 %s484_s21, 6 }
  0x5f   : > { %s8528_s23 = scalar_lea.vmem [#allocation15], %s7291_s30 }
  0x60   : > { %8275 = dma.done.wait (%p10856_p0), %s470_s11, 1024  }
  0x61   : > { %8277 = vsyncadd (%p10856_p0), %s470_s11, 4294966272  ;;  %s7292_s24 = sadd.s32 4294967295, %s8296_s14  ;;  %p601_p3 = scmp.eq.s32.totalorder %s8296_s14, 0 }
  0x62   : > { %p559_p4 = scmp.gt.s32.totalorder %s7292_s24, 0  ;;  %p7293_p6 = scmp.lt.s32.totalorder %s7292_s24, 1  ;;  %v8313_v1 = vmov (%p601_p3), 0.0  }
  0x63   : > { %p7299_p5 = scmp.lt.s32.totalorder %s7292_s24, 2  ;;  %607 = vst [vmem:[#allocation4] sm:$0x1] (%p601_p3), %v8313_v1  ;;  %608 = vst [vmem:[#allocation5] sm:$0x1] (%p601_p3), %v8313_v1 }
  0x64   : > { %s10890_s24 = smov (!%p559_p4, %s7292_s24), 0 }
  0x65   : > { %s7437_s25 = scalar_select %p7293_p6, %s10890_s24, 1 }
  0x66   : > { %s10892_s24 = smov (!%p7299_p5, %s10890_s24), 2 }
  0x67   : > { %p563_p2 = scmp.lt.s32.totalorder %s7437_s25, 1  ;;  %p576_p10 = scmp.lt.s32.totalorder %s10892_s24, 2 }
  0x68   : > { %606 = sbr.rel (!%p601_p3) target bundleno = 109 (0x6d), region = 72 }
  0x69   : > { %s10894_s25 = smov (!%p563_p2, %s7437_s25), 1  ;;  %s10896_s24 = smov (!%p576_p10, %s10892_s24), 2 }
  0x6a   : > { %s565_s29 = scalar_lea.vmem %s10814_s4, %s10894_s25  ;;  %s578_s17 = scalar_lea.vmem %s10815_s5, %s10896_s24 }
  0x6b   : > { %s591_s1 = scalar_lea.vmem %s10816_s6, %s10896_s24 }
  0x6d PF: > { %p609_p11 = scmp.ge.s32.totalorder %s8296_s14, 1 }
  0x6e   : > { %v614_v2 = vld [vmem:[#allocation4] sm:$0x1] (%p609_p11)  ;;  %v616_v3 = vld [vmem:[#allocation5] sm:$0x1] (%p609_p11)  ;;  %v8314_v7 = vmov (%p609_p11), 0.0  }
  0x6f   : > { %613 = sbr.rel (!%p609_p11) target bundleno = 142 (0x8e), region = 76  ;;  %v615_v4 = vmul.f32 (%p609_p11), 0.0033333334, %v614_v2  ;;  %v617_v5 = vmul.f32 (%p609_p11), 0.0033333334, %v616_v3 }
  0x70   : > { %632 = vst [vmem:[#allocation4] sm:$0x1] (%p609_p11), %v8314_v7  ;;  %633 = vst [vmem:[#allocation5] sm:$0x1] (%p609_p11), %v8314_v7  ;;  %v621_v11 = vld [vmem:[#allocation8] sm:$0x1] (%p609_p11) }
  0x71   : > { %v618_v6 = vmul.f32 (%p609_p11), %v615_v4, %v615_v4  ;;  %v623_v12 = vld [vmem:[%s578_s17] sm:$0x1] (%p609_p11)  ;;  %v622_v13 = vadd.f32 (%p609_p11), %v621_v11, %v615_v4 }
  0x72   : > { %v628_v16 = vld [vmem:[%s591_s1] sm:$0x1] (%p609_p11) }
  0x73   : > { %v619_v8 = vsub.f32 (%p609_p11), %v617_v5, %v618_v6 }
  0x75   : > { %v620_v9 = vmax.f32 %v619_v8, 0.0 }
  0x77   : > { %v624_v10 = vadd.f32 1e-05, %v620_v9 }
  0x79   : > { %7814 = vrsqrt.f32 %v624_v10 }
  0x86   : > { %v7815_v14 = vpop.eup %7814 }
  0x87   : > { %v626_v15 = vmul.f32 %v7815_v14, %v623_v12 }
  0x89   : > { %627 = vst [vmem:[#allocation6] sm:$0x1] %v626_v15  ;;  %v629_v17 = vmul.f32 %v626_v15, %v622_v13 }
  0x8b   : > { %v630_v18 = vsub.f32 %v628_v16, %v629_v17 }
  0x8d   : > { %631 = vst [vmem:[#allocation7] sm:$0x1] %v630_v18 }
  0x8e PF: > { %p7312_p9 = scmp.ne.s32.totalorder %s8296_s14, 0 }
  0x90   : > { %636 = sbr.rel (%p7312_p9) target bundleno = 510 (0x1fe), region = 80 }
  0x95   : > { %v7816_v19 = vld [vmem:[#allocation13 + $0x38] sm:$0xff]   ;;  %v8315_v20 = vmov 0.0   ;;  %v7817_v21 = vld [vmem:[#allocation13 + $0x30] sm:$0xff]   ;;  %vm8316_vm0 = vmmov 0   ;;  %v7818_v22 = vld [vmem:[#allocation13 + $0x28] sm:$0xff]  }
  0x96   : > { %7498 = vmatprep.subr.bf16.mxu0 %v8315_v20  ;;  %1531 = vst [vmem:[#allocation3 + $0x80] sm:$0xff] %v8315_v20  ;;  %1532 = vst [vmem:[#allocation3 + $0xc8] sm:$0xff] %v8315_v20  ;;  %7682 = vmatprep.subr.bf16.mxu1 %v8315_v20  ;;  %v7819_v23 = vld [vmem:[#allocation13 + $0x20] sm:$0xff]   ;;  %v7820_v24 = vld [vmem:[#allocation13 + $0x18] sm:$0xff]  }
  0x97   : > { %1533 = vst [vmem:[#allocation3 + $0xb8] sm:$0xff] %v8315_v20  ;;  %1534 = vst [vmem:[#allocation3 + $0x70] sm:$0xff] %v8315_v20  ;;  %7499 = vmatpush3.bf16.msra.mxu0 %v7816_v19  ;;  %7514 = vmatprep.mubr.msk.bf16.mxu0 %vm8316_vm0, %v8315_v20  ;;  %v7821_v25 = vld [vmem:[#allocation13 + $0x10] sm:$0xff]   ;;  %v8611_v26 = vld [vmem:[%s10812_s2] sm:$0x1] }
  0x98   : > { %1535 = vst [vmem:[#allocation3 + $0x98] sm:$0xff] %v8315_v20  ;;  %1536 = vst [vmem:[#allocation3 + $0xa8] sm:$0xff] %v8315_v20  ;;  %7500 = vmatprep.subr.bf16.mxu0 %v8315_v20  ;;  %7690 = vmatpush3.bf16.msra.mxu1 %v7816_v19  ;;  %v7822_v27 = vld [vmem:[#allocation13 + $0x8] sm:$0xff]   ;;  %v7823_v28 = vld [vmem:[#allocation13] sm:$0xff]  }
  0x99   : > { %1537 = vst [vmem:[#allocation3 + $0x120] sm:$0xff] %v8315_v20  ;;  %1538 = vst [vmem:[#allocation3 + $0xd0] sm:$0xff] %v8315_v20  ;;  %7683 = vmatprep.subr.bf16.mxu1 %v8315_v20  ;;  %7554 = vmatprep.mubr.msk.bf16.mxu1 %vm8316_vm0, %v8315_v20  ;;  %v638_v29 = vld [vmem:[#allocation10] sm:$0xff]  ;;  %v639_v30 = vld [vmem:[#allocation10 + $0x8] sm:$0xff] }
  0x9a   : > { %1539 = vst [vmem:[#allocation3 + $0xf0] sm:$0xff] %v8315_v20  ;;  %1540 = vst [vmem:[#allocation3 + $0x100] sm:$0xff] %v8315_v20  ;;  %v658_v31 = vld [vmem:[#allocation10 + $0xa0] sm:$0xff]  ;;  %v659_v32 = vld [vmem:[#allocation10 + $0xa8] sm:$0xff]  ;;  %v676_v33 = vpack.c.bf16 %v639_v30, %v638_v29 }
  0x9b   : > { %1541 = vst [vmem:[#allocation3 + $0xf8] sm:$0xff] %v8315_v20  ;;  %1542 = vst [vmem:[#allocation3 + $0x38] sm:$0xff] %v8315_v20  ;;  %7501 = vmatpush3.bf16.msra.mxu0 %v7817_v21  ;;  %v686_v34 = vpack.c.bf16 %v659_v32, %v658_v31  ;;  %v640_v35 = vld [vmem:[#allocation10 + $0x10] sm:$0xff]  ;;  %v641_v36 = vld [vmem:[#allocation10 + $0x18] sm:$0xff] }
  0x9c   : > { %1543 = vst [vmem:[#allocation3 + $0x68] sm:$0xff] %v8315_v20  ;;  %1544 = vst [vmem:[#allocation3 + $0x58] sm:$0xff] %v8315_v20  ;;  %7502 = vmatprep.subr.bf16.mxu0 %v8315_v20  ;;  %7691 = vmatpush3.bf16.msra.mxu1 %v7817_v21  ;;  %v660_v37 = vld [vmem:[#allocation10 + $0xb0] sm:$0xff]  ;;  %v661_v38 = vld [vmem:[#allocation10 + $0xb8] sm:$0xff]  ;;  %v677_v39 = vpack.c.bf16 %v641_v36, %v640_v35 }
  0x9d   : > { %1545 = vst [vmem:[#allocation3 + $0x88] sm:$0xff] %v8315_v20  ;;  %1546 = vst [vmem:[#allocation3 + $0x48] sm:$0xff] %v8315_v20  ;;  %7684 = vmatprep.subr.bf16.mxu1 %v8315_v20  ;;  %v687_v40 = vpack.c.bf16 %v661_v38, %v660_v37  ;;  %v642_v41 = vld [vmem:[#allocation10 + $0x20] sm:$0xff]  ;;  %v643_v42 = vld [vmem:[#allocation10 + $0x28] sm:$0xff] }
  0x9e   : > { %1547 = vst [vmem:[#allocation3 + $0x10] sm:$0xff] %v8315_v20  ;;  %1548 = vst [vmem:[#allocation3 + $0x40] sm:$0xff] %v8315_v20  ;;  %v662_v43 = vld [vmem:[#allocation10 + $0xc0] sm:$0xff]  ;;  %v663_v44 = vld [vmem:[#allocation10 + $0xc8] sm:$0xff]  ;;  %v678_v45 = vpack.c.bf16 %v643_v42, %v642_v41 }
  0x9f   : > { %1549 = vst [vmem:[#allocation3 + $0xe8] sm:$0xff] %v8315_v20  ;;  %1550 = vst [vmem:[#allocation3 + $0xc0] sm:$0xff] %v8315_v20  ;;  %7503 = vmatpush3.bf16.msra.mxu0 %v7818_v22  ;;  %v688_v46 = vpack.c.bf16 %v663_v44, %v662_v43  ;;  %v644_v47 = vld [vmem:[#allocation10 + $0x30] sm:$0xff]  ;;  %v645_v48 = vld [vmem:[#allocation10 + $0x38] sm:$0xff] }
  0xa0   : > { %1551 = vst [vmem:[#allocation3 + $0xd8] sm:$0xff] %v8315_v20  ;;  %1552 = vst [vmem:[#allocation3 + $0x128] sm:$0xff] %v8315_v20  ;;  %7504 = vmatprep.subr.bf16.mxu0 %v8315_v20  ;;  %7692 = vmatpush3.bf16.msra.mxu1 %v7818_v22  ;;  %v664_v49 = vld [vmem:[#allocation10 + $0xd0] sm:$0xff]  ;;  %v665_v50 = vld [vmem:[#allocation10 + $0xd8] sm:$0xff]  ;;  %v679_v51 = vpack.c.bf16 %v645_v48, %v644_v47 }
  0xa1   : > { %1553 = vst [vmem:[#allocation3 + $0x118] sm:$0xff] %v8315_v20  ;;  %1554 = vst [vmem:[#allocation3 + $0x78] sm:$0xff] %v8315_v20  ;;  %7685 = vmatprep.subr.bf16.mxu1 %v8315_v20  ;;  %v689_v52 = vpack.c.bf16 %v665_v50, %v664_v49  ;;  %v646_v53 = vld [vmem:[#allocation10 + $0x40] sm:$0xff]  ;;  %v647_v54 = vld [vmem:[#allocation10 + $0x48] sm:$0xff] }
  0xa2   : > { %1555 = vst [vmem:[#allocation3 + $0x30] sm:$0xff] %v8315_v20  ;;  %1556 = vst [vmem:[#allocation3 + $0x110] sm:$0xff] %v8315_v20  ;;  %v666_v55 = vld [vmem:[#allocation10 + $0xe0] sm:$0xff]  ;;  %v667_v56 = vld [vmem:[#allocation10 + $0xe8] sm:$0xff]  ;;  %v680_v57 = vpack.c.bf16 %v647_v54, %v646_v53 }
  0xa3   : > { %1557 = vst [vmem:[#allocation3] sm:$0xff] %v8315_v20  ;;  %1558 = vst [vmem:[#allocation3 + $0x108] sm:$0xff] %v8315_v20  ;;  %7505 = vmatpush3.bf16.msra.mxu0 %v7819_v23  ;;  %v690_v58 = vpack.c.bf16 %v667_v56, %v666_v55  ;;  %v648_v59 = vld [vmem:[#allocation10 + $0x50] sm:$0xff]  ;;  %v649_v60 = vld [vmem:[#allocation10 + $0x58] sm:$0xff] }
  0xa4   : > { %1559 = vst [vmem:[#allocation3 + $0x8] sm:$0xff] %v8315_v20  ;;  %1560 = vst [vmem:[#allocation3 + $0xe0] sm:$0xff] %v8315_v20  ;;  %7506 = vmatprep.subr.bf16.mxu0 %v8315_v20  ;;  %7693 = vmatpush3.bf16.msra.mxu1 %v7819_v23  ;;  %v668_v61 = vld [vmem:[#allocation10 + $0xf0] sm:$0xff]  ;;  %v669_v62 = vld [vmem:[#allocation10 + $0xf8] sm:$0xff]  ;;  %v681_v63 = vpack.c.bf16 %v649_v60, %v648_v59  ;;  %v712_v23 = vlaneseq }
  0xa5   : > { %1561 = vst [vmem:[#allocation3 + $0x50] sm:$0xff] %v8315_v20  ;;  %1562 = vst [vmem:[#allocation3 + $0x60] sm:$0xff] %v8315_v20  ;;  %7686 = vmatprep.subr.bf16.mxu1 %v8315_v20  ;;  %v691_v0 = vpack.c.bf16 %v669_v62, %v668_v61  ;;  %v650_v1 = vld [vmem:[#allocation10 + $0x60] sm:$0xff]  ;;  %v651_v2 = vld [vmem:[#allocation10 + $0x68] sm:$0xff] }
  0xa6   : > { %1563 = vst [vmem:[#allocation3 + $0x20] sm:$0xff] %v8315_v20  ;;  %1564 = vst [vmem:[#allocation3 + $0x18] sm:$0xff] %v8315_v20  ;;  %v670_v3 = vld [vmem:[#allocation10 + $0x100] sm:$0xff]  ;;  %v671_v4 = vld [vmem:[#allocation10 + $0x108] sm:$0xff]  ;;  %v682_v5 = vpack.c.bf16 %v651_v2, %v650_v1 }
  0xa7   : > { %1565 = vst [vmem:[#allocation3 + $0xb0] sm:$0xff] %v8315_v20  ;;  %1566 = vst [vmem:[#allocation3 + $0x28] sm:$0xff] %v8315_v20  ;;  %7507 = vmatpush3.bf16.msra.mxu0 %v7820_v24  ;;  %v692_v6 = vpack.c.bf16 %v671_v4, %v670_v3  ;;  %v652_v7 = vld [vmem:[#allocation10 + $0x70] sm:$0xff]  ;;  %v653_v8 = vld [vmem:[#allocation10 + $0x78] sm:$0xff] }
  0xa8   : > { %1567 = vst [vmem:[#allocation3 + $0x90] sm:$0xff] %v8315_v20  ;;  %1568 = vst [vmem:[#allocation3 + $0xa0] sm:$0xff] %v8315_v20  ;;  %7508 = vmatprep.subr.bf16.mxu0 %v8315_v20  ;;  %7694 = vmatpush3.bf16.msra.mxu1 %v7820_v24  ;;  %v672_v9 = vld [vmem:[#allocation10 + $0x110] sm:$0xff]  ;;  %v673_v10 = vld [vmem:[#allocation10 + $0x118] sm:$0xff]  ;;  %v683_v11 = vpack.c.bf16 %v653_v8, %v652_v7  ;;  %v8652_v24 = vshrl.u32 %v712_v23, 7 }
  0xa9   : > { %7687 = vmatprep.subr.bf16.mxu1 %v8315_v20  ;;  %953 = vst [vmem:[#allocation8] sm:$0x1] %v8611_v26  ;;  %v693_v12 = vpack.c.bf16 %v673_v10, %v672_v9  ;;  %v654_v13 = vld [vmem:[#allocation10 + $0x80] sm:$0xff]  ;;  %v655_v14 = vld [vmem:[#allocation10 + $0x88] sm:$0xff]  ;;  %v656_v19 = vld [vmem:[#allocation10 + $0x90] sm:$0xff] }
  0xaa   : > { %v674_v15 = vld [vmem:[#allocation10 + $0x120] sm:$0xff]  ;;  %v675_v16 = vld [vmem:[#allocation10 + $0x128] sm:$0xff]  ;;  %v684_v17 = vpack.c.bf16 %v655_v14, %v654_v13  ;;  %v657_v21 = vld [vmem:[#allocation10 + $0x98] sm:$0xff] }
  0xab   : > { %7509 = vmatpush3.bf16.msra.mxu0 %v7821_v25  ;;  %v694_v18 = vpack.c.bf16 %v675_v16, %v674_v15  ;;  %v685_v22 = vpack.c.bf16 %v657_v21, %v656_v19 }
  0xac   : > { %7510 = vmatprep.subr.bf16.mxu0 %v8315_v20  ;;  %7695 = vmatpush3.bf16.msra.mxu1 %v7821_v25  ;;  %v714_v25 = vsub.s32 0, %v8652_v24 }
  0xad   : > { %7688 = vmatprep.subr.bf16.mxu1 %v8315_v20 }
  0xaf   : > { %7511 = vmatpush3.bf16.msra.mxu0 %v7822_v27 }
  0xb0   : > { %7512 = vmatprep.subr.bf16.mxu0 %v8315_v20  ;;  %7696 = vmatpush3.bf16.msra.mxu1 %v7822_v27  ;;  %v8656_v27 = vrot.slane %v8611_v26, %v714_v25 }
  0xb1   : > { %7689 = vmatprep.subr.bf16.mxu1 %v8315_v20 }
  0xb3   : > { %7513 = vmatpush3.bf16.msra.mxu0 %v7823_v28 }
  0xb4   : > { %7697 = vmatpush3.bf16.msra.mxu1 %v7823_v28 }
  0xb6   : > { %7515 = vmatmul.mubr.bf16.vlgmr.msra.gmra.mxu0 %v676_v33 }
  0xb7   : > { %7518 = vmatprep.mubr.msk.bf16.mxu0 %vm8316_vm0, %v8315_v20  ;;  %7555 = vmatmul.mubr.bf16.vlgmr.msra.gmra.mxu1 %v686_v34 }
  0xb8   : > { %7558 = vmatprep.mubr.msk.bf16.mxu1 %vm8316_vm0, %v8315_v20 }
  0xbe   : > { %7519 = vmatmul.mubr.bf16.gmra.mxu0 %v677_v39 }
  0xbf   : > { %7522 = vmatprep.mubr.msk.bf16.mxu0 %vm8316_vm0, %v8315_v20  ;;  %7559 = vmatmul.mubr.bf16.gmra.mxu1 %v687_v40 }
  0xc0   : > { %7562 = vmatprep.mubr.msk.bf16.mxu1 %vm8316_vm0, %v8315_v20 }
  0xc6   : > { %7523 = vmatmul.mubr.bf16.gmra.mxu0 %v678_v45 }
  0xc7   : > { %7526 = vmatprep.mubr.msk.bf16.mxu0 %vm8316_vm0, %v8315_v20  ;;  %7563 = vmatmul.mubr.bf16.gmra.mxu1 %v688_v46 }
  0xc8   : > { %7566 = vmatprep.mubr.msk.bf16.mxu1 %vm8316_vm0, %v8315_v20 }
  0xce   : > { %7527 = vmatmul.mubr.bf16.gmra.mxu0 %v679_v51 }
  0xcf   : > { %7530 = vmatprep.mubr.msk.bf16.mxu0 %vm8316_vm0, %v8315_v20  ;;  %7567 = vmatmul.mubr.bf16.gmra.mxu1 %v689_v52 }
  0xd0   : > { %7570 = vmatprep.mubr.msk.bf16.mxu1 %vm8316_vm0, %v8315_v20 }
  0xd6   : > { %7531 = vmatmul.mubr.bf16.gmra.mxu0 %v680_v57 }
  0xd7   : > { %7534 = vmatprep.mubr.msk.bf16.mxu0 %vm8316_vm0, %v8315_v20  ;;  %7571 = vmatmul.mubr.bf16.gmra.mxu1 %v690_v58 }
  0xd8   : > { %7574 = vmatprep.mubr.msk.bf16.mxu1 %vm8316_vm0, %v8315_v20 }
  0xde   : > { %7535 = vmatmul.mubr.bf16.gmra.mxu0 %v681_v63 }
  0xdf   : > { %7538 = vmatprep.mubr.msk.bf16.mxu0 %vm8316_vm0, %v8315_v20  ;;  %7575 = vmatmul.mubr.bf16.gmra.mxu1 %v691_v0 }
  0xe0   : > { %7578 = vmatprep.mubr.msk.bf16.mxu1 %vm8316_vm0, %v8315_v20 }
  0xe6   : > { %7539 = vmatmul.mubr.bf16.gmra.mxu0 %v682_v5 }
  0xe7   : > { %7542 = vmatprep.mubr.msk.bf16.mxu0 %vm8316_vm0, %v8315_v20  ;;  %7579 = vmatmul.mubr.bf16.gmra.mxu1 %v692_v6 }
  0xe8   : > { %7582 = vmatprep.mubr.msk.bf16.mxu1 %vm8316_vm0, %v8315_v20 }
  0xee   : > { %7543 = vmatmul.mubr.bf16.gmra.mxu0 %v683_v11 }
  0xef   : > { %7546 = vmatprep.mubr.msk.bf16.mxu0 %vm8316_vm0, %v8315_v20  ;;  %7583 = vmatmul.mubr.bf16.gmra.mxu1 %v693_v12 }
  0xf0   : > { %7586 = vmatprep.mubr.msk.bf16.mxu1 %vm8316_vm0, %v8315_v20 }
  0xf6   : > { %7547 = vmatmul.mubr.bf16.gmra.mxu0 %v684_v17 }
  0xf7   : > { %7550 = vmatprep.mubr.msk.bf16.mxu0 %vm8316_vm0, %v8315_v20  ;;  %7587 = vmatmul.mubr.bf16.gmra.mxu1 %v694_v18 }
  0xfe   : > { %7551 = vmatmul.mubr.bf16.gmra.mxu0 %v685_v22 }
 0x176   : > { %v799_v28 = vpop.f32.mrf.mxu0 }
 0x177   : > { %v8659_v29 = vadd.f32 %v799_v28, %v8656_v27  ;;  %v879_v30 = vpop.f32.mrf.mxu1 }
 0x178   : > { %v7516_v31 = vpop.f32.mrf.mxu0  ;;  %v8662_v32 = vadd.f32 %v879_v30, %v8656_v27 }
 0x179   : > { %1492 = vst [vmem:[#allocation2 + $0xb0] sm:$0xff] %v8659_v29  ;;  %v7556_v33 = vpop.f32.mrf.mxu1  ;;  %v954_v28 = vsub.f32 %v8659_v29, %v8656_v27 }
 0x17a   : > { %v802_v34 = vpop.f32.mrf.mxu0  ;;  %1512 = vst [vmem:[#allocation2 + $0xa8] sm:$0xff] %v8662_v32 }
 0x17b   : > { %v8667_v35 = vadd.f32 %v802_v34, %v8656_v27  ;;  %v882_v26 = vpop.f32.mrf.mxu1 }
 0x17c   : > { %v7517_v36 = vpop.f32.mrf.mxu0  ;;  %v8670_v37 = vadd.f32 %v882_v26, %v8656_v27 }
 0x17d   : > { %1493 = vst [vmem:[#allocation2 + $0xd0] sm:$0xff] %v8667_v35  ;;  %v7557_v38 = vpop.f32.mrf.mxu1  ;;  %v955_v21 = vsub.f32 %v8667_v35, %v8656_v27 }
 0x17e   : > { %v807_v39 = vpop.f32.mrf.mxu0  ;;  %1513 = vst [vmem:[#allocation2 + $0x90] sm:$0xff] %v8670_v37 }
 0x17f   : > { %v8675_v40 = vadd.f32 %v807_v39, %v8656_v27  ;;  %v887_v41 = vpop.f32.mrf.mxu1  ;;  %v1274_v26 = vmul.f32 %v955_v21, %v955_v21 }
 0x180   : > { %v7520_v42 = vpop.f32.mrf.mxu0  ;;  %v8678_v43 = vadd.f32 %v887_v41, %v8656_v27  ;;  %v1273_v41 = vmul.f32 %v954_v28, %v954_v28 }
 0x181   : > { %1494 = vst [vmem:[#allocation2 + $0x10] sm:$0xff] %v8675_v40  ;;  %v7560_v44 = vpop.f32.mrf.mxu1  ;;  %v956_v30 = vsub.f32 %v8675_v40, %v8656_v27 }
 0x182   : > { %v810_v45 = vpop.f32.mrf.mxu0  ;;  %1514 = vst [vmem:[#allocation2 + $0xe0] sm:$0xff] %v8678_v43  ;;  %v1227_v44 = vadd.f32 %v955_v21, %v954_v28 }
 0x183   : > { %v811_v46 = vadd.f32 %v810_v45, %v8656_v27  ;;  %v890_v47 = vpop.f32.mrf.mxu1  ;;  %v1275_v29 = vmul.f32 %v956_v30, %v956_v30 }
 0x184   : > { %v7521_v48 = vpop.f32.mrf.mxu0  ;;  %v8684_v49 = vadd.f32 %v890_v47, %v8656_v27 }
 0x185   : > { %1495 = vst [vmem:[#allocation2 + $0x48] sm:$0xff] %v811_v46  ;;  %v7561_v50 = vpop.f32.mrf.mxu1  ;;  %v957_v35 = vsub.f32 %v811_v46, %v8656_v27  ;;  %v1311_v48 = vadd.f32 %v1274_v26, %v1273_v41 }
 0x186   : > { %v815_v51 = vpop.f32.mrf.mxu0  ;;  %1515 = vst [vmem:[#allocation2 + $0xf8] sm:$0xff] %v8684_v49 }
 0x187   : > { %v816_v52 = vadd.f32 %v815_v51, %v8656_v27  ;;  %v895_v53 = vpop.f32.mrf.mxu1  ;;  %v1276_v50 = vmul.f32 %v957_v35, %v957_v35 }
 0x188   : > { %v7524_v54 = vpop.f32.mrf.mxu0  ;;  %v8689_v55 = vadd.f32 %v895_v53, %v8656_v27 }
 0x189   : > { %1496 = vst [vmem:[#allocation2 + $0x120] sm:$0xff] %v816_v52  ;;  %v7564_v56 = vpop.f32.mrf.mxu1  ;;  %v958_v42 = vsub.f32 %v816_v52, %v8656_v27  ;;  %v1228_v54 = vadd.f32 %v1227_v44, %v956_v30 }
 0x18a   : > { %v818_v57 = vpop.f32.mrf.mxu0  ;;  %1516 = vst [vmem:[#allocation2 + $0xa0] sm:$0xff] %v8689_v55 }
 0x18b   : > { %v819_v58 = vadd.f32 %v818_v57, %v8656_v27  ;;  %v898_v59 = vpop.f32.mrf.mxu1  ;;  %v1312_v57 = vadd.f32 %v1311_v48, %v1275_v29  ;;  %v1277_v52 = vmul.f32 %v958_v42, %v958_v42 }
 0x18c   : > { %v7525_v60 = vpop.f32.mrf.mxu0  ;;  %v8694_v61 = vadd.f32 %v898_v59, %v8656_v27 }
 0x18d   : > { %1497 = vst [vmem:[#allocation2 + $0x38] sm:$0xff] %v819_v58  ;;  %v7565_v62 = vpop.f32.mrf.mxu1  ;;  %v959_v46 = vsub.f32 %v819_v58, %v8656_v27 }
 0x18e   : > { %v823_v63 = vpop.f32.mrf.mxu0  ;;  %1517 = vst [vmem:[#allocation2 + $0x78] sm:$0xff] %v8694_v61  ;;  %v1229_v62 = vadd.f32 %v1228_v54, %v957_v35 }
 0x18f   : > { %v824_v0 = vadd.f32 %v823_v63, %v8656_v27  ;;  %v903_v1 = vpop.f32.mrf.mxu1  ;;  %v1278_v58 = vmul.f32 %v959_v46, %v959_v46 }
 0x190   : > { %v7528_v2 = vpop.f32.mrf.mxu0  ;;  %v8699_v3 = vadd.f32 %v903_v1, %v8656_v27 }
 0x191   : > { %1498 = vst [vmem:[#allocation2 + $0x70] sm:$0xff] %v824_v0  ;;  %v7568_v4 = vpop.f32.mrf.mxu1  ;;  %v960_v59 = vsub.f32 %v824_v0, %v8656_v27  ;;  %v1313_v2 = vadd.f32 %v1312_v57, %v1276_v50 }
 0x192   : > { %v826_v5 = vpop.f32.mrf.mxu0  ;;  %1518 = vst [vmem:[#allocation2 + $0xc0] sm:$0xff] %v8699_v3 }
 0x193   : > { %v827_v6 = vadd.f32 %v826_v5, %v8656_v27  ;;  %v906_v7 = vpop.f32.mrf.mxu1  ;;  %v1279_v0 = vmul.f32 %v960_v59, %v960_v59 }
 0x194   : > { %v7529_v8 = vpop.f32.mrf.mxu0  ;;  %v8704_v9 = vadd.f32 %v906_v7, %v8656_v27 }
 0x195   : > { %1499 = vst [vmem:[#allocation2 + $0x100] sm:$0xff] %v827_v6  ;;  %v7569_v10 = vpop.f32.mrf.mxu1  ;;  %v961_v4 = vsub.f32 %v827_v6, %v8656_v27  ;;  %v1230_v8 = vadd.f32 %v1229_v62, %v958_v42 }
 0x196   : > { %v831_v11 = vpop.f32.mrf.mxu0  ;;  %1519 = vst [vmem:[#allocation2 + $0x80] sm:$0xff] %v8704_v9 }
 0x197   : > { %v832_v12 = vadd.f32 %v831_v11, %v8656_v27  ;;  %v911_v13 = vpop.f32.mrf.mxu1  ;;  %v1314_v11 = vadd.f32 %v1313_v2, %v1277_v52  ;;  %v1280_v6 = vmul.f32 %v961_v4, %v961_v4 }
 0x198   : > { %v7532_v14 = vpop.f32.mrf.mxu0  ;;  %v8709_v15 = vadd.f32 %v911_v13, %v8656_v27 }
 0x199   : > { %1500 = vst [vmem:[#allocation2 + $0x108] sm:$0xff] %v832_v12  ;;  %v7572_v16 = vpop.f32.mrf.mxu1  ;;  %v962_v13 = vsub.f32 %v832_v12, %v8656_v27  ;;  %v1315_v21 = vadd.f32 %v1314_v11, %v1278_v58 }
 0x19a   : > { %v834_v17 = vpop.f32.mrf.mxu0  ;;  %1520 = vst [vmem:[#allocation2 + $0xe8] sm:$0xff] %v8709_v15  ;;  %v1231_v16 = vadd.f32 %v1230_v8, %v959_v46 }
 0x19b   : > { %v835_v18 = vadd.f32 %v834_v17, %v8656_v27  ;;  %v914_v19 = vpop.f32.mrf.mxu1  ;;  %v1281_v12 = vmul.f32 %v962_v13, %v962_v13 }
 0x19c   : > { %v7533_v22 = vpop.f32.mrf.mxu0  ;;  %v8716_v23 = vadd.f32 %v914_v19, %v8656_v27  ;;  %v1232_v30 = vadd.f32 %v1231_v16, %v960_v59 }
 0x19d   : > { %1501 = vst [vmem:[#allocation2 + $0x88] sm:$0xff] %v835_v18  ;;  %v7573_v25 = vpop.f32.mrf.mxu1  ;;  %v963_v22 = vsub.f32 %v835_v18, %v8656_v27 }
 0x19e   : > { %v839_v31 = vpop.f32.mrf.mxu0  ;;  %1521 = vst [vmem:[#allocation2] sm:$0xff] %v8716_v23 }
 0x19f   : > { %v840_v33 = vadd.f32 %v839_v31, %v8656_v27  ;;  %v919_v34 = vpop.f32.mrf.mxu1  ;;  %v1282_v18 = vmul.f32 %v963_v22, %v963_v22 }
 0x1a0   : > { %v7536_v36 = vpop.f32.mrf.mxu0  ;;  %v8726_v38 = vadd.f32 %v919_v34, %v8656_v27  ;;  %v1316_v34 = vadd.f32 %v1315_v21, %v1279_v0 }
 0x1a1   : > { %1502 = vst [vmem:[#allocation2 + $0x110] sm:$0xff] %v840_v33  ;;  %v7576_v39 = vpop.f32.mrf.mxu1  ;;  %v964_v26 = vsub.f32 %v840_v33, %v8656_v27  ;;  %v1233_v36 = vadd.f32 %v1232_v30, %v961_v4 }
 0x1a2   : > { %v842_v40 = vpop.f32.mrf.mxu0  ;;  %1522 = vst [vmem:[#allocation2 + $0xd8] sm:$0xff] %v8726_v38  ;;  %v1317_v29 = vadd.f32 %v1316_v34, %v1280_v6 }
 0x1a3   : > { %v843_v45 = vadd.f32 %v842_v40, %v8656_v27  ;;  %v922_v47 = vpop.f32.mrf.mxu1  ;;  %v1283_v33 = vmul.f32 %v964_v26, %v964_v26 }
 0x1a4   : > { %v7537_v51 = vpop.f32.mrf.mxu0  ;;  %v8733_v53 = vadd.f32 %v922_v47, %v8656_v27  ;;  %v1234_v47 = vadd.f32 %v1233_v36, %v962_v13  ;;  %v1318_v50 = vadd.f32 %v1317_v29, %v1281_v12 }
 0x1a5   : > { %1503 = vst [vmem:[#allocation2 + $0xf0] sm:$0xff] %v843_v45  ;;  %v7577_v56 = vpop.f32.mrf.mxu1  ;;  %v965_v42 = vsub.f32 %v843_v45, %v8656_v27 }
 0x1a6   : > { %v847_v60 = vpop.f32.mrf.mxu0  ;;  %1523 = vst [vmem:[#allocation2 + $0x28] sm:$0xff] %v8733_v53  ;;  %v1235_v54 = vadd.f32 %v1234_v47, %v963_v22  ;;  %v1319_v52 = vadd.f32 %v1318_v50, %v1282_v18 }
 0x1a7   : > { %v848_v63 = vadd.f32 %v847_v60, %v8656_v27  ;;  %v927_v1 = vpop.f32.mrf.mxu1  ;;  %v1284_v45 = vmul.f32 %v965_v42, %v965_v42 }
 0x1a8   : > { %v7540_v5 = vpop.f32.mrf.mxu0  ;;  %v8740_v7 = vadd.f32 %v927_v1, %v8656_v27  ;;  %v1236_v62 = vadd.f32 %v1235_v54, %v964_v26  ;;  %v1320_v58 = vadd.f32 %v1319_v52, %v1283_v33 }
 0x1a9   : > { %1504 = vst [vmem:[#allocation2 + $0x40] sm:$0xff] %v848_v63  ;;  %v7580_v10 = vpop.f32.mrf.mxu1  ;;  %v966_v46 = vsub.f32 %v848_v63, %v8656_v27 }
 0x1aa   : > { %v850_v14 = vpop.f32.mrf.mxu0  ;;  %1524 = vst [vmem:[#allocation2 + $0x60] sm:$0xff] %v8740_v7  ;;  %v1237_v5 = vadd.f32 %v1236_v62, %v965_v42  ;;  %v1321_v0 = vadd.f32 %v1320_v58, %v1284_v45 }
 0x1ab   : > { %v851_v17 = vadd.f32 %v850_v14, %v8656_v27  ;;  %v930_v19 = vpop.f32.mrf.mxu1  ;;  %v1285_v63 = vmul.f32 %v966_v46, %v966_v46 }
 0x1ac   : > { %v7541_v25 = vpop.f32.mrf.mxu0  ;;  %v8747_v28 = vadd.f32 %v930_v19, %v8656_v27  ;;  %v1238_v16 = vadd.f32 %v1237_v5, %v966_v46  ;;  %v975_v5 = vsub.f32 %v8670_v37, %v8656_v27 }
 0x1ad   : > { %1505 = vst [vmem:[#allocation2 + $0xc8] sm:$0xff] %v851_v17  ;;  %v7581_v31 = vpop.f32.mrf.mxu1  ;;  %v967_v1 = vsub.f32 %v851_v17, %v8656_v27  ;;  %v1322_v6 = vadd.f32 %v1321_v0, %v1285_v63 }
 0x1ae   : > { %v855_v35 = vpop.f32.mrf.mxu0  ;;  %1525 = vst [vmem:[#allocation2 + $0x68] sm:$0xff] %v8747_v28 }
 0x1af   : > { %v856_v39 = vadd.f32 %v855_v35, %v8656_v27  ;;  %v935_v41 = vpop.f32.mrf.mxu1  ;;  %v1286_v17 = vmul.f32 %v967_v1, %v967_v1  ;;  %v1239_v25 = vadd.f32 %v1238_v16, %v967_v1 }
 0x1b0   : > { %v7544_v40 = vpop.f32.mrf.mxu0  ;;  %v8754_v44 = vadd.f32 %v935_v41, %v8656_v27 }
 0x1b1   : > { %1506 = vst [vmem:[#allocation2 + $0x30] sm:$0xff] %v856_v39  ;;  %v7584_v48 = vpop.f32.mrf.mxu1  ;;  %v968_v8 = vsub.f32 %v856_v39, %v8656_v27  ;;  %v1323_v36 = vadd.f32 %v1322_v6, %v1286_v17 }
 0x1b2   : > { %v858_v51 = vpop.f32.mrf.mxu0  ;;  %1526 = vst [vmem:[#allocation2 + $0x18] sm:$0xff] %v8754_v44 }
 0x1b3   : > { %v859_v56 = vadd.f32 %v858_v51, %v8656_v27  ;;  %v938_v57 = vpop.f32.mrf.mxu1  ;;  %v1287_v30 = vmul.f32 %v968_v8, %v968_v8  ;;  %v1240_v39 = vadd.f32 %v1239_v25, %v968_v8  ;;  %v978_v25 = vsub.f32 %v8689_v55, %v8656_v27 }
 0x1b4   : > { %v7545_v59 = vpop.f32.mrf.mxu0  ;;  %v8760_v60 = vadd.f32 %v938_v57, %v8656_v27 }
 0x1b5   : > { %1507 = vst [vmem:[#allocation2 + $0x20] sm:$0xff] %v859_v56  ;;  %v7585_v2 = vpop.f32.mrf.mxu1  ;;  %v969_v19 = vsub.f32 %v859_v56, %v8656_v27  ;;  %v1324_v40 = vadd.f32 %v1323_v36, %v1287_v30  ;;  %v980_v36 = vsub.f32 %v8699_v3, %v8656_v27 }
 0x1b6   : > { %v863_v4 = vpop.f32.mrf.mxu0  ;;  %1527 = vst [vmem:[#allocation2 + $0x58] sm:$0xff] %v8760_v60  ;;  %v974_v2 = vsub.f32 %v8662_v32, %v8656_v27  ;;  %v977_v32 = vsub.f32 %v8684_v49, %v8656_v27 }
 0x1b7   : > { %v864_v10 = vadd.f32 %v863_v4, %v8656_v27  ;;  %v943_v11 = vpop.f32.mrf.mxu1  ;;  %v1288_v41 = vmul.f32 %v969_v19, %v969_v19  ;;  %v1241_v47 = vadd.f32 %v1240_v39, %v969_v19  ;;  %v1294_v19 = vmul.f32 %v975_v5, %v975_v5 }
 0x1b8   : > { %v7548_v13 = vpop.f32.mrf.mxu0  ;;  %v8767_v14 = vadd.f32 %v943_v11, %v8656_v27  ;;  %v1293_v0 = vmul.f32 %v974_v2, %v974_v2 }
 0x1b9   : > { %1508 = vst [vmem:[#allocation2 + $0x128] sm:$0xff] %v864_v10  ;;  %v7588_v21 = vpop.f32.mrf.mxu1  ;;  %v970_v31 = vsub.f32 %v864_v10, %v8656_v27  ;;  %v1325_v46 = vadd.f32 %v1324_v40, %v1288_v41  ;;  %v976_v13 = vsub.f32 %v8678_v43, %v8656_v27  ;;  %v982_v40 = vsub.f32 %v8709_v15, %v8656_v27 }
 0x1ba   : > { %v866_v22 = vpop.f32.mrf.mxu0  ;;  %1528 = vst [vmem:[#allocation2 + $0x118] sm:$0xff] %v8767_v14  ;;  %v985_v15 = vsub.f32 %v8733_v53, %v8656_v27  ;;  %v988_v53 = vsub.f32 %v8754_v44, %v8656_v27 }
 0x1bb   : > { %v867_v34 = vadd.f32 %v866_v22, %v8656_v27  ;;  %v946_v12 = vpop.f32.mrf.mxu1  ;;  %v1289_v48 = vmul.f32 %v970_v31, %v970_v31  ;;  %v1242_v51 = vadd.f32 %v1241_v47, %v970_v31  ;;  %v1295_v22 = vmul.f32 %v976_v13, %v976_v13 }
 0x1bc   : > { %v7549_v26 = vpop.f32.mrf.mxu0  ;;  %v8774_v35 = vadd.f32 %v946_v12, %v8656_v27  ;;  %v1296_v31 = vmul.f32 %v977_v32, %v977_v32 }
 0x1bd   : > { %v971_v29 = vsub.f32 %v867_v34, %v8656_v27  ;;  %1509 = vst [vmem:[#allocation2 + $0x50] sm:$0xff] %v867_v34  ;;  %v7589_v18 = vpop.f32.mrf.mxu1  ;;  %v1326_v52 = vadd.f32 %v1325_v46, %v1289_v48  ;;  %v979_v34 = vsub.f32 %v8694_v61, %v8656_v27  ;;  %v1297_v26 = vmul.f32 %v978_v25, %v978_v25 }
 0x1be   : > { %v871_v42 = vpop.f32.mrf.mxu0  ;;  %1529 = vst [vmem:[#allocation2 + $0xb8] sm:$0xff] %v8774_v35  ;;  %v1301_v46 = vmul.f32 %v982_v40, %v982_v40 }
 0x1bf   : > { %v872_v50 = vadd.f32 %v871_v42, %v8656_v27  ;;  %v1290_v54 = vmul.f32 %v971_v29, %v971_v29  ;;  %v1243_v45 = vadd.f32 %v1242_v51, %v971_v29  ;;  %v1298_v41 = vmul.f32 %v979_v34, %v979_v34 }
 0x1c0   : > { %v7552_v33 = vpop.f32.mrf.mxu0  ;;  %v981_v29 = vsub.f32 %v8704_v9, %v8656_v27  ;;  %v1299_v42 = vmul.f32 %v980_v36, %v980_v36  ;;  %v984_v51 = vsub.f32 %v8726_v38, %v8656_v27 }
 0x1c1   : > { %v972_v56 = vsub.f32 %v872_v50, %v8656_v27  ;;  %1510 = vst [vmem:[#allocation2 + $0x8] sm:$0xff] %v872_v50  ;;  %v1327_v58 = vadd.f32 %v1326_v52, %v1290_v54  ;;  %v983_v50 = vsub.f32 %v8716_v23, %v8656_v27  ;;  %v986_v23 = vsub.f32 %v8740_v7, %v8656_v27 }
 0x1c2   : > { %v874_v57 = vpop.f32.mrf.mxu0  ;;  %v1300_v48 = vmul.f32 %v981_v29, %v981_v29  ;;  %v991_v7 = vsub.f32 %v8774_v35, %v8656_v27 }
 0x1c3   : > { %v1291_v59 = vmul.f32 %v972_v56, %v972_v56  ;;  %v875_v62 = vadd.f32 %v874_v57, %v8656_v27  ;;  %v1244_v63 = vadd.f32 %v1243_v45, %v972_v56  ;;  %v1302_v56 = vmul.f32 %v983_v50, %v983_v50 }
 0x1c4   : > { %v7553_v1 = vpop.f32.mrf.mxu0  ;;  %v1033_v45 = vadd.s32 296, %v8652_v24 }
 0x1c5   : > { %v973_v4 = vsub.f32 %v875_v62, %v8656_v27  ;;  %1511 = vst [vmem:[#allocation2 + $0x98] sm:$0xff] %v875_v62  ;;  %v1328_v8 = vadd.f32 %v1327_v58, %v1291_v59  ;;  %v1303_v62 = vmul.f32 %v984_v51, %v984_v51 }
 0x1c6   : > { %vm1111_vm1 = vcmp.lt.s32.totalorder %v1033_v45, 300 }
 0x1c7   : > { %v1245_v10 = vadd.f32 %v1244_v63, %v973_v4  ;;  %v1292_v11 = vmul.f32 %v973_v4, %v973_v4  ;;  %v1304_v63 = vmul.f32 %v985_v15, %v985_v15 }
 0x1c9   : > { %v1246_v16 = vadd.f32 %v1245_v10, %v974_v2  ;;  %v1329_v17 = vadd.f32 %v1328_v8, %v1292_v11  ;;  %v987_v2 = vsub.f32 %v8747_v28, %v8656_v27  ;;  %v1305_v8 = vmul.f32 %v986_v23, %v986_v23 }
 0x1ca   : > { %v7321_v28 = vsel %vm1111_vm1, 1.0, %v8315_v20 }
 0x1cb   : > { %v1247_v21 = vadd.f32 %v1246_v16, %v975_v5  ;;  %v1330_v6 = vadd.f32 %v1329_v17, %v1293_v0  ;;  %v1306_v24 = vmul.f32 %v987_v2, %v987_v2  ;;  %v989_v0 = vsub.f32 %v8760_v60, %v8656_v27 }
 0x1cc   : > { %v1307_v17 = vmul.f32 %v988_v53, %v988_v53 }
 0x1cd   : > { %v1248_v37 = vadd.f32 %v1247_v21, %v976_v13  ;;  %v1331_v30 = vadd.f32 %v1330_v6, %v1294_v19  ;;  %v990_v19 = vsub.f32 %v8767_v14, %v8656_v27  ;;  %v1308_v44 = vmul.f32 %v989_v0, %v989_v0  ;;  %v1226_v14 = vld [vmem:[#allocation4] sm:$0x1] }
 0x1ce   : > { %v1225_v6 = vmul.f32 %v7321_v28, %v991_v7 }
 0x1cf   : > { %v1249_v12 = vadd.f32 %v1248_v37, %v977_v32  ;;  %v1332_v43 = vadd.f32 %v1331_v30, %v1295_v22  ;;  %v1309_v37 = vmul.f32 %v990_v19, %v990_v19 }
 0x1d1   : > { %v1250_v39 = vadd.f32 %v1249_v12, %v978_v25  ;;  %v1333_v49 = vadd.f32 %v1332_v43, %v1296_v31  ;;  %v1310_v31 = vmul.f32 %v1225_v6, %v991_v7 }
 0x1d3   : > { %v1334_v18 = vadd.f32 %v1333_v49, %v1297_v26  ;;  %v1251_v55 = vadd.f32 %v1250_v39, %v979_v34 }
 0x1d5   : > { %v1252_v47 = vadd.f32 %v1251_v55, %v980_v36  ;;  %v1335_v61 = vadd.f32 %v1334_v18, %v1298_v41  ;;  %v1272_v18 = vld [vmem:[#allocation5] sm:$0x1] }
 0x1d7   : > { %v1253_v33 = vadd.f32 %v1252_v47, %v981_v29  ;;  %v1336_v3 = vadd.f32 %v1335_v61, %v1299_v42 }
 0x1d9   : > { %v1254_v54 = vadd.f32 %v1253_v33, %v982_v40  ;;  %v1337_v9 = vadd.f32 %v1336_v3, %v1300_v48 }
 0x1db   : > { %v1255_v57 = vadd.f32 %v1254_v54, %v983_v50  ;;  %v1338_v52 = vadd.f32 %v1337_v9, %v1301_v46 }
 0x1dd   : > { %v1256_v59 = vadd.f32 %v1255_v57, %v984_v51  ;;  %v1339_v1 = vadd.f32 %v1338_v52, %v1302_v56 }
 0x1df   : > { %v1340_v38 = vadd.f32 %v1339_v1, %v1303_v62  ;;  %v1257_v58 = vadd.f32 %v1256_v59, %v985_v15 }
 0x1e1   : > { %v1341_v4 = vadd.f32 %v1340_v38, %v1304_v63  ;;  %v1258_v5 = vadd.f32 %v1257_v58, %v986_v23 }
 0x1e3   : > { %v1342_v10 = vadd.f32 %v1341_v4, %v1305_v8  ;;  %v1259_v11 = vadd.f32 %v1258_v5, %v987_v2 }
 0x1e5   : > { %v1343_v13 = vadd.f32 %v1342_v10, %v1306_v24  ;;  %v1260_v16 = vadd.f32 %v1259_v11, %v988_v53 }
 0x1e7   : > { %v1344_v32 = vadd.f32 %v1343_v13, %v1307_v17  ;;  %v1261_v21 = vadd.f32 %v1260_v16, %v989_v0 }
 0x1e9   : > { %v1345_v22 = vadd.f32 %v1344_v32, %v1308_v44  ;;  %v1262_v25 = vadd.f32 %v1261_v21, %v990_v19 }
 0x1eb   : > { %v1346_v30 = vadd.f32 %v1345_v22, %v1309_v37  ;;  %v1263_v60 = vadd.f32 %v1262_v25, %v1225_v6 }
 0x1ed   : > { %v1264_v34 = vrot.slane %v1263_v60, 4  ;;  %v1347_v35 = vadd.f32 %v1346_v30, %v1310_v31 }
 0x1ef   : > { %v1265_v12 = vadd.f32 %v1264_v34, %v1263_v60  ;;  %v1348_v20 = vrot.slane %v1347_v35, 4 }
 0x1f1   : > { %v1266_v43 = vrot.slane %v1265_v12, 2  ;;  %v1349_v26 = vadd.f32 %v1348_v20, %v1347_v35 }
 0x1f3   : > { %v1267_v36 = vadd.f32 %v1266_v43, %v1265_v12  ;;  %v1350_v39 = vrot.slane %v1349_v26, 2 }
 0x1f5   : > { %v1268_v49 = vrot.slane %v1267_v36, 1  ;;  %v1351_v27 = vadd.f32 %v1350_v39, %v1349_v26 }
 0x1f7   : > { %v1269_v41 = vadd.f32 %v1268_v49, %v1267_v36  ;;  %v1352_v29 = vrot.slane %v1351_v27, 1 }
 0x1f9   : > { %v1270_v55 = vadd.f32 %v1269_v41, %v1226_v14  ;;  %v1353_v42 = vadd.f32 %v1352_v29, %v1351_v27 }
 0x1fb   : > { %1271 = vst [vmem:[#allocation4] sm:$0x1] %v1270_v55  ;;  %v1354_v40 = vadd.f32 %v1353_v42, %v1272_v18 }
 0x1fd   : > { %1355 = vst [vmem:[#allocation5] sm:$0x1] %v1354_v40 }
 0x1fe PF: > { %p1569_p12 = scmp.le.s32.totalorder %s8296_s14, 2 }
 0x200   : > { %p1570_p13 = pnand %p1569_p12, %p609_p11 }
 0x202   : > { %1573 = sbr.rel (%p1570_p13) target bundleno = 892 (0x37c), region = 96 }
 0x207   : > { %v7824_v47 = vld [vmem:[%s8528_s23 + $0x38] sm:$0xff]   ;;  %v10825_v61 = vmov 0.0   ;;  %v7825_v48 = vld [vmem:[%s8528_s23 + $0x30] sm:$0xff]   ;;  %vm8318_vm2 = vmmov 0   ;;  %v7826_v50 = vld [vmem:[%s8528_s23 + $0x28] sm:$0xff]  }
 0x208   : > { %7590 = vmatprep.subr.bf16.mxu0 %v10825_v61  ;;  %7698 = vmatprep.subr.bf16.mxu1 %v10825_v61  ;;  %v1576_v33 = vld [vmem:[#allocation2 + $0xb0] sm:$0xff]  ;;  %v8835_v46 = vld [vmem:[#allocation6] ss:$0 sm:$0xff]  ;;  %v8840_v9 = vld [vmem:[#allocation7] ss:$0 sm:$0xff] }
 0x209   : > { %7591 = vmatpush3.bf16.msra.mxu0 %v7824_v47  ;;  %7606 = vmatprep.mubr.msk.bf16.mxu0 %vm8318_vm2, %v10825_v61  ;;  %v1577_v3 = vld [vmem:[#allocation2 + $0xd0] sm:$0xff]  ;;  %v1621_v51 = vmul.f32 %v8835_v46, %v1576_v33  ;;  %v7827_v56 = vld [vmem:[%s8528_s23 + $0x20] sm:$0xff]   ;;  %v1581_v23 = vld [vmem:[#allocation2 + $0x38] sm:$0xff] }
 0x20a   : > { %7592 = vmatprep.subr.bf16.mxu0 %v10825_v61  ;;  %7706 = vmatpush3.bf16.msra.mxu1 %v7824_v47  ;;  %v1622_v54 = vmul.f32 %v8835_v46, %v1577_v3  ;;  %v1578_v57 = vld [vmem:[#allocation2 + $0x10] sm:$0xff]  ;;  %v1579_v52 = vld [vmem:[#allocation2 + $0x48] sm:$0xff]  ;;  %v1580_v1 = vld [vmem:[#allocation2 + $0x120] sm:$0xff]  ;;  %v1626_v38 = vmul.f32 %v8835_v46, %v1581_v23 }
 0x20b   : > { %7699 = vmatprep.subr.bf16.mxu1 %v10825_v61  ;;  %7646 = vmatprep.mubr.msk.bf16.mxu1 %vm8318_vm2, %v10825_v61  ;;  %v8845_v15 = vadd.f32 %v8840_v9, %v1621_v51  ;;  %v1623_v59 = vmul.f32 %v8835_v46, %v1578_v57  ;;  %v1624_v62 = vmul.f32 %v8835_v46, %v1579_v52  ;;  %v1582_v58 = vld [vmem:[#allocation2 + $0x70] sm:$0xff]  ;;  %v1583_v53 = vld [vmem:[#allocation2 + $0x100] sm:$0xff]  ;;  %v1584_v28 = vld [vmem:[#allocation2 + $0x108] sm:$0xff] }
 0x20c   : > { %v8848_v45 = vadd.f32 %v8840_v9, %v1622_v54  ;;  %v1625_v2 = vmul.f32 %v8835_v46, %v1580_v1  ;;  %v7828_v24 = vld [vmem:[%s8528_s23 + $0x18] sm:$0xff]   ;;  %v8868_v11 = vadd.f32 %v8840_v9, %v1626_v38  ;;  %v1627_v0 = vmul.f32 %v8835_v46, %v1582_v58  ;;  %v1585_v13 = vld [vmem:[#allocation2 + $0x88] sm:$0xff]  ;;  %v1597_v22 = vld [vmem:[#allocation2 + $0x90] sm:$0xff] }
 0x20d   : > { %7593 = vmatpush3.bf16.msra.mxu0 %v7825_v48  ;;  %v7324_v63 = vmul.f32 -1.442695, %v8845_v15  ;;  %v8857_v5 = vadd.f32 %v8840_v9, %v1623_v59  ;;  %v8860_v8 = vadd.f32 %v8840_v9, %v1624_v62  ;;  %v1628_v7 = vmul.f32 %v8835_v46, %v1583_v53  ;;  %v1596_v6 = vld [vmem:[#allocation2 + $0xa8] sm:$0xff]  ;;  %v1586_v60 = vld [vmem:[#allocation2 + $0x110] sm:$0xff]  ;;  %v1598_v39 = vld [vmem:[#allocation2 + $0xe0] sm:$0xff] }
 0x20e   : > { %7594 = vmatprep.subr.bf16.mxu0 %v10825_v61  ;;  %7707 = vmatpush3.bf16.msra.mxu1 %v7825_v48  ;;  %v7325_v4 = vmul.f32 -1.442695, %v8848_v45  ;;  %v8865_v10 = vadd.f32 %v8840_v9, %v1625_v2  ;;  %v1629_v19 = vmul.f32 %v8835_v46, %v1584_v28  ;;  %v7329_v21 = vmul.f32 -1.442695, %v8868_v11  ;;  %v7829_v31 = vld [vmem:[%s8528_s23 + $0x10] sm:$0xff]   ;;  %v1588_v42 = vld [vmem:[#allocation2 + $0x40] sm:$0xff] }
 0x20f   : > { %7700 = vmatprep.subr.bf16.mxu1 %v10825_v61  ;;  %7832 = vpow2.f32 %v7324_v63  ;;  %v7326_v16 = vmul.f32 -1.442695, %v8857_v5  ;;  %v7327_v17 = vmul.f32 -1.442695, %v8860_v8  ;;  %v8879_v44 = vadd.f32 %v8840_v9, %v1627_v0  ;;  %v1587_v20 = vld [vmem:[#allocation2 + $0xf0] sm:$0xff]  ;;  %v1599_v41 = vld [vmem:[#allocation2 + $0xf8] sm:$0xff] }
 0x210   : > { %7834 = vpow2.f32 %v7325_v4  ;;  %v7328_v32 = vmul.f32 -1.442695, %v8865_v10  ;;  %v8883_v25 = vadd.f32 %v8840_v9, %v1628_v7  ;;  %v1630_v37 = vmul.f32 %v8835_v46, %v1585_v13  ;;  %v1589_v40 = vld [vmem:[#allocation2 + $0xc8] sm:$0xff]  ;;  %v1601_v62 = vld [vmem:[#allocation2 + $0x78] sm:$0xff]  ;;  %v1590_v1 = vld [vmem:[#allocation2 + $0x30] sm:$0xff] }
 0x211   : > { %7595 = vmatpush3.bf16.msra.mxu0 %v7826_v50  ;;  %7836 = vpow2.f32 %v7326_v16  ;;  %v8887_v30 = vadd.f32 %v8840_v9, %v1629_v19  ;;  %v7330_v34 = vmul.f32 -1.442695, %v8879_v44  ;;  %v1641_v35 = vmul.f32 %v8835_v46, %v1596_v6  ;;  %v7830_v47 = vld [vmem:[%s8528_s23 + $0x8] sm:$0xff]   ;;  %v7831_v58 = vld [vmem:[%s8528_s23] sm:$0xff]  }
 0x212   : > { %7596 = vmatprep.subr.bf16.mxu0 %v10825_v61  ;;  %7708 = vmatpush3.bf16.msra.mxu1 %v7826_v50  ;;  %7838 = vpow2.f32 %v7327_v17  ;;  %v1642_v12 = vmul.f32 %v8835_v46, %v1597_v22  ;;  %v7331_v43 = vmul.f32 -1.442695, %v8883_v25  ;;  %v8896_v26 = vadd.f32 %v8840_v9, %v1630_v37 }
 0x213   : > { %7701 = vmatprep.subr.bf16.mxu1 %v10825_v61  ;;  %7840 = vpow2.f32 %v7328_v32  ;;  %v7332_v36 = vmul.f32 -1.442695, %v8887_v30  ;;  %v8900_v49 = vadd.f32 %v8840_v9, %v1641_v35  ;;  %v1631_v14 = vmul.f32 %v8835_v46, %v1586_v60  ;;  %v1602_v60 = vld [vmem:[#allocation2 + $0xc0] sm:$0xff] }
 0x214   : > { %7842 = vpow2.f32 %v7329_v21  ;;  %v8903_v27 = vadd.f32 %v8840_v9, %v1642_v12  ;;  %v7333_v29 = vmul.f32 -1.442695, %v8896_v26  ;;  %v1632_v18 = vmul.f32 %v8835_v46, %v1587_v20 }
 0x215   : > { %7597 = vmatpush3.bf16.msra.mxu0 %v7827_v56  ;;  %7844 = vpow2.f32 %v7330_v34  ;;  %v1643_v55 = vmul.f32 %v8835_v46, %v1598_v39  ;;  %v7344_v48 = vmul.f32 -1.442695, %v8900_v49  ;;  %v8914_v33 = vadd.f32 %v8840_v9, %v1631_v14 }
 0x216   : > { %7598 = vmatprep.subr.bf16.mxu0 %v10825_v61  ;;  %7709 = vmatpush3.bf16.msra.mxu1 %v7827_v56  ;;  %7846 = vpow2.f32 %v7331_v43  ;;  %v7345_v50 = vmul.f32 -1.442695, %v8903_v27  ;;  %v8918_v3 = vadd.f32 %v8840_v9, %v1632_v18  ;;  %v1644_v51 = vmul.f32 %v8835_v46, %v1599_v41  ;;  %v1600_v56 = vld [vmem:[#allocation2 + $0xa0] sm:$0xff]  ;;  %v1592_v43 = vld [vmem:[#allocation2 + $0x128] sm:$0xff] }
 0x217   : > { %7702 = vmatprep.subr.bf16.mxu1 %v10825_v61  ;;  %7848 = vpow2.f32 %v7332_v36  ;;  %v8922_v54 = vadd.f32 %v8840_v9, %v1643_v55  ;;  %v7334_v57 = vmul.f32 -1.442695, %v8914_v33  ;;  %v1633_v52 = vmul.f32 %v8835_v46, %v1588_v42 }
 0x218   : > { %7850 = vpow2.f32 %v7333_v29  ;;  %v1634_v59 = vmul.f32 %v8835_v46, %v1589_v40  ;;  %v7335_v23 = vmul.f32 -1.442695, %v8918_v3  ;;  %v8930_v2 = vadd.f32 %v8840_v9, %v1644_v51  ;;  %v1593_v29 = vld [vmem:[#allocation2 + $0x50] sm:$0xff] }
 0x219   : > { %7599 = vmatpush3.bf16.msra.mxu0 %v7828_v24  ;;  %7852 = vpow2.f32 %v7344_v48  ;;  %v7346_v38 = vmul.f32 -1.442695, %v8922_v54  ;;  %v8935_v63 = vadd.f32 %v8840_v9, %v1633_v52  ;;  %v1645_v53 = vmul.f32 %v8835_v46, %v1600_v56 }
 0x21a   : > { %7600 = vmatprep.subr.bf16.mxu0 %v10825_v61  ;;  %7710 = vmatpush3.bf16.msra.mxu1 %v7828_v24  ;;  %7854 = vpow2.f32 %v7345_v50  ;;  %v8938_v4 = vadd.f32 %v8840_v9, %v1634_v59  ;;  %v1591_v24 = vld [vmem:[#allocation2 + $0x20] sm:$0xff]  ;;  %v7347_v0 = vmul.f32 -1.442695, %v8930_v2  ;;  %v1646_v7 = vmul.f32 %v8835_v46, %v1601_v62  ;;  %v1604_v62 = vld [vmem:[#allocation2 + $0xe8] sm:$0xff] }
 0x21b   : > { %7703 = vmatprep.subr.bf16.mxu1 %v10825_v61  ;;  %7856 = vpow2.f32 %v7334_v57  ;;  %v1635_v28 = vmul.f32 %v8835_v46, %v1590_v1  ;;  %v8946_v16 = vadd.f32 %v8840_v9, %v1645_v53  ;;  %v1636_v32 = vmul.f32 %v8835_v46, %v1591_v24  ;;  %v8986_v53 = vld [vmem:[%s565_s29] sm:$0x1] }
 0x21c   : > { %v7833_v13 = vpop.eup %7832  ;;  %7858 = vpow2.f32 %v7335_v23  ;;  %v8951_v22 = vmul.f32 -1.442695, %v8935_v63  ;;  %v8954_v37 = vadd.f32 %v8840_v9, %v1646_v7  ;;  %v8957_v12 = vmul.f32 -1.442695, %v8938_v4  ;;  %10857 = vst [vmem:[#allocation21_spill] sm:$0xff] %v8986_v53 }
 0x21d   : > { %7601 = vmatpush3.bf16.msra.mxu0 %v7829_v31  ;;  %v7835_v17 = vpop.eup %7834  ;;  %v1818_v19 = vadd.f32 1.0, %v7833_v13  ;;  %7860 = vpow2.f32 %v7346_v38  ;;  %v8960_v20 = vadd.f32 %v8840_v9, %v1635_v28  ;;  %v8963_v14 = vmul.f32 -1.442695, %v8946_v16  ;;  %v1594_v13 = vld [vmem:[#allocation2 + $0x8] sm:$0xff]  ;;  %2363 = vst [vmem:[#allocation8] sm:$0x1] %v8986_v53 }
 0x21e   : > { %7602 = vmatprep.subr.bf16.mxu0 %v10825_v61  ;;  %7711 = vmatpush3.bf16.msra.mxu1 %v7829_v31  ;;  %v7837_v21 = vpop.eup %7836  ;;  %v1819_v6 = vadd.f32 1.0, %v7835_v17  ;;  %7862 = vpow2.f32 %v7347_v0  ;;  %v1603_v31 = vld [vmem:[#allocation2 + $0x80] sm:$0xff]  ;;  %v8966_v41 = vadd.f32 %v8840_v9, %v1636_v32  ;;  %v1647_v42 = vmul.f32 %v8835_v46, %v1602_v60 }
 0x21f   : > { %7704 = vmatprep.subr.bf16.mxu1 %v10825_v61  ;;  %v7839_v34 = vpop.eup %7838  ;;  %7864 = vrcp.f32 %v1818_v19  ;;  %v1820_v35 = vadd.f32 1.0, %v7837_v21  ;;  %v1648_v40 = vmul.f32 %v8835_v46, %v1603_v31  ;;  %v8971_v50 = vmul.f32 -1.442695, %v8954_v37 }
 0x220   : > { %v7841_v36 = vpop.eup %7840  ;;  %7866 = vrcp.f32 %v1819_v6  ;;  %v1821_v39 = vadd.f32 1.0, %v7839_v34  ;;  %v1637_v51 = vmul.f32 %v8835_v46, %v1592_v43  ;;  %v8975_v52 = vmul.f32 -1.442695, %v8960_v20  ;;  %v1595_v6 = vld [vmem:[#allocation2 + $0x98] sm:$0xff] }
 0x221   : > { %7603 = vmatpush3.bf16.msra.mxu0 %v7830_v47  ;;  %v7843_v18 = vpop.eup %7842  ;;  %7868 = vrcp.f32 %v1820_v35  ;;  %v1822_v55 = vadd.f32 1.0, %v7841_v36  ;;  %v1638_v59 = vmul.f32 %v8835_v46, %v1593_v29  ;;  %v8979_v38 = vmul.f32 -1.442695, %v8966_v41 }
 0x222   : > { %7604 = vmatprep.subr.bf16.mxu0 %v10825_v61  ;;  %7712 = vmatpush3.bf16.msra.mxu1 %v7830_v47  ;;  %v7845_v47 = vpop.eup %7844  ;;  %7870 = vrcp.f32 %v1821_v39  ;;  %v1823_v48 = vadd.f32 1.0, %v7843_v18  ;;  %v8989_v7 = vadd.f32 %v8840_v9, %v1647_v42  ;;  %v8992_v28 = vadd.f32 %v8840_v9, %v1648_v40 }
 0x223   : > { %7705 = vmatprep.subr.bf16.mxu1 %v10825_v61  ;;  %v7847_v56 = vpop.eup %7846  ;;  %7872 = vrcp.f32 %v1822_v55  ;;  %v1824_v57 = vadd.f32 1.0, %v7845_v47  ;;  %v8996_v32 = vadd.f32 %v8840_v9, %v1637_v51  ;;  %v1649_v21 = vmul.f32 %v8835_v46, %v1604_v62  ;;  %v1609_v61 = vld [vmem:[#allocation2 + $0x68] sm:$0xff] }
 0x224   : > { %v7849_v1 = vpop.eup %7848  ;;  %7874 = vrcp.f32 %v1823_v48  ;;  %v1825_v23 = vadd.f32 1.0, %v7847_v56  ;;  %v9000_v34 = vadd.f32 %v8840_v9, %v1638_v59  ;;  %v1639_v29 = vmul.f32 %v8835_v46, %v1594_v13 }
 0x225   : > { %7605 = vmatpush3.bf16.msra.mxu0 %v7831_v58  ;;  %v7851_v24 = vpop.eup %7850  ;;  %7876 = vrcp.f32 %v1824_v57  ;;  %v1826_v0 = vadd.f32 1.0, %v7849_v1  ;;  %v9004_v39 = vadd.f32 %v8840_v9, %v1649_v21  ;;  %v1640_v40 = vmul.f32 %v8835_v46, %v1595_v6  ;;  %v1972_v6 = vld [vmem:[#allocation3 + $0xc8] sm:$0xff] }
 0x226   : > { %7713 = vmatpush3.bf16.msra.mxu1 %v7831_v58  ;;  %v1605_v58 = vld [vmem:[#allocation2] sm:$0xff]  ;;  %v7853_v17 = vpop.eup %7852  ;;  %7878 = vrcp.f32 %v1825_v23  ;;  %v1827_v19 = vadd.f32 1.0, %v7851_v24  ;;  %v9012_v51 = vmul.f32 -1.442695, %v8989_v7  ;;  %v9015_v56 = vadd.f32 %v8840_v9, %v1639_v29  ;;  %v1606_v23 = vld [vmem:[#allocation2 + $0xd8] sm:$0xff]  ;;  %v1971_v24 = vld [vmem:[#allocation3 + $0x80] sm:$0xff] }
 0x227   : > { %v7855_v60 = vpop.eup %7854  ;;  %7880 = vrcp.f32 %v1826_v0  ;;  %v1838_v31 = vadd.f32 1.0, %v7853_v17  ;;  %v1650_v35 = vmul.f32 %v8835_v46, %v1605_v58  ;;  %v9018_v62 = vmul.f32 -1.442695, %v8992_v28  ;;  %v1973_v29 = vld [vmem:[#allocation3 + $0xb8] sm:$0xff] }
 0x228   : > { %v7857_v43 = vpop.eup %7856  ;;  %7882 = vrcp.f32 %v1827_v19  ;;  %v1839_v36 = vadd.f32 1.0, %v7855_v60  ;;  %v9021_v1 = vadd.f32 %v8840_v9, %v1640_v40  ;;  %v9024_v13 = vmul.f32 -1.442695, %v8996_v32 }
 0x229   : > { %v7859_v18 = vpop.eup %7858  ;;  %7884 = vrcp.f32 %v1838_v31  ;;  %v1828_v55 = vadd.f32 1.0, %v7857_v43  ;;  %v9008_v42 = vadd.f32 %v8840_v9, %v1650_v35  ;;  %v9027_v17 = vmul.f32 -1.442695, %v9000_v34  ;;  %v1607_v35 = vld [vmem:[#allocation2 + $0x28] sm:$0xff] }
 0x22a   : > { %v7861_v47 = vpop.eup %7860  ;;  %7886 = vrcp.f32 %v1839_v36  ;;  %v1829_v48 = vadd.f32 1.0, %v7859_v18  ;;  %v9031_v60 = vmul.f32 -1.442695, %v9004_v39  ;;  %v9038_v18 = vmul.f32 -1.442695, %v9015_v56 }
 0x22b   : > { %v7863_v57 = vpop.eup %7862  ;;  %7888 = vrcp.f32 %v1828_v55  ;;  %v1840_v59 = vadd.f32 1.0, %v7861_v47  ;;  %v9034_v31 = vmul.f32 -1.442695, %v9008_v42  ;;  %v1651_v55 = vmul.f32 %v8835_v46, %v1606_v23 }
 0x22c   : > { %v7865_v58 = vpop.eup %7864  ;;  %7890 = vrcp.f32 %v1829_v48  ;;  %v1841_v0 = vadd.f32 1.0, %v7863_v57  ;;  %v1974_v57 = vld [vmem:[#allocation3 + $0x70] sm:$0xff]  ;;  %v1652_v23 = vmul.f32 %v8835_v46, %v1607_v35  ;;  %v1977_v35 = vld [vmem:[#allocation3 + $0x120] sm:$0xff] }
 0x22d   : > { %v7867_v19 = vpop.eup %7866  ;;  %v1932_v21 = vmul.f32 %v7865_v58, %v8845_v15  ;;  %7892 = vrcp.f32 %v1840_v59  ;;  %v1608_v15 = vld [vmem:[#allocation2 + $0x60] sm:$0xff]  ;;  %v9044_v59 = vmul.f32 -1.442695, %v9021_v1 }
 0x22e   : > { %v7869_v43 = vpop.eup %7868  ;;  %v1933_v36 = vmul.f32 %v7867_v19, %v8848_v45  ;;  %7894 = vrcp.f32 %v1841_v0  ;;  %v1975_v19 = vld [vmem:[#allocation3 + $0x98] sm:$0xff] }
 0x22f   : > { %v7871_v40 = vpop.eup %7870  ;;  %v2009_v47 = vadd.f32 %v1971_v24, %v1932_v21  ;;  %v1934_v48 = vmul.f32 %v7869_v43, %v8857_v5  ;;  %7896 = vpow2.f32 %v8951_v22  ;;  %v1976_v22 = vld [vmem:[#allocation3 + $0xa8] sm:$0xff]  ;;  %v1653_v21 = vmul.f32 %v8835_v46, %v1608_v15 }
 0x230   : > { %v7873_v58 = vpop.eup %7872  ;;  %v2010_v45 = vadd.f32 %v1972_v6, %v1933_v36  ;;  %v1935_v0 = vmul.f32 %v7871_v40, %v8860_v8  ;;  %7898 = vpow2.f32 %v8957_v12  ;;  %v1654_v15 = vmul.f32 %v8835_v46, %v1609_v61 }
 0x231   : > { %v7875_v53 = vpop.eup %7874  ;;  %2047 = vst [vmem:[#allocation3 + $0x80] sm:$0xff] %v2009_v47  ;;  %v9049_v24 = vadd.f32 %v1973_v29, %v1934_v48  ;;  %v1936_v5 = vmul.f32 %v7873_v58, %v8865_v10  ;;  %7900 = vpow2.f32 %v8963_v14  ;;  %v1978_v14 = vld [vmem:[#allocation3 + $0xd0] sm:$0xff]  ;;  %v10858_v48 = vmov 0.0  }
 0x232   : > { %v7877_v6 = vpop.eup %7876  ;;  %2048 = vst [vmem:[#allocation3 + $0xc8] sm:$0xff] %v2010_v45  ;;  %v2086_v8 = vpack.c.bf16 %v2010_v45, %v2009_v47  ;;  %v9054_v43 = vadd.f32 %v1974_v57, %v1935_v0  ;;  %v1937_v12 = vmul.f32 %v7875_v53, %v8868_v11  ;;  %7902 = vpow2.f32 %v8971_v50  ;;  %v1979_v53 = vld [vmem:[#allocation3 + $0xf0] sm:$0xff]  ;;  %v1980_v57 = vld [vmem:[#allocation3 + $0x100] sm:$0xff]  ;;  %v1991_v45 = vld [vmem:[#allocation3 + $0xd8] sm:$0xff] }
 0x233   : > { %v7879_v36 = vpop.eup %7878  ;;  %2049 = vst [vmem:[#allocation3 + $0xb8] sm:$0xff] %v9049_v24  ;;  %v9059_v29 = vadd.f32 %v1975_v19, %v1936_v5  ;;  %v1938_v10 = vmul.f32 %v7877_v6, %v8879_v44  ;;  %7904 = vpow2.f32 %v8975_v52  ;;  %v9070_v47 = vadd.f32 %v8840_v9, %v1651_v55  ;;  %v1992_v5 = vld [vmem:[#allocation3 + $0x128] sm:$0xff]  ;;  %v1981_v6 = vld [vmem:[#allocation3 + $0xf8] sm:$0xff] }
 0x234   : > { %v7881_v40 = vpop.eup %7880  ;;  %7607 = vmatmul.mubr.bf16.vlgmr.msra.gmra.mxu0 %v2086_v8  ;;  %2050 = vst [vmem:[#allocation3 + $0x70] sm:$0xff] %v9054_v43  ;;  %v9065_v11 = vadd.f32 %v1976_v22, %v1937_v12  ;;  %v1939_v50 = vmul.f32 %v7879_v36, %v8883_v25  ;;  %7906 = vpow2.f32 %v8979_v38  ;;  %v9080_v25 = vadd.f32 %v8840_v9, %v1653_v21  ;;  %v1982_v12 = vld [vmem:[#allocation3 + $0x38] sm:$0xff] }
 0x235   : > { %v7883_v44 = vpop.eup %7882  ;;  %7610 = vmatprep.mubr.msk.bf16.mxu0 %vm8318_vm2, %v10858_v48  ;;  %2051 = vst [vmem:[#allocation3 + $0x98] sm:$0xff] %v9059_v29  ;;  %v9075_v61 = vadd.f32 %v1977_v35, %v1938_v10  ;;  %v1940_v52 = vmul.f32 %v7881_v40, %v8887_v30  ;;  %7908 = vpow2.f32 %v9012_v51  ;;  %v9088_v0 = vadd.f32 %v8840_v9, %v1652_v23  ;;  %v1993_v36 = vld [vmem:[#allocation3 + $0x118] sm:$0xff]  ;;  %v1610_v10 = vld [vmem:[#allocation2 + $0x18] sm:$0xff] }
 0x236   : > { %v7885_v38 = vpop.eup %7884  ;;  %2052 = vst [vmem:[#allocation3 + $0xa8] sm:$0xff] %v9065_v11  ;;  %v9083_v55 = vadd.f32 %v1978_v14, %v1939_v50  ;;  %v1941_v58 = vmul.f32 %v7883_v44, %v8896_v26  ;;  %7910 = vpow2.f32 %v9018_v62  ;;  %v9096_v22 = vadd.f32 %v8840_v9, %v1654_v15  ;;  %v1994_v15 = vld [vmem:[#allocation3 + $0x78] sm:$0xff] }
 0x237   : > { %v7887_v30 = vpop.eup %7886  ;;  %2053 = vst [vmem:[#allocation3 + $0x120] sm:$0xff] %v9075_v61  ;;  %v9091_v51 = vadd.f32 %v1979_v53, %v1940_v52  ;;  %v1952_v19 = vmul.f32 %v7885_v38, %v8900_v49  ;;  %7912 = vpow2.f32 %v9024_v13  ;;  %v2087_v62 = vpack.c.bf16 %v9054_v43, %v9049_v24  ;;  %v1611_v53 = vld [vmem:[#allocation2 + $0x58] sm:$0xff] }
 0x238   : > { %v7889_v26 = vpop.eup %7888  ;;  %2054 = vst [vmem:[#allocation3 + $0xd0] sm:$0xff] %v9083_v55  ;;  %v9101_v23 = vadd.f32 %v1980_v57, %v1941_v58  ;;  %v1953_v21 = vmul.f32 %v7887_v30, %v8903_v27  ;;  %7914 = vpow2.f32 %v9027_v17  ;;  %v7354_v24 = vmul.f32 -1.442695, %v9070_v47  ;;  %v1612_v57 = vld [vmem:[#allocation2 + $0x118] sm:$0xff] }
 0x239   : > { %v7891_v49 = vpop.eup %7890  ;;  %2055 = vst [vmem:[#allocation3 + $0xf0] sm:$0xff] %v9091_v51  ;;  %v2029_v13 = vadd.f32 %v1991_v45, %v1952_v19  ;;  %v1942_v8 = vmul.f32 %v7889_v26, %v8914_v33  ;;  %7916 = vpow2.f32 %v9031_v60  ;;  %v7355_v17 = vmul.f32 -1.442695, %v9088_v0 }
 0x23a   : > { %v7893_v43 = vpop.eup %7892  ;;  %2056 = vst [vmem:[#allocation3 + $0x100] sm:$0xff] %v9101_v23  ;;  %v2030_v35 = vadd.f32 %v1992_v5, %v1953_v21  ;;  %v1943_v27 = vmul.f32 %v7891_v49, %v8918_v3  ;;  %7918 = vpow2.f32 %v9034_v31  ;;  %v1656_v30 = vmul.f32 %v8835_v46, %v1611_v53  ;;  %v1613_v5 = vld [vmem:[#allocation2 + $0xb8] sm:$0xff] }
 0x23b   : > { %v7895_v14 = vpop.eup %7894  ;;  %2067 = vst [vmem:[#allocation3 + $0xd8] sm:$0xff] %v2029_v13  ;;  %v9113_v33 = vadd.f32 %v1981_v6, %v1942_v8  ;;  %v1954_v60 = vmul.f32 %v7893_v43, %v8922_v54  ;;  %7920 = vpow2.f32 %v9038_v18  ;;  %v1655_v18 = vmul.f32 %v8835_v46, %v1610_v10 }
 0x23c   : > { %v7897_v40 = vpop.eup %7896  ;;  %7611 = vmatmul.mubr.bf16.gmra.mxu0 %v2087_v62  ;;  %2068 = vst [vmem:[#allocation3 + $0x128] sm:$0xff] %v2030_v35  ;;  %v2096_v50 = vpack.c.bf16 %v2030_v35, %v2029_v13  ;;  %v9117_v3 = vadd.f32 %v1982_v12, %v1943_v27  ;;  %v1955_v31 = vmul.f32 %v7895_v14, %v8930_v2  ;;  %7922 = vpow2.f32 %v9044_v59 }
 0x23d   : > { %v7899_v44 = vpop.eup %7898  ;;  %7614 = vmatprep.mubr.msk.bf16.mxu0 %vm8318_vm2, %v10858_v48  ;;  %2057 = vst [vmem:[#allocation3 + $0xf8] sm:$0xff] %v9113_v33  ;;  %v2031_v54 = vadd.f32 %v1993_v36, %v1954_v60  ;;  %v1830_v52 = vadd.f32 1.0, %v7897_v40  ;;  %7924 = vpow2.f32 %v7354_v24  ;;  %v9130_v19 = vadd.f32 %v8840_v9, %v1655_v18 }
 0x23e   : > { %v7901_v38 = vpop.eup %7900  ;;  %7647 = vmatmul.mubr.bf16.vlgmr.msra.gmra.mxu1 %v2096_v50  ;;  %2058 = vst [vmem:[#allocation3 + $0x38] sm:$0xff] %v9117_v3  ;;  %v2032_v2 = vadd.f32 %v1994_v15, %v1955_v31  ;;  %v1831_v58 = vadd.f32 1.0, %v7899_v44  ;;  %7926 = vpow2.f32 %v7355_v17  ;;  %v2088_v62 = vpack.c.bf16 %v9065_v11, %v9059_v29 }
 0x23f   : > { %v7903_v59 = vpop.eup %7902  ;;  %7650 = vmatprep.mubr.msk.bf16.mxu1 %vm8318_vm2, %v10858_v48  ;;  %2069 = vst [vmem:[#allocation3 + $0x118] sm:$0xff] %v2031_v54  ;;  %7928 = vrcp.f32 %v1830_v52  ;;  %v1842_v45 = vadd.f32 1.0, %v7901_v38  ;;  %v1657_v6 = vmul.f32 %v8835_v46, %v1612_v57  ;;  %v9136_v12 = vadd.f32 %v8840_v9, %v1656_v30 }
 0x240   : > { %v7905_v26 = vpop.eup %7904  ;;  %2070 = vst [vmem:[#allocation3 + $0x78] sm:$0xff] %v2032_v2  ;;  %7930 = vrcp.f32 %v1831_v58  ;;  %v1843_v21 = vadd.f32 1.0, %v7903_v59  ;;  %v2097_v13 = vpack.c.bf16 %v2032_v2, %v2031_v54  ;;  %v1658_v35 = vmul.f32 %v8835_v46, %v1613_v5  ;;  %v1983_v59 = vld [vmem:[#allocation3 + $0x68] sm:$0xff]  ;;  %v1984_v5 = vld [vmem:[#allocation3 + $0x58] sm:$0xff] }
 0x241   : > { %v7907_v49 = vpop.eup %7906  ;;  %7932 = vrcp.f32 %v1842_v45  ;;  %v1832_v8 = vadd.f32 1.0, %v7905_v26  ;;  %v9140_v27 = vadd.f32 %v8840_v9, %v1657_v6  ;;  %v7356_v2 = vmul.f32 -1.442695, %v9080_v25 }
 0x242   : > { %v7909_v24 = vpop.eup %7908  ;;  %7934 = vrcp.f32 %v1843_v21  ;;  %v1833_v43 = vadd.f32 1.0, %v7907_v49  ;;  %v9143_v10 = vadd.f32 %v8840_v9, %v1658_v35  ;;  %v2089_v9 = vpack.c.bf16 %v9083_v55, %v9075_v61  ;;  %v1995_v49 = vld [vmem:[#allocation3 + $0x30] sm:$0xff] }
 0x243   : > { %v7911_v29 = vpop.eup %7910  ;;  %7936 = vrcp.f32 %v1832_v8  ;;  %v1844_v11 = vadd.f32 1.0, %v7909_v24  ;;  %v7357_v61 = vmul.f32 -1.442695, %v9096_v22  ;;  %v7358_v26 = vmul.f32 -1.442695, %v9130_v19 }
 0x244   : > { %v7913_v36 = vpop.eup %7912  ;;  %7615 = vmatmul.mubr.bf16.gmra.mxu0 %v2088_v62  ;;  %7938 = vrcp.f32 %v1833_v43  ;;  %v1845_v17 = vadd.f32 1.0, %v7911_v29  ;;  %v2090_v21 = vpack.c.bf16 %v9101_v23, %v9091_v51  ;;  %v7360_v35 = vmul.f32 -1.442695, %v9140_v27  ;;  %v1985_v23 = vld [vmem:[#allocation3 + $0x88] sm:$0xff] }
 0x245   : > { %v7915_v14 = vpop.eup %7914  ;;  %7618 = vmatprep.mubr.msk.bf16.mxu0 %vm8318_vm2, %v10858_v48  ;;  %7940 = vrcp.f32 %v1844_v11  ;;  %v1834_v60 = vadd.f32 1.0, %v7913_v36 }
 0x246   : > { %v7917_v46 = vpop.eup %7916  ;;  %7651 = vmatmul.mubr.bf16.gmra.mxu1 %v2097_v13  ;;  %7942 = vrcp.f32 %v1845_v17  ;;  %v1835_v15 = vadd.f32 1.0, %v7915_v14  ;;  %v7359_v13 = vmul.f32 -1.442695, %v9136_v12 }
 0x247   : > { %v7919_v40 = vpop.eup %7918  ;;  %7654 = vmatprep.mubr.msk.bf16.mxu1 %vm8318_vm2, %v10858_v48  ;;  %7944 = vrcp.f32 %v1834_v60  ;;  %v1846_v50 = vadd.f32 1.0, %v7917_v46 }
 0x248   : > { %v7921_v31 = vpop.eup %7920  ;;  %7946 = vrcp.f32 %v1835_v15  ;;  %v1847_v53 = vadd.f32 1.0, %v7919_v40  ;;  %v1997_v40 = vld [vmem:[#allocation3] sm:$0xff] }
 0x249   : > { %v7923_v44 = vpop.eup %7922  ;;  %7948 = vrcp.f32 %v1846_v50  ;;  %v1836_v54 = vadd.f32 1.0, %v7921_v31 }
 0x24a   : > { %v7925_v52 = vpop.eup %7924  ;;  %7950 = vrcp.f32 %v1847_v53  ;;  %v1837_v18 = vadd.f32 1.0, %v7923_v44 }
 0x24b   : > { %v7927_v57 = vpop.eup %7926  ;;  %7952 = vrcp.f32 %v1836_v54  ;;  %v1848_v38 = vadd.f32 1.0, %v7925_v52  ;;  %v1987_v52 = vld [vmem:[#allocation3 + $0x10] sm:$0xff] }
 0x24c   : > { %v7929_v58 = vpop.eup %7928  ;;  %7619 = vmatmul.mubr.bf16.gmra.mxu0 %v2089_v9  ;;  %7954 = vrcp.f32 %v1837_v18  ;;  %v1849_v45 = vadd.f32 1.0, %v7927_v57  ;;  %v1998_v9 = vld [vmem:[#allocation3 + $0x108] sm:$0xff]  ;;  %v1988_v57 = vld [vmem:[#allocation3 + $0x40] sm:$0xff] }
 0x24d   : > { %v7931_v55 = vpop.eup %7930  ;;  %7622 = vmatprep.mubr.msk.bf16.mxu0 %vm8318_vm2, %v10858_v48  ;;  %v1944_v30 = vmul.f32 %v7929_v58, %v8935_v63  ;;  %7956 = vrcp.f32 %v1848_v38  ;;  %v1996_v63 = vld [vmem:[#allocation3 + $0x110] sm:$0xff] }
 0x24e   : > { %v7933_v62 = vpop.eup %7932  ;;  %v1945_v6 = vmul.f32 %v7931_v55, %v8938_v4  ;;  %7958 = vrcp.f32 %v1849_v45  ;;  %v7361_v4 = vmul.f32 -1.442695, %v9143_v10  ;;  %v2000_v55 = vld [vmem:[#allocation3 + $0xe0] sm:$0xff] }
 0x24f   : > { %v7935_v8 = vpop.eup %7934  ;;  %v9161_v24 = vadd.f32 %v1983_v59, %v1944_v30  ;;  %v1956_v43 = vmul.f32 %v7933_v62, %v8946_v16  ;;  %7960 = vpow2.f32 %v7356_v2  ;;  %v1986_v16 = vld [vmem:[#allocation3 + $0x48] sm:$0xff]  ;;  %v2091_v30 = vpack.c.bf16 %v9117_v3, %v9113_v33  ;;  %v2001_v3 = vld [vmem:[#allocation3 + $0x50] sm:$0xff] }
 0x250   : > { %v7937_v29 = vpop.eup %7936  ;;  %v9165_v11 = vadd.f32 %v1984_v5, %v1945_v6  ;;  %v1957_v51 = vmul.f32 %v7935_v8, %v8954_v37  ;;  %7962 = vpow2.f32 %v7357_v61 }
 0x251   : > { %v7939_v36 = vpop.eup %7938  ;;  %2059 = vst [vmem:[#allocation3 + $0x68] sm:$0xff] %v9161_v24  ;;  %v2033_v17 = vadd.f32 %v1995_v49, %v1956_v43  ;;  %v1946_v14 = vmul.f32 %v7937_v29, %v8960_v20  ;;  %7964 = vpow2.f32 %v7358_v26  ;;  %v1989_v26 = vld [vmem:[#allocation3 + $0xe8] sm:$0xff]  ;;  %v1990_v49 = vld [vmem:[#allocation3 + $0xc0] sm:$0xff] }
 0x252   : > { %v7941_v60 = vpop.eup %7940  ;;  %2060 = vst [vmem:[#allocation3 + $0x58] sm:$0xff] %v9165_v11  ;;  %v2034_v46 = vadd.f32 %v1996_v63, %v1957_v51  ;;  %v1947_v15 = vmul.f32 %v7939_v36, %v8966_v41  ;;  %7966 = vpow2.f32 %v7359_v13 }
 0x253   : > { %v7943_v37 = vpop.eup %7942  ;;  %2071 = vst [vmem:[#allocation3 + $0x30] sm:$0xff] %v2033_v17  ;;  %v9173_v50 = vadd.f32 %v1985_v23, %v1946_v14  ;;  %v1958_v31 = vmul.f32 %v7941_v60, %v8989_v7  ;;  %7968 = vpow2.f32 %v7360_v35  ;;  %v2002_v35 = vld [vmem:[#allocation3 + $0x60] sm:$0xff]  ;;  %v2092_v60 = vpack.c.bf16 %v9165_v11, %v9161_v24 }
 0x254   : > { %v7945_v53 = vpop.eup %7944  ;;  %7623 = vmatmul.mubr.bf16.gmra.mxu0 %v2090_v21  ;;  %2072 = vst [vmem:[#allocation3 + $0x110] sm:$0xff] %v2034_v46  ;;  %v2098_v20 = vpack.c.bf16 %v2034_v46, %v2033_v17  ;;  %v9176_v44 = vadd.f32 %v1986_v16, %v1947_v15  ;;  %v1959_v54 = vmul.f32 %v7943_v37, %v8992_v28  ;;  %7970 = vpow2.f32 %v7361_v4  ;;  %v1999_v28 = vld [vmem:[#allocation3 + $0x8] sm:$0xff] }
 0x255   : > { %v7947_v41 = vpop.eup %7946  ;;  %7626 = vmatprep.mubr.msk.bf16.mxu0 %vm8318_vm2, %v10858_v48  ;;  %2061 = vst [vmem:[#allocation3 + $0x88] sm:$0xff] %v9173_v50  ;;  %v2035_v18 = vadd.f32 %v1997_v40, %v1958_v31  ;;  %v1948_v7 = vmul.f32 %v7945_v53, %v8996_v32  ;;  %v2003_v53 = vld [vmem:[#allocation3 + $0x20] sm:$0xff] }
 0x256   : > { %v7949_v38 = vpop.eup %7948  ;;  %7655 = vmatmul.mubr.bf16.gmra.mxu1 %v2098_v20  ;;  %2062 = vst [vmem:[#allocation3 + $0x48] sm:$0xff] %v9176_v44  ;;  %v2036_v2 = vadd.f32 %v1998_v9, %v1959_v54  ;;  %v1949_v58 = vmul.f32 %v7947_v41, %v9000_v34  ;;  %v2093_v24 = vpack.c.bf16 %v9176_v44, %v9173_v50 }
 0x257   : > { %v7951_v59 = vpop.eup %7950  ;;  %7658 = vmatprep.mubr.msk.bf16.mxu1 %vm8318_vm2, %v10858_v48  ;;  %2073 = vst [vmem:[#allocation3] sm:$0xff] %v2035_v18  ;;  %v9187_v45 = vadd.f32 %v1987_v52, %v1948_v7  ;;  %v1960_v61 = vmul.f32 %v7949_v38, %v9004_v39  ;;  %v2004_v52 = vld [vmem:[#allocation3 + $0x18] sm:$0xff]  ;;  %v2005_v7 = vld [vmem:[#allocation3 + $0xb0] sm:$0xff]  ;;  %v2006_v38 = vld [vmem:[#allocation3 + $0x28] sm:$0xff] }
 0x258   : > { %v7953_v32 = vpop.eup %7952  ;;  %2074 = vst [vmem:[#allocation3 + $0x108] sm:$0xff] %v2036_v2  ;;  %v9192_v5 = vadd.f32 %v1988_v57, %v1949_v58  ;;  %v1961_v34 = vmul.f32 %v7951_v59, %v9008_v42  ;;  %v2099_v39 = vpack.c.bf16 %v2036_v2, %v2035_v18  ;;  %v2007_v59 = vld [vmem:[#allocation3 + $0x90] sm:$0xff] }
 0x259   : > { %v7955_v62 = vpop.eup %7954  ;;  %2063 = vst [vmem:[#allocation3 + $0x10] sm:$0xff] %v9187_v45  ;;  %v2037_v21 = vadd.f32 %v1999_v28, %v1960_v61  ;;  %v1950_v6 = vmul.f32 %v7953_v32, %v9015_v56  ;;  %v2008_v32 = vld [vmem:[#allocation3 + $0xa0] sm:$0xff] }
 0x25a   : > { %v7957_v13 = vpop.eup %7956  ;;  %2064 = vst [vmem:[#allocation3 + $0x40] sm:$0xff] %v9192_v5  ;;  %v2038_v8 = vadd.f32 %v2000_v55, %v1961_v34  ;;  %v1951_v33 = vmul.f32 %v7955_v62, %v9021_v1  ;;  %v2094_v58 = vpack.c.bf16 %v9192_v5, %v9187_v45 }
 0x25b   : > { %v7959_v43 = vpop.eup %7958  ;;  %2075 = vst [vmem:[#allocation3 + $0x8] sm:$0xff] %v2037_v21  ;;  %v9199_v63 = vadd.f32 %v1989_v26, %v1950_v6  ;;  %v1962_v42 = vmul.f32 %v7957_v13, %v9070_v47  ;;  %v10859_v6 = vld [vmem:[#allocation21_spill] sm:$0xff] }
 0x25c   : > { %v7961_v29 = vpop.eup %7960  ;;  %7627 = vmatmul.mubr.bf16.gmra.mxu0 %v2091_v30  ;;  %2076 = vst [vmem:[#allocation3 + $0xe0] sm:$0xff] %v2038_v8  ;;  %v9202_v56 = vadd.f32 %v1990_v49, %v1951_v33  ;;  %v1963_v51 = vmul.f32 %v7959_v43, %v9088_v0  ;;  %v2100_v37 = vpack.c.bf16 %v2038_v8, %v2037_v21 }
 0x25d   : > { %v7963_v23 = vpop.eup %7962  ;;  %7630 = vmatprep.mubr.msk.bf16.mxu0 %vm8318_vm2, %v10858_v48  ;;  %2065 = vst [vmem:[#allocation3 + $0xe8] sm:$0xff] %v9199_v63  ;;  %v2039_v1 = vadd.f32 %v2001_v3, %v1962_v42  ;;  %v1850_v4 = vadd.f32 1.0, %v7961_v29 }
 0x25e   : > { %v7965_v36 = vpop.eup %7964  ;;  %7659 = vmatmul.mubr.bf16.gmra.mxu1 %v2099_v39  ;;  %2066 = vst [vmem:[#allocation3 + $0xc0] sm:$0xff] %v9202_v56  ;;  %v2040_v47 = vadd.f32 %v2002_v35, %v1963_v51  ;;  %v1851_v17 = vadd.f32 1.0, %v7963_v23 }
 0x25f   : > { %v7967_v14 = vpop.eup %7966  ;;  %7662 = vmatprep.mubr.msk.bf16.mxu1 %vm8318_vm2, %v10858_v48  ;;  %2077 = vst [vmem:[#allocation3 + $0x50] sm:$0xff] %v2039_v1  ;;  %7972 = vrcp.f32 %v1850_v4  ;;  %v1852_v0 = vadd.f32 1.0, %v7965_v36 }
 0x260   : > { %v7969_v16 = vpop.eup %7968  ;;  %2078 = vst [vmem:[#allocation3 + $0x60] sm:$0xff] %v2040_v47  ;;  %7974 = vrcp.f32 %v1851_v17  ;;  %v1853_v46 = vadd.f32 1.0, %v7967_v14  ;;  %v2101_v11 = vpack.c.bf16 %v2040_v47, %v2039_v1 }
 0x261   : > { %v7971_v15 = vpop.eup %7970  ;;  %7976 = vrcp.f32 %v1852_v0  ;;  %v1854_v40 = vadd.f32 1.0, %v7969_v16 }
 0x262   : > { %7978 = vrcp.f32 %v1853_v46  ;;  %v1855_v31 = vadd.f32 1.0, %v7971_v15 }
 0x263   : > { %7980 = vrcp.f32 %v1854_v40 }
 0x264   : > { %7631 = vmatmul.mubr.bf16.gmra.mxu0 %v2092_v60  ;;  %7982 = vrcp.f32 %v1855_v31 }
 0x265   : > { %7634 = vmatprep.mubr.msk.bf16.mxu0 %vm8318_vm2, %v10858_v48 }
 0x266   : > { %7663 = vmatmul.mubr.bf16.gmra.mxu1 %v2100_v37 }
 0x267   : > { %7666 = vmatprep.mubr.msk.bf16.mxu1 %vm8318_vm2, %v10858_v48 }
 0x26c   : > { %v7973_v9 = vpop.eup %7972  ;;  %7635 = vmatmul.mubr.bf16.gmra.mxu0 %v2093_v24 }
 0x26d   : > { %v7975_v20 = vpop.eup %7974  ;;  %7638 = vmatprep.mubr.msk.bf16.mxu0 %vm8318_vm2, %v10858_v48  ;;  %v1964_v54 = vmul.f32 %v7973_v9, %v9080_v25 }
 0x26e   : > { %v7977_v41 = vpop.eup %7976  ;;  %7667 = vmatmul.mubr.bf16.gmra.mxu1 %v2101_v11  ;;  %v1965_v18 = vmul.f32 %v7975_v20, %v9096_v22 }
 0x26f   : > { %v7979_v57 = vpop.eup %7978  ;;  %7670 = vmatprep.mubr.msk.bf16.mxu1 %vm8318_vm2, %v10858_v48  ;;  %v2041_v50 = vadd.f32 %v2003_v53, %v1964_v54  ;;  %v1966_v44 = vmul.f32 %v7977_v41, %v9130_v19 }
 0x270   : > { %v7981_v2 = vpop.eup %7980  ;;  %v2042_v28 = vadd.f32 %v2004_v52, %v1965_v18  ;;  %v1967_v25 = vmul.f32 %v7979_v57, %v9136_v12 }
 0x271   : > { %v7983_v61 = vpop.eup %7982  ;;  %2079 = vst [vmem:[#allocation3 + $0x20] sm:$0xff] %v2041_v50  ;;  %v2043_v22 = vadd.f32 %v2005_v7, %v1966_v44  ;;  %v1968_v55 = vmul.f32 %v7981_v2, %v9140_v27  ;;  %v2095_v27 = vpack.c.bf16 %v9202_v56, %v9199_v63 }
 0x272   : > { %2080 = vst [vmem:[#allocation3 + $0x18] sm:$0xff] %v2042_v28  ;;  %v2102_v30 = vpack.c.bf16 %v2042_v28, %v2041_v50  ;;  %v2044_v34 = vadd.f32 %v2006_v38, %v1967_v25  ;;  %v1969_v19 = vmul.f32 %v7983_v61, %v9143_v10  ;;  %v2122_v10 = vlaneseq }
 0x273   : > { %2081 = vst [vmem:[#allocation3 + $0xb0] sm:$0xff] %v2043_v22  ;;  %v2045_v26 = vadd.f32 %v2007_v59, %v1968_v55 }
 0x274   : > { %7639 = vmatmul.mubr.bf16.gmra.mxu0 %v2094_v58  ;;  %2082 = vst [vmem:[#allocation3 + $0x28] sm:$0xff] %v2044_v34  ;;  %v2103_v45 = vpack.c.bf16 %v2044_v34, %v2043_v22  ;;  %v2046_v5 = vadd.f32 %v2008_v32, %v1969_v19  ;;  %v9239_v62 = vshrl.u32 %v2122_v10, 7 }
 0x275   : > { %7642 = vmatprep.mubr.msk.bf16.mxu0 %vm8318_vm2, %v10858_v48  ;;  %2083 = vst [vmem:[#allocation3 + $0x90] sm:$0xff] %v2045_v26 }
 0x276   : > { %7671 = vmatmul.mubr.bf16.gmra.mxu1 %v2102_v30  ;;  %2084 = vst [vmem:[#allocation3 + $0xa0] sm:$0xff] %v2046_v5  ;;  %v2104_v12 = vpack.c.bf16 %v2046_v5, %v2045_v26  ;;  %v2124_v21 = vsub.s32 0, %v9239_v62 }
 0x277   : > { %7674 = vmatprep.mubr.msk.bf16.mxu1 %vm8318_vm2, %v10858_v48 }
 0x278   : > { %v9243_v49 = vrot.slane %v10859_v6, %v2124_v21 }
 0x27c   : > { %7643 = vmatmul.mubr.bf16.gmra.mxu0 %v2095_v27 }
 0x27e   : > { %7675 = vmatmul.mubr.bf16.gmra.mxu1 %v2103_v45 }
 0x27f   : > { %7678 = vmatprep.mubr.msk.bf16.mxu1 %vm8318_vm2, %v10858_v48 }
 0x286   : > { %7679 = vmatmul.mubr.bf16.gmra.mxu1 %v2104_v12 }
 0x2f4   : > { %v2209_v13 = vpop.f32.mrf.mxu0 }
 0x2f5   : > { %v2210_v39 = vadd.f32 %v2209_v13, %v9243_v49 }
 0x2f6   : > { %v7608_v8 = vpop.f32.mrf.mxu0 }
 0x2f7   : > { %2899 = vst [vmem:[#allocation2 + $0xb0] sm:$0xff] %v2210_v39  ;;  %v2364_v55 = vsub.f32 %v2210_v39, %v9243_v49 }
 0x2f8   : > { %v2212_v33 = vpop.f32.mrf.mxu0 }
 0x2f9   : > { %v2213_v3 = vadd.f32 %v2212_v33, %v9243_v49  ;;  %v2682_v10 = vmul.f32 %v2364_v55, %v2364_v55 }
 0x2fa   : > { %v7609_v43 = vpop.f32.mrf.mxu0 }
 0x2fb   : > { %2900 = vst [vmem:[#allocation2 + $0xd0] sm:$0xff] %v2213_v3  ;;  %v2365_v25 = vsub.f32 %v2213_v3, %v9243_v49 }
 0x2fc   : > { %v2217_v63 = vpop.f32.mrf.mxu0 }
 0x2fd   : > { %v2218_v42 = vadd.f32 %v2217_v63, %v9243_v49  ;;  %v2683_v26 = vmul.f32 %v2365_v25, %v2365_v25  ;;  %v2636_v8 = vadd.f32 %v2365_v25, %v2364_v55 }
 0x2fe   : > { %v7612_v35 = vpop.f32.mrf.mxu0  ;;  %v2289_v29 = vpop.f32.mrf.mxu1 }
 0x2ff   : > { %2901 = vst [vmem:[#allocation2 + $0x10] sm:$0xff] %v2218_v42  ;;  %v9249_v56 = vadd.f32 %v2289_v29, %v9243_v49  ;;  %v2366_v32 = vsub.f32 %v2218_v42, %v9243_v49  ;;  %v2720_v3 = vadd.f32 %v2683_v26, %v2682_v10 }
 0x300   : > { %v2220_v51 = vpop.f32.mrf.mxu0  ;;  %v7648_v23 = vpop.f32.mrf.mxu1 }
 0x301   : > { %v2221_v1 = vadd.f32 %v2220_v51, %v9243_v49  ;;  %2919 = vst [vmem:[#allocation2 + $0xa8] sm:$0xff] %v9249_v56  ;;  %v2684_v21 = vmul.f32 %v2366_v32, %v2366_v32  ;;  %v2637_v29 = vadd.f32 %v2636_v8, %v2366_v32 }
 0x302   : > { %v7613_v4 = vpop.f32.mrf.mxu0  ;;  %v2292_v36 = vpop.f32.mrf.mxu1 }
 0x303   : > { %2902 = vst [vmem:[#allocation2 + $0x48] sm:$0xff] %v2221_v1  ;;  %v9254_v47 = vadd.f32 %v2292_v36, %v9243_v49  ;;  %v2367_v45 = vsub.f32 %v2221_v1, %v9243_v49  ;;  %v2721_v23 = vadd.f32 %v2720_v3, %v2684_v21 }
 0x304   : > { %v2225_v17 = vpop.f32.mrf.mxu0  ;;  %v7649_v14 = vpop.f32.mrf.mxu1 }
 0x305   : > { %v2226_v0 = vadd.f32 %v2225_v17, %v9243_v49  ;;  %2920 = vst [vmem:[#allocation2 + $0x90] sm:$0xff] %v9254_v47  ;;  %v2685_v43 = vmul.f32 %v2367_v45, %v2367_v45  ;;  %v2638_v14 = vadd.f32 %v2637_v29, %v2367_v45 }
 0x306   : > { %v7616_v16 = vpop.f32.mrf.mxu0  ;;  %v2297_v60 = vpop.f32.mrf.mxu1 }
 0x307   : > { %2903 = vst [vmem:[#allocation2 + $0x120] sm:$0xff] %v2226_v0  ;;  %v9259_v46 = vadd.f32 %v2297_v60, %v9243_v49  ;;  %v2368_v6 = vsub.f32 %v2226_v0, %v9243_v49  ;;  %v2722_v16 = vadd.f32 %v2721_v23, %v2685_v43 }
 0x308   : > { %v2228_v15 = vpop.f32.mrf.mxu0  ;;  %v7652_v40 = vpop.f32.mrf.mxu1 }
 0x309   : > { %v2229_v37 = vadd.f32 %v2228_v15, %v9243_v49  ;;  %2921 = vst [vmem:[#allocation2 + $0xe0] sm:$0xff] %v9259_v46  ;;  %v2686_v1 = vmul.f32 %v2368_v6, %v2368_v6 }
 0x30a   : > { %v7617_v31 = vpop.f32.mrf.mxu0  ;;  %v2300_v24 = vpop.f32.mrf.mxu1 }
 0x30b   : > { %2904 = vst [vmem:[#allocation2 + $0x38] sm:$0xff] %v2229_v37  ;;  %v9264_v11 = vadd.f32 %v2300_v24, %v9243_v49  ;;  %v2369_v63 = vsub.f32 %v2229_v37, %v9243_v49  ;;  %v2639_v31 = vadd.f32 %v2638_v14, %v2368_v6 }
 0x30c   : > { %v2233_v9 = vpop.f32.mrf.mxu0  ;;  %v7653_v53 = vpop.f32.mrf.mxu1 }
 0x30d   : > { %v2234_v20 = vadd.f32 %v2233_v9, %v9243_v49  ;;  %2922 = vst [vmem:[#allocation2 + $0xf8] sm:$0xff] %v9264_v11  ;;  %v2687_v60 = vmul.f32 %v2369_v63, %v2369_v63  ;;  %v2723_v9 = vadd.f32 %v2722_v16, %v2686_v1 }
 0x30e   : > { %v7620_v54 = vpop.f32.mrf.mxu0 }
 0x30f   : > { %2905 = vst [vmem:[#allocation2 + $0x70] sm:$0xff] %v2234_v20  ;;  %v2370_v4 = vsub.f32 %v2234_v20, %v9243_v49 }
 0x310   : > { %v2236_v52 = vpop.f32.mrf.mxu0 }
 0x311   : > { %v2237_v41 = vadd.f32 %v2236_v52, %v9243_v49  ;;  %v2688_v53 = vmul.f32 %v2370_v4, %v2370_v4 }
 0x312   : > { %v7621_v18 = vpop.f32.mrf.mxu0 }
 0x313   : > { %2906 = vst [vmem:[#allocation2 + $0x100] sm:$0xff] %v2237_v41  ;;  %v2371_v15 = vsub.f32 %v2237_v41, %v9243_v49  ;;  %v2640_v18 = vadd.f32 %v2639_v31, %v2369_v63 }
 0x314   : > { %v2241_v7 = vpop.f32.mrf.mxu0 }
 0x315   : > { %v2242_v57 = vadd.f32 %v2241_v7, %v9243_v49  ;;  %v2689_v41 = vmul.f32 %v2371_v15, %v2371_v15  ;;  %v2641_v25 = vadd.f32 %v2640_v18, %v2370_v4 }
 0x316   : > { %v7624_v50 = vpop.f32.mrf.mxu0  ;;  %v2305_v44 = vpop.f32.mrf.mxu1 }
 0x317   : > { %2907 = vst [vmem:[#allocation2 + $0x108] sm:$0xff] %v2242_v57  ;;  %v9271_v38 = vadd.f32 %v2305_v44, %v9243_v49  ;;  %v2372_v20 = vsub.f32 %v2242_v57, %v9243_v49  ;;  %v2724_v50 = vadd.f32 %v2723_v9, %v2687_v60 }
 0x318   : > { %v2244_v2 = vpop.f32.mrf.mxu0  ;;  %v7656_v58 = vpop.f32.mrf.mxu1 }
 0x319   : > { %v2245_v28 = vadd.f32 %v2244_v2, %v9243_v49  ;;  %2923 = vst [vmem:[#allocation2 + $0xa0] sm:$0xff] %v9271_v38  ;;  %v2690_v57 = vmul.f32 %v2372_v20, %v2372_v20 }
 0x31a   : > { %v7625_v59 = vpop.f32.mrf.mxu0  ;;  %v2308_v61 = vpop.f32.mrf.mxu1 }
 0x31b   : > { %2908 = vst [vmem:[#allocation2 + $0x88] sm:$0xff] %v2245_v28  ;;  %v9277_v22 = vadd.f32 %v2308_v61, %v9243_v49  ;;  %v2373_v44 = vsub.f32 %v2245_v28, %v9243_v49  ;;  %v2725_v61 = vadd.f32 %v2724_v50, %v2688_v53 }
 0x31c   : > { %v2249_v30 = vpop.f32.mrf.mxu0  ;;  %v7657_v34 = vpop.f32.mrf.mxu1 }
 0x31d   : > { %v2250_v19 = vadd.f32 %v2249_v30, %v9243_v49  ;;  %2924 = vst [vmem:[#allocation2 + $0x78] sm:$0xff] %v9277_v22  ;;  %v2642_v34 = vadd.f32 %v2641_v25, %v2371_v15  ;;  %v2726_v45 = vadd.f32 %v2725_v61, %v2689_v41  ;;  %v2691_v28 = vmul.f32 %v2373_v44, %v2373_v44 }
 0x31e   : > { %v7628_v5 = vpop.f32.mrf.mxu0  ;;  %v2313_v12 = vpop.f32.mrf.mxu1 }
 0x31f   : > { %2909 = vst [vmem:[#allocation2 + $0x110] sm:$0xff] %v2250_v19  ;;  %v9285_v27 = vadd.f32 %v2313_v12, %v9243_v49  ;;  %v2374_v55 = vsub.f32 %v2250_v19, %v9243_v49  ;;  %v2643_v21 = vadd.f32 %v2642_v34, %v2372_v20 }
 0x320   : > { %v2252_v13 = vpop.f32.mrf.mxu0  ;;  %v7660_v39 = vpop.f32.mrf.mxu1 }
 0x321   : > { %v2253_v33 = vadd.f32 %v2252_v13, %v9243_v49  ;;  %2925 = vst [vmem:[#allocation2 + $0xc0] sm:$0xff] %v9285_v27  ;;  %v2727_v13 = vadd.f32 %v2726_v45, %v2690_v57  ;;  %v2692_v19 = vmul.f32 %v2374_v55, %v2374_v55  ;;  %v2644_v43 = vadd.f32 %v2643_v21, %v2373_v44 }
 0x322   : > { %v7629_v42 = vpop.f32.mrf.mxu0  ;;  %v2316_v35 = vpop.f32.mrf.mxu1 }
 0x323   : > { %2910 = vst [vmem:[#allocation2 + $0xf0] sm:$0xff] %v2253_v33  ;;  %v9292_v51 = vadd.f32 %v2316_v35, %v9243_v49  ;;  %v2375_v5 = vsub.f32 %v2253_v33, %v9243_v49  ;;  %v2728_v42 = vadd.f32 %v2727_v13, %v2691_v28  ;;  %v2645_v1 = vadd.f32 %v2644_v43, %v2374_v55 }
 0x324   : > { %v2257_v36 = vpop.f32.mrf.mxu0  ;;  %v7661_v17 = vpop.f32.mrf.mxu1 }
 0x325   : > { %v2258_v0 = vadd.f32 %v2257_v36, %v9243_v49  ;;  %2926 = vst [vmem:[#allocation2 + $0x80] sm:$0xff] %v9292_v51  ;;  %v2693_v33 = vmul.f32 %v2375_v5, %v2375_v5  ;;  %v2729_v36 = vadd.f32 %v2728_v42, %v2692_v19  ;;  %v2646_v60 = vadd.f32 %v2645_v1, %v2375_v5 }
 0x326   : > { %v7632_v40 = vpop.f32.mrf.mxu0  ;;  %v2321_v37 = vpop.f32.mrf.mxu1 }
 0x327   : > { %2911 = vst [vmem:[#allocation2 + $0x40] sm:$0xff] %v2258_v0  ;;  %v9299_v24 = vadd.f32 %v2321_v37, %v9243_v49  ;;  %v2376_v39 = vsub.f32 %v2258_v0, %v9243_v49  ;;  %v2730_v40 = vadd.f32 %v2729_v36, %v2693_v33 }
 0x328   : > { %v2260_v54 = vpop.f32.mrf.mxu0  ;;  %v7664_v52 = vpop.f32.mrf.mxu1 }
 0x329   : > { %v2261_v7 = vadd.f32 %v2260_v54, %v9243_v49  ;;  %2927 = vst [vmem:[#allocation2 + $0xe8] sm:$0xff] %v9299_v24  ;;  %v2694_v17 = vmul.f32 %v2376_v39, %v2376_v39  ;;  %v2647_v20 = vadd.f32 %v2646_v60, %v2376_v39 }
 0x32a   : > { %v7633_v2 = vpop.f32.mrf.mxu0  ;;  %v2324_v58 = vpop.f32.mrf.mxu1 }
 0x32b   : > { %2912 = vst [vmem:[#allocation2 + $0xc8] sm:$0xff] %v2261_v7  ;;  %v9306_v59 = vadd.f32 %v2324_v58, %v9243_v49  ;;  %v2377_v35 = vsub.f32 %v2261_v7, %v9243_v49  ;;  %v2731_v52 = vadd.f32 %v2730_v40, %v2694_v17 }
 0x32c   : > { %v2265_v32 = vpop.f32.mrf.mxu0  ;;  %v7665_v30 = vpop.f32.mrf.mxu1 }
 0x32d   : > { %v2266_v26 = vadd.f32 %v2265_v32, %v9243_v49  ;;  %2928 = vst [vmem:[#allocation2] sm:$0xff] %v9306_v59  ;;  %v2695_v37 = vmul.f32 %v2377_v35, %v2377_v35  ;;  %v2648_v41 = vadd.f32 %v2647_v20, %v2377_v35 }
 0x32e   : > { %v7636_v12 = vpop.f32.mrf.mxu0  ;;  %v2329_v10 = vpop.f32.mrf.mxu1 }
 0x32f   : > { %2913 = vst [vmem:[#allocation2 + $0x30] sm:$0xff] %v2266_v26  ;;  %v9313_v6 = vadd.f32 %v2329_v10, %v9243_v49  ;;  %v2378_v14 = vsub.f32 %v2266_v26, %v9243_v49  ;;  %v2732_v58 = vadd.f32 %v2731_v52, %v2695_v37 }
 0x330   : > { %v2268_v8 = vpop.f32.mrf.mxu0  ;;  %v7668_v3 = vpop.f32.mrf.mxu1 }
 0x331   : > { %v2269_v63 = vadd.f32 %v2268_v8, %v9243_v49  ;;  %2929 = vst [vmem:[#allocation2 + $0xd8] sm:$0xff] %v9313_v6  ;;  %v2696_v18 = vmul.f32 %v2378_v14, %v2378_v14  ;;  %v2649_v55 = vadd.f32 %v2648_v41, %v2378_v14 }
 0x332   : > { %v7637_v29 = vpop.f32.mrf.mxu0  ;;  %v2332_v23 = vpop.f32.mrf.mxu1 }
 0x333   : > { %2914 = vst [vmem:[#allocation2 + $0x20] sm:$0xff] %v2269_v63  ;;  %v9320_v4 = vadd.f32 %v2332_v23, %v9243_v49  ;;  %v2379_v31 = vsub.f32 %v2269_v63, %v9243_v49  ;;  %v2733_v34 = vadd.f32 %v2732_v58, %v2696_v18  ;;  %v2384_v23 = vsub.f32 %v9249_v56, %v9243_v49 }
 0x334   : > { %v2273_v0 = vpop.f32.mrf.mxu0  ;;  %v7669_v16 = vpop.f32.mrf.mxu1  ;;  %v2386_v56 = vsub.f32 %v9259_v46, %v9243_v49  ;;  %v2388_v46 = vsub.f32 %v9271_v38, %v9243_v49  ;;  %v2391_v38 = vsub.f32 %v9292_v51, %v9243_v49 }
 0x335   : > { %v2274_v15 = vadd.f32 %v2273_v0, %v9243_v49  ;;  %2930 = vst [vmem:[#allocation2 + $0x28] sm:$0xff] %v9320_v4  ;;  %v2697_v25 = vmul.f32 %v2379_v31, %v2379_v31  ;;  %v2650_v28 = vadd.f32 %v2649_v55, %v2379_v31 }
 0x336   : > { %v7640_v9 = vpop.f32.mrf.mxu0  ;;  %v2337_v53 = vpop.f32.mrf.mxu1 }
 0x337   : > { %2915 = vst [vmem:[#allocation2 + $0x128] sm:$0xff] %v2274_v15  ;;  %v9327_v54 = vadd.f32 %v2337_v53, %v9243_v49  ;;  %v2380_v44 = vsub.f32 %v2274_v15, %v9243_v49  ;;  %v2734_v10 = vadd.f32 %v2733_v34, %v2697_v25  ;;  %v2385_v15 = vsub.f32 %v9254_v47, %v9243_v49 }
 0x338   : > { %v2276_v7 = vpop.f32.mrf.mxu0  ;;  %v7672_v50 = vpop.f32.mrf.mxu1  ;;  %v2702_v53 = vmul.f32 %v2384_v23, %v2384_v23  ;;  %v2387_v47 = vsub.f32 %v9264_v11, %v9243_v49  ;;  %v2389_v34 = vsub.f32 %v9277_v22, %v9243_v49 }
 0x339   : > { %v2277_v2 = vadd.f32 %v2276_v7, %v9243_v49  ;;  %2931 = vst [vmem:[#allocation2 + $0x60] sm:$0xff] %v9327_v54  ;;  %v2698_v5 = vmul.f32 %v2380_v44, %v2380_v44  ;;  %v2651_v19 = vadd.f32 %v2650_v28, %v2380_v44  ;;  %v2703_v50 = vmul.f32 %v2385_v15, %v2385_v15 }
 0x33a   : > { %v7641_v61 = vpop.f32.mrf.mxu0  ;;  %v2340_v57 = vpop.f32.mrf.mxu1  ;;  %v2390_v28 = vsub.f32 %v9285_v27, %v9243_v49 }
 0x33b   : > { %v2381_v32 = vsub.f32 %v2277_v2, %v9243_v49  ;;  %2916 = vst [vmem:[#allocation2 + $0x50] sm:$0xff] %v2277_v2  ;;  %v9334_v30 = vadd.f32 %v2340_v57, %v9243_v49  ;;  %v2735_v42 = vadd.f32 %v2734_v10, %v2698_v5  ;;  %v2704_v2 = vmul.f32 %v2386_v56, %v2386_v56 }
 0x33c   : > { %v2281_v26 = vpop.f32.mrf.mxu0  ;;  %v7673_v45 = vpop.f32.mrf.mxu1  ;;  %v2707_v10 = vmul.f32 %v2389_v34, %v2389_v34 }
 0x33d   : > { %v2282_v12 = vadd.f32 %v2281_v26, %v9243_v49  ;;  %2932 = vst [vmem:[#allocation2 + $0x68] sm:$0xff] %v9334_v30  ;;  %v2699_v39 = vmul.f32 %v2381_v32, %v2381_v32  ;;  %v2652_v33 = vadd.f32 %v2651_v19, %v2381_v32  ;;  %v2705_v32 = vmul.f32 %v2387_v47, %v2387_v47 }
 0x33e   : > { %v7644_v21 = vpop.f32.mrf.mxu0  ;;  %v2345_v13 = vpop.f32.mrf.mxu1  ;;  %v2706_v45 = vmul.f32 %v2388_v46, %v2388_v46  ;;  %v2708_v19 = vmul.f32 %v2390_v28, %v2390_v28 }
 0x33f   : > { %v2382_v8 = vsub.f32 %v2282_v12, %v9243_v49  ;;  %2917 = vst [vmem:[#allocation2 + $0x8] sm:$0xff] %v2282_v12  ;;  %v9340_v3 = vadd.f32 %v2345_v13, %v9243_v49  ;;  %v2736_v17 = vadd.f32 %v2735_v42, %v2699_v39  ;;  %v2392_v39 = vsub.f32 %v9299_v24, %v9243_v49 }
 0x340   : > { %v2284_v43 = vpop.f32.mrf.mxu0  ;;  %v7676_v63 = vpop.f32.mrf.mxu1  ;;  %v2395_v24 = vsub.f32 %v9320_v4, %v9243_v49 }
 0x341   : > { %v2700_v35 = vmul.f32 %v2382_v8, %v2382_v8  ;;  %v2285_v29 = vadd.f32 %v2284_v43, %v9243_v49  ;;  %2933 = vst [vmem:[#allocation2 + $0x18] sm:$0xff] %v9340_v3  ;;  %v2653_v14 = vadd.f32 %v2652_v33, %v2382_v8  ;;  %v2709_v43 = vmul.f32 %v2391_v38, %v2391_v38 }
 0x342   : > { %v7645_v1 = vpop.f32.mrf.mxu0  ;;  %v2348_v36 = vpop.f32.mrf.mxu1  ;;  %v2393_v63 = vsub.f32 %v9306_v59, %v9243_v49  ;;  %v2710_v33 = vmul.f32 %v2392_v39, %v2392_v39  ;;  %v2396_v59 = vsub.f32 %v9327_v54, %v9243_v49  ;;  %v2398_v4 = vsub.f32 %v9340_v3, %v9243_v49 }
 0x343   : > { %v2383_v0 = vsub.f32 %v2285_v29, %v9243_v49  ;;  %2918 = vst [vmem:[#allocation2 + $0x98] sm:$0xff] %v2285_v29  ;;  %v9348_v16 = vadd.f32 %v2348_v36, %v9243_v49  ;;  %v2737_v40 = vadd.f32 %v2736_v17, %v2700_v35  ;;  %v2394_v35 = vsub.f32 %v9313_v6, %v9243_v49 }
 0x344   : > { %v7677_v60 = vpop.f32.mrf.mxu1  ;;  %v2443_v17 = vadd.s32 296, %v9239_v62 }
 0x345   : > { %v2654_v37 = vadd.f32 %v2653_v14, %v2383_v0  ;;  %v2701_v31 = vmul.f32 %v2383_v0, %v2383_v0  ;;  %2934 = vst [vmem:[#allocation2 + $0x58] sm:$0xff] %v9348_v16  ;;  %v2712_v0 = vmul.f32 %v2394_v35, %v2394_v35 }
 0x346   : > { %v2353_v9 = vpop.f32.mrf.mxu1  ;;  %vm2520_vm3 = vcmp.lt.s32.totalorder %v2443_v17, 300 }
 0x347   : > { %v2655_v20 = vadd.f32 %v2654_v37, %v2384_v23  ;;  %v2738_v52 = vadd.f32 %v2737_v40, %v2701_v31  ;;  %v9356_v18 = vadd.f32 %v2353_v9, %v9243_v49  ;;  %v2711_v23 = vmul.f32 %v2393_v63, %v2393_v63 }
 0x348   : > { %v7680_v7 = vpop.f32.mrf.mxu1  ;;  %v2713_v37 = vmul.f32 %v2395_v24, %v2395_v24  ;;  %v2714_v9 = vmul.f32 %v2396_v59, %v2396_v59 }
 0x349   : > { %v2656_v41 = vadd.f32 %v2655_v20, %v2385_v15  ;;  %v2739_v44 = vadd.f32 %v2738_v52, %v2702_v53  ;;  %2935 = vst [vmem:[#allocation2 + $0x118] sm:$0xff] %v9356_v18  ;;  %v2397_v15 = vsub.f32 %v9334_v30, %v9243_v49  ;;  %v2399_v52 = vsub.f32 %v9348_v16, %v9243_v49 }
 0x34a   : > { %v2356_v58 = vpop.f32.mrf.mxu1  ;;  %v7370_v30 = vsel %vm2520_vm3, 1.0, %v10858_v48 }
 0x34b   : > { %v2657_v25 = vadd.f32 %v2656_v41, %v2386_v56  ;;  %v2740_v61 = vadd.f32 %v2739_v44, %v2703_v50  ;;  %v2357_v57 = vadd.f32 %v2356_v58, %v9243_v49  ;;  %v2715_v62 = vmul.f32 %v2397_v15, %v2397_v15 }
 0x34c   : > { %v7681_v55 = vpop.f32.mrf.mxu1  ;;  %v2400_v41 = vsub.f32 %v9356_v18, %v9243_v49  ;;  %v2717_v58 = vmul.f32 %v2399_v52, %v2399_v52  ;;  %v2635_v18 = vld [vmem:[#allocation4] sm:$0x1] }
 0x34d   : > { %v2658_v26 = vadd.f32 %v2657_v25, %v2387_v47  ;;  %v2741_v11 = vadd.f32 %v2740_v61, %v2704_v2  ;;  %2936 = vst [vmem:[#allocation2 + $0xb8] sm:$0xff] %v2357_v57  ;;  %v2401_v54 = vsub.f32 %v2357_v57, %v9243_v49  ;;  %v2716_v47 = vmul.f32 %v2398_v4, %v2398_v4 }
 0x34e   : > { %v2718_v61 = vmul.f32 %v2400_v41, %v2400_v41 }
 0x34f   : > { %v2659_v5 = vadd.f32 %v2658_v26, %v2388_v46  ;;  %v2742_v12 = vadd.f32 %v2741_v11, %v2705_v32  ;;  %v2634_v3 = vmul.f32 %v7370_v30, %v2401_v54 }
 0x351   : > { %v2743_v21 = vadd.f32 %v2742_v12, %v2706_v45  ;;  %v2660_v13 = vadd.f32 %v2659_v5, %v2389_v34  ;;  %v2719_v16 = vmul.f32 %v2634_v3, %v2401_v54 }
 0x353   : > { %v2661_v22 = vadd.f32 %v2660_v13, %v2390_v28  ;;  %v2744_v8 = vadd.f32 %v2743_v21, %v2707_v10  ;;  %v2681_v21 = vld [vmem:[#allocation5] sm:$0x1] }
 0x355   : > { %v2662_v42 = vadd.f32 %v2661_v22, %v2391_v38  ;;  %v2745_v27 = vadd.f32 %v2744_v8, %v2708_v19 }
 0x357   : > { %v2663_v29 = vadd.f32 %v2662_v42, %v2392_v39  ;;  %v2746_v51 = vadd.f32 %v2745_v27, %v2709_v43 }
 0x359   : > { %v2664_v1 = vadd.f32 %v2663_v29, %v2393_v63  ;;  %v2747_v36 = vadd.f32 %v2746_v51, %v2710_v33 }
 0x35b   : > { %v2665_v14 = vadd.f32 %v2664_v1, %v2394_v35  ;;  %v2748_v60 = vadd.f32 %v2747_v36, %v2711_v23 }
 0x35d   : > { %v2749_v6 = vadd.f32 %v2748_v60, %v2712_v0  ;;  %v2666_v40 = vadd.f32 %v2665_v14, %v2395_v24 }
 0x35f   : > { %v2750_v31 = vadd.f32 %v2749_v6, %v2713_v37  ;;  %v2667_v56 = vadd.f32 %v2666_v40, %v2396_v59 }
 0x361   : > { %v2751_v53 = vadd.f32 %v2750_v31, %v2714_v9  ;;  %v2668_v20 = vadd.f32 %v2667_v56, %v2397_v15 }
 0x363   : > { %v2752_v7 = vadd.f32 %v2751_v53, %v2715_v62  ;;  %v2669_v50 = vadd.f32 %v2668_v20, %v2398_v4 }
 0x365   : > { %v2753_v44 = vadd.f32 %v2752_v7, %v2716_v47  ;;  %v2670_v2 = vadd.f32 %v2669_v50, %v2399_v52 }
 0x367   : > { %v2754_v46 = vadd.f32 %v2753_v44, %v2717_v58  ;;  %v2671_v25 = vadd.f32 %v2670_v2, %v2400_v41 }
 0x369   : > { %v2755_v55 = vadd.f32 %v2754_v46, %v2718_v61  ;;  %v2672_v32 = vadd.f32 %v2671_v25, %v2634_v3 }
 0x36b   : > { %v2673_v34 = vrot.slane %v2672_v32, 4  ;;  %v2756_v57 = vadd.f32 %v2755_v55, %v2719_v16 }
 0x36d   : > { %v2674_v26 = vadd.f32 %v2673_v34, %v2672_v32  ;;  %v2757_v48 = vrot.slane %v2756_v57, 4 }
 0x36f   : > { %v2675_v11 = vrot.slane %v2674_v26, 2  ;;  %v2758_v45 = vadd.f32 %v2757_v48, %v2756_v57 }
 0x371   : > { %v2676_v28 = vadd.f32 %v2675_v11, %v2674_v26  ;;  %v2759_v5 = vrot.slane %v2758_v45, 2 }
 0x373   : > { %v2677_v12 = vrot.slane %v2676_v28, 1  ;;  %v2760_v49 = vadd.f32 %v2759_v5, %v2758_v45 }
 0x375   : > { %v2678_v10 = vadd.f32 %v2677_v12, %v2676_v28  ;;  %v2761_v38 = vrot.slane %v2760_v49, 1 }
 0x377   : > { %v2679_v13 = vadd.f32 %v2678_v10, %v2635_v18  ;;  %v2762_v19 = vadd.f32 %v2761_v38, %v2760_v49 }
 0x379   : > { %2680 = vst [vmem:[#allocation4] sm:$0x1] %v2679_v13  ;;  %v2763_v39 = vadd.f32 %v2762_v19, %v2681_v21 }
 0x37b   : > { %2764 = vst [vmem:[#allocation5] sm:$0x1] %v2763_v39 }
 0x37c PF: > { %p7371_p7 = scmp.ne.s32.totalorder %s8296_s14, 3 }
 0x37e   : > { %2940 = sbr.rel (%p7371_p7) target bundleno = 1513 (0x5e9), region = 112 }
 0x383   : > { %v2943_v22 = vld [vmem:[#allocation2 + $0xb0] sm:$0xff]  ;;  %v9392_v8 = vld [vmem:[#allocation6] ss:$0 sm:$0xff]  ;;  %v9394_v43 = vld [vmem:[#allocation7] ss:$0 sm:$0xff]  ;;  %v8319_v27 = vmov 0  }
 0x384   : > { %v2988_v63 = vmul.f32 %v9392_v8, %v2943_v22  ;;  %v2944_v42 = vld [vmem:[#allocation2 + $0xd0] sm:$0xff]  ;;  %7984 = vset.pattern.permute.xlu0 %v8319_v27  ;;  %7985 = vset.pattern.permute.xlu1 %v8319_v27  ;;  %v2947_v35 = vld [vmem:[#allocation2 + $0x120] sm:$0xff]  ;;  %v2946_v14 = vld [vmem:[#allocation2 + $0x48] sm:$0xff]  ;;  %vm6824_vm4 = vcmask 130112   ;;  %vm6831_vm5 = vcmask 195712   ;;  %vm6838_vm6 = vcmask 261312  }
 0x385   : > { %v2989_v33 = vmul.f32 %v9392_v8, %v2944_v42  ;;  %v2992_v51 = vmul.f32 %v9392_v8, %v2947_v35  ;;  %v2945_v23 = vld [vmem:[#allocation2 + $0x10] sm:$0xff]  ;;  %v2991_v59 = vmul.f32 %v9392_v8, %v2946_v14  ;;  %v2951_v15 = vld [vmem:[#allocation2 + $0x108] sm:$0xff]  ;;  %v2948_v6 = vld [vmem:[#allocation2 + $0x38] sm:$0xff]  ;;  %vm6845_vm7 = vcmask 326912  }
 0x386   : > { %v9399_v29 = vadd.f32 %v9394_v43, %v2988_v63  ;;  %v2949_v1 = vld [vmem:[#allocation2 + $0x70] sm:$0xff]  ;;  %v2990_v24 = vmul.f32 %v9392_v8, %v2945_v23  ;;  %v2996_v56 = vmul.f32 %v9392_v8, %v2951_v15  ;;  %v2993_v53 = vmul.f32 %v9392_v8, %v2948_v6  ;;  %v2950_v20 = vld [vmem:[#allocation2 + $0x100] sm:$0xff]  ;;  %v2952_v50 = vld [vmem:[#allocation2 + $0x88] sm:$0xff] }
 0x387   : > { %v9403_v36 = vadd.f32 %v9394_v43, %v2989_v33  ;;  %v2994_v17 = vmul.f32 %v9392_v8, %v2949_v1  ;;  %v9409_v60 = vadd.f32 %v9394_v43, %v2992_v51  ;;  %v2953_v9 = vld [vmem:[#allocation2 + $0x110] sm:$0xff]  ;;  %v9422_v62 = vadd.f32 %v9394_v43, %v2991_v59  ;;  %v2955_v52 = vld [vmem:[#allocation2 + $0x40] sm:$0xff]  ;;  %v2959_v26 = vld [vmem:[#allocation2 + $0x128] sm:$0xff] }
 0x388   : > { %v7374_v0 = vmul.f32 -1.442695, %v9399_v29  ;;  %v9414_v37 = vadd.f32 %v9394_v43, %v2990_v24  ;;  %v9428_v7 = vadd.f32 %v9394_v43, %v2996_v56  ;;  %v9432_v41 = vadd.f32 %v9394_v43, %v2993_v53  ;;  %v2957_v2 = vld [vmem:[#allocation2 + $0x30] sm:$0xff]  ;;  %v2956_v28 = vld [vmem:[#allocation2 + $0xc8] sm:$0xff]  ;;  %v2958_v22 = vld [vmem:[#allocation2 + $0x20] sm:$0xff] }
 0x389   : > { %v7375_v40 = vmul.f32 -1.442695, %v9403_v36  ;;  %v9417_v31 = vadd.f32 %v9394_v43, %v2994_v17  ;;  %v7378_v4 = vmul.f32 -1.442695, %v9409_v60  ;;  %v7377_v47 = vmul.f32 -1.442695, %v9422_v62 }
 0x38a   : > { %7986 = vpow2.f32 %v7374_v0  ;;  %v7376_v54 = vmul.f32 -1.442695, %v9414_v37  ;;  %v2998_v44 = vmul.f32 %v9392_v8, %v2953_v9  ;;  %v7382_v58 = vmul.f32 -1.442695, %v9428_v7  ;;  %v2954_v25 = vld [vmem:[#allocation2 + $0xf0] sm:$0xff]  ;;  %v2961_v5 = vld [vmem:[#allocation2 + $0x8] sm:$0xff] }
 0x38b   : > { %7988 = vpow2.f32 %v7375_v40  ;;  %v7380_v30 = vmul.f32 -1.442695, %v9417_v31  ;;  %v2995_v3 = vmul.f32 %v9392_v8, %v2950_v20  ;;  %v3000_v46 = vmul.f32 %v9392_v8, %v2955_v52  ;;  %v2963_v63 = vld [vmem:[#allocation2 + $0xa8] sm:$0xff]  ;;  %v2960_v35 = vld [vmem:[#allocation2 + $0x50] sm:$0xff]  ;;  %v2965_v6 = vld [vmem:[#allocation2 + $0xe0] sm:$0xff] }
 0x38c   : > { %7990 = vpow2.f32 %v7378_v4  ;;  %v7379_v61 = vmul.f32 -1.442695, %v9432_v41  ;;  %v9440_v55 = vadd.f32 %v9394_v43, %v2998_v44  ;;  %v2997_v32 = vmul.f32 %v9392_v8, %v2952_v50  ;;  %v2962_v9 = vld [vmem:[#allocation2 + $0x98] sm:$0xff] }
 0x38d   : > { %7992 = vpow2.f32 %v7376_v54  ;;  %v9444_v16 = vadd.f32 %v9394_v43, %v2995_v3  ;;  %v9447_v34 = vadd.f32 %v9394_v43, %v3000_v46  ;;  %v3002_v57 = vmul.f32 %v9392_v8, %v2957_v2  ;;  %v2967_v54 = vld [vmem:[#allocation2 + $0xa0] sm:$0xff] }
 0x38e   : > { %7994 = vpow2.f32 %v7380_v30  ;;  %v7384_v48 = vmul.f32 -1.442695, %v9440_v55  ;;  %v9452_v11 = vadd.f32 %v9394_v43, %v2997_v32  ;;  %v2999_v45 = vmul.f32 %v9392_v8, %v2954_v25  ;;  %v2964_v30 = vld [vmem:[#allocation2 + $0x90] sm:$0xff] }
 0x38f   : > { %7996 = vpow2.f32 %v7377_v47  ;;  %v7381_v12 = vmul.f32 -1.442695, %v9444_v16  ;;  %v7386_v49 = vmul.f32 -1.442695, %v9447_v34  ;;  %v9458_v18 = vadd.f32 %v9394_v43, %v3002_v57 }
 0x390   : > { %7998 = vpow2.f32 %v7382_v58  ;;  %v7383_v10 = vmul.f32 -1.442695, %v9452_v11  ;;  %v9462_v38 = vadd.f32 %v9394_v43, %v2999_v45  ;;  %v3004_v21 = vmul.f32 %v9392_v8, %v2959_v26 }
 0x391   : > { %8000 = vpow2.f32 %v7379_v61  ;;  %v7388_v13 = vmul.f32 -1.442695, %v9458_v18  ;;  %v3001_v19 = vmul.f32 %v9392_v8, %v2956_v28  ;;  %v3006_v39 = vmul.f32 %v9392_v8, %v2961_v5  ;;  %v2969_v61 = vld [vmem:[#allocation2 + $0xc0] sm:$0xff] }
 0x392   : > { %8002 = vpow2.f32 %v7384_v48  ;;  %v7385_v42 = vmul.f32 -1.442695, %v9462_v38  ;;  %v9470_v27 = vadd.f32 %v9394_v43, %v3004_v21  ;;  %v3003_v23 = vmul.f32 %v9392_v8, %v2958_v22 }
 0x393   : > { %8004 = vpow2.f32 %v7381_v12  ;;  %v9473_v33 = vadd.f32 %v9394_v43, %v3001_v19  ;;  %v3008_v1 = vmul.f32 %v9392_v8, %v2963_v63  ;;  %v9480_v14 = vadd.f32 %v9394_v43, %v3006_v39  ;;  %v2966_v19 = vld [vmem:[#allocation2 + $0xf8] sm:$0xff] }
 0x394   : > { %8006 = vpow2.f32 %v7386_v49  ;;  %v7390_v51 = vmul.f32 -1.442695, %v9470_v27  ;;  %v3005_v15 = vmul.f32 %v9392_v8, %v2960_v35  ;;  %v9484_v20 = vadd.f32 %v9394_v43, %v3003_v23  ;;  %v2971_v35 = vld [vmem:[#allocation2 + $0xe8] sm:$0xff] }
 0x395   : > { %8008 = vpow2.f32 %v7383_v10  ;;  %v7387_v17 = vmul.f32 -1.442695, %v9473_v33  ;;  %v9487_v52 = vadd.f32 %v9394_v43, %v3008_v1  ;;  %v9490_v44 = vmul.f32 -1.442695, %v9480_v14 }
 0x396   : > { %8010 = vpow2.f32 %v7388_v13  ;;  %v3010_v2 = vmul.f32 %v9392_v8, %v2965_v6  ;;  %v9494_v46 = vadd.f32 %v9394_v43, %v3005_v15  ;;  %v3007_v25 = vmul.f32 %v9392_v8, %v2962_v9 }
 0x397   : > { %v7987_v24 = vpop.eup %7986  ;;  %8012 = vpow2.f32 %v7385_v42  ;;  %v3012_v26 = vmul.f32 %v9392_v8, %v2967_v54  ;;  %v3009_v48 = vmul.f32 %v9392_v8, %v2964_v30  ;;  %v9500_v5 = vmul.f32 -1.442695, %v9484_v20 }
 0x398   : > { %v7989_v0 = vpop.eup %7988  ;;  %v3185_v59 = vadd.f32 1.0, %v7987_v24  ;;  %8014 = vpow2.f32 %v7390_v51  ;;  %v9503_v12 = vmul.f32 -1.442695, %v9487_v52  ;;  %v9506_v21 = vadd.f32 %v9394_v43, %v3010_v2 }
 0x399   : > { %v7991_v40 = vpop.eup %7990  ;;  %v3186_v56 = vadd.f32 1.0, %v7989_v0  ;;  %8016 = vpow2.f32 %v7387_v17  ;;  %v3014_v13 = vmul.f32 %v9392_v8, %v2969_v61  ;;  %v9510_v63 = vmul.f32 -1.442695, %v9494_v46  ;;  %v2968_v17 = vld [vmem:[#allocation2 + $0x78] sm:$0xff] }
 0x39a   : > { %v7993_v4 = vpop.eup %7992  ;;  %8018 = vrcp.f32 %v3185_v59  ;;  %v3189_v53 = vadd.f32 1.0, %v7991_v40  ;;  %v9513_v42 = vadd.f32 %v9394_v43, %v3007_v25  ;;  %v9516_v1 = vadd.f32 %v9394_v43, %v3012_v26  ;;  %v2973_v61 = vld [vmem:[#allocation2 + $0xd8] sm:$0xff] }
 0x39b   : > { %v7995_v50 = vpop.eup %7994  ;;  %8020 = vrcp.f32 %v3186_v56  ;;  %v3187_v47 = vadd.f32 1.0, %v7993_v4  ;;  %v9519_v24 = vadd.f32 %v9394_v43, %v3009_v48  ;;  %v9522_v15 = vadd.f32 %v9394_v43, %v3014_v13 }
 0x39c   : > { %v7997_v58 = vpop.eup %7996  ;;  %8022 = vrcp.f32 %v3189_v53  ;;  %v3191_v3 = vadd.f32 1.0, %v7995_v50  ;;  %v3011_v6 = vmul.f32 %v9392_v8, %v2966_v19  ;;  %v9526_v9 = vmul.f32 -1.442695, %v9506_v21 }
 0x39d   : > { %v7999_v32 = vpop.eup %7998  ;;  %8024 = vrcp.f32 %v3187_v47  ;;  %v3188_v57 = vadd.f32 1.0, %v7997_v58  ;;  %v3016_v4 = vmul.f32 %v9392_v8, %v2971_v35  ;;  %v9530_v30 = vmul.f32 -1.442695, %v9513_v42  ;;  %v2975_v47 = vld [vmem:[#allocation2 + $0x60] sm:$0xff]  ;;  %v3339_v35 = vld [vmem:[#allocation3 + $0xc8] sm:$0xff] }
 0x39e   : > { %v8001_v45 = vpop.eup %8000  ;;  %8026 = vrcp.f32 %v3191_v3  ;;  %v3193_v28 = vadd.f32 1.0, %v7999_v32  ;;  %v3013_v50 = vmul.f32 %v9392_v8, %v2968_v17  ;;  %v9534_v3 = vmul.f32 -1.442695, %v9516_v1 }
 0x39f   : > { %v8003_v49 = vpop.eup %8002  ;;  %8028 = vrcp.f32 %v3188_v57  ;;  %v3190_v10 = vadd.f32 1.0, %v8001_v45  ;;  %v9537_v25 = vmul.f32 -1.442695, %v9519_v24  ;;  %v9540_v26 = vmul.f32 -1.442695, %v9522_v15  ;;  %v2970_v45 = vld [vmem:[#allocation2 + $0x80] sm:$0xff] }
 0x3a0   : > { %v8005_v39 = vpop.eup %8004  ;;  %8030 = vrcp.f32 %v3193_v28  ;;  %v3195_v22 = vadd.f32 1.0, %v8003_v49  ;;  %v9543_v48 = vadd.f32 %v9394_v43, %v3011_v6  ;;  %v3338_v49 = vld [vmem:[#allocation3 + $0x80] sm:$0xff]  ;;  %v9546_v13 = vadd.f32 %v9394_v43, %v3016_v4 }
 0x3a1   : > { %v8007_v51 = vpop.eup %8006  ;;  %8032 = vrcp.f32 %v3190_v10  ;;  %v3192_v23 = vadd.f32 1.0, %v8005_v39  ;;  %v3020_v19 = vmul.f32 %v9392_v8, %v2975_v47  ;;  %v3015_v6 = vmul.f32 %v9392_v8, %v2970_v45 }
 0x3a2   : > { %v8009_v0 = vpop.eup %8008  ;;  %8034 = vrcp.f32 %v3195_v22  ;;  %v3197_v59 = vadd.f32 1.0, %v8007_v51  ;;  %v9551_v51 = vadd.f32 %v9394_v43, %v3013_v50  ;;  %vm6852_vm8 = vcmask 392512  }
 0x3a3   : > { %v8011_v40 = vpop.eup %8010  ;;  %8036 = vrcp.f32 %v3192_v23  ;;  %v3194_v56 = vadd.f32 1.0, %v8009_v0  ;;  %v3018_v23 = vmul.f32 %v9392_v8, %v2973_v61  ;;  %v9557_v0 = vld [vmem:[%s10817_s7] ss:$0 sm:$0xff]  ;;  %vm6859_vm9 = vcmask 458112  }
 0x3a4   : > { %v8013_v53 = vpop.eup %8012  ;;  %8038 = vrcp.f32 %v3197_v59  ;;  %v3199_v54 = vadd.f32 1.0, %v8011_v40  ;;  %vm6866_vm10 = vcmask 523712   ;;  %vm6873_vm11 = vcmask 589312  }
 0x3a5   : > { %v8015_v2 = vpop.eup %8014  ;;  %8040 = vrcp.f32 %v3194_v56  ;;  %v3196_v58 = vadd.f32 1.0, %v8013_v53  ;;  %v3340_v53 = vld [vmem:[#allocation3 + $0xb8] sm:$0xff]  ;;  %vm6880_vm12 = vcmask 654912   ;;  %vm6887_vm13 = vcmask 720512  }
 0x3a6   : > { %v8017_v32 = vpop.eup %8016  ;;  %8042 = vrcp.f32 %v3199_v54  ;;  %v3201_v57 = vadd.f32 1.0, %v8015_v2  ;;  %v7397_v54 = vmul.f32 -1.442695, %v9543_v48  ;;  %v3342_v2 = vld [vmem:[#allocation3 + $0x98] sm:$0xff]  ;;  %vm6894_vm14 = vcmask 786112  }
 0x3a7   : > { %v8019_v28 = vpop.eup %8018  ;;  %8044 = vrcp.f32 %v3196_v58  ;;  %v3198_v10 = vadd.f32 1.0, %v8017_v32  ;;  %v7402_v58 = vmul.f32 -1.442695, %v9546_v13  ;;  %vm6901_vm15 = vcmask 851712  }
 0x3a8   : > { %v8021_v39 = vpop.eup %8020  ;;  %v3299_v22 = vmul.f32 %v8019_v28, %v9399_v29  ;;  %8046 = vrcp.f32 %v3201_v57  ;;  %v9562_v29 = vadd.f32 %v9394_v43, %v3020_v19  ;;  %v3341_v57 = vld [vmem:[#allocation3 + $0x70] sm:$0xff]  ;;  %vm6908_vm0 = vcmask 917312  }
 0x3a9   : > { %v8023_v17 = vpop.eup %8022  ;;  %v3300_v59 = vmul.f32 %v8021_v39, %v9403_v36  ;;  %8048 = vrcp.f32 %v3198_v10  ;;  %v3343_v39 = vld [vmem:[#allocation3 + $0xa8] sm:$0xff]  ;;  %vm6915_vm1 = vcmask 982912   ;;  %vm6922_vm2 = vcmask 1048512  }
 0x3aa   : > { %v8025_v40 = vpop.eup %8024  ;;  %v3376_v56 = vadd.f32 %v3338_v49, %v3299_v22  ;;  %v3303_v4 = vmul.f32 %v8023_v17, %v9409_v60  ;;  %8050 = vpow2.f32 %v9490_v44  ;;  %v7399_v60 = vmul.f32 -1.442695, %v9551_v51 }
 0x3ab   : > { %v8027_v50 = vpop.eup %8026  ;;  %v3377_v47 = vadd.f32 %v3339_v35, %v3300_v59  ;;  %v3301_v36 = vmul.f32 %v8025_v40, %v9414_v37  ;;  %8052 = vpow2.f32 %v9500_v5  ;;  %v9574_v44 = vadd.f32 %v9394_v43, %v3018_v23  ;;  %v3344_v23 = vld [vmem:[#allocation3 + $0x120] sm:$0xff] }
 0x3ac   : > { %v8029_v61 = vpop.eup %8028  ;;  %v3421_v32 = vmul.f32 %v9557_v0, %v3376_v56  ;;  %8054 = vpow2.f32 %v9503_v12  ;;  %v9579_v37 = vadd.f32 %v9394_v43, %v3015_v6  ;;  %v3380_v19 = vadd.f32 %v3342_v2, %v3303_v4  ;;  %v3346_v56 = vld [vmem:[#allocation3 + $0xf0] sm:$0xff] }
 0x3ad   : > { %v8031_v45 = vpop.eup %8030  ;;  %v3378_v28 = vadd.f32 %v3340_v53, %v3301_v36  ;;  %v3302_v49 = vmul.f32 %v8029_v61, %v9422_v62  ;;  %8056 = vpow2.f32 %v9510_v63  ;;  %v3422_v10 = vmul.f32 %v9557_v0, %v3377_v47  ;;  %v3348_v53 = vld [vmem:[#allocation3 + $0xf8] sm:$0xff]  ;;  %v3350_v47 = vld [vmem:[#allocation3 + $0x68] sm:$0xff]  ;;  %v3347_v61 = vld [vmem:[#allocation3 + $0x100] sm:$0xff] }
 0x3ae   : > { %v8033_v5 = vpop.eup %8032  ;;  %3459 = vadd.xlane.f32.xlu0 %v3421_v32  ;;  %v3305_v12 = vmul.f32 %v8027_v50, %v9417_v31  ;;  %8058 = vpow2.f32 %v9526_v9  ;;  %v3307_v59 = vmul.f32 %v8031_v45, %v9428_v7  ;;  %v7404_v31 = vmul.f32 -1.442695, %v9574_v44  ;;  %v3345_v50 = vld [vmem:[#allocation3 + $0xd0] sm:$0xff] }
 0x3af   : > { %v8035_v22 = vpop.eup %8034  ;;  %v3423_v35 = vmul.f32 %v9557_v0, %v3378_v28  ;;  %v3379_v62 = vadd.f32 %v3341_v57, %v3302_v49  ;;  %v3304_v63 = vmul.f32 %v8033_v5, %v9432_v41  ;;  %8060 = vpow2.f32 %v9530_v30  ;;  %v2972_v28 = vld [vmem:[#allocation2] sm:$0xff] }
 0x3b0   : > { %v8037_v17 = vpop.eup %8036  ;;  %v3309_v6 = vmul.f32 %v8035_v22, %v9440_v55  ;;  %8062 = vpow2.f32 %v9534_v3  ;;  %v3425_v7 = vmul.f32 %v9557_v0, %v3380_v19  ;;  %v3382_v55 = vadd.f32 %v3344_v23, %v3305_v12 }
 0x3b1   : > { %v8039_v40 = vpop.eup %8038  ;;  %3463 = vadd.xlane.f32.xlu1 %v3423_v35  ;;  %v3424_v9 = vmul.f32 %v9557_v0, %v3379_v62  ;;  %v3381_v4 = vadd.f32 %v3343_v39, %v3304_v63  ;;  %v3306_v41 = vmul.f32 %v8037_v17, %v9444_v16  ;;  %8064 = vpow2.f32 %v9537_v25  ;;  %v2977_v39 = vld [vmem:[#allocation2 + $0x18] sm:$0xff]  ;;  %v3349_v62 = vld [vmem:[#allocation3 + $0x38] sm:$0xff] }
 0x3b2   : > { %v8041_v30 = vpop.eup %8040  ;;  %3461 = vadd.xlane.f32.xlu0 %v3422_v10  ;;  %v3311_v3 = vmul.f32 %v8039_v40, %v9447_v34  ;;  %8066 = vpow2.f32 %v9540_v26  ;;  %v7401_v16 = vmul.f32 -1.442695, %v9579_v37  ;;  %v3384_v25 = vadd.f32 %v3346_v56, %v3307_v59 }
 0x3b3   : > { %v8043_v2 = vpop.eup %8042  ;;  %v3308_v36 = vmul.f32 %v8041_v30, %v9452_v11  ;;  %8068 = vpow2.f32 %v7397_v54  ;;  %v3386_v57 = vadd.f32 %v3348_v53, %v3309_v6  ;;  %v7406_v45 = vmul.f32 -1.442695, %v9562_v29  ;;  %v2976_v53 = vld [vmem:[#allocation2 + $0x68] sm:$0xff] }
 0x3b4   : > { %v8045_v32 = vpop.eup %8044  ;;  %8070 = vpow2.f32 %v7402_v58  ;;  %v3426_v34 = vmul.f32 %v9557_v0, %v3381_v4  ;;  %v3383_v5 = vadd.f32 %v3345_v50, %v3306_v41  ;;  %v3388_v26 = vadd.f32 %v3350_v47, %v3311_v3  ;;  %v2979_v4 = vld [vmem:[#allocation2 + $0x118] sm:$0xff] }
 0x3b5   : > { %v8047_v49 = vpop.eup %8046  ;;  %3465 = vadd.xlane.f32.xlu1 %v3424_v9  ;;  %8072 = vpow2.f32 %v7399_v60  ;;  %v3427_v11 = vmul.f32 %v9557_v0, %v3382_v55  ;;  %v3385_v54 = vadd.f32 %v3347_v61, %v3308_v36  ;;  %v3310_v12 = vmul.f32 %v8045_v32, %v9462_v38 }
 0x3b6   : > { %v8049_v10 = vpop.eup %8048  ;;  %3467 = vadd.xlane.f32.xlu0 %v3425_v7  ;;  %8074 = vpow2.f32 %v7404_v31  ;;  %v9604_v58 = vmul.f32 %v9392_v8, %v2972_v28  ;;  %v3429_v35 = vmul.f32 %v9557_v0, %v3384_v25  ;;  %v3431_v23 = vmul.f32 %v9557_v0, %v3386_v57  ;;  %v2974_v31 = vld [vmem:[#allocation2 + $0x28] sm:$0xff]  ;;  %v2978_v25 = vld [vmem:[#allocation2 + $0x58] sm:$0xff] }
 0x3b7   : > { %v8051_v19 = vpop.eup %8050  ;;  %8076 = vpow2.f32 %v7401_v16  ;;  %v9609_v60 = vmul.f32 %v8043_v2, %v9458_v18  ;;  %v3428_v59 = vmul.f32 %v9557_v0, %v3383_v5  ;;  %v9613_v38 = vmul.f32 %v9557_v0, %v3388_v26  ;;  %v3352_v26 = vld [vmem:[#allocation3 + $0x88] sm:$0xff] }
 0x3b8   : > { %v8053_v22 = vpop.eup %8052  ;;  %v3203_v63 = vadd.f32 1.0, %v8051_v19  ;;  %8078 = vpow2.f32 %v7406_v45  ;;  %v3430_v9 = vmul.f32 %v9557_v0, %v3385_v54  ;;  %v3022_v18 = vmul.f32 %v9392_v8, %v2977_v39  ;;  %v3351_v45 = vld [vmem:[#allocation3 + $0x58] sm:$0xff]  ;;  %v2980_v19 = vld [vmem:[#allocation2 + $0xb8] sm:$0xff] }
 0x3b9   : > { %v8055_v17 = vpop.eup %8054  ;;  %3469 = vadd.xlane.f32.xlu1 %v3426_v34  ;;  %v3200_v6 = vadd.f32 1.0, %v8053_v22  ;;  %v3387_v30 = vadd.f32 %v3349_v62, %v3310_v12  ;;  %v3312_v7 = vmul.f32 %v8049_v10, %v9473_v33  ;;  %v3019_v2 = vmul.f32 %v9392_v8, %v2974_v31 }
 0x3ba   : > { %v8057_v40 = vpop.eup %8056  ;;  %3471 = vadd.xlane.f32.xlu0 %v3427_v11  ;;  %8080 = vrcp.f32 %v3203_v63  ;;  %v3205_v56 = vadd.f32 1.0, %v8055_v17  ;;  %v9619_v47 = vadd.f32 %v9394_v43, %v3022_v18  ;;  %v3024_v16 = vmul.f32 %v9392_v8, %v2979_v4 }
 0x3bb   : > { %v8059_v41 = vpop.eup %8058  ;;  %8082 = vrcp.f32 %v3200_v6  ;;  %v3202_v55 = vadd.f32 1.0, %v8057_v40  ;;  %v3021_v32 = vmul.f32 %v9392_v8, %v2976_v53  ;;  %v3315_v57 = vmul.f32 %v8047_v49, %v9470_v27 }
 0x3bc   : > { %v8061_v50 = vpop.eup %8060  ;;  %8084 = vrcp.f32 %v3205_v56  ;;  %v3207_v3 = vadd.f32 1.0, %v8059_v41  ;;  %v9626_v34 = vadd.f32 %v9394_v43, %v3019_v2  ;;  %v9629_v11 = vadd.f32 %v9394_v43, %v3024_v16 }
 0x3bd   : > { %v8063_v36 = vpop.eup %8062  ;;  %3473 = vadd.xlane.f32.xlu1 %v3428_v59  ;;  %8086 = vrcp.f32 %v3202_v55  ;;  %v3204_v61 = vadd.f32 1.0, %v8061_v50  ;;  %v9632_v54 = vadd.f32 %v9394_v43, %v3021_v32  ;;  %v3432_v27 = vmul.f32 %v9557_v0, %v3387_v30 }
 0x3be   : > { %v8065_v33 = vpop.eup %8064  ;;  %3475 = vadd.xlane.f32.xlu0 %v3429_v35  ;;  %8088 = vrcp.f32 %v3207_v3  ;;  %v3209_v28 = vadd.f32 1.0, %v8063_v36  ;;  %v3023_v39 = vmul.f32 %v9392_v8, %v2978_v25  ;;  %v3354_v35 = vld [vmem:[#allocation3 + $0x10] sm:$0xff]  ;;  %v3389_v62 = vadd.f32 %v3351_v45, %v3312_v7  ;;  %v3356_v3 = vld [vmem:[#allocation3 + $0xe8] sm:$0xff] }
 0x3bf   : > { %v8067_v5 = vpop.eup %8066  ;;  %8090 = vrcp.f32 %v3204_v61  ;;  %v3206_v10 = vadd.f32 1.0, %v8065_v33  ;;  %v9638_v17 = vadd.f32 %v9394_v43, %v9604_v58  ;;  %v3390_v6 = vadd.f32 %v3352_v26, %v9609_v60  ;;  %v3353_v61 = vld [vmem:[#allocation3 + $0x48] sm:$0xff] }
 0x3c0   : > { %v8069_v12 = vpop.eup %8068  ;;  %8092 = vrcp.f32 %v3209_v28  ;;  %v3211_v49 = vadd.f32 1.0, %v8067_v5  ;;  %v9642_v40 = vadd.f32 %v9394_v43, %v3023_v39  ;;  %v3025_v56 = vmul.f32 %v9392_v8, %v2980_v19  ;;  %v3355_v5 = vld [vmem:[#allocation3 + $0x40] sm:$0xff]  ;;  %v3358_v19 = vld [vmem:[#allocation3 + $0xd8] sm:$0xff] }
 0x3c1   : > { %v8071_v22 = vpop.eup %8070  ;;  %3477 = vadd.xlane.f32.xlu1 %v3430_v9  ;;  %8094 = vrcp.f32 %v3206_v10  ;;  %v3208_v63 = vadd.f32 1.0, %v8069_v12  ;;  %v3392_v53 = vadd.f32 %v3354_v35, %v3315_v57  ;;  %v7403_v30 = vmul.f32 -1.442695, %v9638_v17 }
 0x3c2   : > { %v8073_v59 = vpop.eup %8072  ;;  %3479 = vadd.xlane.f32.xlu0 %v3431_v23  ;;  %v3213_v31 = vadd.f32 1.0, %v8071_v22  ;;  %v9646_v58 = vadd.f32 %v9394_v43, %v3025_v56  ;;  %v3434_v23 = vmul.f32 %v9557_v0, %v3389_v62  ;;  %v3435_v8 = vmul.f32 %v9557_v0, %v3390_v6  ;;  %v3360_v56 = vld [vmem:[#allocation3 + $0x118] sm:$0xff] }
 0x3c3   : > { %v8075_v18 = vpop.eup %8074  ;;  %8096 = vrcp.f32 %v3208_v63  ;;  %v3210_v9 = vadd.f32 1.0, %v8073_v59  ;;  %v7408_v55 = vmul.f32 -1.442695, %v9619_v47  ;;  %v7405_v43 = vmul.f32 -1.442695, %v9626_v34 }
 0x3c4   : > { %v8077_v4 = vpop.eup %8076  ;;  %8098 = vrcp.f32 %v3211_v49  ;;  %v3215_v41 = vadd.f32 1.0, %v8075_v18  ;;  %v7410_v16 = vmul.f32 -1.442695, %v9629_v11  ;;  %v7407_v33 = vmul.f32 -1.442695, %v9632_v54  ;;  %v3357_v49 = vld [vmem:[#allocation3 + $0xc0] sm:$0xff] }
 0x3c5   : > { %3481 = vadd.xlane.f32.xlu1 %v3432_v27  ;;  %8100 = vrcp.f32 %v3213_v31  ;;  %v3212_v60 = vadd.f32 1.0, %v8077_v4  ;;  %v8079_v7 = vpop.eup %8078 }
 0x3c6   : > { %3483 = vadd.xlane.f32.xlu0 %v9613_v38  ;;  %8102 = vrcp.f32 %v3210_v9  ;;  %v3437_v38 = vmul.f32 %v9557_v0, %v3392_v53  ;;  %v3217_v39 = vadd.f32 1.0, %v8079_v7  ;;  %v3359_v53 = vld [vmem:[#allocation3 + $0x128] sm:$0xff] }
 0x3c7   : > { %v8081_v50 = vpop.eup %8080  ;;  %8104 = vrcp.f32 %v3215_v41 }
 0x3c8   : > { %v8083_v2 = vpop.eup %8082  ;;  %v3317_v36 = vmul.f32 %v8081_v50, %v9480_v14  ;;  %8106 = vrcp.f32 %v3212_v60  ;;  %v7409_v14 = vmul.f32 -1.442695, %v9642_v40  ;;  %v3361_v50 = vld [vmem:[#allocation3 + $0x78] sm:$0xff] }
 0x3c9   : > { %v8085_v32 = vpop.eup %8084  ;;  %3485 = vadd.xlane.f32.xlu1 %v3434_v23  ;;  %v3314_v25 = vmul.f32 %v8083_v2, %v9484_v20  ;;  %8108 = vpow2.f32 %v7403_v30  ;;  %v7411_v20 = vmul.f32 -1.442695, %v9646_v58 }
 0x3ca   : > { %v8087_v57 = vpop.eup %8086  ;;  %3487 = vadd.xlane.f32.xlu0 %v3435_v8  ;;  %v3394_v45 = vadd.f32 %v3356_v3, %v3317_v36  ;;  %v3319_v28 = vmul.f32 %v8085_v32, %v9487_v52  ;;  %8110 = vpow2.f32 %v7408_v55 }
 0x3cb   : > { %v8089_v26 = vpop.eup %8088  ;;  %v3391_v10 = vadd.f32 %v3353_v61, %v3314_v25  ;;  %v3316_v12 = vmul.f32 %v8087_v57, %v9494_v46  ;;  %8112 = vpow2.f32 %v7405_v43 }
 0x3cc   : > { %v8091_v27 = vpop.eup %8090  ;;  %8114 = vpow2.f32 %v7410_v16  ;;  %v3439_v59 = vmul.f32 %v9557_v0, %v3394_v45  ;;  %v3396_v6 = vadd.f32 %v3358_v19, %v3319_v28  ;;  %v3321_v46 = vmul.f32 %v8089_v26, %v9506_v21  ;;  %v3362_v21 = vld [vmem:[#allocation3 + $0x30] sm:$0xff]  ;;  %v3364_v16 = vld [vmem:[#allocation3] sm:$0xff] }
 0x3cd   : > { %v8093_v22 = vpop.eup %8092  ;;  %v3436_v35 = vmul.f32 %v9557_v0, %v3391_v10  ;;  %v3393_v52 = vadd.f32 %v3355_v5, %v3316_v12  ;;  %v3318_v62 = vmul.f32 %v8091_v27, %v9513_v42  ;;  %8116 = vpow2.f32 %v7407_v33  ;;  %v3363_v45 = vld [vmem:[#allocation3 + $0x110] sm:$0xff] }
 0x3ce   : > { %v8095_v63 = vpop.eup %8094  ;;  %3491 = vadd.xlane.f32.xlu0 %v3437_v38  ;;  %8118 = vpow2.f32 %v7409_v14  ;;  %v3323_v41 = vmul.f32 %v8093_v22, %v9516_v1  ;;  %v3441_v60 = vmul.f32 %v9557_v0, %v3396_v6  ;;  %v3398_v30 = vadd.f32 %v3360_v56, %v3321_v46 }
 0x3cf   : > { %3489 = vadd.xlane.f32.xlu1 %v3436_v35  ;;  %v3438_v31 = vmul.f32 %v9557_v0, %v3393_v52  ;;  %v3395_v18 = vadd.f32 %v3357_v49, %v3318_v62  ;;  %v3320_v9 = vmul.f32 %v8095_v63, %v9519_v24  ;;  %8120 = vpow2.f32 %v7411_v20  ;;  %v3365_v52 = vld [vmem:[#allocation3 + $0x108] sm:$0xff] }
 0x3d0   : > { %v8097_v4 = vpop.eup %8096  ;;  %8122 = vrcp.f32 %v3217_v39  ;;  %v3400_v2 = vadd.f32 %v3362_v21, %v3323_v41  ;;  %v3443_v61 = vmul.f32 %v9557_v0, %v3398_v30 }
 0x3d1   : > { %v8099_v42 = vpop.eup %8098  ;;  %v3322_v7 = vmul.f32 %v8097_v4, %v9543_v48  ;;  %v3440_v55 = vmul.f32 %v9557_v0, %v3395_v18  ;;  %v3397_v24 = vadd.f32 %v3359_v53, %v3320_v9 }
 0x3d2   : > { %v8101_v23 = vpop.eup %8100  ;;  %3495 = vadd.xlane.f32.xlu0 %v3439_v59  ;;  %v3325_v1 = vmul.f32 %v8099_v42, %v9522_v15  ;;  %v3445_v14 = vmul.f32 %v9557_v0, %v3400_v2  ;;  %v3370_v42 = vld [vmem:[#allocation3 + $0x20] sm:$0xff] }
 0x3d3   : > { %v8103_v8 = vpop.eup %8102  ;;  %3493 = vadd.xlane.f32.xlu1 %v3438_v31  ;;  %v3399_v32 = vadd.f32 %v3361_v50, %v3322_v7  ;;  %v3442_v48 = vmul.f32 %v9557_v0, %v3397_v24  ;;  %v3327_v12 = vmul.f32 %v8101_v23, %v9546_v13  ;;  %v3372_v7 = vld [vmem:[#allocation3 + $0xb0] sm:$0xff]  ;;  %v3369_v24 = vld [vmem:[#allocation3 + $0x60] sm:$0xff] }
 0x3d4   : > { %v8105_v3 = vpop.eup %8104  ;;  %v3324_v25 = vmul.f32 %v8103_v8, %v9551_v51  ;;  %v3402_v15 = vadd.f32 %v3364_v16, %v3325_v1  ;;  %v3366_v51 = vld [vmem:[#allocation3 + $0x8] sm:$0xff] }
 0x3d5   : > { %v8107_v43 = vpop.eup %8106  ;;  %v3444_v19 = vmul.f32 %v9557_v0, %v3399_v32  ;;  %v3404_v13 = vadd.f32 %v3366_v51, %v3327_v12  ;;  %v3329_v6 = vmul.f32 %v8105_v3, %v9574_v44 }
 0x3d6   : > { %v8109_v36 = vpop.eup %8108  ;;  %3499 = vadd.xlane.f32.xlu0 %v3441_v60  ;;  %v3401_v49 = vadd.f32 %v3363_v45, %v3324_v25  ;;  %v3326_v39 = vmul.f32 %v8107_v43, %v9579_v37  ;;  %v3447_v59 = vmul.f32 %v9557_v0, %v3402_v15  ;;  %v3368_v37 = vld [vmem:[#allocation3 + $0x50] sm:$0xff]  ;;  %v3367_v60 = vld [vmem:[#allocation3 + $0xe0] sm:$0xff] }
 0x3d7   : > { %v8111_v38 = vpop.eup %8110  ;;  %3497 = vadd.xlane.f32.xlu1 %v3440_v55  ;;  %v3214_v33 = vadd.f32 1.0, %v8109_v36  ;;  %v3449_v18 = vmul.f32 %v9557_v0, %v3404_v13  ;;  %v3406_v9 = vadd.f32 %v3368_v37, %v3329_v6  ;;  %v3375_v15 = vld [vmem:[#allocation3 + $0xa0] sm:$0xff] }
 0x3d8   : > { %v8113_v57 = vpop.eup %8112  ;;  %v3219_v28 = vadd.f32 1.0, %v8111_v38  ;;  %v3446_v31 = vmul.f32 %v9557_v0, %v3401_v49  ;;  %v3403_v56 = vadd.f32 %v3365_v52, %v3326_v39  ;;  %v3374_v38 = vld [vmem:[#allocation3 + $0x90] sm:$0xff] }
 0x3d9   : > { %v8115_v5 = vpop.eup %8114  ;;  %8124 = vrcp.f32 %v3214_v33  ;;  %v3216_v26 = vadd.f32 1.0, %v8113_v57  ;;  %v3451_v44 = vmul.f32 %v9557_v0, %v3406_v9 }
 0x3da   : > { %v8117_v10 = vpop.eup %8116  ;;  %3503 = vadd.xlane.f32.xlu0 %v3443_v61  ;;  %8126 = vrcp.f32 %v3219_v28  ;;  %v3221_v20 = vadd.f32 1.0, %v8115_v5  ;;  %v3448_v53 = vmul.f32 %v9557_v0, %v3403_v56  ;;  %v3371_v61 = vld [vmem:[#allocation3 + $0x18] sm:$0xff] }
 0x3db   : > { %v8119_v27 = vpop.eup %8118  ;;  %3501 = vadd.xlane.f32.xlu1 %v3442_v48  ;;  %8128 = vrcp.f32 %v3216_v26  ;;  %v3218_v22 = vadd.f32 1.0, %v8117_v10 }
 0x3dc   : > { %v8121_v35 = vpop.eup %8120  ;;  %8130 = vrcp.f32 %v3221_v20  ;;  %v3220_v62 = vadd.f32 1.0, %v8119_v27 }
 0x3dd   : > { %8132 = vrcp.f32 %v3218_v22  ;;  %v3222_v63 = vadd.f32 1.0, %v8121_v35  ;;  %v8123_v46 = vpop.eup %8122 }
 0x3de   : > { %3507 = vadd.xlane.f32.xlu0 %v3445_v14  ;;  %8134 = vrcp.f32 %v3220_v62  ;;  %v3331_v4 = vmul.f32 %v8123_v46, %v9562_v29 }
 0x3df   : > { %3505 = vadd.xlane.f32.xlu1 %v3444_v19  ;;  %8136 = vrcp.f32 %v3222_v63  ;;  %v3535_v19 = vld [vmem:[#allocation9] sm:$0x1] }
 0x3e0   : > { %v3408_v23 = vadd.f32 %v3370_v42, %v3331_v4 }
 0x3e2   : > { %3511 = vadd.xlane.f32.xlu0 %v3447_v59  ;;  %v3453_v2 = vmul.f32 %v9557_v0, %v3408_v23 }
 0x3e3   : > { %3509 = vadd.xlane.f32.xlu1 %v3446_v31 }
 0x3e6   : > { %v8125_v41 = vpop.eup %8124  ;;  %3515 = vadd.xlane.f32.xlu0 %v3449_v18 }
 0x3e7   : > { %v8127_v30 = vpop.eup %8126  ;;  %3513 = vadd.xlane.f32.xlu1 %v3448_v53  ;;  %v3328_v21 = vmul.f32 %v8125_v41, %v9638_v17 }
 0x3e8   : > { %v8129_v8 = vpop.eup %8128  ;;  %v3333_v55 = vmul.f32 %v8127_v30, %v9619_v47 }
 0x3e9   : > { %v8131_v29 = vpop.eup %8130  ;;  %v3405_v50 = vadd.f32 %v3367_v60, %v3328_v21  ;;  %v3330_v3 = vmul.f32 %v8129_v8, %v9626_v34  ;;  %v10828_v8 = vlaneseq }
 0x3ea   : > { %v8133_v43 = vpop.eup %8132  ;;  %3519 = vadd.xlane.f32.xlu0 %v3451_v44  ;;  %v3410_v1 = vadd.f32 %v3372_v7, %v3333_v55  ;;  %v3335_v36 = vmul.f32 %v8131_v29, %v9629_v11  ;;  %v3373_v11 = vld [vmem:[#allocation3 + $0x28] sm:$0xff] }
 0x3eb   : > { %v8135_v16 = vpop.eup %8134  ;;  %v3450_v17 = vmul.f32 %v9557_v0, %v3405_v50  ;;  %v3407_v32 = vadd.f32 %v3369_v24, %v3330_v3  ;;  %v3332_v47 = vmul.f32 %v8133_v43, %v9632_v54  ;;  %v9704_v29 = vshrl.u32 %v10828_v8, 7 }
 0x3ec   : > { %v3334_v34 = vmul.f32 %v8135_v16, %v9642_v40  ;;  %v8137_v33 = vpop.eup %8136  ;;  %v3455_v57 = vmul.f32 %v9557_v0, %v3410_v1  ;;  %v3412_v45 = vadd.f32 %v3374_v38, %v3335_v36  ;;  %v8320_v50 = vmov 1966171168  }
 0x3ed   : > { %3517 = vadd.xlane.f32.xlu1 %v3450_v17  ;;  %v3452_v48 = vmul.f32 %v9557_v0, %v3407_v32  ;;  %v3409_v25 = vadd.f32 %v3371_v61, %v3332_v47  ;;  %v3336_v14 = vmul.f32 %v8137_v33, %v9646_v58  ;;  %10860 = vst [vmem:[#allocation22_spill] sm:$0xff] %v9704_v29  ;;  %v4842_v3 = vunpack.c.l.s4 %v8320_v50 }
 0x3ee   : > { %3523 = vadd.xlane.f32.xlu0 %v3453_v2  ;;  %v3411_v5 = vadd.f32 %v3373_v11, %v3334_v34  ;;  %v3457_v54 = vmul.f32 %v9557_v0, %v3412_v45  ;;  %v9707_v1 = vsub.s32 0, %v9704_v29  ;;  %v9710_v16 = vsub.s32 1, %v9704_v29 }
 0x3ef   : > { %v3454_v28 = vmul.f32 %v9557_v0, %v3409_v25  ;;  %v3413_v40 = vadd.f32 %v3375_v15, %v3336_v14  ;;  %v4843_v36 = vunpack.c.0.s8 %v4842_v3  ;;  %v9714_v32 = vsub.s32 2, %v9704_v29 }
 0x3f0   : > { %v3456_v26 = vmul.f32 %v9557_v0, %v3411_v5  ;;  %v9717_v38 = vsub.s32 3, %v9704_v29  ;;  %v9720_v47 = vsub.s32 4, %v9704_v29  ;;  %v9726_v25 = vsub.s32 6, %v9704_v29 }
 0x3f1   : > { %3521 = vadd.xlane.f32.xlu1 %v3452_v48  ;;  %v3458_v10 = vmul.f32 %v9557_v0, %v3413_v40  ;;  %v9723_v48 = vsub.s32 5, %v9704_v29  ;;  %v9729_v34 = vsub.s32 7, %v9704_v29  ;;  %v9732_v33 = vsub.s32 %v4843_v36, %v9704_v29 }
 0x3f2   : > { %3527 = vadd.xlane.f32.xlu0 %v3455_v57 }
 0x3f5   : > { %3525 = vadd.xlane.f32.xlu1 %v3454_v28 }
 0x3f6   : > { %3531 = vadd.xlane.f32.xlu0 %v3457_v54 }
 0x3f9   : > { %3529 = vadd.xlane.f32.xlu1 %v3456_v26 }
 0x3fd   : > { %3533 = vadd.xlane.f32.xlu1 %v3458_v10 }
 0x40c   : > { %3538 = vperm.xlu0 %7984, %v3535_v19  }
 0x437   : > { %v3460_v12 = vpop.xlane.xlu0 %3459 }
 0x43a   : > { %v3464_v20 = vpop.xlane.xlu1 %3463 }
 0x43b   : > { %v3462_v27 = vpop.xlane.xlu0 %3461 }
 0x43e   : > { %v3466_v51 = vpop.xlane.xlu1 %3465 }
 0x43f   : > { %v3468_v58 = vpop.xlane.xlu0 %3467 }
 0x442   : > { %v3470_v49 = vpop.xlane.xlu1 %3469 }
 0x443   : > { %v3472_v39 = vpop.xlane.xlu0 %3471 }
 0x446   : > { %v3474_v22 = vpop.xlane.xlu1 %3473 }
 0x447   : > { %v3476_v35 = vpop.xlane.xlu0 %3475 }
 0x44a   : > { %v3478_v52 = vpop.xlane.xlu1 %3477 }
 0x44b   : > { %v3480_v62 = vpop.xlane.xlu0 %3479 }
 0x44e   : > { %v3482_v63 = vpop.xlane.xlu1 %3481 }
 0x44f   : > { %v3484_v59 = vpop.xlane.xlu0 %3483 }
 0x452   : > { %v3486_v13 = vpop.xlane.xlu1 %3485 }
 0x453   : > { %v3488_v6 = vpop.xlane.xlu0 %3487 }
 0x457   : > { %v3492_v46 = vpop.xlane.xlu0 %3491 }
 0x458   : > { %v3490_v0 = vpop.xlane.xlu1 %3489 }
 0x45b   : > { %v3496_v31 = vpop.xlane.xlu0 %3495 }
 0x45c   : > { %v3494_v37 = vpop.xlane.xlu1 %3493 }
 0x45f   : > { %v3500_v56 = vpop.xlane.xlu0 %3499 }
 0x460   : > { %v3498_v18 = vpop.xlane.xlu1 %3497 }
 0x463   : > { %v3504_v9 = vpop.xlane.xlu0 %3503 }
 0x464   : > { %v3502_v4 = vpop.xlane.xlu1 %3501 }
 0x467   : > { %v3508_v53 = vpop.xlane.xlu0 %3507 }
 0x468   : > { %v3506_v42 = vpop.xlane.xlu1 %3505 }
 0x46b   : > { %v3512_v41 = vpop.xlane.xlu0 %3511 }
 0x46c   : > { %v3510_v44 = vpop.xlane.xlu1 %3509 }
 0x46f   : > { %v3516_v23 = vpop.xlane.xlu0 %3515 }
 0x470   : > { %v3514_v60 = vpop.xlane.xlu1 %3513 }
 0x473   : > { %v3520_v30 = vpop.xlane.xlu0 %3519 }
 0x476   : > { %v3518_v7 = vpop.xlane.xlu1 %3517 }
 0x477   : > { %v3524_v21 = vpop.xlane.xlu0 %3523 }
 0x47a   : > { %v3522_v24 = vpop.xlane.xlu1 %3521 }
 0x47b   : > { %v3528_v55 = vpop.xlane.xlu0 %3527 }
 0x47e   : > { %v3526_v2 = vpop.xlane.xlu1 %3525 }
 0x47f   : > { %v3532_v43 = vpop.xlane.xlu0 %3531 }
 0x482   : > { %v3530_v57 = vpop.xlane.xlu1 %3529 }
 0x487   : > { %v3539_v61 = vpop.permute.xlu0 %3538 }
 0x488   : > { %v3544_v17 = vrot.slane %v3539_v61, %v9707_v1 }
 0x48a   : > { %v9734_v45 = vadd.f32 %v3544_v17, %v3460_v12  ;;  %v9736_v11 = vadd.f32 %v3544_v17, %v3462_v27  ;;  %v9738_v28 = vadd.f32 %v3544_v17, %v3464_v20  ;;  %v9740_v5 = vadd.f32 %v3544_v17, %v3466_v51 }
 0x48b   : > { %v9742_v14 = vadd.f32 %v3544_v17, %v3468_v58  ;;  %v9744_v54 = vadd.f32 %v3544_v17, %v3470_v49  ;;  %v9746_v15 = vadd.f32 %v3544_v17, %v3472_v39  ;;  %v9748_v26 = vadd.f32 %v3544_v17, %v3474_v22 }
 0x48c   : > { %v3553_v40 = vadd.f32 %v3544_v17, %v3476_v35  ;;  %v9750_v10 = vadd.f32 %v3544_v17, %v3478_v52  ;;  %v9752_v19 = vadd.f32 %v3544_v17, %v3480_v62  ;;  %v9754_v12 = vadd.f32 %v3544_v17, %v3482_v63 }
 0x48d   : > { %v9756_v27 = vadd.f32 %v3544_v17, %v3484_v59  ;;  %v9758_v20 = vadd.f32 %v3544_v17, %v3486_v13  ;;  %v9760_v51 = vadd.f32 %v3544_v17, %v3488_v6  ;;  %v9762_v58 = vadd.f32 %v3544_v17, %v3490_v0 }
 0x48e   : > { %v9764_v49 = vadd.f32 %v3544_v17, %v3492_v46  ;;  %v9766_v39 = vadd.f32 %v3544_v17, %v3494_v37  ;;  %v9768_v22 = vadd.f32 %v3544_v17, %v3496_v31  ;;  %v9770_v35 = vadd.f32 %v3544_v17, %v3498_v18  ;;  %v3534_v31 = vpop.xlane.xlu1 %3533 }
 0x48f   : > { %v9772_v52 = vadd.f32 %v3544_v17, %v3500_v56  ;;  %v9774_v62 = vadd.f32 %v3544_v17, %v3502_v4  ;;  %v9776_v63 = vadd.f32 %v3544_v17, %v3504_v9  ;;  %v9778_v59 = vadd.f32 %v3544_v17, %v3506_v42 }
 0x490   : > { %v9780_v13 = vadd.f32 %v3544_v17, %v3508_v53  ;;  %v9782_v6 = vadd.f32 %v3544_v17, %v3510_v44  ;;  %v9784_v46 = vadd.f32 %v3544_v17, %v3512_v41  ;;  %v9786_v0 = vadd.f32 %v3544_v17, %v3514_v60 }
 0x491   : > { %v9788_v37 = vadd.f32 %v3544_v17, %v3516_v23  ;;  %v9790_v18 = vadd.f32 %v3544_v17, %v3518_v7  ;;  %v9792_v56 = vadd.f32 %v3544_v17, %v3520_v30  ;;  %v9794_v4 = vadd.f32 %v3544_v17, %v3522_v24 }
 0x492   : > { %v9796_v9 = vadd.f32 %v3544_v17, %v3524_v21  ;;  %v9798_v42 = vadd.f32 %v3544_v17, %v3526_v2  ;;  %v9800_v53 = vadd.f32 %v3544_v17, %v3528_v55  ;;  %v9802_v44 = vadd.f32 %v3544_v17, %v3530_v57 }
 0x493   : > { %10861 = vst [vmem:[#allocation23_spill] sm:$0xff] %v9790_v18  ;;  %v9804_v41 = vadd.f32 %v3544_v17, %v3532_v43  ;;  %v9806_v60 = vadd.f32 %v3544_v17, %v3534_v31  ;;  %v3880_v23 = vrot.slane %v3553_v40, %v9707_v1  ;;  %v3884_v7 = vrot.slane %v3553_v40, %v9710_v16 }
 0x494   : > { %10862 = vst [vmem:[#allocation24_spill] sm:$0xff] %v9798_v42  ;;  %10863 = vst [vmem:[#allocation25_spill] sm:$0xff] %v9800_v53  ;;  %v3888_v30 = vrot.slane %v3553_v40, %v9714_v32  ;;  %v3892_v24 = vrot.slane %v3553_v40, %v9717_v38  ;;  %v3896_v21 = vrot.slane %v3553_v40, %v9720_v47 }
 0x495   : > { %10864 = vst [vmem:[#allocation26_spill] sm:$0xff] %v9802_v44  ;;  %10865 = vst [vmem:[#allocation27_spill] sm:$0xff] %v9806_v60  ;;  %v3900_v50 = vrot.slane %v3553_v40, %v9723_v48  ;;  %v3904_v55 = vrot.slane %v3553_v40, %v9726_v25  ;;  %v3908_v3 = vrot.slane %v3553_v40, %v9729_v34 }
 0x496   : > { %v5229_v43 = vcombine.low %v3880_v23, %v3884_v7  ;;  %v3624_v2 = vrot.slane %v9734_v45, %v9707_v1  ;;  %v5230_v36 = vcombine.low %v3888_v30, %v3892_v24  ;;  %v3628_v17 = vrot.slane %v9734_v45, %v9710_v16 }
 0x497   : > { %v5231_v61 = vcombine.low %v3896_v21, %v3900_v50  ;;  %v3632_v57 = vrot.slane %v9734_v45, %v9714_v32  ;;  %v5232_v31 = vcombine.low %v3904_v55, %v3908_v3  ;;  %v3636_v29 = vrot.slane %v9734_v45, %v9717_v38 }
 0x498   : > { %v5239_v8 = vrot.slane %v5229_v43, %v9732_v33  ;;  %v3640_v40 = vrot.slane %v9734_v45, %v9720_v47  ;;  %v5246_v23 = vrot.slane %v5230_v36, %v9732_v33  ;;  %v3644_v30 = vrot.slane %v9734_v45, %v9723_v48 }
 0x499   : > { %v5253_v7 = vrot.slane %v5231_v61, %v9732_v33  ;;  %v3648_v24 = vrot.slane %v9734_v45, %v9726_v25  ;;  %v5260_v21 = vrot.slane %v5232_v31, %v9732_v33  ;;  %v3652_v50 = vrot.slane %v9734_v45, %v9729_v34 }
 0x49a   : > { %v4837_v55 = vcombine.low %v3624_v2, %v3628_v17  ;;  %v4838_v3 = vcombine.low %v3632_v57, %v3636_v29  ;;  %v5261_v43 = vcombine.low %v5239_v8, %v5246_v23  ;;  %v4839_v60 = vcombine.low %v3640_v40, %v3644_v30 }
 0x49b   : > { %v3944_v36 = vrot.slane %v9752_v19, %v9707_v1  ;;  %v3948_v61 = vrot.slane %v9752_v19, %v9710_v16  ;;  %v5262_v44 = vcombine.low %v5253_v7, %v5260_v21  ;;  %v4840_v53 = vcombine.low %v3648_v24, %v3652_v50 }
 0x49c   : > { %v4847_v42 = vrot.slane %v4837_v55, %v9732_v33  ;;  %v4854_v18 = vrot.slane %v4838_v3, %v9732_v33  ;;  %v5269_v31 = vrot.slane %v5261_v43, %v9732_v33  ;;  %v4861_v45 = vrot.slane %v4839_v60, %v9732_v33 }
 0x49d   : > { %v3952_v8 = vrot.slane %v9752_v19, %v9714_v32  ;;  %v3956_v29 = vrot.slane %v9752_v19, %v9717_v38  ;;  %v5276_v2 = vrot.slane %v5262_v44, %v9732_v33  ;;  %v4868_v17 = vrot.slane %v4840_v53, %v9732_v33 }
 0x49e   : > { %v4869_v57 = vcombine.low %v4847_v42, %v4854_v18  ;;  %v3960_v40 = vrot.slane %v9752_v19, %v9720_v47  ;;  %v3964_v23 = vrot.slane %v9752_v19, %v9723_v48  ;;  %v3968_v60 = vrot.slane %v9752_v19, %v9726_v25 }
 0x49f   : > { %v3972_v7 = vrot.slane %v9752_v19, %v9729_v34  ;;  %v5327_v30 = vcombine.low %v3944_v36, %v3948_v61  ;;  %v5277_v24 = vcombine.low %v5269_v31, %v5276_v2  ;;  %v4870_v21 = vcombine.low %v4861_v45, %v4868_v17 }
 0x4a0   : > { %v4877_v44 = vrot.slane %v4869_v57, %v9732_v33  ;;  %v5328_v50 = vcombine.low %v3952_v8, %v3956_v29  ;;  %v5329_v53 = vcombine.low %v3960_v40, %v3964_v23  ;;  %v3656_v55 = vrot.slane %v9736_v11, %v9707_v1 }
 0x4a1   : > { %v5330_v18 = vcombine.low %v3968_v60, %v3972_v7  ;;  %v5337_v42 = vrot.slane %v5327_v30, %v9732_v33  ;;  %6724 = vperm.xlu0 %7984, %v5277_v24   ;;  %v4884_v3 = vrot.slane %v4870_v21, %v9732_v33  ;;  %v3660_v19 = vrot.slane %v9736_v11, %v9710_v16 }
 0x4a2   : > { %v5344_v43 = vrot.slane %v5328_v50, %v9732_v33  ;;  %v3664_v36 = vrot.slane %v9736_v11, %v9714_v32  ;;  %v5351_v61 = vrot.slane %v5329_v53, %v9732_v33  ;;  %v3668_v45 = vrot.slane %v9736_v11, %v9717_v38 }
 0x4a3   : > { %v5358_v31 = vrot.slane %v5330_v18, %v9732_v33  ;;  %v3672_v8 = vrot.slane %v9736_v11, %v9720_v47  ;;  %v4885_v29 = vcombine.low %v4877_v44, %v4884_v3  ;;  %v3676_v17 = vrot.slane %v9736_v11, %v9723_v48 }
 0x4a4   : > { %v5359_v2 = vcombine.low %v5337_v42, %v5344_v43  ;;  %v3680_v57 = vrot.slane %v9736_v11, %v9726_v25  ;;  %v3684_v23 = vrot.slane %v9736_v11, %v9729_v34  ;;  %v4886_v60 = vcombine.low %v3656_v55, %v3660_v19 }
 0x4a5   : > { %v5360_v40 = vcombine.low %v5351_v61, %v5358_v31  ;;  %v4887_v7 = vcombine.low %v3664_v36, %v3668_v45  ;;  %6700 = vperm.xlu1 %7985, %v4885_v29   ;;  %v4888_v24 = vcombine.low %v3672_v8, %v3676_v17  ;;  %v4008_v21 = vrot.slane %v9756_v27, %v9707_v1 }
 0x4a6   : > { %v5367_v30 = vrot.slane %v5359_v2, %v9732_v33  ;;  %v4012_v44 = vrot.slane %v9756_v27, %v9710_v16  ;;  %v4889_v53 = vcombine.low %v3680_v57, %v3684_v23  ;;  %v4896_v18 = vrot.slane %v4886_v60, %v9732_v33 }
 0x4a7   : > { %v5374_v50 = vrot.slane %v5360_v40, %v9732_v33  ;;  %v4903_v42 = vrot.slane %v4887_v7, %v9732_v33  ;;  %v4910_v11 = vrot.slane %v4888_v24, %v9732_v33  ;;  %v4016_v55 = vrot.slane %v9756_v27, %v9714_v32 }
 0x4a8   : > { %v4020_v3 = vrot.slane %v9756_v27, %v9717_v38  ;;  %v4024_v43 = vrot.slane %v9756_v27, %v9720_v47  ;;  %v4917_v36 = vrot.slane %v4889_v53, %v9732_v33  ;;  %v4028_v31 = vrot.slane %v9756_v27, %v9723_v48 }
 0x4a9   : > { %v5375_v19 = vcombine.low %v5367_v30, %v5374_v50  ;;  %v4918_v61 = vcombine.low %v4896_v18, %v4903_v42  ;;  %v4032_v45 = vrot.slane %v9756_v27, %v9726_v25  ;;  %v4036_v8 = vrot.slane %v9756_v27, %v9729_v34 }
 0x4aa   : > { %v5425_v29 = vcombine.low %v4008_v21, %v4012_v44  ;;  %v5426_v2 = vcombine.low %v4016_v55, %v4020_v3  ;;  %v4919_v17 = vcombine.low %v4910_v11, %v4917_v36  ;;  %v5427_v40 = vcombine.low %v4024_v43, %v4028_v31 }
 0x4ab   : > { %6730 = vperm.xlu0 %7984, %v5375_v19   ;;  %v4926_v57 = vrot.slane %v4918_v61, %v9732_v33  ;;  %v3688_v23 = vrot.slane %v9738_v28, %v9707_v1  ;;  %v5428_v60 = vcombine.low %v4032_v45, %v4036_v8  ;;  %v3692_v24 = vrot.slane %v9738_v28, %v9710_v16 }
 0x4ac   : > { %v5435_v7 = vrot.slane %v5425_v29, %v9732_v33  ;;  %v5442_v30 = vrot.slane %v5426_v2, %v9732_v33  ;;  %v4933_v27 = vrot.slane %v4919_v17, %v9732_v33  ;;  %v5449_v21 = vrot.slane %v5427_v40, %v9732_v33 }
 0x4ad   : > { %v3696_v44 = vrot.slane %v9738_v28, %v9714_v32  ;;  %v3700_v50 = vrot.slane %v9738_v28, %v9717_v38  ;;  %v5456_v53 = vrot.slane %v5428_v60, %v9732_v33  ;;  %v3704_v42 = vrot.slane %v9738_v28, %v9720_v47 }
 0x4ae   : > { %v5457_v18 = vcombine.low %v5435_v7, %v5442_v30  ;;  %v3708_v11 = vrot.slane %v9738_v28, %v9723_v48  ;;  %v4934_v55 = vcombine.low %v4926_v57, %v4933_v27  ;;  %v3712_v3 = vrot.slane %v9738_v28, %v9726_v25 }
 0x4af   : > { %v3716_v43 = vrot.slane %v9738_v28, %v9729_v34  ;;  %v4935_v19 = vcombine.low %v3688_v23, %v3692_v24  ;;  %v5458_v36 = vcombine.low %v5449_v21, %v5456_v53  ;;  %v4936_v31 = vcombine.low %v3696_v44, %v3700_v50 }
 0x4b0   : > { %v5465_v61 = vrot.slane %v5457_v18, %v9732_v33  ;;  %v4937_v45 = vcombine.low %v3704_v42, %v3708_v11  ;;  %6703 = vperm.xlu1 %7985, %v4934_v55   ;;  %v4072_v2 = vrot.slane %v9760_v51, %v9707_v1  ;;  %v4076_v17 = vrot.slane %v9760_v51, %v9710_v16 }
 0x4b1   : > { %v4938_v8 = vcombine.low %v3712_v3, %v3716_v43  ;;  %v4945_v29 = vrot.slane %v4935_v19, %v9732_v33  ;;  %v5472_v57 = vrot.slane %v5458_v36, %v9732_v33  ;;  %v4952_v28 = vrot.slane %v4936_v31, %v9732_v33 }
 0x4b2   : > { %v4959_v40 = vrot.slane %v4937_v45, %v9732_v33  ;;  %v4080_v23 = vrot.slane %v9760_v51, %v9714_v32  ;;  %v4084_v7 = vrot.slane %v9760_v51, %v9717_v38  ;;  %v4088_v30 = vrot.slane %v9760_v51, %v9720_v47 }
 0x4b3   : > { %v4966_v60 = vrot.slane %v4938_v8, %v9732_v33  ;;  %v4092_v24 = vrot.slane %v9760_v51, %v9723_v48  ;;  %v5473_v27 = vcombine.low %v5465_v61, %v5472_v57  ;;  %v4967_v21 = vcombine.low %v4945_v29, %v4952_v28 }
 0x4b4   : > { %v4096_v44 = vrot.slane %v9760_v51, %v9726_v25  ;;  %v4100_v50 = vrot.slane %v9760_v51, %v9729_v34  ;;  %v5523_v18 = vcombine.low %v4072_v2, %v4076_v17  ;;  %v5524_v42 = vcombine.low %v4080_v23, %v4084_v7 }
 0x4b5   : > { %v4968_v53 = vcombine.low %v4959_v40, %v4966_v60  ;;  %v5525_v11 = vcombine.low %v4088_v30, %v4092_v24  ;;  %6736 = vperm.xlu0 %7984, %v5473_v27   ;;  %v4975_v55 = vrot.slane %v4967_v21, %v9732_v33  ;;  %v3720_v43 = vrot.slane %v9740_v5, %v9707_v1 }
 0x4b6   : > { %v5526_v3 = vcombine.low %v4096_v44, %v4100_v50  ;;  %v3724_v19 = vrot.slane %v9740_v5, %v9710_v16  ;;  %v5533_v61 = vrot.slane %v5523_v18, %v9732_v33  ;;  %v5540_v51 = vrot.slane %v5524_v42, %v9732_v33 }
 0x4b7   : > { %v4982_v36 = vrot.slane %v4968_v53, %v9732_v33  ;;  %v5547_v31 = vrot.slane %v5525_v11, %v9732_v33  ;;  %v3728_v8 = vrot.slane %v9740_v5, %v9714_v32  ;;  %v3732_v29 = vrot.slane %v9740_v5, %v9717_v38 }
 0x4b8   : > { %v5554_v45 = vrot.slane %v5526_v3, %v9732_v33  ;;  %v3736_v2 = vrot.slane %v9740_v5, %v9720_v47  ;;  %v5555_v57 = vcombine.low %v5533_v61, %v5540_v51  ;;  %v3740_v28 = vrot.slane %v9740_v5, %v9723_v48 }
 0x4b9   : > { %v4983_v17 = vcombine.low %v4975_v55, %v4982_v36  ;;  %v3744_v40 = vrot.slane %v9740_v5, %v9726_v25  ;;  %v3748_v60 = vrot.slane %v9740_v5, %v9729_v34  ;;  %v4984_v7 = vcombine.low %v3720_v43, %v3724_v19 }
 0x4ba   : > { %v5556_v23 = vcombine.low %v5547_v31, %v5554_v45  ;;  %v4985_v30 = vcombine.low %v3728_v8, %v3732_v29  ;;  %v5563_v24 = vrot.slane %v5555_v57, %v9732_v33  ;;  %v4986_v27 = vcombine.low %v3736_v2, %v3740_v28 }
 0x4bb   : > { %6706 = vperm.xlu1 %7985, %v4983_v17   ;;  %v4136_v21 = vrot.slane %v9764_v49, %v9707_v1  ;;  %v4140_v44 = vrot.slane %v9764_v49, %v9710_v16  ;;  %v4987_v53 = vcombine.low %v3744_v40, %v3748_v60  ;;  %v4994_v18 = vrot.slane %v4984_v7, %v9732_v33 }
 0x4bc   : > { %v5570_v50 = vrot.slane %v5556_v23, %v9732_v33  ;;  %v5001_v42 = vrot.slane %v4985_v30, %v9732_v33  ;;  %v5008_v5 = vrot.slane %v4986_v27, %v9732_v33  ;;  %v4144_v11 = vrot.slane %v9764_v49, %v9714_v32 }
 0x4bd   : > { %v4148_v55 = vrot.slane %v9764_v49, %v9717_v38  ;;  %v4152_v3 = vrot.slane %v9764_v49, %v9720_v47  ;;  %v5015_v19 = vrot.slane %v4987_v53, %v9732_v33  ;;  %v4156_v61 = vrot.slane %v9764_v49, %v9723_v48 }
 0x4be   : > { %v5571_v43 = vcombine.low %v5563_v24, %v5570_v50  ;;  %v5016_v36 = vcombine.low %v4994_v18, %v5001_v42  ;;  %v4160_v51 = vrot.slane %v9764_v49, %v9726_v25  ;;  %v4164_v31 = vrot.slane %v9764_v49, %v9729_v34 }
 0x4bf   : > { %v5621_v45 = vcombine.low %v4136_v21, %v4140_v44  ;;  %v5622_v8 = vcombine.low %v4144_v11, %v4148_v55  ;;  %v5017_v29 = vcombine.low %v5008_v5, %v5015_v19  ;;  %v5623_v17 = vcombine.low %v4152_v3, %v4156_v61 }
 0x4c0   : > { %6742 = vperm.xlu0 %7984, %v5571_v43   ;;  %v5024_v2 = vrot.slane %v5016_v36, %v9732_v33  ;;  %v3752_v57 = vrot.slane %v9742_v14, %v9707_v1  ;;  %v5624_v28 = vcombine.low %v4160_v51, %v4164_v31  ;;  %v3756_v60 = vrot.slane %v9742_v14, %v9710_v16 }
 0x4c1   : > { %v5631_v40 = vrot.slane %v5621_v45, %v9732_v33  ;;  %v5638_v23 = vrot.slane %v5622_v8, %v9732_v33  ;;  %v5031_v49 = vrot.slane %v5017_v29, %v9732_v33  ;;  %v5645_v7 = vrot.slane %v5623_v17, %v9732_v33 }
 0x4c2   : > { %v3760_v30 = vrot.slane %v9742_v14, %v9714_v32  ;;  %v3764_v24 = vrot.slane %v9742_v14, %v9717_v38  ;;  %v5652_v27 = vrot.slane %v5624_v28, %v9732_v33  ;;  %v3768_v44 = vrot.slane %v9742_v14, %v9720_v47 }
 0x4c3   : > { %v5653_v21 = vcombine.low %v5631_v40, %v5638_v23  ;;  %v3772_v50 = vrot.slane %v9742_v14, %v9723_v48  ;;  %v5032_v53 = vcombine.low %v5024_v2, %v5031_v49  ;;  %v3776_v18 = vrot.slane %v9742_v14, %v9726_v25 }
 0x4c4   : > { %v3780_v42 = vrot.slane %v9742_v14, %v9729_v34  ;;  %v5033_v5 = vcombine.low %v3752_v57, %v3756_v60  ;;  %v5654_v11 = vcombine.low %v5645_v7, %v5652_v27  ;;  %v5034_v3 = vcombine.low %v3760_v30, %v3764_v24 }
 0x4c5   : > { %v5661_v55 = vrot.slane %v5653_v21, %v9732_v33  ;;  %v5035_v43 = vcombine.low %v3768_v44, %v3772_v50  ;;  %6709 = vperm.xlu1 %7985, %v5032_v53   ;;  %v4200_v61 = vrot.slane %v9768_v22, %v9707_v1  ;;  %v4204_v51 = vrot.slane %v9768_v22, %v9710_v16 }
 0x4c6   : > { %v5036_v19 = vcombine.low %v3776_v18, %v3780_v42  ;;  %v5043_v36 = vrot.slane %v5033_v5, %v9732_v33  ;;  %v5668_v31 = vrot.slane %v5654_v11, %v9732_v33  ;;  %v5050_v14 = vrot.slane %v5034_v3, %v9732_v33 }
 0x4c7   : > { %v5057_v45 = vrot.slane %v5035_v43, %v9732_v33  ;;  %v4208_v8 = vrot.slane %v9768_v22, %v9714_v32  ;;  %v4212_v2 = vrot.slane %v9768_v22, %v9717_v38  ;;  %v4216_v17 = vrot.slane %v9768_v22, %v9720_v47 }
 0x4c8   : > { %v5064_v29 = vrot.slane %v5036_v19, %v9732_v33  ;;  %v4220_v57 = vrot.slane %v9768_v22, %v9723_v48  ;;  %v5669_v28 = vcombine.low %v5661_v55, %v5668_v31  ;;  %v5065_v40 = vcombine.low %v5043_v36, %v5050_v14 }
 0x4c9   : > { %v4224_v23 = vrot.slane %v9768_v22, %v9726_v25  ;;  %v4228_v60 = vrot.slane %v9768_v22, %v9729_v34  ;;  %v5719_v7 = vcombine.low %v4200_v61, %v4204_v51  ;;  %v5720_v30 = vcombine.low %v4208_v8, %v4212_v2 }
 0x4ca   : > { %v5066_v49 = vcombine.low %v5057_v45, %v5064_v29  ;;  %v5721_v24 = vcombine.low %v4216_v17, %v4220_v57  ;;  %6748 = vperm.xlu0 %7984, %v5669_v28   ;;  %v5073_v27 = vrot.slane %v5065_v40, %v9732_v33  ;;  %v3784_v44 = vrot.slane %v9744_v54, %v9707_v1 }
 0x4cb   : > { %v5722_v21 = vcombine.low %v4224_v23, %v4228_v60  ;;  %v3788_v50 = vrot.slane %v9744_v54, %v9710_v16  ;;  %v5729_v18 = vrot.slane %v5719_v7, %v9732_v33  ;;  %v5736_v22 = vrot.slane %v5720_v30, %v9732_v33 }
 0x4cc   : > { %v5080_v53 = vrot.slane %v5066_v49, %v9732_v33  ;;  %v5743_v42 = vrot.slane %v5721_v24, %v9732_v33  ;;  %v3792_v11 = vrot.slane %v9744_v54, %v9714_v32  ;;  %v3796_v55 = vrot.slane %v9744_v54, %v9717_v38 }
 0x4cd   : > { %v5750_v5 = vrot.slane %v5722_v21, %v9732_v33  ;;  %v3800_v3 = vrot.slane %v9744_v54, %v9720_v47  ;;  %v5751_v19 = vcombine.low %v5729_v18, %v5736_v22  ;;  %v3804_v36 = vrot.slane %v9744_v54, %v9723_v48 }
 0x4ce   : > { %v5081_v43 = vcombine.low %v5073_v27, %v5080_v53  ;;  %v3808_v61 = vrot.slane %v9744_v54, %v9726_v25  ;;  %v3812_v31 = vrot.slane %v9744_v54, %v9729_v34  ;;  %v5082_v14 = vcombine.low %v3784_v44, %v3788_v50 }
 0x4cf   : > { %v5752_v51 = vcombine.low %v5743_v42, %v5750_v5  ;;  %v5083_v45 = vcombine.low %v3792_v11, %v3796_v55  ;;  %v5759_v8 = vrot.slane %v5751_v19, %v9732_v33  ;;  %v5084_v29 = vcombine.low %v3800_v3, %v3804_v36 }
 0x4d0   : > { %6712 = vperm.xlu1 %7985, %v5081_v43   ;;  %v4264_v2 = vrot.slane %v9772_v52, %v9707_v1  ;;  %v4268_v17 = vrot.slane %v9772_v52, %v9710_v16  ;;  %v5085_v28 = vcombine.low %v3808_v61, %v3812_v31  ;;  %v5092_v40 = vrot.slane %v5082_v14, %v9732_v33 }
 0x4d1   : > { %v5766_v57 = vrot.slane %v5752_v51, %v9732_v33  ;;  %v5099_v23 = vrot.slane %v5083_v45, %v9732_v33  ;;  %v5106_v54 = vrot.slane %v5084_v29, %v9732_v33  ;;  %v4272_v60 = vrot.slane %v9772_v52, %v9714_v32 }
 0x4d2   : > { %v4276_v49 = vrot.slane %v9772_v52, %v9717_v38  ;;  %v4280_v7 = vrot.slane %v9772_v52, %v9720_v47  ;;  %v5113_v24 = vrot.slane %v5085_v28, %v9732_v33  ;;  %v4284_v21 = vrot.slane %v9772_v52, %v9723_v48 }
 0x4d3   : > { %v5767_v30 = vcombine.low %v5759_v8, %v5766_v57  ;;  %v5114_v27 = vcombine.low %v5092_v40, %v5099_v23  ;;  %v4288_v44 = vrot.slane %v9772_v52, %v9726_v25  ;;  %v4292_v50 = vrot.slane %v9772_v52, %v9729_v34 }
 0x4d4   : > { %v5817_v53 = vcombine.low %v4264_v2, %v4268_v17  ;;  %v5818_v18 = vcombine.low %v4272_v60, %v4276_v49  ;;  %v5115_v22 = vcombine.low %v5106_v54, %v5113_v24  ;;  %v5819_v5 = vcombine.low %v4280_v7, %v4284_v21 }
 0x4d5   : > { %6754 = vperm.xlu0 %7984, %v5767_v30   ;;  %v5122_v42 = vrot.slane %v5114_v27, %v9732_v33  ;;  %v3816_v11 = vrot.slane %v9746_v15, %v9707_v1  ;;  %v5820_v55 = vcombine.low %v4288_v44, %v4292_v50  ;;  %v3820_v19 = vrot.slane %v9746_v15, %v9710_v16 }
 0x4d6   : > { %v5827_v3 = vrot.slane %v5817_v53, %v9732_v33  ;;  %v5834_v43 = vrot.slane %v5818_v18, %v9732_v33  ;;  %v5129_v52 = vrot.slane %v5115_v22, %v9732_v33  ;;  %v5841_v36 = vrot.slane %v5819_v5, %v9732_v33 }
 0x4d7   : > { %v3824_v61 = vrot.slane %v9746_v15, %v9714_v32  ;;  %v3828_v51 = vrot.slane %v9746_v15, %v9717_v38  ;;  %v5848_v31 = vrot.slane %v5820_v55, %v9732_v33  ;;  %v3832_v45 = vrot.slane %v9746_v15, %v9720_v47 }
 0x4d8   : > { %v5849_v14 = vcombine.low %v5827_v3, %v5834_v43  ;;  %v3836_v8 = vrot.slane %v9746_v15, %v9723_v48  ;;  %v5130_v29 = vcombine.low %v5122_v42, %v5129_v52  ;;  %v3840_v2 = vrot.slane %v9746_v15, %v9726_v25 }
 0x4d9   : > { %v3844_v17 = vrot.slane %v9746_v15, %v9729_v34  ;;  %v5131_v57 = vcombine.low %v3816_v11, %v3820_v19  ;;  %v5850_v28 = vcombine.low %v5841_v36, %v5848_v31  ;;  %v5132_v23 = vcombine.low %v3824_v61, %v3828_v51 }
 0x4da   : > { %v5857_v40 = vrot.slane %v5849_v14, %v9732_v33  ;;  %v5133_v54 = vcombine.low %v3832_v45, %v3836_v8  ;;  %6715 = vperm.xlu1 %7985, %v5130_v29   ;;  %v4328_v7 = vrot.slane %v9776_v63, %v9707_v1  ;;  %v4332_v30 = vrot.slane %v9776_v63, %v9710_v16 }
 0x4db   : > { %v5134_v60 = vcombine.low %v3840_v2, %v3844_v17  ;;  %v5141_v49 = vrot.slane %v5131_v57, %v9732_v33  ;;  %v5864_v24 = vrot.slane %v5850_v28, %v9732_v33  ;;  %v5148_v15 = vrot.slane %v5132_v23, %v9732_v33 }
 0x4dc   : > { %v5155_v27 = vrot.slane %v5133_v54, %v9732_v33  ;;  %v4336_v21 = vrot.slane %v9776_v63, %v9714_v32  ;;  %v4340_v50 = vrot.slane %v9776_v63, %v9717_v38  ;;  %v4344_v53 = vrot.slane %v9776_v63, %v9720_v47 }
 0x4dd   : > { %v5162_v44 = vrot.slane %v5134_v60, %v9732_v33  ;;  %v4348_v18 = vrot.slane %v9776_v63, %v9723_v48  ;;  %v5865_v22 = vcombine.low %v5857_v40, %v5864_v24  ;;  %v5163_v42 = vcombine.low %v5141_v49, %v5148_v15 }
 0x4de   : > { %v4352_v5 = vrot.slane %v9776_v63, %v9726_v25  ;;  %v4356_v11 = vrot.slane %v9776_v63, %v9729_v34  ;;  %v5915_v3 = vcombine.low %v4328_v7, %v4332_v30  ;;  %v5916_v43 = vcombine.low %v4336_v21, %v4340_v50 }
 0x4df   : > { %v5164_v55 = vcombine.low %v5155_v27, %v5162_v44  ;;  %v5917_v19 = vcombine.low %v4344_v53, %v4348_v18  ;;  %6760 = vperm.xlu0 %7984, %v5865_v22   ;;  %v5171_v52 = vrot.slane %v5163_v42, %v9732_v33  ;;  %v3848_v61 = vrot.slane %v9748_v26, %v9707_v1 }
 0x4e0   : > { %v5918_v36 = vcombine.low %v4352_v5, %v4356_v11  ;;  %v3852_v51 = vrot.slane %v9748_v26, %v9710_v16  ;;  %v5925_v14 = vrot.slane %v5915_v3, %v9732_v33  ;;  %v5932_v63 = vrot.slane %v5916_v43, %v9732_v33 }
 0x4e1   : > { %v5178_v31 = vrot.slane %v5164_v55, %v9732_v33  ;;  %v5939_v45 = vrot.slane %v5917_v19, %v9732_v33  ;;  %v3856_v29 = vrot.slane %v9748_v26, %v9714_v32  ;;  %v3860_v2 = vrot.slane %v9748_v26, %v9717_v38 }
 0x4e2   : > { %v5946_v8 = vrot.slane %v5918_v36, %v9732_v33  ;;  %v3864_v17 = vrot.slane %v9748_v26, %v9720_v47  ;;  %v5947_v28 = vcombine.low %v5925_v14, %v5932_v63  ;;  %v3868_v40 = vrot.slane %v9748_v26, %v9723_v48 }
 0x4e3   : > { %v5179_v57 = vcombine.low %v5171_v52, %v5178_v31  ;;  %v3872_v23 = vrot.slane %v9748_v26, %v9726_v25  ;;  %v3876_v60 = vrot.slane %v9748_v26, %v9729_v34  ;;  %v5180_v49 = vcombine.low %v3848_v61, %v3852_v51 }
 0x4e4   : > { %v5948_v54 = vcombine.low %v5939_v45, %v5946_v8  ;;  %v5181_v7 = vcombine.low %v3856_v29, %v3860_v2  ;;  %v5955_v30 = vrot.slane %v5947_v28, %v9732_v33  ;;  %v5182_v24 = vcombine.low %v3864_v17, %v3868_v40 }
 0x4e5   : > { %6718 = vperm.xlu1 %7985, %v5179_v57   ;;  %v4392_v15 = vrot.slane %v9780_v13, %v9707_v1  ;;  %v4396_v27 = vrot.slane %v9780_v13, %v9710_v16  ;;  %v5183_v44 = vcombine.low %v3872_v23, %v3876_v60  ;;  %v5190_v50 = vrot.slane %v5180_v49, %v9732_v33 }
 0x4e6   : > { %v5962_v21 = vrot.slane %v5948_v54, %v9732_v33  ;;  %v5197_v53 = vrot.slane %v5181_v7, %v9732_v33  ;;  %v5204_v26 = vrot.slane %v5182_v24, %v9732_v33  ;;  %v4400_v18 = vrot.slane %v9780_v13, %v9714_v32 }
 0x4e7   : > { %v4404_v22 = vrot.slane %v9780_v13, %v9717_v38  ;;  %v4408_v42 = vrot.slane %v9780_v13, %v9720_v47  ;;  %v5211_v11 = vrot.slane %v5183_v44, %v9732_v33  ;;  %v4412_v3 = vrot.slane %v9780_v13, %v9723_v48 }
 0x4e8   : > { %v5963_v5 = vcombine.low %v5955_v30, %v5962_v21  ;;  %v5212_v55 = vcombine.low %v5190_v50, %v5197_v53  ;;  %v4416_v43 = vrot.slane %v9780_v13, %v9726_v25  ;;  %v4420_v19 = vrot.slane %v9780_v13, %v9729_v34 }
 0x4e9   : > { %v6013_v52 = vcombine.low %v4392_v15, %v4396_v27  ;;  %v6014_v36 = vcombine.low %v4400_v18, %v4404_v22  ;;  %v5213_v61 = vcombine.low %v5204_v26, %v5211_v11  ;;  %v6015_v31 = vcombine.low %v4408_v42, %v4412_v3 }
 0x4ea   : > { %6766 = vperm.xlu0 %7984, %v5963_v5   ;;  %v5220_v51 = vrot.slane %v5212_v55, %v9732_v33  ;;  %v3912_v14 = vrot.slane %v9750_v10, %v9707_v1  ;;  %v6016_v63 = vcombine.low %v4416_v43, %v4420_v19  ;;  %v3916_v29 = vrot.slane %v9750_v10, %v9710_v16 }
 0x4eb   : > { %v6023_v45 = vrot.slane %v6013_v52, %v9732_v33  ;;  %v6030_v8 = vrot.slane %v6014_v36, %v9732_v33  ;;  %v5227_v13 = vrot.slane %v5213_v61, %v9732_v33  ;;  %v6037_v2 = vrot.slane %v6015_v31, %v9732_v33 }
 0x4ec   : > { %v3920_v17 = vrot.slane %v9750_v10, %v9714_v32  ;;  %v3924_v57 = vrot.slane %v9750_v10, %v9717_v38  ;;  %v6044_v28 = vrot.slane %v6016_v63, %v9732_v33  ;;  %v3928_v23 = vrot.slane %v9750_v10, %v9720_v47 }
 0x4ed   : > { %v6045_v40 = vcombine.low %v6023_v45, %v6030_v8  ;;  %v3932_v54 = vrot.slane %v9750_v10, %v9723_v48  ;;  %v5228_v60 = vcombine.low %v5220_v51, %v5227_v13  ;;  %v3936_v49 = vrot.slane %v9750_v10, %v9726_v25 }
 0x4ee   : > { %v3940_v7 = vrot.slane %v9750_v10, %v9729_v34  ;;  %v5278_v30 = vcombine.low %v3912_v14, %v3916_v29  ;;  %v6046_v24 = vcombine.low %v6037_v2, %v6044_v28  ;;  %v5279_v27 = vcombine.low %v3920_v17, %v3924_v57 }
 0x4ef   : > { %v6053_v15 = vrot.slane %v6045_v40, %v9732_v33  ;;  %v5280_v21 = vcombine.low %v3928_v23, %v3932_v54  ;;  %6721 = vperm.xlu1 %7985, %v5228_v60   ;;  %v4456_v53 = vrot.slane %v9784_v46, %v9707_v1  ;;  %v4460_v26 = vrot.slane %v9784_v46, %v9710_v16 }
 0x4f0   : > { %v5281_v44 = vcombine.low %v3936_v49, %v3940_v7  ;;  %v5288_v50 = vrot.slane %v5278_v30, %v9732_v33  ;;  %v6060_v18 = vrot.slane %v6046_v24, %v9732_v33  ;;  %v5295_v10 = vrot.slane %v5279_v27, %v9732_v33 }
 0x4f1   : > { %v5302_v22 = vrot.slane %v5280_v21, %v9732_v33  ;;  %v4464_v42 = vrot.slane %v9784_v46, %v9714_v32  ;;  %v4468_v11 = vrot.slane %v9784_v46, %v9717_v38  ;;  %v4472_v55 = vrot.slane %v9784_v46, %v9720_v47 }
 0x4f2   : > { %v5309_v5 = vrot.slane %v5281_v44, %v9732_v33  ;;  %v4476_v3 = vrot.slane %v9784_v46, %v9723_v48  ;;  %v6061_v43 = vcombine.low %v6053_v15, %v6060_v18  ;;  %v5310_v19 = vcombine.low %v5288_v50, %v5295_v10 }
 0x4f3   : > { %v4480_v52 = vrot.slane %v9784_v46, %v9726_v25  ;;  %v4484_v36 = vrot.slane %v9784_v46, %v9729_v34  ;;  %v6111_v51 = vcombine.low %v4456_v53, %v4460_v26  ;;  %v6112_v31 = vcombine.low %v4464_v42, %v4468_v11 }
 0x4f4   : > { %v5311_v61 = vcombine.low %v5302_v22, %v5309_v5  ;;  %v6113_v14 = vcombine.low %v4472_v55, %v4476_v3  ;;  %6772 = vperm.xlu0 %7984, %v6061_v43   ;;  %v5318_v63 = vrot.slane %v5310_v19, %v9732_v33  ;;  %v3976_v8 = vrot.slane %v9754_v12, %v9707_v1 }
 0x4f5   : > { %v6114_v45 = vcombine.low %v4480_v52, %v4484_v36  ;;  %v3980_v29 = vrot.slane %v9754_v12, %v9710_v16  ;;  %v6121_v2 = vrot.slane %v6111_v51, %v9732_v33  ;;  %v6128_v46 = vrot.slane %v6112_v31, %v9732_v33 }
 0x4f6   : > { %v5325_v13 = vrot.slane %v5311_v61, %v9732_v33  ;;  %v6135_v17 = vrot.slane %v6113_v14, %v9732_v33  ;;  %v3984_v28 = vrot.slane %v9754_v12, %v9714_v32  ;;  %v3988_v40 = vrot.slane %v9754_v12, %v9717_v38 }
 0x4f7   : > { %v6142_v57 = vrot.slane %v6114_v45, %v9732_v33  ;;  %v3992_v23 = vrot.slane %v9754_v12, %v9720_v47  ;;  %v6143_v60 = vcombine.low %v6121_v2, %v6128_v46  ;;  %v3996_v49 = vrot.slane %v9754_v12, %v9723_v48 }
 0x4f8   : > { %v5326_v54 = vcombine.low %v5318_v63, %v5325_v13  ;;  %v4000_v7 = vrot.slane %v9754_v12, %v9726_v25  ;;  %v4004_v24 = vrot.slane %v9754_v12, %v9729_v34  ;;  %v5376_v15 = vcombine.low %v3976_v8, %v3980_v29 }
 0x4f9   : > { %v6144_v30 = vcombine.low %v6135_v17, %v6142_v57  ;;  %v5377_v27 = vcombine.low %v3984_v28, %v3988_v40  ;;  %v6151_v21 = vrot.slane %v6143_v60, %v9732_v33  ;;  %v5378_v44 = vcombine.low %v3992_v23, %v3996_v49 }
 0x4fa   : > { %6727 = vperm.xlu1 %7985, %v5326_v54   ;;  %v4520_v50 = vrot.slane %v9788_v37, %v9707_v1  ;;  %v4524_v53 = vrot.slane %v9788_v37, %v9710_v16  ;;  %v5379_v18 = vcombine.low %v4000_v7, %v4004_v24  ;;  %v5386_v10 = vrot.slane %v5376_v15, %v9732_v33 }
 0x4fb   : > { %v6158_v26 = vrot.slane %v6144_v30, %v9732_v33  ;;  %v5393_v22 = vrot.slane %v5377_v27, %v9732_v33  ;;  %v5400_v12 = vrot.slane %v5378_v44, %v9732_v33  ;;  %v4528_v42 = vrot.slane %v9788_v37, %v9714_v32 }
 0x4fc   : > { %v4532_v5 = vrot.slane %v9788_v37, %v9717_v38  ;;  %v4536_v11 = vrot.slane %v9788_v37, %v9720_v47  ;;  %v5407_v3 = vrot.slane %v5379_v18, %v9732_v33  ;;  %v4540_v19 = vrot.slane %v9788_v37, %v9723_v48 }
 0x4fd   : > { %v6159_v55 = vcombine.low %v6151_v21, %v6158_v26  ;;  %v5408_v43 = vcombine.low %v5386_v10, %v5393_v22  ;;  %v4544_v52 = vrot.slane %v9788_v37, %v9726_v25  ;;  %v4548_v36 = vrot.slane %v9788_v37, %v9729_v34 }
 0x4fe   : > { %v6209_v61 = vcombine.low %v4520_v50, %v4524_v53  ;;  %v6210_v51 = vcombine.low %v4528_v42, %v4532_v5  ;;  %v5409_v31 = vcombine.low %v5400_v12, %v5407_v3  ;;  %v6211_v63 = vcombine.low %v4536_v11, %v4540_v19 }
 0x4ff   : > { %6778 = vperm.xlu0 %7984, %v6159_v55   ;;  %v5416_v14 = vrot.slane %v5408_v43, %v9732_v33  ;;  %v4040_v45 = vrot.slane %v9758_v20, %v9707_v1  ;;  %v6212_v8 = vcombine.low %v4544_v52, %v4548_v36  ;;  %v4044_v2 = vrot.slane %v9758_v20, %v9710_v16 }
 0x500   : > { %v6219_v29 = vrot.slane %v6209_v61, %v9732_v33  ;;  %v6226_v13 = vrot.slane %v6210_v51, %v9732_v33  ;;  %v5423_v37 = vrot.slane %v5409_v31, %v9732_v33  ;;  %v6233_v46 = vrot.slane %v6211_v63, %v9732_v33 }
 0x501   : > { %v4048_v17 = vrot.slane %v9758_v20, %v9714_v32  ;;  %v4052_v57 = vrot.slane %v9758_v20, %v9717_v38  ;;  %v6240_v28 = vrot.slane %v6212_v8, %v9732_v33  ;;  %v4056_v23 = vrot.slane %v9758_v20, %v9720_v47 }
 0x502   : > { %v6241_v40 = vcombine.low %v6219_v29, %v6226_v13  ;;  %v4060_v54 = vrot.slane %v9758_v20, %v9723_v48  ;;  %v5424_v60 = vcombine.low %v5416_v14, %v5423_v37  ;;  %v4064_v49 = vrot.slane %v9758_v20, %v9726_v25 }
 0x503   : > { %v4068_v7 = vrot.slane %v9758_v20, %v9729_v34  ;;  %v5474_v30 = vcombine.low %v4040_v45, %v4044_v2  ;;  %v6242_v24 = vcombine.low %v6233_v46, %v6240_v28  ;;  %v5475_v27 = vcombine.low %v4048_v17, %v4052_v57 }
 0x504   : > { %v6249_v15 = vrot.slane %v6241_v40, %v9732_v33  ;;  %v5476_v21 = vcombine.low %v4056_v23, %v4060_v54  ;;  %6733 = vperm.xlu1 %7985, %v5424_v60   ;;  %v4648_v53 = vrot.slane %v9796_v9, %v9707_v1  ;;  %v4652_v26 = vrot.slane %v9796_v9, %v9710_v16 }
 0x505   : > { %v5477_v44 = vcombine.low %v4064_v49, %v4068_v7  ;;  %v5484_v50 = vrot.slane %v5474_v30, %v9732_v33  ;;  %v6256_v18 = vrot.slane %v6242_v24, %v9732_v33  ;;  %v5491_v20 = vrot.slane %v5475_v27, %v9732_v33 }
 0x506   : > { %v5498_v10 = vrot.slane %v5476_v21, %v9732_v33  ;;  %v4656_v22 = vrot.slane %v9796_v9, %v9714_v32  ;;  %v4660_v42 = vrot.slane %v9796_v9, %v9717_v38  ;;  %v4664_v5 = vrot.slane %v9796_v9, %v9720_v47 }
 0x507   : > { %v5505_v12 = vrot.slane %v5477_v44, %v9732_v33  ;;  %v4668_v11 = vrot.slane %v9796_v9, %v9723_v48  ;;  %v6257_v55 = vcombine.low %v6249_v15, %v6256_v18  ;;  %v5506_v3 = vcombine.low %v5484_v50, %v5491_v20 }
 0x508   : > { %v4672_v43 = vrot.slane %v9796_v9, %v9726_v25  ;;  %v4676_v19 = vrot.slane %v9796_v9, %v9729_v34  ;;  %v6405_v36 = vcombine.low %v4648_v53, %v4652_v26  ;;  %v6406_v61 = vcombine.low %v4656_v22, %v4660_v42 }
 0x509   : > { %v5507_v52 = vcombine.low %v5498_v10, %v5505_v12  ;;  %v6407_v51 = vcombine.low %v4664_v5, %v4668_v11  ;;  %6784 = vperm.xlu0 %7984, %v6257_v55   ;;  %v5514_v31 = vrot.slane %v5506_v3, %v9732_v33  ;;  %v4104_v63 = vrot.slane %v9762_v58, %v9707_v1 }
 0x50a   : > { %v6408_v14 = vcombine.low %v4672_v43, %v4676_v19  ;;  %v4108_v45 = vrot.slane %v9762_v58, %v9710_v16  ;;  %v6415_v29 = vrot.slane %v6405_v36, %v9732_v33  ;;  %v6422_v9 = vrot.slane %v6406_v61, %v9732_v33 }
 0x50b   : > { %v5521_v8 = vrot.slane %v5507_v52, %v9732_v33  ;;  %v6429_v13 = vrot.slane %v6407_v51, %v9732_v33  ;;  %v4112_v37 = vrot.slane %v9762_v58, %v9714_v32  ;;  %v4116_v46 = vrot.slane %v9762_v58, %v9717_v38 }
 0x50c   : > { %v6436_v2 = vrot.slane %v6408_v14, %v9732_v33  ;;  %v4120_v17 = vrot.slane %v9762_v58, %v9720_v47  ;;  %v6437_v28 = vcombine.low %v6415_v29, %v6422_v9  ;;  %v4124_v40 = vrot.slane %v9762_v58, %v9723_v48 }
 0x50d   : > { %v5522_v57 = vcombine.low %v5514_v31, %v5521_v8  ;;  %v4128_v23 = vrot.slane %v9762_v58, %v9726_v25  ;;  %v4132_v60 = vrot.slane %v9762_v58, %v9729_v34  ;;  %v5572_v49 = vcombine.low %v4104_v63, %v4108_v45 }
 0x50e   : > { %v6438_v54 = vcombine.low %v6429_v13, %v6436_v2  ;;  %v5573_v7 = vcombine.low %v4112_v37, %v4116_v46  ;;  %v6445_v30 = vrot.slane %v6437_v28, %v9732_v33  ;;  %v5574_v24 = vcombine.low %v4120_v17, %v4124_v40 }
 0x50f   : > { %6739 = vperm.xlu1 %7985, %v5522_v57   ;;  %v4584_v15 = vrot.slane %v9792_v56, %v9707_v1  ;;  %v4588_v27 = vrot.slane %v9792_v56, %v9710_v16  ;;  %v5575_v44 = vcombine.low %v4128_v23, %v4132_v60  ;;  %v5582_v50 = vrot.slane %v5572_v49, %v9732_v33 }
 0x510   : > { %v6452_v21 = vrot.slane %v6438_v54, %v9732_v33  ;;  %v5589_v53 = vrot.slane %v5573_v7, %v9732_v33  ;;  %v5596_v58 = vrot.slane %v5574_v24, %v9732_v33  ;;  %v4592_v26 = vrot.slane %v9792_v56, %v9714_v32 }
 0x511   : > { %v4596_v18 = vrot.slane %v9792_v56, %v9717_v38  ;;  %v4600_v20 = vrot.slane %v9792_v56, %v9720_v47  ;;  %v5603_v22 = vrot.slane %v5575_v44, %v9732_v33  ;;  %v4604_v42 = vrot.slane %v9792_v56, %v9723_v48 }
 0x512   : > { %v6453_v10 = vcombine.low %v6445_v30, %v6452_v21  ;;  %v5604_v12 = vcombine.low %v5582_v50, %v5589_v53  ;;  %v4608_v5 = vrot.slane %v9792_v56, %v9726_v25  ;;  %v4612_v11 = vrot.slane %v9792_v56, %v9729_v34 }
 0x513   : > { %v6307_v55 = vcombine.low %v4584_v15, %v4588_v27  ;;  %v6308_v3 = vcombine.low %v4592_v26, %v4596_v18  ;;  %v5605_v43 = vcombine.low %v5596_v58, %v5603_v22  ;;  %v6309_v52 = vcombine.low %v4600_v20, %v4604_v42 }
 0x514   : > { %6796 = vperm.xlu0 %7984, %v6453_v10   ;;  %v5612_v19 = vrot.slane %v5604_v12, %v9732_v33  ;;  %v4168_v36 = vrot.slane %v9766_v39, %v9707_v1  ;;  %v6310_v61 = vcombine.low %v4608_v5, %v4612_v11  ;;  %v4172_v14 = vrot.slane %v9766_v39, %v9710_v16 }
 0x515   : > { %v6317_v51 = vrot.slane %v6307_v55, %v9732_v33  ;;  %v6324_v31 = vrot.slane %v6308_v3, %v9732_v33  ;;  %v5619_v56 = vrot.slane %v5605_v43, %v9732_v33  ;;  %v6331_v63 = vrot.slane %v6309_v52, %v9732_v33 }
 0x516   : > { %v4176_v45 = vrot.slane %v9766_v39, %v9714_v32  ;;  %v4180_v8 = vrot.slane %v9766_v39, %v9717_v38  ;;  %v6338_v29 = vrot.slane %v6310_v61, %v9732_v33  ;;  %v4184_v13 = vrot.slane %v9766_v39, %v9720_v47 }
 0x517   : > { %v6339_v9 = vcombine.low %v6317_v51, %v6324_v31  ;;  %v4188_v2 = vrot.slane %v9766_v39, %v9723_v48  ;;  %v5620_v37 = vcombine.low %v5612_v19, %v5619_v56  ;;  %v4192_v46 = vrot.slane %v9766_v39, %v9726_v25 }
 0x518   : > { %v4196_v17 = vrot.slane %v9766_v39, %v9729_v34  ;;  %v5670_v57 = vcombine.low %v4168_v36, %v4172_v14  ;;  %v6340_v28 = vcombine.low %v6331_v63, %v6338_v29  ;;  %v5671_v23 = vcombine.low %v4176_v45, %v4180_v8 }
 0x519   : > { %v6347_v40 = vrot.slane %v6339_v9, %v9732_v33  ;;  %v5672_v54 = vcombine.low %v4184_v13, %v4188_v2  ;;  %6745 = vperm.xlu1 %7985, %v5620_v37   ;;  %v4616_v7 = vrot.slane %v9794_v4, %v9707_v1  ;;  %v4620_v30 = vrot.slane %v9794_v4, %v9710_v16 }
 0x51a   : > { %v5673_v60 = vcombine.low %v4192_v46, %v4196_v17  ;;  %v5680_v49 = vrot.slane %v5670_v57, %v9732_v33  ;;  %v6354_v24 = vrot.slane %v6340_v28, %v9732_v33  ;;  %v5687_v39 = vrot.slane %v5671_v23, %v9732_v33 }
 0x51b   : > { %v5694_v15 = vrot.slane %v5672_v54, %v9732_v33  ;;  %v4624_v27 = vrot.slane %v9794_v4, %v9714_v32  ;;  %v4628_v44 = vrot.slane %v9794_v4, %v9717_v38  ;;  %v4632_v50 = vrot.slane %v9794_v4, %v9720_v47 }
 0x51c   : > { %v5701_v21 = vrot.slane %v5673_v60, %v9732_v33  ;;  %v4636_v53 = vrot.slane %v9794_v4, %v9723_v48  ;;  %v6355_v58 = vcombine.low %v6347_v40, %v6354_v24  ;;  %v5702_v26 = vcombine.low %v5680_v49, %v5687_v39 }
 0x51d   : > { %v4640_v18 = vrot.slane %v9794_v4, %v9726_v25  ;;  %v4644_v20 = vrot.slane %v9794_v4, %v9729_v34  ;;  %v6356_v22 = vcombine.low %v4616_v7, %v4620_v30  ;;  %v6357_v12 = vcombine.low %v4624_v27, %v4628_v44 }
 0x51e   : > { %v5703_v10 = vcombine.low %v5694_v15, %v5701_v21  ;;  %v6358_v42 = vcombine.low %v4632_v50, %v4636_v53  ;;  %6790 = vperm.xlu0 %7984, %v6355_v58   ;;  %v5710_v5 = vrot.slane %v5702_v26, %v9732_v33  ;;  %v4232_v55 = vrot.slane %v9770_v35, %v9707_v1 }
 0x51f   : > { %v6359_v11 = vcombine.low %v4640_v18, %v4644_v20  ;;  %v4236_v3 = vrot.slane %v9770_v35, %v9710_v16  ;;  %v6366_v19 = vrot.slane %v6356_v22, %v9732_v33  ;;  %v6373_v4 = vrot.slane %v6357_v12, %v9732_v33 }
 0x520   : > { %v5717_v43 = vrot.slane %v5703_v10, %v9732_v33  ;;  %v6380_v52 = vrot.slane %v6358_v42, %v9732_v33  ;;  %v4240_v61 = vrot.slane %v9770_v35, %v9714_v32  ;;  %v4244_v51 = vrot.slane %v9770_v35, %v9717_v38 }
 0x521   : > { %v6387_v36 = vrot.slane %v6359_v11, %v9732_v33  ;;  %v4248_v31 = vrot.slane %v9770_v35, %v9720_v47  ;;  %v6388_v56 = vcombine.low %v6366_v19, %v6373_v4  ;;  %v4252_v63 = vrot.slane %v9770_v35, %v9723_v48 }
 0x522   : > { %v5718_v14 = vcombine.low %v5710_v5, %v5717_v43  ;;  %v4256_v45 = vrot.slane %v9770_v35, %v9726_v25  ;;  %v4260_v29 = vrot.slane %v9770_v35, %v9729_v34  ;;  %v5768_v9 = vcombine.low %v4232_v55, %v4236_v3 }
 0x523   : > { %v6389_v8 = vcombine.low %v6380_v52, %v6387_v36  ;;  %v5769_v13 = vcombine.low %v4240_v61, %v4244_v51  ;;  %v6396_v2 = vrot.slane %v6388_v56, %v9732_v33  ;;  %v5770_v37 = vcombine.low %v4248_v31, %v4252_v63 }
 0x524   : > { %6751 = vperm.xlu1 %7985, %v5718_v14   ;;  %v4776_v46 = vrot.slane %v9804_v41, %v9707_v1  ;;  %v4780_v17 = vrot.slane %v9804_v41, %v9710_v16  ;;  %v5771_v28 = vcombine.low %v4256_v45, %v4260_v29  ;;  %v5778_v40 = vrot.slane %v5768_v9, %v9732_v33 }
 0x525   : > { %v6403_v57 = vrot.slane %v6389_v8, %v9732_v33  ;;  %v5785_v23 = vrot.slane %v5769_v13, %v9732_v33  ;;  %v5792_v35 = vrot.slane %v5770_v37, %v9732_v33  ;;  %v4784_v54 = vrot.slane %v9804_v41, %v9714_v32 }
 0x526   : > { %v4788_v60 = vrot.slane %v9804_v41, %v9717_v38  ;;  %v4792_v49 = vrot.slane %v9804_v41, %v9720_v47  ;;  %v5799_v30 = vrot.slane %v5771_v28, %v9732_v33  ;;  %v4796_v39 = vrot.slane %v9804_v41, %v9723_v48 }
 0x527   : > { %v6404_v7 = vcombine.low %v6396_v2, %v6403_v57  ;;  %v5800_v24 = vcombine.low %v5778_v40, %v5785_v23  ;;  %v4800_v15 = vrot.slane %v9804_v41, %v9726_v25  ;;  %v4804_v27 = vrot.slane %v9804_v41, %v9729_v34 }
 0x528   : > { %v6601_v21 = vcombine.low %v4776_v46, %v4780_v17  ;;  %v6602_v44 = vcombine.low %v4784_v54, %v4788_v60  ;;  %v5801_v50 = vcombine.low %v5792_v35, %v5799_v30  ;;  %v6603_v58 = vcombine.low %v4792_v49, %v4796_v39 }
 0x529   : > { %6793 = vperm.xlu0 %7984, %v6404_v7   ;;  %v5808_v53 = vrot.slane %v5800_v24, %v9732_v33  ;;  %v4296_v26 = vrot.slane %v9774_v62, %v9707_v1  ;;  %v6604_v18 = vcombine.low %v4800_v15, %v4804_v27  ;;  %v4300_v22 = vrot.slane %v9774_v62, %v9710_v16 }
 0x52a   : > { %v6611_v20 = vrot.slane %v6601_v21, %v9732_v33  ;;  %v6618_v10 = vrot.slane %v6602_v44, %v9732_v33  ;;  %v5815_v41 = vrot.slane %v5801_v50, %v9732_v33  ;;  %v6625_v12 = vrot.slane %v6603_v58, %v9732_v33 }
 0x52b   : > { %v4304_v42 = vrot.slane %v9774_v62, %v9714_v32  ;;  %v4308_v5 = vrot.slane %v9774_v62, %v9717_v38  ;;  %v6632_v11 = vrot.slane %v6604_v18, %v9732_v33  ;;  %v4312_v3 = vrot.slane %v9774_v62, %v9720_v47 }
 0x52c   : > { %v6633_v55 = vcombine.low %v6611_v20, %v6618_v10  ;;  %v4316_v43 = vrot.slane %v9774_v62, %v9723_v48  ;;  %v5816_v19 = vcombine.low %v5808_v53, %v5815_v41  ;;  %v4320_v4 = vrot.slane %v9774_v62, %v9726_v25 }
 0x52d   : > { %v4324_v52 = vrot.slane %v9774_v62, %v9729_v34  ;;  %v5866_v36 = vcombine.low %v4296_v26, %v4300_v22  ;;  %v6634_v61 = vcombine.low %v6625_v12, %v6632_v11  ;;  %v5867_v31 = vcombine.low %v4304_v42, %v4308_v5 }
 0x52e   : > { %v6641_v51 = vrot.slane %v6633_v55, %v9732_v33  ;;  %v5868_v14 = vcombine.low %v4312_v3, %v4316_v43  ;;  %6757 = vperm.xlu1 %7985, %v5816_v19   ;;  %v4360_v45 = vrot.slane %v9778_v59, %v9707_v1  ;;  %v4364_v8 = vrot.slane %v9778_v59, %v9710_v16 }
 0x52f   : > { %v5869_v56 = vcombine.low %v4320_v4, %v4324_v52  ;;  %v5876_v63 = vrot.slane %v5866_v36, %v9732_v33  ;;  %v6648_v29 = vrot.slane %v6634_v61, %v9732_v33  ;;  %v5883_v62 = vrot.slane %v5867_v31, %v9732_v33 }
 0x530   : > { %v5890_v9 = vrot.slane %v5868_v14, %v9732_v33  ;;  %v4368_v13 = vrot.slane %v9778_v59, %v9714_v32  ;;  %v4372_v37 = vrot.slane %v9778_v59, %v9717_v38  ;;  %v4376_v46 = vrot.slane %v9778_v59, %v9720_v47 }
 0x531   : > { %v5897_v2 = vrot.slane %v5869_v56, %v9732_v33  ;;  %v4380_v17 = vrot.slane %v9778_v59, %v9723_v48  ;;  %v6649_v57 = vcombine.low %v6641_v51, %v6648_v29  ;;  %v5898_v28 = vcombine.low %v5876_v63, %v5883_v62 }
 0x532   : > { %v4384_v40 = vrot.slane %v9778_v59, %v9726_v25  ;;  %v4388_v23 = vrot.slane %v9778_v59, %v9729_v34  ;;  %v5964_v54 = vcombine.low %v4360_v45, %v4364_v8  ;;  %v5965_v60 = vcombine.low %v4368_v13, %v4372_v37  ;;  %v10866_v37 = vld [vmem:[#allocation23_spill] sm:$0xff] }
 0x533   : > { %v5899_v35 = vcombine.low %v5890_v9, %v5897_v2  ;;  %v5966_v49 = vcombine.low %v4376_v46, %v4380_v17  ;;  %6808 = vperm.xlu0 %7984, %v6649_v57   ;;  %v5906_v7 = vrot.slane %v5898_v28, %v9732_v33  ;;  %v4424_v24 = vrot.slane %v9782_v6, %v9707_v1 }
 0x534   : > { %v5967_v30 = vcombine.low %v4384_v40, %v4388_v23  ;;  %v4428_v39 = vrot.slane %v9782_v6, %v9710_v16  ;;  %v5974_v27 = vrot.slane %v5964_v54, %v9732_v33  ;;  %v5981_v59 = vrot.slane %v5965_v60, %v9732_v33 }
 0x535   : > { %v5913_v15 = vrot.slane %v5899_v35, %v9732_v33  ;;  %v5988_v21 = vrot.slane %v5966_v49, %v9732_v33  ;;  %v4432_v50 = vrot.slane %v9782_v6, %v9714_v32  ;;  %v4436_v53 = vrot.slane %v9782_v6, %v9717_v38 }
 0x536   : > { %v5995_v44 = vrot.slane %v5967_v30, %v9732_v33  ;;  %v4440_v58 = vrot.slane %v9782_v6, %v9720_v47  ;;  %v5996_v18 = vcombine.low %v5974_v27, %v5981_v59  ;;  %v4444_v20 = vrot.slane %v9782_v6, %v9723_v48 }
 0x537   : > { %v5914_v26 = vcombine.low %v5906_v7, %v5913_v15  ;;  %v4448_v10 = vrot.slane %v9782_v6, %v9726_v25  ;;  %v4452_v41 = vrot.slane %v9782_v6, %v9729_v34  ;;  %v6062_v12 = vcombine.low %v4424_v24, %v4428_v39 }
 0x538   : > { %v5997_v22 = vcombine.low %v5988_v21, %v5995_v44  ;;  %v6063_v42 = vcombine.low %v4432_v50, %v4436_v53  ;;  %v6004_v5 = vrot.slane %v5996_v18, %v9732_v33  ;;  %v6064_v11 = vcombine.low %v4440_v58, %v4444_v20 }
 0x539   : > { %6763 = vperm.xlu1 %7985, %v5914_v26   ;;  %v4488_v55 = vrot.slane %v9786_v0, %v9707_v1  ;;  %v4492_v3 = vrot.slane %v9786_v0, %v9710_v16  ;;  %v6065_v19 = vcombine.low %v4448_v10, %v4452_v41  ;;  %v6072_v4 = vrot.slane %v6062_v12, %v9732_v33  ;;  %v10867_v26 = vld [vmem:[#allocation24_spill] sm:$0xff] }
 0x53a   : > { %v6011_v43 = vrot.slane %v5997_v22, %v9732_v33  ;;  %v6079_v52 = vrot.slane %v6063_v42, %v9732_v33  ;;  %v6086_v6 = vrot.slane %v6064_v11, %v9732_v33  ;;  %v4496_v36 = vrot.slane %v9786_v0, %v9714_v32 }
 0x53b   : > { %v4500_v61 = vrot.slane %v9786_v0, %v9717_v38  ;;  %v4504_v51 = vrot.slane %v9786_v0, %v9720_v47  ;;  %v6093_v14 = vrot.slane %v6065_v19, %v9732_v33  ;;  %v4508_v63 = vrot.slane %v9786_v0, %v9723_v48 }
 0x53c   : > { %v6012_v31 = vcombine.low %v6004_v5, %v6011_v43  ;;  %v6094_v56 = vcombine.low %v6072_v4, %v6079_v52  ;;  %v4512_v45 = vrot.slane %v9786_v0, %v9726_v25  ;;  %v4516_v8 = vrot.slane %v9786_v0, %v9729_v34 }
 0x53d   : > { %v6160_v29 = vcombine.low %v4488_v55, %v4492_v3  ;;  %v6161_v62 = vcombine.low %v4496_v36, %v4500_v61  ;;  %v6095_v9 = vcombine.low %v6086_v6, %v6093_v14  ;;  %v6162_v2 = vcombine.low %v4504_v51, %v4508_v63  ;;  %v10868_v14 = vld [vmem:[#allocation25_spill] sm:$0xff] }
 0x53e   : > { %6769 = vperm.xlu1 %7985, %v6012_v31   ;;  %v6102_v13 = vrot.slane %v6094_v56, %v9732_v33  ;;  %v4552_v46 = vrot.slane %v10866_v37, %v9707_v1  ;;  %v6163_v17 = vcombine.low %v4512_v45, %v4516_v8  ;;  %v4556_v40 = vrot.slane %v10866_v37, %v9710_v16 }
 0x53f   : > { %v6170_v57 = vrot.slane %v6160_v29, %v9732_v33  ;;  %v6177_v28 = vrot.slane %v6161_v62, %v9732_v33  ;;  %v6109_v0 = vrot.slane %v6095_v9, %v9732_v33  ;;  %v6184_v23 = vrot.slane %v6162_v2, %v9732_v33 }
 0x540   : > { %v4560_v35 = vrot.slane %v10866_v37, %v9714_v32  ;;  %v4564_v54 = vrot.slane %v10866_v37, %v9717_v38  ;;  %v6191_v60 = vrot.slane %v6163_v17, %v9732_v33  ;;  %v4568_v7 = vrot.slane %v10866_v37, %v9720_v47 }
 0x541   : > { %v6192_v49 = vcombine.low %v6170_v57, %v6177_v28  ;;  %v4572_v30 = vrot.slane %v10866_v37, %v9723_v48  ;;  %v6110_v24 = vcombine.low %v6102_v13, %v6109_v0  ;;  %v4576_v39 = vrot.slane %v10866_v37, %v9726_v25 }
 0x542   : > { %v4580_v15 = vrot.slane %v10866_v37, %v9729_v34  ;;  %v6258_v27 = vcombine.low %v4552_v46, %v4556_v40  ;;  %v6193_v59 = vcombine.low %v6184_v23, %v6191_v60  ;;  %v6259_v44 = vcombine.low %v4560_v35, %v4564_v54 }
 0x543   : > { %v6200_v21 = vrot.slane %v6192_v49, %v9732_v33  ;;  %v6260_v50 = vcombine.low %v4568_v7, %v4572_v30  ;;  %6775 = vperm.xlu1 %7985, %v6110_v24   ;;  %v4680_v18 = vrot.slane %v10867_v26, %v9707_v1  ;;  %v4684_v20 = vrot.slane %v10867_v26, %v9710_v16  ;;  %v10869_v49 = vld [vmem:[#allocation26_spill] sm:$0xff] }
 0x544   : > { %v6261_v53 = vcombine.low %v4576_v39, %v4580_v15  ;;  %v6268_v58 = vrot.slane %v6258_v27, %v9732_v33  ;;  %v6207_v10 = vrot.slane %v6193_v59, %v9732_v33  ;;  %v6275_v22 = vrot.slane %v6259_v44, %v9732_v33 }
 0x545   : > { %v6282_v41 = vrot.slane %v6260_v50, %v9732_v33  ;;  %v4688_v12 = vrot.slane %v10867_v26, %v9714_v32  ;;  %v4692_v5 = vrot.slane %v10867_v26, %v9717_v38  ;;  %v4696_v11 = vrot.slane %v10867_v26, %v9720_v47 }
 0x546   : > { %v6289_v42 = vrot.slane %v6261_v53, %v9732_v33  ;;  %v4700_v55 = vrot.slane %v10867_v26, %v9723_v48  ;;  %v6208_v3 = vcombine.low %v6200_v21, %v6207_v10  ;;  %v6290_v43 = vcombine.low %v6268_v58, %v6275_v22 }
 0x547   : > { %v4704_v19 = vrot.slane %v10867_v26, %v9726_v25  ;;  %v4708_v4 = vrot.slane %v10867_v26, %v9729_v34  ;;  %v6454_v6 = vcombine.low %v4680_v18, %v4684_v20  ;;  %v6455_v36 = vcombine.low %v4688_v12, %v4692_v5 }
 0x548   : > { %v6291_v52 = vcombine.low %v6282_v41, %v6289_v42  ;;  %v6456_v61 = vcombine.low %v4696_v11, %v4700_v55  ;;  %6781 = vperm.xlu1 %7985, %v6208_v3   ;;  %v6298_v51 = vrot.slane %v6290_v43, %v9732_v33  ;;  %v4712_v56 = vrot.slane %v10868_v14, %v9707_v1  ;;  %v10870_v11 = vld [vmem:[#allocation27_spill] sm:$0xff]  ;;  %v6701_v3 = vpop.permute.xlu1 %6700 }
 0x549   : > { %v6457_v31 = vcombine.low %v4704_v19, %v4708_v4  ;;  %v4716_v63 = vrot.slane %v10868_v14, %v9710_v16  ;;  %v6464_v8 = vrot.slane %v6454_v6, %v9732_v33  ;;  %v6471_v29 = vrot.slane %v6455_v36, %v9732_v33 }
 0x54a   : > { %v6305_v45 = vrot.slane %v6291_v52, %v9732_v33  ;;  %v6478_v62 = vrot.slane %v6456_v61, %v9732_v33  ;;  %v4720_v13 = vrot.slane %v10868_v14, %v9714_v32  ;;  %v4724_v2 = vrot.slane %v10868_v14, %v9717_v38 }
 0x54b   : > { %v6485_v9 = vrot.slane %v6457_v31, %v9732_v33  ;;  %v4728_v37 = vrot.slane %v10868_v14, %v9720_v47  ;;  %v6486_v17 = vcombine.low %v6464_v8, %v6471_v29  ;;  %v4732_v57 = vrot.slane %v10868_v14, %v9723_v48 }
 0x54c   : > { %v6306_v46 = vcombine.low %v6298_v51, %v6305_v45  ;;  %v4736_v28 = vrot.slane %v10868_v14, %v9726_v25  ;;  %v4740_v0 = vrot.slane %v10868_v14, %v9729_v34  ;;  %v6503_v23 = vcombine.low %v4712_v56, %v4716_v63 }
 0x54d   : > { %v6487_v40 = vcombine.low %v6478_v62, %v6485_v9  ;;  %v6504_v35 = vcombine.low %v4720_v13, %v4724_v2  ;;  %v6494_v54 = vrot.slane %v6486_v17, %v9732_v33  ;;  %v6505_v60 = vcombine.low %v4728_v37, %v4732_v57  ;;  %v6704_v13 = vpop.permute.xlu1 %6703 }
 0x54e   : > { %6787 = vperm.xlu1 %7985, %v6306_v46   ;;  %v4744_v7 = vrot.slane %v10869_v49, %v9707_v1  ;;  %v4748_v30 = vrot.slane %v10869_v49, %v9710_v16  ;;  %v6506_v39 = vcombine.low %v4736_v28, %v4740_v0  ;;  %v6513_v15 = vrot.slane %v6503_v23, %v9732_v33  ;;  %v10872_v28 = vld [vmem:[#allocation22_spill] sm:$0xff] }
 0x54f   : > { %v6501_v24 = vrot.slane %v6487_v40, %v9732_v33  ;;  %v6520_v27 = vrot.slane %v6504_v35, %v9732_v33  ;;  %v6527_v59 = vrot.slane %v6505_v60, %v9732_v33  ;;  %v4752_v21 = vrot.slane %v10869_v49, %v9714_v32 }
 0x550   : > { %v4756_v44 = vrot.slane %v10869_v49, %v9717_v38  ;;  %v4760_v50 = vrot.slane %v10869_v49, %v9720_v47  ;;  %v6534_v58 = vrot.slane %v6506_v39, %v9732_v33  ;;  %v4764_v18 = vrot.slane %v10869_v49, %v9723_v48 }
 0x551   : > { %v6502_v53 = vcombine.low %v6494_v54, %v6501_v24  ;;  %v6535_v26 = vcombine.low %v6513_v15, %v6520_v27  ;;  %v4768_v20 = vrot.slane %v10869_v49, %v9726_v25  ;;  %v4772_v10 = vrot.slane %v10869_v49, %v9729_v34 }
 0x552   : > { %v6552_v22 = vcombine.low %v4744_v7, %v4748_v30  ;;  %v6553_v41 = vcombine.low %v4752_v21, %v4756_v44  ;;  %v6536_v12 = vcombine.low %v6527_v59, %v6534_v58  ;;  %v6554_v5 = vcombine.low %v4760_v50, %v4764_v18  ;;  %v6707_v7 = vpop.permute.xlu1 %6706 }
 0x553   : > { %6799 = vperm.xlu1 %7985, %v6502_v53   ;;  %v6543_v42 = vrot.slane %v6535_v26, %v9732_v33  ;;  %v4808_v55 = vrot.slane %v10870_v11, %v9707_v1  ;;  %v6555_v43 = vcombine.low %v4768_v20, %v4772_v10  ;;  %v4812_v52 = vrot.slane %v10870_v11, %v9710_v16  ;;  %v10666_v26 = vpop.permute.xlu0 %6724 }
 0x554   : > { %v6562_v19 = vrot.slane %v6552_v22, %v9732_v33  ;;  %v6569_v4 = vrot.slane %v6553_v41, %v9732_v33  ;;  %v6550_v6 = vrot.slane %v6536_v12, %v9732_v33  ;;  %v6576_v36 = vrot.slane %v6554_v5, %v9732_v33 }
 0x555   : > { %v4816_v61 = vrot.slane %v10870_v11, %v9714_v32  ;;  %v4820_v51 = vrot.slane %v10870_v11, %v9717_v38  ;;  %v6583_v1 = vrot.slane %v6555_v43, %v9732_v33  ;;  %v4824_v14 = vrot.slane %v10870_v11, %v9720_v47 }
 0x556   : > { %v6584_v31 = vcombine.low %v6562_v19, %v6569_v4  ;;  %v4828_v56 = vrot.slane %v10870_v11, %v9723_v48  ;;  %v6551_v16 = vcombine.low %v6543_v42, %v6550_v6  ;;  %v4832_v63 = vrot.slane %v10870_v11, %v9726_v25  ;;  %v10658_v44 = vpop.permute.xlu1 %6709 }
 0x557   : > { %v4836_v45 = vrot.slane %v10870_v11, %v9729_v34  ;;  %v6650_v32 = vcombine.low %v4808_v55, %v4812_v52  ;;  %v6585_v8 = vcombine.low %v6576_v36, %v6583_v1  ;;  %v6651_v29 = vcombine.low %v4816_v61, %v4820_v51  ;;  %v10670_v20 = vpop.permute.xlu0 %6730 }
 0x558   : > { %v6592_v38 = vrot.slane %v6584_v31, %v9732_v33  ;;  %v6652_v62 = vcombine.low %v4824_v14, %v4828_v56  ;;  %6802 = vperm.xlu1 %7985, %v6551_v16   ;;  %v10871_v37 = vlaneseq }
 0x559   : > { %v6653_v9 = vcombine.low %v4832_v63, %v4836_v45  ;;  %v6660_v47 = vrot.slane %v6650_v32, %v9732_v33  ;;  %v6599_v48 = vrot.slane %v6585_v8, %v9732_v33  ;;  %v6667_v2 = vrot.slane %v6651_v29, %v9732_v33 }
 0x55a   : > { %v6674_v25 = vrot.slane %v6652_v62, %v9732_v33  ;;  %v10634_v46 = vand.u32 127, %v10871_v37  ;;  %v10660_v50 = vpop.permute.xlu1 %6712  ;;  %vm7058_vm3 = vcmp.lt.s32.totalorder %v10871_v37, 304 }
 0x55b   : > { %v6681_v34 = vrot.slane %v6653_v9, %v9732_v33  ;;  %v6600_v17 = vcombine.low %v6592_v38, %v6599_v48  ;;  %v6682_v57 = vcombine.low %v6660_v47, %v6667_v2  ;;  %v10674_v22 = vpop.permute.xlu0 %6736 }
 0x55c   : > { %v10639_v40 = vsub.s32 %v10634_v46, %v10872_v28  ;;  %v6819_v0 = vadd.s32 4294967288, %v10634_v46  ;;  %v6826_v60 = vadd.s32 4294967280, %v10634_v46  ;;  %v6833_v6 = vadd.s32 4294967272, %v10634_v46 }
 0x55d   : > { %v6683_v23 = vcombine.low %v6674_v25, %v6681_v34  ;;  %6805 = vperm.xlu1 %7985, %v6600_v17   ;;  %v6690_v35 = vrot.slane %v6682_v57, %v9732_v33  ;;  %v6847_v14 = vadd.s32 4294967256, %v10634_v46  ;;  %v6840_v56 = vadd.s32 4294967264, %v10634_v46 }
 0x55e   : > { %v10644_v54 = vsub.s32 %v6819_v0, %v10872_v28  ;;  %v6818_v30 = vrot.slane %v6701_v3, %v10639_v40  ;;  %v10651_v39 = vsub.s32 %v6826_v60, %v10872_v28  ;;  %v10662_v53 = vpop.permute.xlu1 %6715  ;;  %v10687_v1 = vsub.s32 %v6833_v6, %v10872_v28 }
 0x55f   : > { %v6697_v49 = vrot.slane %v6683_v23, %v9732_v33  ;;  %v10678_v12 = vpop.permute.xlu0 %6742  ;;  %v10698_v8 = vsub.s32 %v6847_v14, %v10872_v28  ;;  %v6861_v38 = vadd.s32 4294967240, %v10634_v46  ;;  %v10702_v62 = vsub.s32 %v6840_v56, %v10872_v28 }
 0x560   : > { %v6823_v24 = vrot.slane %v6704_v13, %v10644_v54  ;;  %v6830_v59 = vrot.slane %v6707_v7, %v10651_v39  ;;  %v6854_v9 = vadd.s32 4294967248, %v10634_v46  ;;  %v6875_v34 = vadd.s32 4294967224, %v10634_v46 }
 0x561   : > { %v6698_v15 = vcombine.low %v6690_v35, %v6697_v49  ;;  %v6864_v25 = vsub.s32 %v6861_v38, %v10872_v28  ;;  %v6868_v57 = vadd.s32 4294967232, %v10634_v46  ;;  %v6837_v60 = vrot.slane %v10658_v44, %v10687_v1 }
 0x562   : > { %v6825_v27 = vsel %vm6824_vm4, %v6823_v24, %v6818_v30  ;;  %v10664_v58 = vpop.permute.xlu1 %6718  ;;  %v6857_v0 = vsub.s32 %v6854_v9, %v10872_v28  ;;  %v6882_v30 = vadd.s32 4294967216, %v10634_v46  ;;  %v6844_v24 = vrot.slane %v10660_v50, %v10702_v62 }
 0x563   : > { %6811 = vperm.xlu1 %7985, %v6698_v15   ;;  %v10656_v21 = vsel %vm6831_vm5, %v6830_v59, %v6825_v27  ;;  %v6749_v5 = vpop.permute.xlu0 %6748  ;;  %v6851_v27 = vrot.slane %v10662_v53, %v10698_v8  ;;  %v6878_v59 = vsub.s32 %v6875_v34, %v10872_v28  ;;  %v6896_v6 = vadd.s32 4294967200, %v10634_v46 }
 0x564   : > { %v6927_v31 = vrot.slane %v6749_v5, %v10639_v40  ;;  %v6889_v5 = vadd.s32 4294967208, %v10634_v46  ;;  %v6858_v44 = vrot.slane %v10664_v58, %v6857_v0 }
 0x567   : > { %v6755_v55 = vpop.permute.xlu0 %6754 }
 0x568   : > { %v6936_v32 = vrot.slane %v6755_v55, %v10651_v39  ;;  %v6871_v55 = vsub.s32 %v6868_v57, %v10872_v28 }
 0x56a   : > { %v10668_v18 = vpop.permute.xlu1 %6721  ;;  %v6872_v38 = vrot.slane %v10666_v26, %v6871_v55 }
 0x56b   : > { %v6761_v43 = vpop.permute.xlu0 %6760  ;;  %v6865_v50 = vrot.slane %v10668_v18, %v6864_v25  ;;  %v6885_v18 = vsub.s32 %v6882_v30, %v10872_v28 }
 0x56c   : > { %v6946_v2 = vrot.slane %v6761_v43, %v10702_v62  ;;  %v6839_v43 = vsel %vm6838_vm6, %v6837_v60, %v10656_v21  ;;  %v6903_v21 = vadd.s32 4294967192, %v10634_v46 }
 0x56f   : > { %v6767_v4 = vpop.permute.xlu0 %6766 }
 0x570   : > { %v6956_v15 = vrot.slane %v6767_v4, %v6857_v0 }
 0x573   : > { %v6773_v36 = vpop.permute.xlu0 %6772 }
 0x575   : > { %v10672_v10 = vpop.permute.xlu1 %6727 }
 0x57a   : > { %v10692_v16 = vpop.permute.xlu0 %6778 }
 0x57f   : > { %v10676_v41 = vpop.permute.xlu1 %6733 }
 0x584   : > { %v10711_v17 = vpop.permute.xlu0 %6784 }
 0x58a   : > { %v10680_v42 = vpop.permute.xlu1 %6739 }
 0x594   : > { %v10682_v11 = vpop.permute.xlu1 %6745 }
 0x59f   : > { %v6752_v3 = vpop.permute.xlu1 %6751 }
 0x5a0   : > { %v6931_v61 = vrot.slane %v6752_v3, %v10644_v54 }
 0x5a2   : > { %v6932_v63 = vsel %vm6824_vm4, %v6931_v61, %v6927_v31  ;;  %v6846_v61 = vsel %vm6845_vm7, %v6844_v24, %v6839_v43  ;;  %v6892_v31 = vsub.s32 %v6889_v5, %v10872_v28 }
 0x5a3   : > { %v6937_v47 = vsel %vm6831_vm5, %v6936_v32, %v6932_v63  ;;  %v6853_v58 = vsel %vm6852_vm8, %v6851_v27, %v6846_v61 }
 0x5a4   : > { %v6860_v14 = vsel %vm6859_vm9, %v6858_v44, %v6853_v58  ;;  %v6893_v26 = vrot.slane %v10676_v41, %v6892_v31 }
 0x5a5   : > { %v6867_v63 = vsel %vm6866_vm10, %v6865_v50, %v6860_v14 }
 0x5a9   : > { %v6758_v19 = vpop.permute.xlu1 %6757 }
 0x5aa   : > { %v6941_v45 = vrot.slane %v6758_v19, %v10687_v1  ;;  %v10732_v19 = vpop.permute.xlu0 %6796 }
 0x5ab   : > { %v7006_v43 = vrot.slane %v10732_v19, %v10639_v40 }
 0x5ac   : > { %v6942_v13 = vsel %vm6838_vm6, %v6941_v45, %v6937_v47  ;;  %v6879_v45 = vrot.slane %v10672_v10, %v6878_v59  ;;  %v6899_v47 = vsub.s32 %v6896_v6, %v10872_v28  ;;  %v6917_v10 = vadd.s32 4294967176, %v10634_v46 }
 0x5ad   : > { %v6947_v23 = vsel %vm6845_vm7, %v6946_v2, %v6942_v13  ;;  %v6910_v13 = vadd.s32 4294967184, %v10634_v46 }
 0x5ae   : > { %v6791_v2 = vpop.permute.xlu0 %6790 }
 0x5af   : > { %v6913_v60 = vsub.s32 %v6910_v13, %v10872_v28 }
 0x5b1   : > { %v6996_v5 = vrot.slane %v6791_v2, %v6913_v60 }
 0x5b2   : > { %v6794_v27 = vpop.permute.xlu0 %6793 }
 0x5b4   : > { %v6764_v52 = vpop.permute.xlu1 %6763 }
 0x5b5   : > { %v6951_v48 = vrot.slane %v6764_v52, %v10698_v8 }
 0x5b7   : > { %v6952_v49 = vsel %vm6852_vm8, %v6951_v48, %v6947_v23  ;;  %v6906_v48 = vsub.s32 %v6903_v21, %v10872_v28  ;;  %v6886_v23 = vrot.slane %v10670_v20, %v6885_v18 }
 0x5b8   : > { %v6957_v3 = vsel %vm6859_vm9, %v6956_v15, %v6952_v49  ;;  %v6920_v15 = vsub.s32 %v6917_v10, %v10872_v28 }
 0x5b9   : > { %v6770_v51 = vpop.permute.xlu1 %6769  ;;  %v6907_v46 = vrot.slane %v10680_v42, %v6906_v48 }
 0x5ba   : > { %v6961_v7 = vrot.slane %v6770_v51, %v6864_v25  ;;  %v6966_v51 = vrot.slane %v6773_v36, %v6871_v55  ;;  %v6874_v25 = vsel %vm6873_vm11, %v6872_v38, %v6867_v63  ;;  %v6921_v42 = vrot.slane %v10682_v11, %v6920_v15 }
 0x5bb   : > { %v6881_v57 = vsel %vm6880_vm12, %v6879_v45, %v6874_v25  ;;  %v7001_v28 = vrot.slane %v6794_v27, %v6920_v15 }
 0x5bc   : > { %v6962_v53 = vsel %vm6866_vm10, %v6961_v7, %v6957_v3  ;;  %v6888_v49 = vsel %vm6887_vm13, %v6886_v23, %v6881_v57 }
 0x5bd   : > { %v6967_v56 = vsel %vm6873_vm11, %v6966_v51, %v6962_v53  ;;  %v6895_v24 = vsel %vm6894_vm14, %v6893_v26, %v6888_v49  ;;  %v6914_v53 = vrot.slane %v10678_v12, %v6913_v60 }
 0x5be   : > { %v6776_v29 = vpop.permute.xlu1 %6775 }
 0x5bf   : > { %v6971_v4 = vrot.slane %v6776_v29, %v6878_v59  ;;  %v6976_v29 = vrot.slane %v10692_v16, %v6885_v18  ;;  %v6900_v59 = vrot.slane %v10674_v22, %v6899_v47 }
 0x5c1   : > { %v6972_v36 = vsel %vm6880_vm12, %v6971_v4, %v6967_v56  ;;  %v6809_v4 = vpop.permute.xlu0 %6808 }
 0x5c2   : > { %v6977_v34 = vsel %vm6887_vm13, %v6976_v29, %v6972_v36  ;;  %v7025_v11 = vrot.slane %v6809_v4, %v10702_v62 }
 0x5c3   : > { %v6782_v35 = vpop.permute.xlu1 %6781 }
 0x5c4   : > { %v6981_v32 = vrot.slane %v6782_v35, %v6892_v31  ;;  %v6986_v35 = vrot.slane %v10711_v17, %v6899_v47  ;;  %v6902_v17 = vsel %vm6901_vm15, %v6900_v59, %v6895_v24 }
 0x5c5   : > { %v6909_v3 = vsel %vm6908_vm0, %v6907_v46, %v6902_v17 }
 0x5c6   : > { %v6982_v16 = vsel %vm6894_vm14, %v6981_v32, %v6977_v34  ;;  %v6916_v6 = vsel %vm6915_vm1, %v6914_v53, %v6909_v3 }
 0x5c7   : > { %v6987_v7 = vsel %vm6901_vm15, %v6986_v35, %v6982_v16  ;;  %v6923_v61 = vsel %vm6922_vm2, %v6921_v42, %v6916_v6 }
 0x5c9   : > { %v6788_v52 = vpop.permute.xlu1 %6787 }
 0x5ca   : > { %v6991_v0 = vrot.slane %v6788_v52, %v6906_v48 }
 0x5cc   : > { %v6992_v41 = vsel %vm6908_vm0, %v6991_v0, %v6987_v7 }
 0x5cd   : > { %v6997_v55 = vsel %vm6915_vm1, %v6996_v5, %v6992_v41 }
 0x5ce   : > { %v6800_v9 = vpop.permute.xlu1 %6799 }
 0x5cf   : > { %v7010_v20 = vrot.slane %v6800_v9, %v10644_v54  ;;  %v7002_v54 = vsel %vm6922_vm2, %v7001_v28, %v6997_v55 }
 0x5d0   : > { %v7032_v19 = vcombine.low %v6923_v61, %v7002_v54 }
 0x5d1   : > { %v7011_v52 = vsel %vm6824_vm4, %v7010_v20, %v7006_v43 }
 0x5d2   : > { %v7039_v31 = vrot.slane %v7032_v19, %v9732_v33 }
 0x5d3   : > { %v6803_v30 = vpop.permute.xlu1 %6802 }
 0x5d4   : > { %v7015_v44 = vrot.slane %v6803_v30, %v10651_v39 }
 0x5d6   : > { %v7016_v39 = vsel %vm6831_vm5, %v7015_v44, %v7011_v52 }
 0x5d8   : > { %v6806_v50 = vpop.permute.xlu1 %6805 }
 0x5d9   : > { %v7020_v22 = vrot.slane %v6806_v50, %v10687_v1 }
 0x5db   : > { %v7021_v40 = vsel %vm6838_vm6, %v7020_v22, %v7016_v39 }
 0x5dc   : > { %v7026_v58 = vsel %vm6845_vm7, %v7025_v11, %v7021_v40 }
 0x5de   : > { %v6812_v51 = vpop.permute.xlu1 %6811 }
 0x5df   : > { %v7030_v12 = vrot.slane %v6812_v51, %v10698_v8 }
 0x5e1   : > { %v7031_v1 = vsel %vm6852_vm8, %v7030_v12, %v7026_v58 }
 0x5e2   : > { %v7046_v21 = vrot.slane %v7031_v1, %v9732_v33 }
 0x5e4   : > { %v7047_v18 = vcombine.low %v7039_v31, %v7046_v21 }
 0x5e6   : > { %v7054_v14 = vrot.slane %v7047_v18, %v9732_v33 }
 0x5e8   : > { %7060 = vst.msk [vmem:[#allocation16] sm:$0x7] %vm7058_vm3, %v7054_v14 }
 0x5e9 PF: > { %p7748_p1 = scmp.eq.s32.totalorder %s8428_s28, 3  ;;  %s8321_s24 = smov [#allocation16]  }
 0x5ea   : > { %s7078_s25 = sshll.u32 %s8321_s24, 4  ;;  %s7079_s25 = int_to_ptr.vmem [resolvable:$true] %s7078_s25 }
 0x5eb   : > { %s8218_s0 = scalar_lea.vmem %s7079_s25, 48  ;;  %s8224_s27 = scalar_lea.vmem %s7079_s25, 96 }
 0x5ec   : > { %p8219_p8 = scmp.ne.s32.totalorder %s7079_s25, %s8218_s0  ;;  %p8225_p4 = scmp.lt.s32.totalorder %s7079_s25, %s7079_s25 }
 0x5ed   : > { %p8226_p6 = scmp.lt.s32.totalorder %s8224_s27, %s8218_s0 }
 0x5ee   : > { %p8220_p0 = pnand %p8219_p8, %p7748_p1 }
 0x5ef   : > { %p8227_p5 = por %p8226_p6, %p8225_p4 }
 0x5f0   : > { %p8221_p3 = pneg %p8220_p0 }
 0x5f2   : > { %p8228_p2 = pnand %p8227_p5, %p8221_p3 }
 0x5f4   : > { %8231 = shalt.err (!%p8228_p2)
}
 0x5f5   : > { %7725 = dma.vmem_to_hbm [thread:$0]  (%p7748_p1), %s7079_s25, 48, %s10819_s9, [#allocation12]  }
 0x5f6 PF: > { %p7749_p10 = scmp.ge.s32.totalorder %s8304_s16, 2  ;;  %s10873_s22 = sadd.s32 4294967294, %s8304_s16  }
 0x5f7   : > { %p7750_p11 = scmp.eq.s32.totalorder %s10873_s22, 3 }
 0x5f9   : > { %p7740_p9 = pnand %p7750_p11, %p7749_p10 }
 0x5fb   : > { %p7741_p12 = pneg %p7740_p9 }
 0x5fd   : > { %8279 = dma.done.wait (%p7741_p12), [#allocation12], 48  }
 0x5fe   : > { %8281 = vsyncadd (%p7741_p12), [#allocation12], 4294967248  ;;  %s28_s16 = sadd.s32 1, %s8304_s16   ;;  %s10874_s11 = smov %s8288_s12 }
 0x5ff   : > { %p25_p13 = scmp.ge.s32.totalorder %s28_s16, 6   ;;  %s10875_s12 = smov %s8292_s13 }
 0x600   : > { %s10876_s13 = smov %s8514_s18  ;;  %s10877_s14 = smov %s8300_s15 }
 0x601   : > { %s10878_s15 = smov %s10880_s19  ;;  %27 = sbr.rel (!%p25_p13) target bundleno = 10 (0xa), region = 175 }
 0x606   :  { %7096 = vsyncpa [#allocation11], 1 }
 0x607   :  { %7098 = vsyncpa [#allocation11 + $0x1], 1 }
 0x608   :  { %7099 = vsyncpa [#allocation14], 1 }
 0x609   :  { %7100 = vsyncpa [#allocation12], 1 }
 0x60a   :  { %7102 = vsyncpa [#allocation12 + $0x1], 1 }

// kernel: tpu_custom_call.1
= control target key start
LH: loop header
LB: loop body
LE: loop exit
PB: predicated region body
PF: predicated region fallthrough
CT: control target
= control target key end

     0   :  { %s10810_s0 = inlined_call_operand.hbm [shape: f32[304,128], index: 0, kind: input, shape index: {}]   ;;  %s10811_s1 = inlined_call_operand.hbm [shape: bf16[128,128], index: 1, kind: input, shape index: {}]   ;;  %s10812_s2 = inlined_call_operand.vmem [shape: f32[1,128], index: 2, kind: input, shape index: {}]   ;;  %s10813_s3 = inlined_call_operand.hbm [shape: bf16[2,128,128], index: 3, kind: input, shape index: {}]   ;;  %s10814_s4 = inlined_call_operand.vmem [shape: f32[2,1,128], index: 4, kind: input, shape index: {}]   ;;  %s10815_s5 = inlined_call_operand.vmem [shape: f32[3,1,128], index: 5, kind: input, shape index: {}]   ;;  %s10816_s6 = inlined_call_operand.vmem [shape: f32[3,1,128], index: 6, kind: input, shape index: {}]   ;;  %s10817_s7 = inlined_call_operand.vmem [shape: f32[1,128], index: 7, kind: input, shape index: {}]   ;;  %s10818_s8 = inlined_call_operand.<no memory space> [shape: f32[1,1], index: 8, kind: input, shape index: {}]   ;;  %s10819_s9 = inlined_call_operand.hbm [shape: f32[1,304], index: 9, kind: output, shape index: {}]  }
   0x1   :  { %10837 = sst [smem:[#allocation28_spill]] %s10810_s0  ;;  %v14_v0 = vstv %s10818_s8 }
   0x2   :  { %10838 = sst [smem:[#allocation29_spill]] %s10811_s1  ;;  %15 = vst [vmem:[#allocation9] sm:$0x1] %v14_v0 }
   0x3   :  { %16 = vsyncpa [#allocation11], 0 }
   0x4   :  { %18 = vsyncpa [#allocation11 + $0x1], 0 }
   0x5   :  { %19 = vsyncpa [#allocation14], 0 }
   0x6   :  { %20 = vsyncpa [#allocation12], 0 }
   0x7   :  { %22 = vsyncpa [#allocation12 + $0x1], 0  ;;  %s8375_s11 = smov 0   ;;  %s8377_s12 = smov 0  }
   0x8   :  { %s8379_s13 = smov 0   ;;  %s8381_s14 = smov 0  }
   0x9   :  { %s8383_s15 = smov 0   ;;  %s8385_s16 = smov 0  }
   0xa LB: > { %s8306_s8 = smov [#allocation10]   ;;  %p137_p0 = scmp.eq.s32.totalorder %s8304_s16, 0  ;;  %s8304_s16 = sphi %s8385_s16, %s28_s16   ;;  %s8300_s15 = sphi %s8383_s15, %s10878_s15   ;;  %s8296_s14 = sphi %s8381_s14, %s10877_s14   ;;  %s8292_s13 = sphi %s8379_s13, %s10876_s13   ;;  %s8288_s12 = sphi %s8377_s12, %s10875_s12   ;;  %s8284_s11 = sphi %s8375_s11, %s10874_s11  }
   0xb   : > { %s381_s17 = sshll.u32 %s8306_s8, 4  ;;  %p7744_p1 = scmp.lt.s32.totalorder %s8304_s16, 4  ;;  %s382_s17 = int_to_ptr.vmem [resolvable:$true] %s381_s17 }
   0xc   : > { %s368_s19 = sand.u32 1, %s8304_s16   ;;  %s8149_s22 = scalar_lea.vmem %s382_s17, 4864 }
   0xd   : > { %p8413_p2 = pnand %p7744_p1, %p137_p0  ;;  %s8417_s21 = scalar_lea.sflag [#allocation11], %s368_s19 }
   0xe   : > { %p8150_p4 = scmp.ne.s32.totalorder %s382_s17, %s8149_s22  ;;  %s8156_s23 = scalar_lea.vmem %s382_s17, 9728 }
   0xf   : > { %p8140_p3 = pneg %p8413_p2  ;;  %p8157_p7 = scmp.lt.s32.totalorder %s382_s17, %s382_s17 }
  0x10   : > { %p8158_p8 = scmp.lt.s32.totalorder %s8156_s23, %s8149_s22 }
  0x11   : > { %p8152_p5 = pnand %p8150_p4, %p8140_p3 }
  0x12   : > { %p8159_p9 = por %p8158_p8, %p8157_p7 }
  0x13   : > { %p8153_p6 = pneg %p8152_p5 }
  0x15   : > { %p8160_p10 = pnand %p8159_p9, %p8153_p6 }
  0x17   : > { %8163 = shalt.err (!%p8160_p10)
}
  0x18   : > { %s8307_s24 = smov 128   ;;  %s8308_s25 = smov 8  }
  0x19   : > { %s10840_s0 = sld [smem:[#allocation28_spill]]  ;;  %s8428_s28 = sadd.s32 4294967295, %s8304_s16  }
  0x1a   : > { %p136_p11 = scmp.ne.s32.totalorder %s8292_s13, %s8288_s12  ;;  %p142_p12 = scmp.ne.s32.totalorder %s8288_s12, %s8284_s11 }
  0x1b   : > { %p10823_p13 = scmp.eq.s32.totalorder %s8428_s28, 0  ;;  %p7275_p4 = scmp.ge.s32.totalorder %s8304_s16, 1 }
  0x1c   : > { %p138_p3 = por %p137_p0, %p136_p11  ;;  %p333_p6 = scmp.lt.s32.totalorder %s8304_s16, 5 }
  0x1d   : > { %p8440_p5 = por %p10823_p13, %p142_p12  ;;  %s8309_s10 = smov [#allocation13]  }
  0x1e   : > { %p8445_p7 = pnand %p7275_p4, %p333_p6  ;;  %s345_s8 = sshll.u32 %s8309_s10, 4  ;;  %s346_s8 = int_to_ptr.vmem [resolvable:$true] %s345_s8 }
  0x1f   : > { %7735 = dma.hbm_to_vmem [thread:$0]  (!%p8413_p2), %s10840_s0, 4864, %s382_s17, %s8417_s21, %s8307_s24, %s8307_s24, %s8308_s25  }
  0x20   : > { %s10841_s29 = scalar_select %p8440_p5, 1, 0 }
  0x21   : > { %s10842_s30 = scalar_select %p8445_p7, 1, 0 }
  0x22   : > { %p7728_p2 = pneg %p8445_p7  ;;  %p8453_p8 = pnand %p7744_p1, %p138_p3 }
  0x23   : > { %s40_s19 = sadd.s32 1, %s8300_s15  ;;  %s8175_s22 = scalar_lea.vmem %s346_s8, 1024 }
  0x24   : > { %p8459_p0 = pnand %p7728_p2, %p10823_p13  ;;  %p8464_p9 = scmp.ge.s32.totalorder %s40_s19, 4 }
  0x25   : > { %p8176_p11 = scmp.ne.s32.totalorder %s346_s8, %s8175_s22  ;;  %p8183_p3 = scmp.lt.s32.totalorder %s346_s8, %s346_s8 }
  0x26   : > { %p8166_p10 = pneg %p8459_p0  ;;  %p8184_p4 = scmp.lt.s32.totalorder %s8175_s22, %s8175_s22 }
  0x28   : > { %p8178_p12 = pnand %p8176_p11, %p8166_p10  ;;  %p8185_p6 = por %p8184_p4, %p8183_p3 }
  0x2a   : > { %p8179_p1 = pneg %p8178_p12 }
  0x2c   : > { %p8186_p5 = pnand %p8185_p6, %p8179_p1 }
  0x2e   : > { %8189 = shalt.err (!%p8186_p5)
}
  0x2f   : > { %s10821_s23 = smov 64   ;;  %s10822_s24 = smov 4  }
  0x30   : > { %s10846_s1 = sld [smem:[#allocation29_spill]]  ;;  %s10880_s19 = smov (%p8464_p9, %s40_s19), 0 }
  0x31   : > { %s7227_s27 = sadd.s32 4294967295, %s8300_s15  ;;  %s7233_s22 = sadd.s32 4294967295, %s10880_s19 }
  0x32   : > { %p117_p5 = scmp.gt.s32.totalorder %s7227_s27, 0  ;;  %p7228_p2 = scmp.lt.s32.totalorder %s7227_s27, 1 }
  0x33   : > { %s393_s18 = sand.u32 1, %s8292_s13   ;;  %p122_p10 = scmp.gt.s32.totalorder %s7233_s22, 0 }
  0x34   : > { %s10882_s27 = smov (!%p117_p5, %s7227_s27), 0  ;;  %p7234_p11 = scmp.lt.s32.totalorder %s7233_s22, 1 }
  0x35   : > { %s10884_s27 = smov (!%p7228_p2, %s10882_s27), 1  ;;  %s10886_s22 = smov (!%p122_p10, %s7233_s22), 0 }
  0x36   : > { %7731 = dma.hbm_to_vmem [thread:$0]  (!%p8459_p0), %s10846_s1, 1024, %s346_s8, [#allocation14], %s10821_s23, %s10821_s23, %s10822_s24  }
  0x37   : > { %s7279_s17 = sshll.u32 %s393_s18, 6  ;;  %s7435_s0 = sshll.u32 %s10884_s27, 10 }
  0x38   : > { %s10888_s22 = smov (!%p7234_p11, %s10886_s22), 1  ;;  %s8489_s25 = scalar_lea.hbm %s10813_s3, %s7435_s0 }
  0x39   : > { %s126_s26 = ssub.s32 %s10884_s27, %s10888_s22  ;;  %s395_s10 = scalar_lea.vmem [#allocation15], %s7279_s17 }
  0x3a   : > { %s407_s23 = sshll.u32 %s395_s10, 4  ;;  %p8491_p0 = scmp.eq.s32.totalorder %s126_s26, 0  ;;  %s408_s23 = int_to_ptr.vmem [resolvable:$true] %s407_s23 }
  0x3b   : > { %s8190_s1 = scalar_lea.hbm %s8489_s25, 1024  ;;  %p8192_p12 = pneg %p8453_p8 }
  0x3c   : > { %p8191_p9 = scmp.ne.s32.totalorder %s8489_s25, %s8190_s1  ;;  %s8195_s0 = scalar_lea.hbm %s10813_s3, 2048 }
  0x3d   : > { %p8197_p4 = scmp.lt.s32.totalorder %s8195_s0, %s8190_s1 }
  0x3e   : > { %p8193_p1 = pnand %p8192_p12, %p8191_p9 }
  0x40   : > { %p8194_p3 = pneg %p8193_p1 }
  0x42   : > { %p8199_p6 = pnand %p8197_p4, %p8194_p3 }
  0x44   : > { %8202 = shalt.err (!%p8199_p6)
}
  0x45   : > { %s8203_s27 = scalar_lea.vmem %s408_s23, 1024  ;;  %s8312_s10 = smov [#allocation15]  }
  0x46   : > { %p8204_p5 = scmp.ne.s32.totalorder %s408_s23, %s8203_s27  ;;  %s8208_s22 = sshll.u32 %s8312_s10, 4  ;;  %s8209_s22 = int_to_ptr.vmem [resolvable:$false] %s8208_s22 }
  0x47   : > { %s8210_s17 = scalar_lea.vmem %s8209_s22, 2048  ;;  %p8211_p11 = scmp.lt.s32.totalorder %s408_s23, %s8209_s22 }
  0x48   : > { %p8206_p2 = pnand %p8204_p5, %p8192_p12  ;;  %p8212_p13 = scmp.lt.s32.totalorder %s8210_s17, %s8203_s27 }
  0x4a   : > { %p8207_p10 = pneg %p8206_p2  ;;  %p8213_p7 = por %p8212_p13, %p8211_p11 }
  0x4c   : > { %p8214_p9 = pnand %p8213_p7, %p8207_p10 }
  0x4e   : > { %8217 = shalt.err (!%p8214_p9)
}
  0x4f   : > { %s10848_s20 = smov 4   ;;  %s10849_s26 = smov 64  }
  0x50   : > { %7738 = dma.hbm_to_vmem [thread:$0]  (!%p8453_p8), %s8489_s25, 1024, %s408_s23, %s8417_s21, %s10849_s26, %s10849_s26, %s10848_s20  }
  0x51   : > { %s10850_s1 = sadd.s32 1, %s8292_s13  ;;  %p10851_p12 = scmp.ne.s32.totalorder %s10842_s30, 0 }
  0x52   : > { %s8514_s18 = scalar_select %p8491_p0, %s8292_s13, %s10850_s1  }
  0x53   : > { %467 = sbr.rel (%p10851_p12) target bundleno = 1526 (0x5f6), region = 56  ;;  %s469_s8 = sand.u32 (!%p10851_p12), 1, %s8428_s28  }
  0x54   : > { %s470_s11 = scalar_lea.sflag (!%p10851_p12), [#allocation11], %s469_s8  ;;  %p10852_p13 = scmp.eq.s32.totalorder (!%p10851_p12), %s8428_s28, 0 }
  0x58   : > { %8267 = dma.done.wait (%p10852_p13), %s470_s11, 4864   ;;  %p10853_p7 = pmov %p10852_p13 }
  0x5a   : > { %8269 = vsyncadd (%p10853_p7), %s470_s11, 4294962432  ;;  %p10854_p1 = pmov %p10853_p7 }
  0x5c   : > { %8271 = dma.done.wait (%p10854_p1), [#allocation14], 1024   ;;  %p10855_p8 = pmov %p10854_p1 }
  0x5d   : > { %s484_s21 = sand.u32 1, %s8288_s12   ;;  %p10856_p0 = scmp.ne.s32.totalorder %s10841_s29, 0 }
  0x5e   : > { %8273 = vsyncadd (%p10855_p8), [#allocation14], 4294966272  ;;  %s7291_s30 = sshll.u32 %s484_s21, 6 }
  0x5f   : > { %s8528_s23 = scalar_lea.vmem [#allocation15], %s7291_s30 }
  0x60   : > { %8275 = dma.done.wait (%p10856_p0), %s470_s11, 1024  }
  0x61   : > { %8277 = vsyncadd (%p10856_p0), %s470_s11, 4294966272  ;;  %s7292_s24 = sadd.s32 4294967295, %s8296_s14  ;;  %p601_p3 = scmp.eq.s32.totalorder %s8296_s14, 0 }
  0x62   : > { %p559_p4 = scmp.gt.s32.totalorder %s7292_s24, 0  ;;  %p7293_p6 = scmp.lt.s32.totalorder %s7292_s24, 1  ;;  %v8313_v1 = vmov (%p601_p3), 0.0  }
  0x63   : > { %p7299_p5 = scmp.lt.s32.totalorder %s7292_s24, 2  ;;  %607 = vst [vmem:[#allocation4] sm:$0x1] (%p601_p3), %v8313_v1  ;;  %608 = vst [vmem:[#allocation5] sm:$0x1] (%p601_p3), %v8313_v1 }
  0x64   : > { %s10890_s24 = smov (!%p559_p4, %s7292_s24), 0 }
  0x65   : > { %s7437_s25 = scalar_select %p7293_p6, %s10890_s24, 1 }
  0x66   : > { %s10892_s24 = smov (!%p7299_p5, %s10890_s24), 2 }
  0x67   : > { %p563_p2 = scmp.lt.s32.totalorder %s7437_s25, 1  ;;  %p576_p10 = scmp.lt.s32.totalorder %s10892_s24, 2 }
  0x68   : > { %606 = sbr.rel (!%p601_p3) target bundleno = 109 (0x6d), region = 72 }
  0x69   : > { %s10894_s25 = smov (!%p563_p2, %s7437_s25), 1  ;;  %s10896_s24 = smov (!%p576_p10, %s10892_s24), 2 }
  0x6a   : > { %s565_s29 = scalar_lea.vmem %s10814_s4, %s10894_s25  ;;  %s578_s17 = scalar_lea.vmem %s10815_s5, %s10896_s24 }
  0x6b   : > { %s591_s1 = scalar_lea.vmem %s10816_s6, %s10896_s24 }
  0x6d PF: > { %p609_p11 = scmp.ge.s32.totalorder %s8296_s14, 1 }
  0x6e   : > { %v614_v2 = vld [vmem:[#allocation4] sm:$0x1] (%p609_p11)  ;;  %v616_v3 = vld [vmem:[#allocation5] sm:$0x1] (%p609_p11)  ;;  %v8314_v7 = vmov (%p609_p11), 0.0  }
  0x6f   : > { %613 = sbr.rel (!%p609_p11) target bundleno = 142 (0x8e), region = 76  ;;  %v615_v4 = vmul.f32 (%p609_p11), 0.0033333334, %v614_v2  ;;  %v617_v5 = vmul.f32 (%p609_p11), 0.0033333334, %v616_v3 }
  0x70   : > { %632 = vst [vmem:[#allocation4] sm:$0x1] (%p609_p11), %v8314_v7  ;;  %633 = vst [vmem:[#allocation5] sm:$0x1] (%p609_p11), %v8314_v7  ;;  %v621_v11 = vld [vmem:[#allocation8] sm:$0x1] (%p609_p11) }
  0x71   : > { %v618_v6 = vmul.f32 (%p609_p11), %v615_v4, %v615_v4  ;;  %v623_v12 = vld [vmem:[%s578_s17] sm:$0x1] (%p609_p11)  ;;  %v622_v13 = vadd.f32 (%p609_p11), %v621_v11, %v615_v4 }
  0x72   : > { %v628_v16 = vld [vmem:[%s591_s1] sm:$0x1] (%p609_p11) }
  0x73   : > { %v619_v8 = vsub.f32 (%p609_p11), %v617_v5, %v618_v6 }
  0x75   : > { %v620_v9 = vmax.f32 %v619_v8, 0.0 }
  0x77   : > { %v624_v10 = vadd.f32 1e-05, %v620_v9 }
  0x79   : > { %7814 = vrsqrt.f32 %v624_v10 }
  0x86   : > { %v7815_v14 = vpop.eup %7814 }
  0x87   : > { %v626_v15 = vmul.f32 %v7815_v14, %v623_v12 }
  0x89   : > { %627 = vst [vmem:[#allocation6] sm:$0x1] %v626_v15  ;;  %v629_v17 = vmul.f32 %v626_v15, %v622_v13 }
  0x8b   : > { %v630_v18 = vsub.f32 %v628_v16, %v629_v17 }
  0x8d   : > { %631 = vst [vmem:[#allocation7] sm:$0x1] %v630_v18 }
  0x8e PF: > { %p7312_p9 = scmp.ne.s32.totalorder %s8296_s14, 0 }
  0x90   : > { %636 = sbr.rel (%p7312_p9) target bundleno = 510 (0x1fe), region = 80 }
  0x95   : > { %v7816_v19 = vld [vmem:[#allocation13 + $0x38] sm:$0xff]   ;;  %v8315_v20 = vmov 0.0   ;;  %v7817_v21 = vld [vmem:[#allocation13 + $0x30] sm:$0xff]   ;;  %vm8316_vm0 = vmmov 0   ;;  %v7818_v22 = vld [vmem:[#allocation13 + $0x28] sm:$0xff]  }
  0x96   : > { %7498 = vmatprep.subr.bf16.mxu0 %v8315_v20  ;;  %1531 = vst [vmem:[#allocation3 + $0x80] sm:$0xff] %v8315_v20  ;;  %1532 = vst [vmem:[#allocation3 + $0xc8] sm:$0xff] %v8315_v20  ;;  %7682 = vmatprep.subr.bf16.mxu1 %v8315_v20  ;;  %v7819_v23 = vld [vmem:[#allocation13 + $0x20] sm:$0xff]   ;;  %v7820_v24 = vld [vmem:[#allocation13 + $0x18] sm:$0xff]  }
  0x97   : > { %1533 = vst [vmem:[#allocation3 + $0xb8] sm:$0xff] %v8315_v20  ;;  %1534 = vst [vmem:[#allocation3 + $0x70] sm:$0xff] %v8315_v20  ;;  %7499 = vmatpush3.bf16.msra.mxu0 %v7816_v19  ;;  %7514 = vmatprep.mubr.msk.bf16.mxu0 %vm8316_vm0, %v8315_v20  ;;  %v7821_v25 = vld [vmem:[#allocation13 + $0x10] sm:$0xff]   ;;  %v8611_v26 = vld [vmem:[%s10812_s2] sm:$0x1] }
  0x98   : > { %1535 = vst [vmem:[#allocation3 + $0x98] sm:$0xff] %v8315_v20  ;;  %1536 = vst [vmem:[#allocation3 + $0xa8] sm:$0xff] %v8315_v20  ;;  %7500 = vmatprep.subr.bf16.mxu0 %v8315_v20  ;;  %7690 = vmatpush3.bf16.msra.mxu1 %v7816_v19  ;;  %v7822_v27 = vld [vmem:[#allocation13 + $0x8] sm:$0xff]   ;;  %v7823_v28 = vld [vmem:[#allocation13] sm:$0xff]  }
  0x99   : > { %1537 = vst [vmem:[#allocation3 + $0x120] sm:$0xff] %v8315_v20  ;;  %1538 = vst [vmem:[#allocation3 + $0xd0] sm:$0xff] %v8315_v20  ;;  %7683 = vmatprep.subr.bf16.mxu1 %v8315_v20  ;;  %7554 = vmatprep.mubr.msk.bf16.mxu1 %vm8316_vm0, %v8315_v20  ;;  %v638_v29 = vld [vmem:[#allocation10] sm:$0xff]  ;;  %v639_v30 = vld [vmem:[#allocation10 + $0x8] sm:$0xff] }
  0x9a   : > { %1539 = vst [vmem:[#allocation3 + $0xf0] sm:$0xff] %v8315_v20  ;;  %1540 = vst [vmem:[#allocation3 + $0x100] sm:$0xff] %v8315_v20  ;;  %v658_v31 = vld [vmem:[#allocation10 + $0xa0] sm:$0xff]  ;;  %v659_v32 = vld [vmem:[#allocation10 + $0xa8] sm:$0xff]  ;;  %v676_v33 = vpack.c.bf16 %v639_v30, %v638_v29 }
  0x9b   : > { %1541 = vst [vmem:[#allocation3 + $0xf8] sm:$0xff] %v8315_v20  ;;  %1542 = vst [vmem:[#allocation3 + $0x38] sm:$0xff] %v8315_v20  ;;  %7501 = vmatpush3.bf16.msra.mxu0 %v7817_v21  ;;  %v686_v34 = vpack.c.bf16 %v659_v32, %v658_v31  ;;  %v640_v35 = vld [vmem:[#allocation10 + $0x10] sm:$0xff]  ;;  %v641_v36 = vld [vmem:[#allocation10 + $0x18] sm:$0xff] }
  0x9c   : > { %1543 = vst [vmem:[#allocation3 + $0x68] sm:$0xff] %v8315_v20  ;;  %1544 = vst [vmem:[#allocation3 + $0x58] sm:$0xff] %v8315_v20  ;;  %7502 = vmatprep.subr.bf16.mxu0 %v8315_v20  ;;  %7691 = vmatpush3.bf16.msra.mxu1 %v7817_v21  ;;  %v660_v37 = vld [vmem:[#allocation10 + $0xb0] sm:$0xff]  ;;  %v661_v38 = vld [vmem:[#allocation10 + $0xb8] sm:$0xff]  ;;  %v677_v39 = vpack.c.bf16 %v641_v36, %v640_v35 }
  0x9d   : > { %1545 = vst [vmem:[#allocation3 + $0x88] sm:$0xff] %v8315_v20  ;;  %1546 = vst [vmem:[#allocation3 + $0x48] sm:$0xff] %v8315_v20  ;;  %7684 = vmatprep.subr.bf16.mxu1 %v8315_v20  ;;  %v687_v40 = vpack.c.bf16 %v661_v38, %v660_v37  ;;  %v642_v41 = vld [vmem:[#allocation10 + $0x20] sm:$0xff]  ;;  %v643_v42 = vld [vmem:[#allocation10 + $0x28] sm:$0xff] }
  0x9e   : > { %1547 = vst [vmem:[#allocation3 + $0x10] sm:$0xff] %v8315_v20  ;;  %1548 = vst [vmem:[#allocation3 + $0x40] sm:$0xff] %v8315_v20  ;;  %v662_v43 = vld [vmem:[#allocation10 + $0xc0] sm:$0xff]  ;;  %v663_v44 = vld [vmem:[#allocation10 + $0xc8] sm:$0xff]  ;;  %v678_v45 = vpack.c.bf16 %v643_v42, %v642_v41 }
  0x9f   : > { %1549 = vst [vmem:[#allocation3 + $0xe8] sm:$0xff] %v8315_v20  ;;  %1550 = vst [vmem:[#allocation3 + $0xc0] sm:$0xff] %v8315_v20  ;;  %7503 = vmatpush3.bf16.msra.mxu0 %v7818_v22  ;;  %v688_v46 = vpack.c.bf16 %v663_v44, %v662_v43  ;;  %v644_v47 = vld [vmem:[#allocation10 + $0x30] sm:$0xff]  ;;  %v645_v48 = vld [vmem:[#allocation10 + $0x38] sm:$0xff] }
  0xa0   : > { %1551 = vst [vmem:[#allocation3 + $0xd8] sm:$0xff] %v8315_v20  ;;  %1552 = vst [vmem:[#allocation3 + $0x128] sm:$0xff] %v8315_v20  ;;  %7504 = vmatprep.subr.bf16.mxu0 %v8315_v20  ;;  %7692 = vmatpush3.bf16.msra.mxu1 %v7818_v22  ;;  %v664_v49 = vld [vmem:[#allocation10 + $0xd0] sm:$0xff]  ;;  %v665_v50 = vld [vmem:[#allocation10 + $0xd8] sm:$0xff]  ;;  %v679_v51 = vpack.c.bf16 %v645_v48, %v644_v47 }
  0xa1   : > { %1553 = vst [vmem:[#allocation3 + $0x118] sm:$0xff] %v8315_v20  ;;  %1554 = vst [vmem:[#allocation3 + $0x78] sm:$0xff] %v8315_v20  ;;  %7685 = vmatprep.subr.bf16.mxu1 %v8315_v20  ;;  %v689_v52 = vpack.c.bf16 %v665_v50, %v664_v49  ;;  %v646_v53 = vld [vmem:[#allocation10 + $0x40] sm:$0xff]  ;;  %v647_v54 = vld [vmem:[#allocation10 + $0x48] sm:$0xff] }
  0xa2   : > { %1555 = vst [vmem:[#allocation3 + $0x30] sm:$0xff] %v8315_v20  ;;  %1556 = vst [vmem:[#allocation3 + $0x110] sm:$0xff] %v8315_v20  ;;  %v666_v55 = vld [vmem:[#allocation10 + $0xe0] sm:$0xff]  ;;  %v667_v56 = vld [vmem:[#allocation10 + $0xe8] sm:$0xff]  ;;  %v680_v57 = vpack.c.bf16 %v647_v54, %v646_v53 }
  0xa3   : > { %1557 = vst [vmem:[#allocation3] sm:$0xff] %v8315_v20  ;;  %1558 = vst [vmem:[#allocation3 + $0x108] sm:$0xff] %v8315_v20  ;;  %7505 = vmatpush3.bf16.msra.mxu0 %v7819_v23  ;;  %v690_v58 = vpack.c.bf16 %v667_v56, %v666_v55  ;;  %v648_v59 = vld [vmem:[#allocation10 + $0x50] sm:$0xff]  ;;  %v649_v60 = vld [vmem:[#allocation10 + $0x58] sm:$0xff] }
  0xa4   : > { %1559 = vst [vmem:[#allocation3 + $0x8] sm:$0xff] %v8315_v20  ;;  %1560 = vst [vmem:[#allocation3 + $0xe0] sm:$0xff] %v8315_v20  ;;  %7506 = vmatprep.subr.bf16.mxu0 %v8315_v20  ;;  %7693 = vmatpush3.bf16.msra.mxu1 %v7819_v23  ;;  %v668_v61 = vld [vmem:[#allocation10 + $0xf0] sm:$0xff]  ;;  %v669_v62 = vld [vmem:[#allocation10 + $0xf8] sm:$0xff]  ;;  %v681_v63 = vpack.c.bf16 %v649_v60, %v648_v59  ;;  %v712_v23 = vlaneseq }
  0xa5   : > { %1561 = vst [vmem:[#allocation3 + $0x50] sm:$0xff] %v8315_v20  ;;  %1562 = vst [vmem:[#allocation3 + $0x60] sm:$0xff] %v8315_v20  ;;  %7686 = vmatprep.subr.bf16.mxu1 %v8315_v20  ;;  %v691_v0 = vpack.c.bf16 %v669_v62, %v668_v61  ;;  %v650_v1 = vld [vmem:[#allocation10 + $0x60] sm:$0xff]  ;;  %v651_v2 = vld [vmem:[#allocation10 + $0x68] sm:$0xff] }
  0xa6   : > { %1563 = vst [vmem:[#allocation3 + $0x20] sm:$0xff] %v8315_v20  ;;  %1564 = vst [vmem:[#allocation3 + $0x18] sm:$0xff] %v8315_v20  ;;  %v670_v3 = vld [vmem:[#allocation10 + $0x100] sm:$0xff]  ;;  %v671_v4 = vld [vmem:[#allocation10 + $0x108] sm:$0xff]  ;;  %v682_v5 = vpack.c.bf16 %v651_v2, %v650_v1 }
  0xa7   : > { %1565 = vst [vmem:[#allocation3 + $0xb0] sm:$0xff] %v8315_v20  ;;  %1566 = vst [vmem:[#allocation3 + $0x28] sm:$0xff] %v8315_v20  ;;  %7507 = vmatpush3.bf16.msra.mxu0 %v7820_v24  ;;  %v692_v6 = vpack.c.bf16 %v671_v4, %v670_v3  ;;  %v652_v7 = vld [vmem:[#allocation10 + $0x70] sm:$0xff]  ;;  %v653_v8 = vld [vmem:[#allocation10 + $0x78] sm:$0xff] }
  0xa8   : > { %1567 = vst [vmem:[#allocation3 + $0x90] sm:$0xff] %v8315_v20  ;;  %1568 = vst [vmem:[#allocation3 + $0xa0] sm:$0xff] %v8315_v20  ;;  %7508 = vmatprep.subr.bf16.mxu0 %v8315_v20  ;;  %7694 = vmatpush3.bf16.msra.mxu1 %v7820_v24  ;;  %v672_v9 = vld [vmem:[#allocation10 + $0x110] sm:$0xff]  ;;  %v673_v10 = vld [vmem:[#allocation10 + $0x118] sm:$0xff]  ;;  %v683_v11 = vpack.c.bf16 %v653_v8, %v652_v7  ;;  %v8652_v24 = vshrl.u32 %v712_v23, 7 }
  0xa9   : > { %7687 = vmatprep.subr.bf16.mxu1 %v8315_v20  ;;  %953 = vst [vmem:[#allocation8] sm:$0x1] %v8611_v26  ;;  %v693_v12 = vpack.c.bf16 %v673_v10, %v672_v9  ;;  %v654_v13 = vld [vmem:[#allocation10 + $0x80] sm:$0xff]  ;;  %v655_v14 = vld [vmem:[#allocation10 + $0x88] sm:$0xff]  ;;  %v656_v19 = vld [vmem:[#allocation10 + $0x90] sm:$0xff] }
  0xaa   : > { %v674_v15 = vld [vmem:[#allocation10 + $0x120] sm:$0xff]  ;;  %v675_v16 = vld [vmem:[#allocation10 + $0x128] sm:$0xff]  ;;  %v684_v17 = vpack.c.bf16 %v655_v14, %v654_v13  ;;  %v657_v21 = vld [vmem:[#allocation10 + $0x98] sm:$0xff] }
  0xab   : > { %7509 = vmatpush3.bf16.msra.mxu0 %v7821_v25  ;;  %v694_v18 = vpack.c.bf16 %v675_v16, %v674_v15  ;;  %v685_v22 = vpack.c.bf16 %v657_v21, %v656_v19 }
  0xac   : > { %7510 = vmatprep.subr.bf16.mxu0 %v8315_v20  ;;  %7695 = vmatpush3.bf16.msra.mxu1 %v7821_v25  ;;  %v714_v25 = vsub.s32 0, %v8652_v24 }
  0xad   : > { %7688 = vmatprep.subr.bf16.mxu1 %v8315_v20 }
  0xaf   : > { %7511 = vmatpush3.bf16.msra.mxu0 %v7822_v27 }
  0xb0   : > { %7512 = vmatprep.subr.bf16.mxu0 %v8315_v20  ;;  %7696 = vmatpush3.bf16.msra.mxu1 %v7822_v27  ;;  %v8656_v27 = vrot.slane %v8611_v26, %v714_v25 }
  0xb1   : > { %7689 = vmatprep.subr.bf16.mxu1 %v8315_v20 }
  0xb3   : > { %7513 = vmatpush3.bf16.msra.mxu0 %v7823_v28 }
  0xb4   : > { %7697 = vmatpush3.bf16.msra.mxu1 %v7823_v28 }
  0xb6   : > { %7515 = vmatmul.mubr.bf16.vlgmr.msra.gmra.mxu0 %v676_v33 }
  0xb7   : > { %7518 = vmatprep.mubr.msk.bf16.mxu0 %vm8316_vm0, %v8315_v20  ;;  %7555 = vmatmul.mubr.bf16.vlgmr.msra.gmra.mxu1 %v686_v34 }
  0xb8   : > { %7558 = vmatprep.mubr.msk.bf16.mxu1 %vm8316_vm0, %v8315_v20 }
  0xbe   : > { %7519 = vmatmul.mubr.bf16.gmra.mxu0 %v677_v39 }
  0xbf   : > { %7522 = vmatprep.mubr.msk.bf16.mxu0 %vm8316_vm0, %v8315_v20  ;;  %7559 = vmatmul.mubr.bf16.gmra.mxu1 %v687_v40 }
  0xc0   : > { %7562 = vmatprep.mubr.msk.bf16.mxu1 %vm8316_vm0, %v8315_v20 }
  0xc6   : > { %7523 = vmatmul.mubr.bf16.gmra.mxu0 %v678_v45 }
  0xc7   : > { %7526 = vmatprep.mubr.msk.bf16.mxu0 %vm8316_vm0, %v8315_v20  ;;  %7563 = vmatmul.mubr.bf16.gmra.mxu1 %v688_v46 }
  0xc8   : > { %7566 = vmatprep.mubr.msk.bf16.mxu1 %vm8316_vm0, %v8315_v20 }
  0xce   : > { %7527 = vmatmul.mubr.bf16.gmra.mxu0 %v679_v51 }
  0xcf   : > { %7530 = vmatprep.mubr.msk.bf16.mxu0 %vm8316_vm0, %v8315_v20  ;;  %7567 = vmatmul.mubr.bf16.gmra.mxu1 %v689_v52 }
  0xd0   : > { %7570 = vmatprep.mubr.msk.bf16.mxu1 %vm8316_vm0, %v8315_v20 }
  0xd6   : > { %7531 = vmatmul.mubr.bf16.gmra.mxu0 %v680_v57 }
  0xd7   : > { %7534 = vmatprep.mubr.msk.bf16.mxu0 %vm8316_vm0, %v8315_v20  ;;  %7571 = vmatmul.mubr.bf16.gmra.mxu1 %v690_v58 }
  0xd8   : > { %7574 = vmatprep.mubr.msk.bf16.mxu1 %vm8316_vm0, %v8315_v20 }
  0xde   : > { %7535 = vmatmul.mubr.bf16.gmra.mxu0 %v681_v63 }
  0xdf   : > { %7538 = vmatprep.mubr.msk.bf16.mxu0 %vm8316_vm0, %v8315_v20  ;;  %7575 = vmatmul.mubr.bf16.gmra.mxu1 %v691_v0 }
  0xe0   : > { %7578 = vmatprep.mubr.msk.bf16.mxu1 %vm8316_vm0, %v8315_v20 }
  0xe6   : > { %7539 = vmatmul.mubr.bf16.gmra.mxu0 %v682_v5 }
  0xe7   : > { %7542 = vmatprep.mubr.msk.bf16.mxu0 %vm8316_vm0, %v8315_v20  ;;  %7579 = vmatmul.mubr.bf16.gmra.mxu1 %v692_v6 }
  0xe8   : > { %7582 = vmatprep.mubr.msk.bf16.mxu1 %vm8316_vm0, %v8315_v20 }
  0xee   : > { %7543 = vmatmul.mubr.bf16.gmra.mxu0 %v683_v11 }
  0xef   : > { %7546 = vmatprep.mubr.msk.bf16.mxu0 %vm8316_vm0, %v8315_v20  ;;  %7583 = vmatmul.mubr.bf16.gmra.mxu1 %v693_v12 }
  0xf0   : > { %7586 = vmatprep.mubr.msk.bf16.mxu1 %vm8316_vm0, %v8315_v20 }
  0xf6   : > { %7547 = vmatmul.mubr.bf16.gmra.mxu0 %v684_v17 }
  0xf7   : > { %7550 = vmatprep.mubr.msk.bf16.mxu0 %vm8316_vm0, %v8315_v20  ;;  %7587 = vmatmul.mubr.bf16.gmra.mxu1 %v694_v18 }
  0xfe   : > { %7551 = vmatmul.mubr.bf16.gmra.mxu0 %v685_v22 }
 0x176   : > { %v799_v28 = vpop.f32.mrf.mxu0 }
 0x177   : > { %v8659_v29 = vadd.f32 %v799_v28, %v8656_v27  ;;  %v879_v30 = vpop.f32.mrf.mxu1 }
 0x178   : > { %v7516_v31 = vpop.f32.mrf.mxu0  ;;  %v8662_v32 = vadd.f32 %v879_v30, %v8656_v27 }
 0x179   : > { %1492 = vst [vmem:[#allocation2 + $0xb0] sm:$0xff] %v8659_v29  ;;  %v7556_v33 = vpop.f32.mrf.mxu1  ;;  %v954_v28 = vsub.f32 %v8659_v29, %v8656_v27 }
 0x17a   : > { %v802_v34 = vpop.f32.mrf.mxu0  ;;  %1512 = vst [vmem:[#allocation2 + $0xa8] sm:$0xff] %v8662_v32 }
 0x17b   : > { %v8667_v35 = vadd.f32 %v802_v34, %v8656_v27  ;;  %v882_v26 = vpop.f32.mrf.mxu1 }
 0x17c   : > { %v7517_v36 = vpop.f32.mrf.mxu0  ;;  %v8670_v37 = vadd.f32 %v882_v26, %v8656_v27 }
 0x17d   : > { %1493 = vst [vmem:[#allocation2 + $0xd0] sm:$0xff] %v8667_v35  ;;  %v7557_v38 = vpop.f32.mrf.mxu1  ;;  %v955_v21 = vsub.f32 %v8667_v35, %v8656_v27 }
 0x17e   : > { %v807_v39 = vpop.f32.mrf.mxu0  ;;  %1513 = vst [vmem:[#allocation2 + $0x90] sm:$0xff] %v8670_v37 }
 0x17f   : > { %v8675_v40 = vadd.f32 %v807_v39, %v8656_v27  ;;  %v887_v41 = vpop.f32.mrf.mxu1  ;;  %v1274_v26 = vmul.f32 %v955_v21, %v955_v21 }
 0x180   : > { %v7520_v42 = vpop.f32.mrf.mxu0  ;;  %v8678_v43 = vadd.f32 %v887_v41, %v8656_v27  ;;  %v1273_v41 = vmul.f32 %v954_v28, %v954_v28 }
 0x181   : > { %1494 = vst [vmem:[#allocation2 + $0x10] sm:$0xff] %v8675_v40  ;;  %v7560_v44 = vpop.f32.mrf.mxu1  ;;  %v956_v30 = vsub.f32 %v8675_v40, %v8656_v27 }
 0x182   : > { %v810_v45 = vpop.f32.mrf.mxu0  ;;  %1514 = vst [vmem:[#allocation2 + $0xe0] sm:$0xff] %v8678_v43  ;;  %v1227_v44 = vadd.f32 %v955_v21, %v954_v28 }
 0x183   : > { %v811_v46 = vadd.f32 %v810_v45, %v8656_v27  ;;  %v890_v47 = vpop.f32.mrf.mxu1  ;;  %v1275_v29 = vmul.f32 %v956_v30, %v956_v30 }
 0x184   : > { %v7521_v48 = vpop.f32.mrf.mxu0  ;;  %v8684_v49 = vadd.f32 %v890_v47, %v8656_v27 }
 0x185   : > { %1495 = vst [vmem:[#allocation2 + $0x48] sm:$0xff] %v811_v46  ;;  %v7561_v50 = vpop.f32.mrf.mxu1  ;;  %v957_v35 = vsub.f32 %v811_v46, %v8656_v27  ;;  %v1311_v48 = vadd.f32 %v1274_v26, %v1273_v41 }
 0x186   : > { %v815_v51 = vpop.f32.mrf.mxu0  ;;  %1515 = vst [vmem:[#allocation2 + $0xf8] sm:$0xff] %v8684_v49 }
 0x187   : > { %v816_v52 = vadd.f32 %v815_v51, %v8656_v27  ;;  %v895_v53 = vpop.f32.mrf.mxu1  ;;  %v1276_v50 = vmul.f32 %v957_v35, %v957_v35 }
 0x188   : > { %v7524_v54 = vpop.f32.mrf.mxu0  ;;  %v8689_v55 = vadd.f32 %v895_v53, %v8656_v27 }
 0x189   : > { %1496 = vst [vmem:[#allocation2 + $0x120] sm:$0xff] %v816_v52  ;;  %v7564_v56 = vpop.f32.mrf.mxu1  ;;  %v958_v42 = vsub.f32 %v816_v52, %v8656_v27  ;;  %v1228_v54 = vadd.f32 %v1227_v44, %v956_v30 }
 0x18a   : > { %v818_v57 = vpop.f32.mrf.mxu0  ;;  %1516 = vst [vmem:[#allocation2 + $0xa0] sm:$0xff] %v8689_v55 }
 0x18b   : > { %v819_v58 = vadd.f32 %v818_v57, %v8656_v27  ;;  %v898_v59 = vpop.f32.mrf.mxu1  ;;  %v1312_v57 = vadd.f32 %v1311_v48, %v1275_v29  ;;  %v1277_v52 = vmul.f32 %v958_v42, %v958_v42 }
 0x18c   : > { %v7525_v60 = vpop.f32.mrf.mxu0  ;;  %v8694_v61 = vadd.f32 %v898_v59, %v8656_v27 }
 0x18d   : > { %1497 = vst [vmem:[#allocation2 + $0x38] sm:$0xff] %v819_v58  ;;  %v7565_v62 = vpop.f32.mrf.mxu1  ;;  %v959_v46 = vsub.f32 %v819_v58, %v8656_v27 }
 0x18e   : > { %v823_v63 = vpop.f32.mrf.mxu0  ;;  %1517 = vst [vmem:[#allocation2 + $0x78] sm:$0xff] %v8694_v61  ;;  %v1229_v62 = vadd.f32 %v1228_v54, %v957_v35 }
 0x18f   : > { %v824_v0 = vadd.f32 %v823_v63, %v8656_v27  ;;  %v903_v1 = vpop.f32.mrf.mxu1  ;;  %v1278_v58 = vmul.f32 %v959_v46, %v959_v46 }
 0x190   : > { %v7528_v2 = vpop.f32.mrf.mxu0  ;;  %v8699_v3 = vadd.f32 %v903_v1, %v8656_v27 }
 0x191   : > { %1498 = vst [vmem:[#allocation2 + $0x70] sm:$0xff] %v824_v0  ;;  %v7568_v4 = vpop.f32.mrf.mxu1  ;;  %v960_v59 = vsub.f32 %v824_v0, %v8656_v27  ;;  %v1313_v2 = vadd.f32 %v1312_v57, %v1276_v50 }
 0x192   : > { %v826_v5 = vpop.f32.mrf.mxu0  ;;  %1518 = vst [vmem:[#allocation2 + $0xc0] sm:$0xff] %v8699_v3 }
 0x193   : > { %v827_v6 = vadd.f32 %v826_v5, %v8656_v27  ;;  %v906_v7 = vpop.f32.mrf.mxu1  ;;  %v1279_v0 = vmul.f32 %v960_v59, %v960_v59 }
 0x194   : > { %v7529_v8 = vpop.f32.mrf.mxu0  ;;  %v8704_v9 = vadd.f32 %v906_v7, %v8656_v27 }
 0x195   : > { %1499 = vst [vmem:[#allocation2 + $0x100] sm:$0xff] %v827_v6  ;;  %v7569_v10 = vpop.f32.mrf.mxu1  ;;  %v961_v4 = vsub.f32 %v827_v6, %v8656_v27  ;;  %v1230_v8 = vadd.f32 %v1229_v62, %v958_v42 }
 0x196   : > { %v831_v11 = vpop.f32.mrf.mxu0  ;;  %1519 = vst [vmem:[#allocation2 + $0x80] sm:$0xff] %v8704_v9 }
 0x197   : > { %v832_v12 = vadd.f32 %v831_v11, %v8656_v27  ;;  %v911_v13 = vpop.f32.mrf.mxu1  ;;  %v1314_v11 = vadd.f32 %v1313_v2, %v1277_v52  ;;  %v1280_v6 = vmul.f32 %v961_v4, %v961_v4 }
 0x198   : > { %v7532_v14 = vpop.f32.mrf.mxu0  ;;  %v8709_v15 = vadd.f32 %v911_v13, %v8656_v27 }
 0x199   : > { %1500 = vst [vmem:[#allocation2 + $0x108] sm:$0xff] %v832_v12  ;;  %v7572_v16 = vpop.f32.mrf.mxu1  ;;  %v962_v13 = vsub.f32 %v832_v12, %v8656_v27  ;;  %v1315_v21 = vadd.f32 %v1314_v11, %v1278_v58 }
 0x19a   : > { %v834_v17 = vpop.f32.mrf.mxu0  ;;  %1520 = vst [vmem:[#allocation2 + $0xe8] sm:$0xff] %v8709_v15  ;;  %v1231_v16 = vadd.f32 %v1230_v8, %v959_v46 }
 0x19b   : > { %v835_v18 = vadd.f32 %v834_v17, %v8656_v27  ;;  %v914_v19 = vpop.f32.mrf.mxu1  ;;  %v1281_v12 = vmul.f32 %v962_v13, %v962_v13 }
 0x19c   : > { %v7533_v22 = vpop.f32.mrf.mxu0  ;;  %v8716_v23 = vadd.f32 %v914_v19, %v8656_v27  ;;  %v1232_v30 = vadd.f32 %v1231_v16, %v960_v59 }
 0x19d   : > { %1501 = vst [vmem:[#allocation2 + $0x88] sm:$0xff] %v835_v18  ;;  %v7573_v25 = vpop.f32.mrf.mxu1  ;;  %v963_v22 = vsub.f32 %v835_v18, %v8656_v27 }
 0x19e   : > { %v839_v31 = vpop.f32.mrf.mxu0  ;;  %1521 = vst [vmem:[#allocation2] sm:$0xff] %v8716_v23 }
 0x19f   : > { %v840_v33 = vadd.f32 %v839_v31, %v8656_v27  ;;  %v919_v34 = vpop.f32.mrf.mxu1  ;;  %v1282_v18 = vmul.f32 %v963_v22, %v963_v22 }
 0x1a0   : > { %v7536_v36 = vpop.f32.mrf.mxu0  ;;  %v8726_v38 = vadd.f32 %v919_v34, %v8656_v27  ;;  %v1316_v34 = vadd.f32 %v1315_v21, %v1279_v0 }
 0x1a1   : > { %1502 = vst [vmem:[#allocation2 + $0x110] sm:$0xff] %v840_v33  ;;  %v7576_v39 = vpop.f32.mrf.mxu1  ;;  %v964_v26 = vsub.f32 %v840_v33, %v8656_v27  ;;  %v1233_v36 = vadd.f32 %v1232_v30, %v961_v4 }
 0x1a2   : > { %v842_v40 = vpop.f32.mrf.mxu0  ;;  %1522 = vst [vmem:[#allocation2 + $0xd8] sm:$0xff] %v8726_v38  ;;  %v1317_v29 = vadd.f32 %v1316_v34, %v1280_v6 }
 0x1a3   : > { %v843_v45 = vadd.f32 %v842_v40, %v8656_v27  ;;  %v922_v47 = vpop.f32.mrf.mxu1  ;;  %v1283_v33 = vmul.f32 %v964_v26, %v964_v26 }
 0x1a4   : > { %v7537_v51 = vpop.f32.mrf.mxu0  ;;  %v8733_v53 = vadd.f32 %v922_v47, %v8656_v27  ;;  %v1234_v47 = vadd.f32 %v1233_v36, %v962_v13  ;;  %v1318_v50 = vadd.f32 %v1317_v29, %v1281_v12 }
 0x1a5   : > { %1503 = vst [vmem:[#allocation2 + $0xf0] sm:$0xff] %v843_v45  ;;  %v7577_v56 = vpop.f32.mrf.mxu1  ;;  %v965_v42 = vsub.f32 %v843_v45, %v8656_v27 }
 0x1a6   : > { %v847_v60 = vpop.f32.mrf.mxu0  ;;  %1523 = vst [vmem:[#allocation2 + $0x28] sm:$0xff] %v8733_v53  ;;  %v1235_v54 = vadd.f32 %v1234_v47, %v963_v22  ;;  %v1319_v52 = vadd.f32 %v1318_v50, %v1282_v18 }
 0x1a7   : > { %v848_v63 = vadd.f32 %v847_v60, %v8656_v27  ;;  %v927_v1 = vpop.f32.mrf.mxu1  ;;  %v1284_v45 = vmul.f32 %v965_v42, %v965_v42 }
 0x1a8   : > { %v7540_v5 = vpop.f32.mrf.mxu0  ;;  %v8740_v7 = vadd.f32 %v927_v1, %v8656_v27  ;;  %v1236_v62 = vadd.f32 %v1235_v54, %v964_v26  ;;  %v1320_v58 = vadd.f32 %v1319_v52, %v1283_v33 }
 0x1a9   : > { %1504 = vst [vmem:[#allocation2 + $0x40] sm:$0xff] %v848_v63  ;;  %v7580_v10 = vpop.f32.mrf.mxu1  ;;  %v966_v46 = vsub.f32 %v848_v63, %v8656_v27 }
 0x1aa   : > { %v850_v14 = vpop.f32.mrf.mxu0  ;;  %1524 = vst [vmem:[#allocation2 + $0x60] sm:$0xff] %v8740_v7  ;;  %v1237_v5 = vadd.f32 %v1236_v62, %v965_v42  ;;  %v1321_v0 = vadd.f32 %v1320_v58, %v1284_v45 }
 0x1ab   : > { %v851_v17 = vadd.f32 %v850_v14, %v8656_v27  ;;  %v930_v19 = vpop.f32.mrf.mxu1  ;;  %v1285_v63 = vmul.f32 %v966_v46, %v966_v46 }
 0x1ac   : > { %v7541_v25 = vpop.f32.mrf.mxu0  ;;  %v8747_v28 = vadd.f32 %v930_v19, %v8656_v27  ;;  %v1238_v16 = vadd.f32 %v1237_v5, %v966_v46  ;;  %v975_v5 = vsub.f32 %v8670_v37, %v8656_v27 }
 0x1ad   : > { %1505 = vst [vmem:[#allocation2 + $0xc8] sm:$0xff] %v851_v17  ;;  %v7581_v31 = vpop.f32.mrf.mxu1  ;;  %v967_v1 = vsub.f32 %v851_v17, %v8656_v27  ;;  %v1322_v6 = vadd.f32 %v1321_v0, %v1285_v63 }
 0x1ae   : > { %v855_v35 = vpop.f32.mrf.mxu0  ;;  %1525 = vst [vmem:[#allocation2 + $0x68] sm:$0xff] %v8747_v28 }
 0x1af   : > { %v856_v39 = vadd.f32 %v855_v35, %v8656_v27  ;;  %v935_v41 = vpop.f32.mrf.mxu1  ;;  %v1286_v17 = vmul.f32 %v967_v1, %v967_v1  ;;  %v1239_v25 = vadd.f32 %v1238_v16, %v967_v1 }
 0x1b0   : > { %v7544_v40 = vpop.f32.mrf.mxu0  ;;  %v8754_v44 = vadd.f32 %v935_v41, %v8656_v27 }
 0x1b1   : > { %1506 = vst [vmem:[#allocation2 + $0x30] sm:$0xff] %v856_v39  ;;  %v7584_v48 = vpop.f32.mrf.mxu1  ;;  %v968_v8 = vsub.f32 %v856_v39, %v8656_v27  ;;  %v1323_v36 = vadd.f32 %v1322_v6, %v1286_v17 }
 0x1b2   : > { %v858_v51 = vpop.f32.mrf.mxu0  ;;  %1526 = vst [vmem:[#allocation2 + $0x18] sm:$0xff] %v8754_v44 }
 0x1b3   : > { %v859_v56 = vadd.f32 %v858_v51, %v8656_v27  ;;  %v938_v57 = vpop.f32.mrf.mxu1  ;;  %v1287_v30 = vmul.f32 %v968_v8, %v968_v8  ;;  %v1240_v39 = vadd.f32 %v1239_v25, %v968_v8  ;;  %v978_v25 = vsub.f32 %v8689_v55, %v8656_v27 }
 0x1b4   : > { %v7545_v59 = vpop.f32.mrf.mxu0  ;;  %v8760_v60 = vadd.f32 %v938_v57, %v8656_v27 }
 0x1b5   : > { %1507 = vst [vmem:[#allocation2 + $0x20] sm:$0xff] %v859_v56  ;;  %v7585_v2 = vpop.f32.mrf.mxu1  ;;  %v969_v19 = vsub.f32 %v859_v56, %v8656_v27  ;;  %v1324_v40 = vadd.f32 %v1323_v36, %v1287_v30  ;;  %v980_v36 = vsub.f32 %v8699_v3, %v8656_v27 }
 0x1b6   : > { %v863_v4 = vpop.f32.mrf.mxu0  ;;  %1527 = vst [vmem:[#allocation2 + $0x58] sm:$0xff] %v8760_v60  ;;  %v974_v2 = vsub.f32 %v8662_v32, %v8656_v27  ;;  %v977_v32 = vsub.f32 %v8684_v49, %v8656_v27 }
 0x1b7   : > { %v864_v10 = vadd.f32 %v863_v4, %v8656_v27  ;;  %v943_v11 = vpop.f32.mrf.mxu1  ;;  %v1288_v41 = vmul.f32 %v969_v19, %v969_v19  ;;  %v1241_v47 = vadd.f32 %v1240_v39, %v969_v19  ;;  %v1294_v19 = vmul.f32 %v975_v5, %v975_v5 }
 0x1b8   : > { %v7548_v13 = vpop.f32.mrf.mxu0  ;;  %v8767_v14 = vadd.f32 %v943_v11, %v8656_v27  ;;  %v1293_v0 = vmul.f32 %v974_v2, %v974_v2 }
 0x1b9   : > { %1508 = vst [vmem:[#allocation2 + $0x128] sm:$0xff] %v864_v10  ;;  %v7588_v21 = vpop.f32.mrf.mxu1  ;;  %v970_v31 = vsub.f32 %v864_v10, %v8656_v27  ;;  %v1325_v46 = vadd.f32 %v1324_v40, %v1288_v41  ;;  %v976_v13 = vsub.f32 %v8678_v43, %v8656_v27  ;;  %v982_v40 = vsub.f32 %v8709_v15, %v8656_v27 }
 0x1ba   : > { %v866_v22 = vpop.f32.mrf.mxu0  ;;  %1528 = vst [vmem:[#allocation2 + $0x118] sm:$0xff] %v8767_v14  ;;  %v985_v15 = vsub.f32 %v8733_v53, %v8656_v27  ;;  %v988_v53 = vsub.f32 %v8754_v44, %v8656_v27 }
 0x1bb   : > { %v867_v34 = vadd.f32 %v866_v22, %v8656_v27  ;;  %v946_v12 = vpop.f32.mrf.mxu1  ;;  %v1289_v48 = vmul.f32 %v970_v31, %v970_v31  ;;  %v1242_v51 = vadd.f32 %v1241_v47, %v970_v31  ;;  %v1295_v22 = vmul.f32 %v976_v13, %v976_v13 }
 0x1bc   : > { %v7549_v26 = vpop.f32.mrf.mxu0  ;;  %v8774_v35 = vadd.f32 %v946_v12, %v8656_v27  ;;  %v1296_v31 = vmul.f32 %v977_v32, %v977_v32 }
 0x1bd   : > { %v971_v29 = vsub.f32 %v867_v34, %v8656_v27  ;;  %1509 = vst [vmem:[#allocation2 + $0x50] sm:$0xff] %v867_v34  ;;  %v7589_v18 = vpop.f32.mrf.mxu1  ;;  %v1326_v52 = vadd.f32 %v1325_v46, %v1289_v48  ;;  %v979_v34 = vsub.f32 %v8694_v61, %v8656_v27  ;;  %v1297_v26 = vmul.f32 %v978_v25, %v978_v25 }
 0x1be   : > { %v871_v42 = vpop.f32.mrf.mxu0  ;;  %1529 = vst [vmem:[#allocation2 + $0xb8] sm:$0xff] %v8774_v35  ;;  %v1301_v46 = vmul.f32 %v982_v40, %v982_v40 }
 0x1bf   : > { %v872_v50 = vadd.f32 %v871_v42, %v8656_v27  ;;  %v1290_v54 = vmul.f32 %v971_v29, %v971_v29  ;;  %v1243_v45 = vadd.f32 %v1242_v51, %v971_v29  ;;  %v1298_v41 = vmul.f32 %v979_v34, %v979_v34 }
 0x1c0   : > { %v7552_v33 = vpop.f32.mrf.mxu0  ;;  %v981_v29 = vsub.f32 %v8704_v9, %v8656_v27  ;;  %v1299_v42 = vmul.f32 %v980_v36, %v980_v36  ;;  %v984_v51 = vsub.f32 %v8726_v38, %v8656_v27 }
 0x1c1   : > { %v972_v56 = vsub.f32 %v872_v50, %v8656_v27  ;;  %1510 = vst [vmem:[#allocation2 + $0x8] sm:$0xff] %v872_v50  ;;  %v1327_v58 = vadd.f32 %v1326_v52, %v1290_v54  ;;  %v983_v50 = vsub.f32 %v8716_v23, %v8656_v27  ;;  %v986_v23 = vsub.f32 %v8740_v7, %v8656_v27 }
 0x1c2   : > { %v874_v57 = vpop.f32.mrf.mxu0  ;;  %v1300_v48 = vmul.f32 %v981_v29, %v981_v29  ;;  %v991_v7 = vsub.f32 %v8774_v35, %v8656_v27 }
 0x1c3   : > { %v1291_v59 = vmul.f32 %v972_v56, %v972_v56  ;;  %v875_v62 = vadd.f32 %v874_v57, %v8656_v27  ;;  %v1244_v63 = vadd.f32 %v1243_v45, %v972_v56  ;;  %v1302_v56 = vmul.f32 %v983_v50, %v983_v50 }
 0x1c4   : > { %v7553_v1 = vpop.f32.mrf.mxu0  ;;  %v1033_v45 = vadd.s32 296, %v8652_v24 }
 0x1c5   : > { %v973_v4 = vsub.f32 %v875_v62, %v8656_v27  ;;  %1511 = vst [vmem:[#allocation2 + $0x98] sm:$0xff] %v875_v62  ;;  %v1328_v8 = vadd.f32 %v1327_v58, %v1291_v59  ;;  %v1303_v62 = vmul.f32 %v984_v51, %v984_v51 }
 0x1c6   : > { %vm1111_vm1 = vcmp.lt.s32.totalorder %v1033_v45, 300 }
 0x1c7   : > { %v1245_v10 = vadd.f32 %v1244_v63, %v973_v4  ;;  %v1292_v11 = vmul.f32 %v973_v4, %v973_v4  ;;  %v1304_v63 = vmul.f32 %v985_v15, %v985_v15 }
 0x1c9   : > { %v1246_v16 = vadd.f32 %v1245_v10, %v974_v2  ;;  %v1329_v17 = vadd.f32 %v1328_v8, %v1292_v11  ;;  %v987_v2 = vsub.f32 %v8747_v28, %v8656_v27  ;;  %v1305_v8 = vmul.f32 %v986_v23, %v986_v23 }
 0x1ca   : > { %v7321_v28 = vsel %vm1111_vm1, 1.0, %v8315_v20 }
 0x1cb   : > { %v1247_v21 = vadd.f32 %v1246_v16, %v975_v5  ;;  %v1330_v6 = vadd.f32 %v1329_v17, %v1293_v0  ;;  %v1306_v24 = vmul.f32 %v987_v2, %v987_v2  ;;  %v989_v0 = vsub.f32 %v8760_v60, %v8656_v27 }
 0x1cc   : > { %v1307_v17 = vmul.f32 %v988_v53, %v988_v53 }
 0x1cd   : > { %v1248_v37 = vadd.f32 %v1247_v21, %v976_v13  ;;  %v1331_v30 = vadd.f32 %v1330_v6, %v1294_v19  ;;  %v990_v19 = vsub.f32 %v8767_v14, %v8656_v27  ;;  %v1308_v44 = vmul.f32 %v989_v0, %v989_v0  ;;  %v1226_v14 = vld [vmem:[#allocation4] sm:$0x1] }
 0x1ce   : > { %v1225_v6 = vmul.f32 %v7321_v28, %v991_v7 }
 0x1cf   : > { %v1249_v12 = vadd.f32 %v1248_v37, %v977_v32  ;;  %v1332_v43 = vadd.f32 %v1331_v30, %v1295_v22  ;;  %v1309_v37 = vmul.f32 %v990_v19, %v990_v19 }
 0x1d1   : > { %v1250_v39 = vadd.f32 %v1249_v12, %v978_v25  ;;  %v1333_v49 = vadd.f32 %v1332_v43, %v1296_v31  ;;  %v1310_v31 = vmul.f32 %v1225_v6, %v991_v7 }
 0x1d3   : > { %v1334_v18 = vadd.f32 %v1333_v49, %v1297_v26  ;;  %v1251_v55 = vadd.f32 %v1250_v39, %v979_v34 }
 0x1d5   : > { %v1252_v47 = vadd.f32 %v1251_v55, %v980_v36  ;;  %v1335_v61 = vadd.f32 %v1334_v18, %v1298_v41  ;;  %v1272_v18 = vld [vmem:[#allocation5] sm:$0x1] }
 0x1d7   : > { %v1253_v33 = vadd.f32 %v1252_v47, %v981_v29  ;;  %v1336_v3 = vadd.f32 %v1335_v61, %v1299_v42 }
 0x1d9   : > { %v1254_v54 = vadd.f32 %v1253_v33, %v982_v40  ;;  %v1337_v9 = vadd.f32 %v1336_v3, %v1300_v48 }
 0x1db   : > { %v1255_v57 = vadd.f32 %v1254_v54, %v983_v50  ;;  %v1338_v52 = vadd.f32 %v1337_v9, %v1301_v46 }
 0x1dd   : > { %v1256_v59 = vadd.f32 %v1255_v57, %v984_v51  ;;  %v1339_v1 = vadd.f32 %v1338_v52, %v1302_v56 }
 0x1df   : > { %v1340_v38 = vadd.f32 %v1339_v1, %v1303_v62  ;;  %v1257_v58 = vadd.f32 %v1256_v59, %v985_v15 }
 0x1e1   : > { %v1341_v4 = vadd.f32 %v1340_v38, %v1304_v63  ;;  %v1258_v5 = vadd.f32 %v1257_v58, %v986_v23 }
 0x1e3   : > { %v1342_v10 = vadd.f32 %v1341_v4, %v1305_v8  ;;  %v1259_v11 = vadd.f32 %v1258_v5, %v987_v2 }
 0x1e5   : > { %v1343_v13 = vadd.f32 %v1342_v10, %v1306_v24  ;;  %v1260_v16 = vadd.f32 %v1259_v11, %v988_v53 }
 0x1e7   : > { %v1344_v32 = vadd.f32 %v1343_v13, %v1307_v17  ;;  %v1261_v21 = vadd.f32 %v1260_v16, %v989_v0 }
 0x1e9   : > { %v1345_v22 = vadd.f32 %v1344_v32, %v1308_v44  ;;  %v1262_v25 = vadd.f32 %v1261_v21, %v990_v19 }
 0x1eb   : > { %v1346_v30 = vadd.f32 %v1345_v22, %v1309_v37  ;;  %v1263_v60 = vadd.f32 %v1262_v25, %v1225_v6 }
 0x1ed   : > { %v1264_v34 = vrot.slane %v1263_v60, 4  ;;  %v1347_v35 = vadd.f32 %v1346_v30, %v1310_v31 }
 0x1ef   : > { %v1265_v12 = vadd.f32 %v1264_v34, %v1263_v60  ;;  %v1348_v20 = vrot.slane %v1347_v35, 4 }
 0x1f1   : > { %v1266_v43 = vrot.slane %v1265_v12, 2  ;;  %v1349_v26 = vadd.f32 %v1348_v20, %v1347_v35 }
 0x1f3   : > { %v1267_v36 = vadd.f32 %v1266_v43, %v1265_v12  ;;  %v1350_v39 = vrot.slane %v1349_v26, 2 }
 0x1f5   : > { %v1268_v49 = vrot.slane %v1267_v36, 1  ;;  %v1351_v27 = vadd.f32 %v1350_v39, %v1349_v26 }
 0x1f7   : > { %v1269_v41 = vadd.f32 %v1268_v49, %v1267_v36  ;;  %v1352_v29 = vrot.slane %v1351_v27, 1 }
 0x1f9   : > { %v1270_v55 = vadd.f32 %v1269_v41, %v1226_v14  ;;  %v1353_v42 = vadd.f32 %v1352_v29, %v1351_v27 }
 0x1fb   : > { %1271 = vst [vmem:[#allocation4] sm:$0x1] %v1270_v55  ;;  %v1354_v40 = vadd.f32 %v1353_v42, %v1272_v18 }
 0x1fd   : > { %1355 = vst [vmem:[#allocation5] sm:$0x1] %v1354_v40 }
 0x1fe PF: > { %p1569_p12 = scmp.le.s32.totalorder %s8296_s14, 2 }
 0x200   : > { %p1570_p13 = pnand %p1569_p12, %p609_p11 }
 0x202   : > { %1573 = sbr.rel (%p1570_p13) target bundleno = 892 (0x37c), region = 96 }
 0x207   : > { %v7824_v47 = vld [vmem:[%s8528_s23 + $0x38] sm:$0xff]   ;;  %v10825_v61 = vmov 0.0   ;;  %v7825_v48 = vld [vmem:[%s8528_s23 + $0x30] sm:$0xff]   ;;  %vm8318_vm2 = vmmov 0   ;;  %v7826_v50 = vld [vmem:[%s8528_s23 + $0x28] sm:$0xff]  }
 0x208   : > { %7590 = vmatprep.subr.bf16.mxu0 %v10825_v61  ;;  %7698 = vmatprep.subr.bf16.mxu1 %v10825_v61  ;;  %v1576_v33 = vld [vmem:[#allocation2 + $0xb0] sm:$0xff]  ;;  %v8835_v46 = vld [vmem:[#allocation6] ss:$0 sm:$0xff]  ;;  %v8840_v9 = vld [vmem:[#allocation7] ss:$0 sm:$0xff] }
 0x209   : > { %7591 = vmatpush3.bf16.msra.mxu0 %v7824_v47  ;;  %7606 = vmatprep.mubr.msk.bf16.mxu0 %vm8318_vm2, %v10825_v61  ;;  %v1577_v3 = vld [vmem:[#allocation2 + $0xd0] sm:$0xff]  ;;  %v1621_v51 = vmul.f32 %v8835_v46, %v1576_v33  ;;  %v7827_v56 = vld [vmem:[%s8528_s23 + $0x20] sm:$0xff]   ;;  %v1581_v23 = vld [vmem:[#allocation2 + $0x38] sm:$0xff] }
 0x20a   : > { %7592 = vmatprep.subr.bf16.mxu0 %v10825_v61  ;;  %7706 = vmatpush3.bf16.msra.mxu1 %v7824_v47  ;;  %v1622_v54 = vmul.f32 %v8835_v46, %v1577_v3  ;;  %v1578_v57 = vld [vmem:[#allocation2 + $0x10] sm:$0xff]  ;;  %v1579_v52 = vld [vmem:[#allocation2 + $0x48] sm:$0xff]  ;;  %v1580_v1 = vld [vmem:[#allocation2 + $0x120] sm:$0xff]  ;;  %v1626_v38 = vmul.f32 %v8835_v46, %v1581_v23 }
 0x20b   : > { %7699 = vmatprep.subr.bf16.mxu1 %v10825_v61  ;;  %7646 = vmatprep.mubr.msk.bf16.mxu1 %vm8318_vm2, %v10825_v61  ;;  %v8845_v15 = vadd.f32 %v8840_v9, %v1621_v51  ;;  %v1623_v59 = vmul.f32 %v8835_v46, %v1578_v57  ;;  %v1624_v62 = vmul.f32 %v8835_v46, %v1579_v52  ;;  %v1582_v58 = vld [vmem:[#allocation2 + $0x70] sm:$0xff]  ;;  %v1583_v53 = vld [vmem:[#allocation2 + $0x100] sm:$0xff]  ;;  %v1584_v28 = vld [vmem:[#allocation2 + $0x108] sm:$0xff] }
 0x20c   : > { %v8848_v45 = vadd.f32 %v8840_v9, %v1622_v54  ;;  %v1625_v2 = vmul.f32 %v8835_v46, %v1580_v1  ;;  %v7828_v24 = vld [vmem:[%s8528_s23 + $0x18] sm:$0xff]   ;;  %v8868_v11 = vadd.f32 %v8840_v9, %v1626_v38  ;;  %v1627_v0 = vmul.f32 %v8835_v46, %v1582_v58  ;;  %v1585_v13 = vld [vmem:[#allocation2 + $0x88] sm:$0xff]  ;;  %v1597_v22 = vld [vmem:[#allocation2 + $0x90] sm:$0xff] }
 0x20d   : > { %7593 = vmatpush3.bf16.msra.mxu0 %v7825_v48  ;;  %v7324_v63 = vmul.f32 -1.442695, %v8845_v15  ;;  %v8857_v5 = vadd.f32 %v8840_v9, %v1623_v59  ;;  %v8860_v8 = vadd.f32 %v8840_v9, %v1624_v62  ;;  %v1628_v7 = vmul.f32 %v8835_v46, %v1583_v53  ;;  %v1596_v6 = vld [vmem:[#allocation2 + $0xa8] sm:$0xff]  ;;  %v1586_v60 = vld [vmem:[#allocation2 + $0x110] sm:$0xff]  ;;  %v1598_v39 = vld [vmem:[#allocation2 + $0xe0] sm:$0xff] }
 0x20e   : > { %7594 = vmatprep.subr.bf16.mxu0 %v10825_v61  ;;  %7707 = vmatpush3.bf16.msra.mxu1 %v7825_v48  ;;  %v7325_v4 = vmul.f32 -1.442695, %v8848_v45  ;;  %v8865_v10 = vadd.f32 %v8840_v9, %v1625_v2  ;;  %v1629_v19 = vmul.f32 %v8835_v46, %v1584_v28  ;;  %v7329_v21 = vmul.f32 -1.442695, %v8868_v11  ;;  %v7829_v31 = vld [vmem:[%s8528_s23 + $0x10] sm:$0xff]   ;;  %v1588_v42 = vld [vmem:[#allocation2 + $0x40] sm:$0xff] }
 0x20f   : > { %7700 = vmatprep.subr.bf16.mxu1 %v10825_v61  ;;  %7832 = vpow2.f32 %v7324_v63  ;;  %v7326_v16 = vmul.f32 -1.442695, %v8857_v5  ;;  %v7327_v17 = vmul.f32 -1.442695, %v8860_v8  ;;  %v8879_v44 = vadd.f32 %v8840_v9, %v1627_v0  ;;  %v1587_v20 = vld [vmem:[#allocation2 + $0xf0] sm:$0xff]  ;;  %v1599_v41 = vld [vmem:[#allocation2 + $0xf8] sm:$0xff] }
 0x210   : > { %7834 = vpow2.f32 %v7325_v4  ;;  %v7328_v32 = vmul.f32 -1.442695, %v8865_v10  ;;  %v8883_v25 = vadd.f32 %v8840_v9, %v1628_v7  ;;  %v1630_v37 = vmul.f32 %v8835_v46, %v1585_v13  ;;  %v1589_v40 = vld [vmem:[#allocation2 + $0xc8] sm:$0xff]  ;;  %v1601_v62 = vld [vmem:[#allocation2 + $0x78] sm:$0xff]  ;;  %v1590_v1 = vld [vmem:[#allocation2 + $0x30] sm:$0xff] }
 0x211   : > { %7595 = vmatpush3.bf16.msra.mxu0 %v7826_v50  ;;  %7836 = vpow2.f32 %v7326_v16  ;;  %v8887_v30 = vadd.f32 %v8840_v9, %v1629_v19  ;;  %v7330_v34 = vmul.f32 -1.442695, %v8879_v44  ;;  %v1641_v35 = vmul.f32 %v8835_v46, %v1596_v6  ;;  %v7830_v47 = vld [vmem:[%s8528_s23 + $0x8] sm:$0xff]   ;;  %v7831_v58 = vld [vmem:[%s8528_s23] sm:$0xff]  }
 0x212   : > { %7596 = vmatprep.subr.bf16.mxu0 %v10825_v61  ;;  %7708 = vmatpush3.bf16.msra.mxu1 %v7826_v50  ;;  %7838 = vpow2.f32 %v7327_v17  ;;  %v1642_v12 = vmul.f32 %v8835_v46, %v1597_v22  ;;  %v7331_v43 = vmul.f32 -1.442695, %v8883_v25  ;;  %v8896_v26 = vadd.f32 %v8840_v9, %v1630_v37 }
 0x213   : > { %7701 = vmatprep.subr.bf16.mxu1 %v10825_v61  ;;  %7840 = vpow2.f32 %v7328_v32  ;;  %v7332_v36 = vmul.f32 -1.442695, %v8887_v30  ;;  %v8900_v49 = vadd.f32 %v8840_v9, %v1641_v35  ;;  %v1631_v14 = vmul.f32 %v8835_v46, %v1586_v60  ;;  %v1602_v60 = vld [vmem:[#allocation2 + $0xc0] sm:$0xff] }
 0x214   : > { %7842 = vpow2.f32 %v7329_v21  ;;  %v8903_v27 = vadd.f32 %v8840_v9, %v1642_v12  ;;  %v7333_v29 = vmul.f32 -1.442695, %v8896_v26  ;;  %v1632_v18 = vmul.f32 %v8835_v46, %v1587_v20 }
 0x215   : > { %7597 = vmatpush3.bf16.msra.mxu0 %v7827_v56  ;;  %7844 = vpow2.f32 %v7330_v34  ;;  %v1643_v55 = vmul.f32 %v8835_v46, %v1598_v39  ;;  %v7344_v48 = vmul.f32 -1.442695, %v8900_v49  ;;  %v8914_v33 = vadd.f32 %v8840_v9, %v1631_v14 }
 0x216   : > { %7598 = vmatprep.subr.bf16.mxu0 %v10825_v61  ;;  %7709 = vmatpush3.bf16.msra.mxu1 %v7827_v56  ;;  %7846 = vpow2.f32 %v7331_v43  ;;  %v7345_v50 = vmul.f32 -1.442695, %v8903_v27  ;;  %v8918_v3 = vadd.f32 %v8840_v9, %v1632_v18  ;;  %v1644_v51 = vmul.f32 %v8835_v46, %v1599_v41  ;;  %v1600_v56 = vld [vmem:[#allocation2 + $0xa0] sm:$0xff]  ;;  %v1592_v43 = vld [vmem:[#allocation2 + $0x128] sm:$0xff] }
 0x217   : > { %7702 = vmatprep.subr.bf16.mxu1 %v10825_v61  ;;  %7848 = vpow2.f32 %v7332_v36  ;;  %v8922_v54 = vadd.f32 %v8840_v9, %v1643_v55  ;;  %v7334_v57 = vmul.f32 -1.442695, %v8914_v33  ;;  %v1633_v52 = vmul.f32 %v8835_v46, %v1588_v42 }
 0x218   : > { %7850 = vpow2.f32 %v7333_v29  ;;  %v1634_v59 = vmul.f32 %v8835_v46, %v1589_v40  ;;  %v7335_v23 = vmul.f32 -1.442695, %v8918_v3  ;;  %v8930_v2 = vadd.f32 %v8840_v9, %v1644_v51  ;;  %v1593_v29 = vld [vmem:[#allocation2 + $0x50] sm:$0xff] }
 0x219   : > { %7599 = vmatpush3.bf16.msra.mxu0 %v7828_v24  ;;  %7852 = vpow2.f32 %v7344_v48  ;;  %v7346_v38 = vmul.f32 -1.442695, %v8922_v54  ;;  %v8935_v63 = vadd.f32 %v8840_v9, %v1633_v52  ;;  %v1645_v53 = vmul.f32 %v8835_v46, %v1600_v56 }
 0x21a   : > { %7600 = vmatprep.subr.bf16.mxu0 %v10825_v61  ;;  %7710 = vmatpush3.bf16.msra.mxu1 %v7828_v24  ;;  %7854 = vpow2.f32 %v7345_v50  ;;  %v8938_v4 = vadd.f32 %v8840_v9, %v1634_v59  ;;  %v1591_v24 = vld [vmem:[#allocation2 + $0x20] sm:$0xff]  ;;  %v7347_v0 = vmul.f32 -1.442695, %v8930_v2  ;;  %v1646_v7 = vmul.f32 %v8835_v46, %v1601_v62  ;;  %v1604_v62 = vld [vmem:[#allocation2 + $0xe8] sm:$0xff] }
 0x21b   : > { %7703 = vmatprep.subr.bf16.mxu1 %v10825_v61  ;;  %7856 = vpow2.f32 %v7334_v57  ;;  %v1635_v28 = vmul.f32 %v8835_v46, %v1590_v1  ;;  %v8946_v16 = vadd.f32 %v8840_v9, %v1645_v53  ;;  %v1636_v32 = vmul.f32 %v8835_v46, %v1591_v24  ;;  %v8986_v53 = vld [vmem:[%s565_s29] sm:$0x1] }
 0x21c   : > { %v7833_v13 = vpop.eup %7832  ;;  %7858 = vpow2.f32 %v7335_v23  ;;  %v8951_v22 = vmul.f32 -1.442695, %v8935_v63  ;;  %v8954_v37 = vadd.f32 %v8840_v9, %v1646_v7  ;;  %v8957_v12 = vmul.f32 -1.442695, %v8938_v4  ;;  %10857 = vst [vmem:[#allocation21_spill] sm:$0xff] %v8986_v53 }
 0x21d   : > { %7601 = vmatpush3.bf16.msra.mxu0 %v7829_v31  ;;  %v7835_v17 = vpop.eup %7834  ;;  %v1818_v19 = vadd.f32 1.0, %v7833_v13  ;;  %7860 = vpow2.f32 %v7346_v38  ;;  %v8960_v20 = vadd.f32 %v8840_v9, %v1635_v28  ;;  %v8963_v14 = vmul.f32 -1.442695, %v8946_v16  ;;  %v1594_v13 = vld [vmem:[#allocation2 + $0x8] sm:$0xff]  ;;  %2363 = vst [vmem:[#allocation8] sm:$0x1] %v8986_v53 }
 0x21e   : > { %7602 = vmatprep.subr.bf16.mxu0 %v10825_v61  ;;  %7711 = vmatpush3.bf16.msra.mxu1 %v7829_v31  ;;  %v7837_v21 = vpop.eup %7836  ;;  %v1819_v6 = vadd.f32 1.0, %v7835_v17  ;;  %7862 = vpow2.f32 %v7347_v0  ;;  %v1603_v31 = vld [vmem:[#allocation2 + $0x80] sm:$0xff]  ;;  %v8966_v41 = vadd.f32 %v8840_v9, %v1636_v32  ;;  %v1647_v42 = vmul.f32 %v8835_v46, %v1602_v60 }
 0x21f   : > { %7704 = vmatprep.subr.bf16.mxu1 %v10825_v61  ;;  %v7839_v34 = vpop.eup %7838  ;;  %7864 = vrcp.f32 %v1818_v19  ;;  %v1820_v35 = vadd.f32 1.0, %v7837_v21  ;;  %v1648_v40 = vmul.f32 %v8835_v46, %v1603_v31  ;;  %v8971_v50 = vmul.f32 -1.442695, %v8954_v37 }
 0x220   : > { %v7841_v36 = vpop.eup %7840  ;;  %7866 = vrcp.f32 %v1819_v6  ;;  %v1821_v39 = vadd.f32 1.0, %v7839_v34  ;;  %v1637_v51 = vmul.f32 %v8835_v46, %v1592_v43  ;;  %v8975_v52 = vmul.f32 -1.442695, %v8960_v20  ;;  %v1595_v6 = vld [vmem:[#allocation2 + $0x98] sm:$0xff] }
 0x221   : > { %7603 = vmatpush3.bf16.msra.mxu0 %v7830_v47  ;;  %v7843_v18 = vpop.eup %7842  ;;  %7868 = vrcp.f32 %v1820_v35  ;;  %v1822_v55 = vadd.f32 1.0, %v7841_v36  ;;  %v1638_v59 = vmul.f32 %v8835_v46, %v1593_v29  ;;  %v8979_v38 = vmul.f32 -1.442695, %v8966_v41 }
 0x222   : > { %7604 = vmatprep.subr.bf16.mxu0 %v10825_v61  ;;  %7712 = vmatpush3.bf16.msra.mxu1 %v7830_v47  ;;  %v7845_v47 = vpop.eup %7844  ;;  %7870 = vrcp.f32 %v1821_v39  ;;  %v1823_v48 = vadd.f32 1.0, %v7843_v18  ;;  %v8989_v7 = vadd.f32 %v8840_v9, %v1647_v42  ;;  %v8992_v28 = vadd.f32 %v8840_v9, %v1648_v40 }
 0x223   : > { %7705 = vmatprep.subr.bf16.mxu1 %v10825_v61  ;;  %v7847_v56 = vpop.eup %7846  ;;  %7872 = vrcp.f32 %v1822_v55  ;;  %v1824_v57 = vadd.f32 1.0, %v7845_v47  ;;  %v8996_v32 = vadd.f32 %v8840_v9, %v1637_v51  ;;  %v1649_v21 = vmul.f32 %v8835_v46, %v1604_v62  ;;  %v1609_v61 = vld [vmem:[#allocation2 + $0x68] sm:$0xff] }
 0x224   : > { %v7849_v1 = vpop.eup %7848  ;;  %7874 = vrcp.f32 %v1823_v48  ;;  %v1825_v23 = vadd.f32 1.0, %v7847_v56  ;;  %v9000_v34 = vadd.f32 %v8840_v9, %v1638_v59  ;;  %v1639_v29 = vmul.f32 %v8835_v46, %v1594_v13 }
 0x225   : > { %7605 = vmatpush3.bf16.msra.mxu0 %v7831_v58  ;;  %v7851_v24 = vpop.eup %7850  ;;  %7876 = vrcp.f32 %v1824_v57  ;;  %v1826_v0 = vadd.f32 1.0, %v7849_v1  ;;  %v9004_v39 = vadd.f32 %v8840_v9, %v1649_v21  ;;  %v1640_v40 = vmul.f32 %v8835_v46, %v1595_v6  ;;  %v1972_v6 = vld [vmem:[#allocation3 + $0xc8] sm:$0xff] }
 0x226   : > { %7713 = vmatpush3.bf16.msra.mxu1 %v7831_v58  ;;  %v1605_v58 = vld [vmem:[#allocation2] sm:$0xff]  ;;  %v7853_v17 = vpop.eup %7852  ;;  %7878 = vrcp.f32 %v1825_v23  ;;  %v1827_v19 = vadd.f32 1.0, %v7851_v24  ;;  %v9012_v51 = vmul.f32 -1.442695, %v8989_v7  ;;  %v9015_v56 = vadd.f32 %v8840_v9, %v1639_v29  ;;  %v1606_v23 = vld [vmem:[#allocation2 + $0xd8] sm:$0xff]  ;;  %v1971_v24 = vld [vmem:[#allocation3 + $0x80] sm:$0xff] }
 0x227   : > { %v7855_v60 = vpop.eup %7854  ;;  %7880 = vrcp.f32 %v1826_v0  ;;  %v1838_v31 = vadd.f32 1.0, %v7853_v17  ;;  %v1650_v35 = vmul.f32 %v8835_v46, %v1605_v58  ;;  %v9018_v62 = vmul.f32 -1.442695, %v8992_v28  ;;  %v1973_v29 = vld [vmem:[#allocation3 + $0xb8] sm:$0xff] }
 0x228   : > { %v7857_v43 = vpop.eup %7856  ;;  %7882 = vrcp.f32 %v1827_v19  ;;  %v1839_v36 = vadd.f32 1.0, %v7855_v60  ;;  %v9021_v1 = vadd.f32 %v8840_v9, %v1640_v40  ;;  %v9024_v13 = vmul.f32 -1.442695, %v8996_v32 }
 0x229   : > { %v7859_v18 = vpop.eup %7858  ;;  %7884 = vrcp.f32 %v1838_v31  ;;  %v1828_v55 = vadd.f32 1.0, %v7857_v43  ;;  %v9008_v42 = vadd.f32 %v8840_v9, %v1650_v35  ;;  %v9027_v17 = vmul.f32 -1.442695, %v9000_v34  ;;  %v1607_v35 = vld [vmem:[#allocation2 + $0x28] sm:$0xff] }
 0x22a   : > { %v7861_v47 = vpop.eup %7860  ;;  %7886 = vrcp.f32 %v1839_v36  ;;  %v1829_v48 = vadd.f32 1.0, %v7859_v18  ;;  %v9031_v60 = vmul.f32 -1.442695, %v9004_v39  ;;  %v9038_v18 = vmul.f32 -1.442695, %v9015_v56 }
 0x22b   : > { %v7863_v57 = vpop.eup %7862  ;;  %7888 = vrcp.f32 %v1828_v55  ;;  %v1840_v59 = vadd.f32 1.0, %v7861_v47  ;;  %v9034_v31 = vmul.f32 -1.442695, %v9008_v42  ;;  %v1651_v55 = vmul.f32 %v8835_v46, %v1606_v23 }
 0x22c   : > { %v7865_v58 = vpop.eup %7864  ;;  %7890 = vrcp.f32 %v1829_v48  ;;  %v1841_v0 = vadd.f32 1.0, %v7863_v57  ;;  %v1974_v57 = vld [vmem:[#allocation3 + $0x70] sm:$0xff]  ;;  %v1652_v23 = vmul.f32 %v8835_v46, %v1607_v35  ;;  %v1977_v35 = vld [vmem:[#allocation3 + $0x120] sm:$0xff] }
 0x22d   : > { %v7867_v19 = vpop.eup %7866  ;;  %v1932_v21 = vmul.f32 %v7865_v58, %v8845_v15  ;;  %7892 = vrcp.f32 %v1840_v59  ;;  %v1608_v15 = vld [vmem:[#allocation2 + $0x60] sm:$0xff]  ;;  %v9044_v59 = vmul.f32 -1.442695, %v9021_v1 }
 0x22e   : > { %v7869_v43 = vpop.eup %7868  ;;  %v1933_v36 = vmul.f32 %v7867_v19, %v8848_v45  ;;  %7894 = vrcp.f32 %v1841_v0  ;;  %v1975_v19 = vld [vmem:[#allocation3 + $0x98] sm:$0xff] }
 0x22f   : > { %v7871_v40 = vpop.eup %7870  ;;  %v2009_v47 = vadd.f32 %v1971_v24, %v1932_v21  ;;  %v1934_v48 = vmul.f32 %v7869_v43, %v8857_v5  ;;  %7896 = vpow2.f32 %v8951_v22  ;;  %v1976_v22 = vld [vmem:[#allocation3 + $0xa8] sm:$0xff]  ;;  %v1653_v21 = vmul.f32 %v8835_v46, %v1608_v15 }
 0x230   : > { %v7873_v58 = vpop.eup %7872  ;;  %v2010_v45 = vadd.f32 %v1972_v6, %v1933_v36  ;;  %v1935_v0 = vmul.f32 %v7871_v40, %v8860_v8  ;;  %7898 = vpow2.f32 %v8957_v12  ;;  %v1654_v15 = vmul.f32 %v8835_v46, %v1609_v61 }
 0x231   : > { %v7875_v53 = vpop.eup %7874  ;;  %2047 = vst [vmem:[#allocation3 + $0x80] sm:$0xff] %v2009_v47  ;;  %v9049_v24 = vadd.f32 %v1973_v29, %v1934_v48  ;;  %v1936_v5 = vmul.f32 %v7873_v58, %v8865_v10  ;;  %7900 = vpow2.f32 %v8963_v14  ;;  %v1978_v14 = vld [vmem:[#allocation3 + $0xd0] sm:$0xff]  ;;  %v10858_v48 = vmov 0.0  }
 0x232   : > { %v7877_v6 = vpop.eup %7876  ;;  %2048 = vst [vmem:[#allocation3 + $0xc8] sm:$0xff] %v2010_v45  ;;  %v2086_v8 = vpack.c.bf16 %v2010_v45, %v2009_v47  ;;  %v9054_v43 = vadd.f32 %v1974_v57, %v1935_v0  ;;  %v1937_v12 = vmul.f32 %v7875_v53, %v8868_v11  ;;  %7902 = vpow2.f32 %v8971_v50  ;;  %v1979_v53 = vld [vmem:[#allocation3 + $0xf0] sm:$0xff]  ;;  %v1980_v57 = vld [vmem:[#allocation3 + $0x100] sm:$0xff]  ;;  %v1991_v45 = vld [vmem:[#allocation3 + $0xd8] sm:$0xff] }
 0x233   : > { %v7879_v36 = vpop.eup %7878  ;;  %2049 = vst [vmem:[#allocation3 + $0xb8] sm:$0xff] %v9049_v24  ;;  %v9059_v29 = vadd.f32 %v1975_v19, %v1936_v5  ;;  %v1938_v10 = vmul.f32 %v7877_v6, %v8879_v44  ;;  %7904 = vpow2.f32 %v8975_v52  ;;  %v9070_v47 = vadd.f32 %v8840_v9, %v1651_v55  ;;  %v1992_v5 = vld [vmem:[#allocation3 + $0x128] sm:$0xff]  ;;  %v1981_v6 = vld [vmem:[#allocation3 + $0xf8] sm:$0xff] }
 0x234   : > { %v7881_v40 = vpop.eup %7880  ;;  %7607 = vmatmul.mubr.bf16.vlgmr.msra.gmra.mxu0 %v2086_v8  ;;  %2050 = vst [vmem:[#allocation3 + $0x70] sm:$0xff] %v9054_v43  ;;  %v9065_v11 = vadd.f32 %v1976_v22, %v1937_v12  ;;  %v1939_v50 = vmul.f32 %v7879_v36, %v8883_v25  ;;  %7906 = vpow2.f32 %v8979_v38  ;;  %v9080_v25 = vadd.f32 %v8840_v9, %v1653_v21  ;;  %v1982_v12 = vld [vmem:[#allocation3 + $0x38] sm:$0xff] }
 0x235   : > { %v7883_v44 = vpop.eup %7882  ;;  %7610 = vmatprep.mubr.msk.bf16.mxu0 %vm8318_vm2, %v10858_v48  ;;  %2051 = vst [vmem:[#allocation3 + $0x98] sm:$0xff] %v9059_v29  ;;  %v9075_v61 = vadd.f32 %v1977_v35, %v1938_v10  ;;  %v1940_v52 = vmul.f32 %v7881_v40, %v8887_v30  ;;  %7908 = vpow2.f32 %v9012_v51  ;;  %v9088_v0 = vadd.f32 %v8840_v9, %v1652_v23  ;;  %v1993_v36 = vld [vmem:[#allocation3 + $0x118] sm:$0xff]  ;;  %v1610_v10 = vld [vmem:[#allocation2 + $0x18] sm:$0xff] }
 0x236   : > { %v7885_v38 = vpop.eup %7884  ;;  %2052 = vst [vmem:[#allocation3 + $0xa8] sm:$0xff] %v9065_v11  ;;  %v9083_v55 = vadd.f32 %v1978_v14, %v1939_v50  ;;  %v1941_v58 = vmul.f32 %v7883_v44, %v8896_v26  ;;  %7910 = vpow2.f32 %v9018_v62  ;;  %v9096_v22 = vadd.f32 %v8840_v9, %v1654_v15  ;;  %v1994_v15 = vld [vmem:[#allocation3 + $0x78] sm:$0xff] }
 0x237   : > { %v7887_v30 = vpop.eup %7886  ;;  %2053 = vst [vmem:[#allocation3 + $0x120] sm:$0xff] %v9075_v61  ;;  %v9091_v51 = vadd.f32 %v1979_v53, %v1940_v52  ;;  %v1952_v19 = vmul.f32 %v7885_v38, %v8900_v49  ;;  %7912 = vpow2.f32 %v9024_v13  ;;  %v2087_v62 = vpack.c.bf16 %v9054_v43, %v9049_v24  ;;  %v1611_v53 = vld [vmem:[#allocation2 + $0x58] sm:$0xff] }
 0x238   : > { %v7889_v26 = vpop.eup %7888  ;;  %2054 = vst [vmem:[#allocation3 + $0xd0] sm:$0xff] %v9083_v55  ;;  %v9101_v23 = vadd.f32 %v1980_v57, %v1941_v58  ;;  %v1953_v21 = vmul.f32 %v7887_v30, %v8903_v27  ;;  %7914 = vpow2.f32 %v9027_v17  ;;  %v7354_v24 = vmul.f32 -1.442695, %v9070_v47  ;;  %v1612_v57 = vld [vmem:[#allocation2 + $0x118] sm:$0xff] }
 0x239   : > { %v7891_v49 = vpop.eup %7890  ;;  %2055 = vst [vmem:[#allocation3 + $0xf0] sm:$0xff] %v9091_v51  ;;  %v2029_v13 = vadd.f32 %v1991_v45, %v1952_v19  ;;  %v1942_v8 = vmul.f32 %v7889_v26, %v8914_v33  ;;  %7916 = vpow2.f32 %v9031_v60  ;;  %v7355_v17 = vmul.f32 -1.442695, %v9088_v0 }
 0x23a   : > { %v7893_v43 = vpop.eup %7892  ;;  %2056 = vst [vmem:[#allocation3 + $0x100] sm:$0xff] %v9101_v23  ;;  %v2030_v35 = vadd.f32 %v1992_v5, %v1953_v21  ;;  %v1943_v27 = vmul.f32 %v7891_v49, %v8918_v3  ;;  %7918 = vpow2.f32 %v9034_v31  ;;  %v1656_v30 = vmul.f32 %v8835_v46, %v1611_v53  ;;  %v1613_v5 = vld [vmem:[#allocation2 + $0xb8] sm:$0xff] }
 0x23b   : > { %v7895_v14 = vpop.eup %7894  ;;  %2067 = vst [vmem:[#allocation3 + $0xd8] sm:$0xff] %v2029_v13  ;;  %v9113_v33 = vadd.f32 %v1981_v6, %v1942_v8  ;;  %v1954_v60 = vmul.f32 %v7893_v43, %v8922_v54  ;;  %7920 = vpow2.f32 %v9038_v18  ;;  %v1655_v18 = vmul.f32 %v8835_v46, %v1610_v10 }
 0x23c   : > { %v7897_v40 = vpop.eup %7896  ;;  %7611 = vmatmul.mubr.bf16.gmra.mxu0 %v2087_v62  ;;  %2068 = vst [vmem:[#allocation3 + $0x128] sm:$0xff] %v2030_v35  ;;  %v2096_v50 = vpack.c.bf16 %v2030_v35, %v2029_v13  ;;  %v9117_v3 = vadd.f32 %v1982_v12, %v1943_v27  ;;  %v1955_v31 = vmul.f32 %v7895_v14, %v8930_v2  ;;  %7922 = vpow2.f32 %v9044_v59 }
 0x23d   : > { %v7899_v44 = vpop.eup %7898  ;;  %7614 = vmatprep.mubr.msk.bf16.mxu0 %vm8318_vm2, %v10858_v48  ;;  %2057 = vst [vmem:[#allocation3 + $0xf8] sm:$0xff] %v9113_v33  ;;  %v2031_v54 = vadd.f32 %v1993_v36, %v1954_v60  ;;  %v1830_v52 = vadd.f32 1.0, %v7897_v40  ;;  %7924 = vpow2.f32 %v7354_v24  ;;  %v9130_v19 = vadd.f32 %v8840_v9, %v1655_v18 }
 0x23e   : > { %v7901_v38 = vpop.eup %7900  ;;  %7647 = vmatmul.mubr.bf16.vlgmr.msra.gmra.mxu1 %v2096_v50  ;;  %2058 = vst [vmem:[#allocation3 + $0x38] sm:$0xff] %v9117_v3  ;;  %v2032_v2 = vadd.f32 %v1994_v15, %v1955_v31  ;;  %v1831_v58 = vadd.f32 1.0, %v7899_v44  ;;  %7926 = vpow2.f32 %v7355_v17  ;;  %v2088_v62 = vpack.c.bf16 %v9065_v11, %v9059_v29 }
 0x23f   : > { %v7903_v59 = vpop.eup %7902  ;;  %7650 = vmatprep.mubr.msk.bf16.mxu1 %vm8318_vm2, %v10858_v48  ;;  %2069 = vst [vmem:[#allocation3 + $0x118] sm:$0xff] %v2031_v54  ;;  %7928 = vrcp.f32 %v1830_v52  ;;  %v1842_v45 = vadd.f32 1.0, %v7901_v38  ;;  %v1657_v6 = vmul.f32 %v8835_v46, %v1612_v57  ;;  %v9136_v12 = vadd.f32 %v8840_v9, %v1656_v30 }
 0x240   : > { %v7905_v26 = vpop.eup %7904  ;;  %2070 = vst [vmem:[#allocation3 + $0x78] sm:$0xff] %v2032_v2  ;;  %7930 = vrcp.f32 %v1831_v58  ;;  %v1843_v21 = vadd.f32 1.0, %v7903_v59  ;;  %v2097_v13 = vpack.c.bf16 %v2032_v2, %v2031_v54  ;;  %v1658_v35 = vmul.f32 %v8835_v46, %v1613_v5  ;;  %v1983_v59 = vld [vmem:[#allocation3 + $0x68] sm:$0xff]  ;;  %v1984_v5 = vld [vmem:[#allocation3 + $0x58] sm:$0xff] }
 0x241   : > { %v7907_v49 = vpop.eup %7906  ;;  %7932 = vrcp.f32 %v1842_v45  ;;  %v1832_v8 = vadd.f32 1.0, %v7905_v26  ;;  %v9140_v27 = vadd.f32 %v8840_v9, %v1657_v6  ;;  %v7356_v2 = vmul.f32 -1.442695, %v9080_v25 }
 0x242   : > { %v7909_v24 = vpop.eup %7908  ;;  %7934 = vrcp.f32 %v1843_v21  ;;  %v1833_v43 = vadd.f32 1.0, %v7907_v49  ;;  %v9143_v10 = vadd.f32 %v8840_v9, %v1658_v35  ;;  %v2089_v9 = vpack.c.bf16 %v9083_v55, %v9075_v61  ;;  %v1995_v49 = vld [vmem:[#allocation3 + $0x30] sm:$0xff] }
 0x243   : > { %v7911_v29 = vpop.eup %7910  ;;  %7936 = vrcp.f32 %v1832_v8  ;;  %v1844_v11 = vadd.f32 1.0, %v7909_v24  ;;  %v7357_v61 = vmul.f32 -1.442695, %v9096_v22  ;;  %v7358_v26 = vmul.f32 -1.442695, %v9130_v19 }
 0x244   : > { %v7913_v36 = vpop.eup %7912  ;;  %7615 = vmatmul.mubr.bf16.gmra.mxu0 %v2088_v62  ;;  %7938 = vrcp.f32 %v1833_v43  ;;  %v1845_v17 = vadd.f32 1.0, %v7911_v29  ;;  %v2090_v21 = vpack.c.bf16 %v9101_v23, %v9091_v51  ;;  %v7360_v35 = vmul.f32 -1.442695, %v9140_v27  ;;  %v1985_v23 = vld [vmem:[#allocation3 + $0x88] sm:$0xff] }
 0x245   : > { %v7915_v14 = vpop.eup %7914  ;;  %7618 = vmatprep.mubr.msk.bf16.mxu0 %vm8318_vm2, %v10858_v48  ;;  %7940 = vrcp.f32 %v1844_v11  ;;  %v1834_v60 = vadd.f32 1.0, %v7913_v36 }
 0x246   : > { %v7917_v46 = vpop.eup %7916  ;;  %7651 = vmatmul.mubr.bf16.gmra.mxu1 %v2097_v13  ;;  %7942 = vrcp.f32 %v1845_v17  ;;  %v1835_v15 = vadd.f32 1.0, %v7915_v14  ;;  %v7359_v13 = vmul.f32 -1.442695, %v9136_v12 }
 0x247   : > { %v7919_v40 = vpop.eup %7918  ;;  %7654 = vmatprep.mubr.msk.bf16.mxu1 %vm8318_vm2, %v10858_v48  ;;  %7944 = vrcp.f32 %v1834_v60  ;;  %v1846_v50 = vadd.f32 1.0, %v7917_v46 }
 0x248   : > { %v7921_v31 = vpop.eup %7920  ;;  %7946 = vrcp.f32 %v1835_v15  ;;  %v1847_v53 = vadd.f32 1.0, %v7919_v40  ;;  %v1997_v40 = vld [vmem:[#allocation3] sm:$0xff] }
 0x249   : > { %v7923_v44 = vpop.eup %7922  ;;  %7948 = vrcp.f32 %v1846_v50  ;;  %v1836_v54 = vadd.f32 1.0, %v7921_v31 }
 0x24a   : > { %v7925_v52 = vpop.eup %7924  ;;  %7950 = vrcp.f32 %v1847_v53  ;;  %v1837_v18 = vadd.f32 1.0, %v7923_v44 }
 0x24b   : > { %v7927_v57 = vpop.eup %7926  ;;  %7952 = vrcp.f32 %v1836_v54  ;;  %v1848_v38 = vadd.f32 1.0, %v7925_v52  ;;  %v1987_v52 = vld [vmem:[#allocation3 + $0x10] sm:$0xff] }
 0x24c   : > { %v7929_v58 = vpop.eup %7928  ;;  %7619 = vmatmul.mubr.bf16.gmra.mxu0 %v2089_v9  ;;  %7954 = vrcp.f32 %v1837_v18  ;;  %v1849_v45 = vadd.f32 1.0, %v7927_v57  ;;  %v1998_v9 = vld [vmem:[#allocation3 + $0x108] sm:$0xff]  ;;  %v1988_v57 = vld [vmem:[#allocation3 + $0x40] sm:$0xff] }
 0x24d   : > { %v7931_v55 = vpop.eup %7930  ;;  %7622 = vmatprep.mubr.msk.bf16.mxu0 %vm8318_vm2, %v10858_v48  ;;  %v1944_v30 = vmul.f32 %v7929_v58, %v8935_v63  ;;  %7956 = vrcp.f32 %v1848_v38  ;;  %v1996_v63 = vld [vmem:[#allocation3 + $0x110] sm:$0xff] }
 0x24e   : > { %v7933_v62 = vpop.eup %7932  ;;  %v1945_v6 = vmul.f32 %v7931_v55, %v8938_v4  ;;  %7958 = vrcp.f32 %v1849_v45  ;;  %v7361_v4 = vmul.f32 -1.442695, %v9143_v10  ;;  %v2000_v55 = vld [vmem:[#allocation3 + $0xe0] sm:$0xff] }
 0x24f   : > { %v7935_v8 = vpop.eup %7934  ;;  %v9161_v24 = vadd.f32 %v1983_v59, %v1944_v30  ;;  %v1956_v43 = vmul.f32 %v7933_v62, %v8946_v16  ;;  %7960 = vpow2.f32 %v7356_v2  ;;  %v1986_v16 = vld [vmem:[#allocation3 + $0x48] sm:$0xff]  ;;  %v2091_v30 = vpack.c.bf16 %v9117_v3, %v9113_v33  ;;  %v2001_v3 = vld [vmem:[#allocation3 + $0x50] sm:$0xff] }
 0x250   : > { %v7937_v29 = vpop.eup %7936  ;;  %v9165_v11 = vadd.f32 %v1984_v5, %v1945_v6  ;;  %v1957_v51 = vmul.f32 %v7935_v8, %v8954_v37  ;;  %7962 = vpow2.f32 %v7357_v61 }
 0x251   : > { %v7939_v36 = vpop.eup %7938  ;;  %2059 = vst [vmem:[#allocation3 + $0x68] sm:$0xff] %v9161_v24  ;;  %v2033_v17 = vadd.f32 %v1995_v49, %v1956_v43  ;;  %v1946_v14 = vmul.f32 %v7937_v29, %v8960_v20  ;;  %7964 = vpow2.f32 %v7358_v26  ;;  %v1989_v26 = vld [vmem:[#allocation3 + $0xe8] sm:$0xff]  ;;  %v1990_v49 = vld [vmem:[#allocation3 + $0xc0] sm:$0xff] }
 0x252   : > { %v7941_v60 = vpop.eup %7940  ;;  %2060 = vst [vmem:[#allocation3 + $0x58] sm:$0xff] %v9165_v11  ;;  %v2034_v46 = vadd.f32 %v1996_v63, %v1957_v51  ;;  %v1947_v15 = vmul.f32 %v7939_v36, %v8966_v41  ;;  %7966 = vpow2.f32 %v7359_v13 }
 0x253   : > { %v7943_v37 = vpop.eup %7942  ;;  %2071 = vst [vmem:[#allocation3 + $0x30] sm:$0xff] %v2033_v17  ;;  %v9173_v50 = vadd.f32 %v1985_v23, %v1946_v14  ;;  %v1958_v31 = vmul.f32 %v7941_v60, %v8989_v7  ;;  %7968 = vpow2.f32 %v7360_v35  ;;  %v2002_v35 = vld [vmem:[#allocation3 + $0x60] sm:$0xff]  ;;  %v2092_v60 = vpack.c.bf16 %v9165_v11, %v9161_v24 }
 0x254   : > { %v7945_v53 = vpop.eup %7944  ;;  %7623 = vmatmul.mubr.bf16.gmra.mxu0 %v2090_v21  ;;  %2072 = vst [vmem:[#allocation3 + $0x110] sm:$0xff] %v2034_v46  ;;  %v2098_v20 = vpack.c.bf16 %v2034_v46, %v2033_v17  ;;  %v9176_v44 = vadd.f32 %v1986_v16, %v1947_v15  ;;  %v1959_v54 = vmul.f32 %v7943_v37, %v8992_v28  ;;  %7970 = vpow2.f32 %v7361_v4  ;;  %v1999_v28 = vld [vmem:[#allocation3 + $0x8] sm:$0xff] }
 0x255   : > { %v7947_v41 = vpop.eup %7946  ;;  %7626 = vmatprep.mubr.msk.bf16.mxu0 %vm8318_vm2, %v10858_v48  ;;  %2061 = vst [vmem:[#allocation3 + $0x88] sm:$0xff] %v9173_v50  ;;  %v2035_v18 = vadd.f32 %v1997_v40, %v1958_v31  ;;  %v1948_v7 = vmul.f32 %v7945_v53, %v8996_v32  ;;  %v2003_v53 = vld [vmem:[#allocation3 + $0x20] sm:$0xff] }
 0x256   : > { %v7949_v38 = vpop.eup %7948  ;;  %7655 = vmatmul.mubr.bf16.gmra.mxu1 %v2098_v20  ;;  %2062 = vst [vmem:[#allocation3 + $0x48] sm:$0xff] %v9176_v44  ;;  %v2036_v2 = vadd.f32 %v1998_v9, %v1959_v54  ;;  %v1949_v58 = vmul.f32 %v7947_v41, %v9000_v34  ;;  %v2093_v24 = vpack.c.bf16 %v9176_v44, %v9173_v50 }
 0x257   : > { %v7951_v59 = vpop.eup %7950  ;;  %7658 = vmatprep.mubr.msk.bf16.mxu1 %vm8318_vm2, %v10858_v48  ;;  %2073 = vst [vmem:[#allocation3] sm:$0xff] %v2035_v18  ;;  %v9187_v45 = vadd.f32 %v1987_v52, %v1948_v7  ;;  %v1960_v61 = vmul.f32 %v7949_v38, %v9004_v39  ;;  %v2004_v52 = vld [vmem:[#allocation3 + $0x18] sm:$0xff]  ;;  %v2005_v7 = vld [vmem:[#allocation3 + $0xb0] sm:$0xff]  ;;  %v2006_v38 = vld [vmem:[#allocation3 + $0x28] sm:$0xff] }
 0x258   : > { %v7953_v32 = vpop.eup %7952  ;;  %2074 = vst [vmem:[#allocation3 + $0x108] sm:$0xff] %v2036_v2  ;;  %v9192_v5 = vadd.f32 %v1988_v57, %v1949_v58  ;;  %v1961_v34 = vmul.f32 %v7951_v59, %v9008_v42  ;;  %v2099_v39 = vpack.c.bf16 %v2036_v2, %v2035_v18  ;;  %v2007_v59 = vld [vmem:[#allocation3 + $0x90] sm:$0xff] }
 0x259   : > { %v7955_v62 = vpop.eup %7954  ;;  %2063 = vst [vmem:[#allocation3 + $0x10] sm:$0xff] %v9187_v45  ;;  %v2037_v21 = vadd.f32 %v1999_v28, %v1960_v61  ;;  %v1950_v6 = vmul.f32 %v7953_v32, %v9015_v56  ;;  %v2008_v32 = vld [vmem:[#allocation3 + $0xa0] sm:$0xff] }
 0x25a   : > { %v7957_v13 = vpop.eup %7956  ;;  %2064 = vst [vmem:[#allocation3 + $0x40] sm:$0xff] %v9192_v5  ;;  %v2038_v8 = vadd.f32 %v2000_v55, %v1961_v34  ;;  %v1951_v33 = vmul.f32 %v7955_v62, %v9021_v1  ;;  %v2094_v58 = vpack.c.bf16 %v9192_v5, %v9187_v45 }
 0x25b   : > { %v7959_v43 = vpop.eup %7958  ;;  %2075 = vst [vmem:[#allocation3 + $0x8] sm:$0xff] %v2037_v21  ;;  %v9199_v63 = vadd.f32 %v1989_v26, %v1950_v6  ;;  %v1962_v42 = vmul.f32 %v7957_v13, %v9070_v47  ;;  %v10859_v6 = vld [vmem:[#allocation21_spill] sm:$0xff] }
 0x25c   : > { %v7961_v29 = vpop.eup %7960  ;;  %7627 = vmatmul.mubr.bf16.gmra.mxu0 %v2091_v30  ;;  %2076 = vst [vmem:[#allocation3 + $0xe0] sm:$0xff] %v2038_v8  ;;  %v9202_v56 = vadd.f32 %v1990_v49, %v1951_v33  ;;  %v1963_v51 = vmul.f32 %v7959_v43, %v9088_v0  ;;  %v2100_v37 = vpack.c.bf16 %v2038_v8, %v2037_v21 }
 0x25d   : > { %v7963_v23 = vpop.eup %7962  ;;  %7630 = vmatprep.mubr.msk.bf16.mxu0 %vm8318_vm2, %v10858_v48  ;;  %2065 = vst [vmem:[#allocation3 + $0xe8] sm:$0xff] %v9199_v63  ;;  %v2039_v1 = vadd.f32 %v2001_v3, %v1962_v42  ;;  %v1850_v4 = vadd.f32 1.0, %v7961_v29 }
 0x25e   : > { %v7965_v36 = vpop.eup %7964  ;;  %7659 = vmatmul.mubr.bf16.gmra.mxu1 %v2099_v39  ;;  %2066 = vst [vmem:[#allocation3 + $0xc0] sm:$0xff] %v9202_v56  ;;  %v2040_v47 = vadd.f32 %v2002_v35, %v1963_v51  ;;  %v1851_v17 = vadd.f32 1.0, %v7963_v23 }
 0x25f   : > { %v7967_v14 = vpop.eup %7966  ;;  %7662 = vmatprep.mubr.msk.bf16.mxu1 %vm8318_vm2, %v10858_v48  ;;  %2077 = vst [vmem:[#allocation3 + $0x50] sm:$0xff] %v2039_v1  ;;  %7972 = vrcp.f32 %v1850_v4  ;;  %v1852_v0 = vadd.f32 1.0, %v7965_v36 }
 0x260   : > { %v7969_v16 = vpop.eup %7968  ;;  %2078 = vst [vmem:[#allocation3 + $0x60] sm:$0xff] %v2040_v47  ;;  %7974 = vrcp.f32 %v1851_v17  ;;  %v1853_v46 = vadd.f32 1.0, %v7967_v14  ;;  %v2101_v11 = vpack.c.bf16 %v2040_v47, %v2039_v1 }
 0x261   : > { %v7971_v15 = vpop.eup %7970  ;;  %7976 = vrcp.f32 %v1852_v0  ;;  %v1854_v40 = vadd.f32 1.0, %v7969_v16 }
 0x262   : > { %7978 = vrcp.f32 %v1853_v46  ;;  %v1855_v31 = vadd.f32 1.0, %v7971_v15 }
 0x263   : > { %7980 = vrcp.f32 %v1854_v40 }
 0x264   : > { %7631 = vmatmul.mubr.bf16.gmra.mxu0 %v2092_v60  ;;  %7982 = vrcp.f32 %v1855_v31 }
 0x265   : > { %7634 = vmatprep.mubr.msk.bf16.mxu0 %vm8318_vm2, %v10858_v48 }
 0x266   : > { %7663 = vmatmul.mubr.bf16.gmra.mxu1 %v2100_v37 }
 0x267   : > { %7666 = vmatprep.mubr.msk.bf16.mxu1 %vm8318_vm2, %v10858_v48 }
 0x26c   : > { %v7973_v9 = vpop.eup %7972  ;;  %7635 = vmatmul.mubr.bf16.gmra.mxu0 %v2093_v24 }
 0x26d   : > { %v7975_v20 = vpop.eup %7974  ;;  %7638 = vmatprep.mubr.msk.bf16.mxu0 %vm8318_vm2, %v10858_v48  ;;  %v1964_v54 = vmul.f32 %v7973_v9, %v9080_v25 }
 0x26e   : > { %v7977_v41 = vpop.eup %7976  ;;  %7667 = vmatmul.mubr.bf16.gmra.mxu1 %v2101_v11  ;;  %v1965_v18 = vmul.f32 %v7975_v20, %v9096_v22 }
 0x26f   : > { %v7979_v57 = vpop.eup %7978  ;;  %7670 = vmatprep.mubr.msk.bf16.mxu1 %vm8318_vm2, %v10858_v48  ;;  %v2041_v50 = vadd.f32 %v2003_v53, %v1964_v54  ;;  %v1966_v44 = vmul.f32 %v7977_v41, %v9130_v19 }
 0x270   : > { %v7981_v2 = vpop.eup %7980  ;;  %v2042_v28 = vadd.f32 %v2004_v52, %v1965_v18  ;;  %v1967_v25 = vmul.f32 %v7979_v57, %v9136_v12 }
 0x271   : > { %v7983_v61 = vpop.eup %7982  ;;  %2079 = vst [vmem:[#allocation3 + $0x20] sm:$0xff] %v2041_v50  ;;  %v2043_v22 = vadd.f32 %v2005_v7, %v1966_v44  ;;  %v1968_v55 = vmul.f32 %v7981_v2, %v9140_v27  ;;  %v2095_v27 = vpack.c.bf16 %v9202_v56, %v9199_v63 }
 0x272   : > { %2080 = vst [vmem:[#allocation3 + $0x18] sm:$0xff] %v2042_v28  ;;  %v2102_v30 = vpack.c.bf16 %v2042_v28, %v2041_v50  ;;  %v2044_v34 = vadd.f32 %v2006_v38, %v1967_v25  ;;  %v1969_v19 = vmul.f32 %v7983_v61, %v9143_v10  ;;  %v2122_v10 = vlaneseq }
 0x273   : > { %2081 = vst [vmem:[#allocation3 + $0xb0] sm:$0xff] %v2043_v22  ;;  %v2045_v26 = vadd.f32 %v2007_v59, %v1968_v55 }
 0x274   : > { %7639 = vmatmul.mubr.bf16.gmra.mxu0 %v2094_v58  ;;  %2082 = vst [vmem:[#allocation3 + $0x28] sm:$0xff] %v2044_v34  ;;  %v2103_v45 = vpack.c.bf16 %v2044_v34, %v2043_v22  ;;  %v2046_v5 = vadd.f32 %v2008_v32, %v1969_v19  ;;  %v9239_v62 = vshrl.u32 %v2122_v10, 7 }
 0x275   : > { %7642 = vmatprep.mubr.msk.bf16.mxu0 %vm8318_vm2, %v10858_v48  ;;  %2083 = vst [vmem:[#allocation3 + $0x90] sm:$0xff] %v2045_v26 }
 0x276   : > { %7671 = vmatmul.mubr.bf16.gmra.mxu1 %v2102_v30  ;;  %2084 = vst [vmem:[#allocation3 + $0xa0] sm:$0xff] %v2046_v5  ;;  %v2104_v12 = vpack.c.bf16 %v2046_v5, %v2045_v26  ;;  %v2124_v21 = vsub.s32 0, %v9239_v62 }
 0x277   : > { %7674 = vmatprep.mubr.msk.bf16.mxu1 %vm8318_vm2, %v10858_v48 }
 0x278   : > { %v9243_v49 = vrot.slane %v10859_v6, %v2124_v21 }
 0x27c   : > { %7643 = vmatmul.mubr.bf16.gmra.mxu0 %v2095_v27 }
 0x27e   : > { %7675 = vmatmul.mubr.bf16.gmra.mxu1 %v2103_v45 }
 0x27f   : > { %7678 = vmatprep.mubr.msk.bf16.mxu1 %vm8318_vm2, %v10858_v48 }
 0x286   : > { %7679 = vmatmul.mubr.bf16.gmra.mxu1 %v2104_v12 }
 0x2f4   : > { %v2209_v13 = vpop.f32.mrf.mxu0 }
 0x2f5   : > { %v2210_v39 = vadd.f32 %v2209_v13, %v9243_v49 }
 0x2f6   : > { %v7608_v8 = vpop.f32.mrf.mxu0 }
 0x2f7   : > { %2899 = vst [vmem:[#allocation2 + $0xb0] sm:$0xff] %v2210_v39  ;;  %v2364_v55 = vsub.f32 %v2210_v39, %v9243_v49 }
 0x2f8   : > { %v2212_v33 = vpop.f32.mrf.mxu0 }
 0x2f9   : > { %v2213_v3 = vadd.f32 %v2212_v33, %v9243_v49  ;;  %v2682_v10 = vmul.f32 %v2364_v55, %v2364_v55 }
 0x2fa   : > { %v7609_v43 = vpop.f32.mrf.mxu0 }
 0x2fb   : > { %2900 = vst [vmem:[#allocation2 + $0xd0] sm:$0xff] %v2213_v3  ;;  %v2365_v25 = vsub.f32 %v2213_v3, %v9243_v49 }
 0x2fc   : > { %v2217_v63 = vpop.f32.mrf.mxu0 }
 0x2fd   : > { %v2218_v42 = vadd.f32 %v2217_v63, %v9243_v49  ;;  %v2683_v26 = vmul.f32 %v2365_v25, %v2365_v25  ;;  %v2636_v8 = vadd.f32 %v2365_v25, %v2364_v55 }
 0x2fe   : > { %v7612_v35 = vpop.f32.mrf.mxu0  ;;  %v2289_v29 = vpop.f32.mrf.mxu1 }
 0x2ff   : > { %2901 = vst [vmem:[#allocation2 + $0x10] sm:$0xff] %v2218_v42  ;;  %v9249_v56 = vadd.f32 %v2289_v29, %v9243_v49  ;;  %v2366_v32 = vsub.f32 %v2218_v42, %v9243_v49  ;;  %v2720_v3 = vadd.f32 %v2683_v26, %v2682_v10 }
 0x300   : > { %v2220_v51 = vpop.f32.mrf.mxu0  ;;  %v7648_v23 = vpop.f32.mrf.mxu1 }
 0x301   : > { %v2221_v1 = vadd.f32 %v2220_v51, %v9243_v49  ;;  %2919 = vst [vmem:[#allocation2 + $0xa8] sm:$0xff] %v9249_v56  ;;  %v2684_v21 = vmul.f32 %v2366_v32, %v2366_v32  ;;  %v2637_v29 = vadd.f32 %v2636_v8, %v2366_v32 }
 0x302   : > { %v7613_v4 = vpop.f32.mrf.mxu0  ;;  %v2292_v36 = vpop.f32.mrf.mxu1 }
 0x303   : > { %2902 = vst [vmem:[#allocation2 + $0x48] sm:$0xff] %v2221_v1  ;;  %v9254_v47 = vadd.f32 %v2292_v36, %v9243_v49  ;;  %v2367_v45 = vsub.f32 %v2221_v1, %v9243_v49  ;;  %v2721_v23 = vadd.f32 %v2720_v3, %v2684_v21 }
 0x304   : > { %v2225_v17 = vpop.f32.mrf.mxu0  ;;  %v7649_v14 = vpop.f32.mrf.mxu1 }
 0x305   : > { %v2226_v0 = vadd.f32 %v2225_v17, %v9243_v49  ;;  %2920 = vst [vmem:[#allocation2 + $0x90] sm:$0xff] %v9254_v47  ;;  %v2685_v43 = vmul.f32 %v2367_v45, %v2367_v45  ;;  %v2638_v14 = vadd.f32 %v2637_v29, %v2367_v45 }
 0x306   : > { %v7616_v16 = vpop.f32.mrf.mxu0  ;;  %v2297_v60 = vpop.f32.mrf.mxu1 }
 0x307   : > { %2903 = vst [vmem:[#allocation2 + $0x120] sm:$0xff] %v2226_v0  ;;  %v9259_v46 = vadd.f32 %v2297_v60, %v9243_v49  ;;  %v2368_v6 = vsub.f32 %v2226_v0, %v9243_v49  ;;  %v2722_v16 = vadd.f32 %v2721_v23, %v2685_v43 }
 0x308   : > { %v2228_v15 = vpop.f32.mrf.mxu0  ;;  %v7652_v40 = vpop.f32.mrf.mxu1 }
 0x309   : > { %v2229_v37 = vadd.f32 %v2228_v15, %v9243_v49  ;;  %2921 = vst [vmem:[#allocation2 + $0xe0] sm:$0xff] %v9259_v46  ;;  %v2686_v1 = vmul.f32 %v2368_v6, %v2368_v6 }
 0x30a   : > { %v7617_v31 = vpop.f32.mrf.mxu0  ;;  %v2300_v24 = vpop.f32.mrf.mxu1 }
 0x30b   : > { %2904 = vst [vmem:[#allocation2 + $0x38] sm:$0xff] %v2229_v37  ;;  %v9264_v11 = vadd.f32 %v2300_v24, %v9243_v49  ;;  %v2369_v63 = vsub.f32 %v2229_v37, %v9243_v49  ;;  %v2639_v31 = vadd.f32 %v2638_v14, %v2368_v6 }
 0x30c   : > { %v2233_v9 = vpop.f32.mrf.mxu0  ;;  %v7653_v53 = vpop.f32.mrf.mxu1 }
 0x30d   : > { %v2234_v20 = vadd.f32 %v2233_v9, %v9243_v49  ;;  %2922 = vst [vmem:[#allocation2 + $0xf8] sm:$0xff] %v9264_v11  ;;  %v2687_v60 = vmul.f32 %v2369_v63, %v2369_v63  ;;  %v2723_v9 = vadd.f32 %v2722_v16, %v2686_v1 }
 0x30e   : > { %v7620_v54 = vpop.f32.mrf.mxu0 }
 0x30f   : > { %2905 = vst [vmem:[#allocation2 + $0x70] sm:$0xff] %v2234_v20  ;;  %v2370_v4 = vsub.f32 %v2234_v20, %v9243_v49 }
 0x310   : > { %v2236_v52 = vpop.f32.mrf.mxu0 }
 0x311   : > { %v2237_v41 = vadd.f32 %v2236_v52, %v9243_v49  ;;  %v2688_v53 = vmul.f32 %v2370_v4, %v2370_v4 }
 0x312   : > { %v7621_v18 = vpop.f32.mrf.mxu0 }
 0x313   : > { %2906 = vst [vmem:[#allocation2 + $0x100] sm:$0xff] %v2237_v41  ;;  %v2371_v15 = vsub.f32 %v2237_v41, %v9243_v49  ;;  %v2640_v18 = vadd.f32 %v2639_v31, %v2369_v63 }
 0x314   : > { %v2241_v7 = vpop.f32.mrf.mxu0 }
 0x315   : > { %v2242_v57 = vadd.f32 %v2241_v7, %v9243_v49  ;;  %v2689_v41 = vmul.f32 %v2371_v15, %v2371_v15  ;;  %v2641_v25 = vadd.f32 %v2640_v18, %v2370_v4 }
 0x316   : > { %v7624_v50 = vpop.f32.mrf.mxu0  ;;  %v2305_v44 = vpop.f32.mrf.mxu1 }
 0x317   : > { %2907 = vst [vmem:[#allocation2 + $0x108] sm:$0xff] %v2242_v57  ;;  %v9271_v38 = vadd.f32 %v2305_v44, %v9243_v49  ;;  %v2372_v20 = vsub.f32 %v2242_v57, %v9243_v49  ;;  %v2724_v50 = vadd.f32 %v2723_v9, %v2687_v60 }
 0x318   : > { %v2244_v2 = vpop.f32.mrf.mxu0  ;;  %v7656_v58 = vpop.f32.mrf.mxu1 }
 0x319   : > { %v2245_v28 = vadd.f32 %v2244_v2, %v9243_v49  ;;  %2923 = vst [vmem:[#allocation2 + $0xa0] sm:$0xff] %v9271_v38  ;;  %v2690_v57 = vmul.f32 %v2372_v20, %v2372_v20 }
 0x31a   : > { %v7625_v59 = vpop.f32.mrf.mxu0  ;;  %v2308_v61 = vpop.f32.mrf.mxu1 }
 0x31b   : > { %2908 = vst [vmem:[#allocation2 + $0x88] sm:$0xff] %v2245_v28  ;;  %v9277_v22 = vadd.f32 %v2308_v61, %v9243_v49  ;;  %v2373_v44 = vsub.f32 %v2245_v28, %v9243_v49  ;;  %v2725_v61 = vadd.f32 %v2724_v50, %v2688_v53 }
 0x31c   : > { %v2249_v30 = vpop.f32.mrf.mxu0  ;;  %v7657_v34 = vpop.f32.mrf.mxu1 }
 0x31d   : > { %v2250_v19 = vadd.f32 %v2249_v30, %v9243_v49  ;;  %2924 = vst [vmem:[#allocation2 + $0x78] sm:$0xff] %v9277_v22  ;;  %v2642_v34 = vadd.f32 %v2641_v25, %v2371_v15  ;;  %v2726_v45 = vadd.f32 %v2725_v61, %v2689_v41  ;;  %v2691_v28 = vmul.f32 %v2373_v44, %v2373_v44 }
 0x31e   : > { %v7628_v5 = vpop.f32.mrf.mxu0  ;;  %v2313_v12 = vpop.f32.mrf.mxu1 }
 0x31f   : > { %2909 = vst [vmem:[#allocation2 + $0x110] sm:$0xff] %v2250_v19  ;;  %v9285_v27 = vadd.f32 %v2313_v12, %v9243_v49  ;;  %v2374_v55 = vsub.f32 %v2250_v19, %v9243_v49  ;;  %v2643_v21 = vadd.f32 %v2642_v34, %v2372_v20 }
 0x320   : > { %v2252_v13 = vpop.f32.mrf.mxu0  ;;  %v7660_v39 = vpop.f32.mrf.mxu1 }
 0x321   : > { %v2253_v33 = vadd.f32 %v2252_v13, %v9243_v49  ;;  %2925 = vst [vmem:[#allocation2 + $0xc0] sm:$0xff] %v9285_v27  ;;  %v2727_v13 = vadd.f32 %v2726_v45, %v2690_v57  ;;  %v2692_v19 = vmul.f32 %v2374_v55, %v2374_v55  ;;  %v2644_v43 = vadd.f32 %v2643_v21, %v2373_v44 }
 0x322   : > { %v7629_v42 = vpop.f32.mrf.mxu0  ;;  %v2316_v35 = vpop.f32.mrf.mxu1 }
 0x323   : > { %2910 = vst [vmem:[#allocation2 + $0xf0] sm:$0xff] %v2253_v33  ;;  %v9292_v51 = vadd.f32 %v2316_v35, %v9243_v49  ;;  %v2375_v5 = vsub.f32 %v2253_v33, %v9243_v49  ;;  %v2728_v42 = vadd.f32 %v2727_v13, %v2691_v28  ;;  %v2645_v1 = vadd.f32 %v2644_v43, %v2374_v55 }
 0x324   : > { %v2257_v36 = vpop.f32.mrf.mxu0  ;;  %v7661_v17 = vpop.f32.mrf.mxu1 }
 0x325   : > { %v2258_v0 = vadd.f32 %v2257_v36, %v9243_v49  ;;  %2926 = vst [vmem:[#allocation2 + $0x80] sm:$0xff] %v9292_v51  ;;  %v2693_v33 = vmul.f32 %v2375_v5, %v2375_v5  ;;  %v2729_v36 = vadd.f32 %v2728_v42, %v2692_v19  ;;  %v2646_v60 = vadd.f32 %v2645_v1, %v2375_v5 }
 0x326   : > { %v7632_v40 = vpop.f32.mrf.mxu0  ;;  %v2321_v37 = vpop.f32.mrf.mxu1 }
 0x327   : > { %2911 = vst [vmem:[#allocation2 + $0x40] sm:$0xff] %v2258_v0  ;;  %v9299_v24 = vadd.f32 %v2321_v37, %v9243_v49  ;;  %v2376_v39 = vsub.f32 %v2258_v0, %v9243_v49  ;;  %v2730_v40 = vadd.f32 %v2729_v36, %v2693_v33 }
 0x328   : > { %v2260_v54 = vpop.f32.mrf.mxu0  ;;  %v7664_v52 = vpop.f32.mrf.mxu1 }
 0x329   : > { %v2261_v7 = vadd.f32 %v2260_v54, %v9243_v49  ;;  %2927 = vst [vmem:[#allocation2 + $0xe8] sm:$0xff] %v9299_v24  ;;  %v2694_v17 = vmul.f32 %v2376_v39, %v2376_v39  ;;  %v2647_v20 = vadd.f32 %v2646_v60, %v2376_v39 }
 0x32a   : > { %v7633_v2 = vpop.f32.mrf.mxu0  ;;  %v2324_v58 = vpop.f32.mrf.mxu1 }
 0x32b   : > { %2912 = vst [vmem:[#allocation2 + $0xc8] sm:$0xff] %v2261_v7  ;;  %v9306_v59 = vadd.f32 %v2324_v58, %v9243_v49  ;;  %v2377_v35 = vsub.f32 %v2261_v7, %v9243_v49  ;;  %v2731_v52 = vadd.f32 %v2730_v40, %v2694_v17 }
 0x32c   : > { %v2265_v32 = vpop.f32.mrf.mxu0  ;;  %v7665_v30 = vpop.f32.mrf.mxu1 }
 0x32d   : > { %v2266_v26 = vadd.f32 %v2265_v32, %v9243_v49  ;;  %2928 = vst [vmem:[#allocation2] sm:$0xff] %v9306_v59  ;;  %v2695_v37 = vmul.f32 %v2377_v35, %v2377_v35  ;;  %v2648_v41 = vadd.f32 %v2647_v20, %v2377_v35 }
 0x32e   : > { %v7636_v12 = vpop.f32.mrf.mxu0  ;;  %v2329_v10 = vpop.f32.mrf.mxu1 }
 0x32f   : > { %2913 = vst [vmem:[#allocation2 + $0x30] sm:$0xff] %v2266_v26  ;;  %v9313_v6 = vadd.f32 %v2329_v10, %v9243_v49  ;;  %v2378_v14 = vsub.f32 %v2266_v26, %v9243_v49  ;;  %v2732_v58 = vadd.f32 %v2731_v52, %v2695_v37 }
 0x330   : > { %v2268_v8 = vpop.f32.mrf.mxu0  ;;  %v7668_v3 = vpop.f32.mrf.mxu1 }
 0x331   : > { %v2269_v63 = vadd.f32 %v2268_v8, %v9243_v49  ;;  %2929 = vst [vmem:[#allocation2 + $0xd8] sm:$0xff] %v9313_v6  ;;  %v2696_v18 = vmul.f32 %v2378_v14, %v2378_v14  ;;  %v2649_v55 = vadd.f32 %v2648_v41, %v2378_v14 }
 0x332   : > { %v7637_v29 = vpop.f32.mrf.mxu0  ;;  %v2332_v23 = vpop.f32.mrf.mxu1 }
 0x333   : > { %2914 = vst [vmem:[#allocation2 + $0x20] sm:$0xff] %v2269_v63  ;;  %v9320_v4 = vadd.f32 %v2332_v23, %v9243_v49  ;;  %v2379_v31 = vsub.f32 %v2269_v63, %v9243_v49  ;;  %v2733_v34 = vadd.f32 %v2732_v58, %v2696_v18  ;;  %v2384_v23 = vsub.f32 %v9249_v56, %v9243_v49 }
 0x334   : > { %v2273_v0 = vpop.f32.mrf.mxu0  ;;  %v7669_v16 = vpop.f32.mrf.mxu1  ;;  %v2386_v56 = vsub.f32 %v9259_v46, %v9243_v49  ;;  %v2388_v46 = vsub.f32 %v9271_v38, %v9243_v49  ;;  %v2391_v38 = vsub.f32 %v9292_v51, %v9243_v49 }
 0x335   : > { %v2274_v15 = vadd.f32 %v2273_v0, %v9243_v49  ;;  %2930 = vst [vmem:[#allocation2 + $0x28] sm:$0xff] %v9320_v4  ;;  %v2697_v25 = vmul.f32 %v2379_v31, %v2379_v31  ;;  %v2650_v28 = vadd.f32 %v2649_v55, %v2379_v31 }
 0x336   : > { %v7640_v9 = vpop.f32.mrf.mxu0  ;;  %v2337_v53 = vpop.f32.mrf.mxu1 }
 0x337   : > { %2915 = vst [vmem:[#allocation2 + $0x128] sm:$0xff] %v2274_v15  ;;  %v9327_v54 = vadd.f32 %v2337_v53, %v9243_v49  ;;  %v2380_v44 = vsub.f32 %v2274_v15, %v9243_v49  ;;  %v2734_v10 = vadd.f32 %v2733_v34, %v2697_v25  ;;  %v2385_v15 = vsub.f32 %v9254_v47, %v9243_v49 }
 0x338   : > { %v2276_v7 = vpop.f32.mrf.mxu0  ;;  %v7672_v50 = vpop.f32.mrf.mxu1  ;;  %v2702_v53 = vmul.f32 %v2384_v23, %v2384_v23  ;;  %v2387_v47 = vsub.f32 %v9264_v11, %v9243_v49  ;;  %v2389_v34 = vsub.f32 %v9277_v22, %v9243_v49 }
 0x339   : > { %v2277_v2 = vadd.f32 %v2276_v7, %v9243_v49  ;;  %2931 = vst [vmem:[#allocation2 + $0x60] sm:$0xff] %v9327_v54  ;;  %v2698_v5 = vmul.f32 %v2380_v44, %v2380_v44  ;;  %v2651_v19 = vadd.f32 %v2650_v28, %v2380_v44  ;;  %v2703_v50 = vmul.f32 %v2385_v15, %v2385_v15 }
 0x33a   : > { %v7641_v61 = vpop.f32.mrf.mxu0  ;;  %v2340_v57 = vpop.f32.mrf.mxu1  ;;  %v2390_v28 = vsub.f32 %v9285_v27, %v9243_v49 }
 0x33b   : > { %v2381_v32 = vsub.f32 %v2277_v2, %v9243_v49  ;;  %2916 = vst [vmem:[#allocation2 + $0x50] sm:$0xff] %v2277_v2  ;;  %v9334_v30 = vadd.f32 %v2340_v57, %v9243_v49  ;;  %v2735_v42 = vadd.f32 %v2734_v10, %v2698_v5  ;;  %v2704_v2 = vmul.f32 %v2386_v56, %v2386_v56 }
 0x33c   : > { %v2281_v26 = vpop.f32.mrf.mxu0  ;;  %v7673_v45 = vpop.f32.mrf.mxu1  ;;  %v2707_v10 = vmul.f32 %v2389_v34, %v2389_v34 }
 0x33d   : > { %v2282_v12 = vadd.f32 %v2281_v26, %v9243_v49  ;;  %2932 = vst [vmem:[#allocation2 + $0x68] sm:$0xff] %v9334_v30  ;;  %v2699_v39 = vmul.f32 %v2381_v32, %v2381_v32  ;;  %v2652_v33 = vadd.f32 %v2651_v19, %v2381_v32  ;;  %v2705_v32 = vmul.f32 %v2387_v47, %v2387_v47 }
 0x33e   : > { %v7644_v21 = vpop.f32.mrf.mxu0  ;;  %v2345_v13 = vpop.f32.mrf.mxu1  ;;  %v2706_v45 = vmul.f32 %v2388_v46, %v2388_v46  ;;  %v2708_v19 = vmul.f32 %v2390_v28, %v2390_v28 }
 0x33f   : > { %v2382_v8 = vsub.f32 %v2282_v12, %v9243_v49  ;;  %2917 = vst [vmem:[#allocation2 + $0x8] sm:$0xff] %v2282_v12  ;;  %v9340_v3 = vadd.f32 %v2345_v13, %v9243_v49  ;;  %v2736_v17 = vadd.f32 %v2735_v42, %v2699_v39  ;;  %v2392_v39 = vsub.f32 %v9299_v24, %v9243_v49 }
 0x340   : > { %v2284_v43 = vpop.f32.mrf.mxu0  ;;  %v7676_v63 = vpop.f32.mrf.mxu1  ;;  %v2395_v24 = vsub.f32 %v9320_v4, %v9243_v49 }
 0x341   : > { %v2700_v35 = vmul.f32 %v2382_v8, %v2382_v8  ;;  %v2285_v29 = vadd.f32 %v2284_v43, %v9243_v49  ;;  %2933 = vst [vmem:[#allocation2 + $0x18] sm:$0xff] %v9340_v3  ;;  %v2653_v14 = vadd.f32 %v2652_v33, %v2382_v8  ;;  %v2709_v43 = vmul.f32 %v2391_v38, %v2391_v38 }
 0x342   : > { %v7645_v1 = vpop.f32.mrf.mxu0  ;;  %v2348_v36 = vpop.f32.mrf.mxu1  ;;  %v2393_v63 = vsub.f32 %v9306_v59, %v9243_v49  ;;  %v2710_v33 = vmul.f32 %v2392_v39, %v2392_v39  ;;  %v2396_v59 = vsub.f32 %v9327_v54, %v9243_v49  ;;  %v2398_v4 = vsub.f32 %v9340_v3, %v9243_v49 }
 0x343   : > { %v2383_v0 = vsub.f32 %v2285_v29, %v9243_v49  ;;  %2918 = vst [vmem:[#allocation2 + $0x98] sm:$0xff] %v2285_v29  ;;  %v9348_v16 = vadd.f32 %v2348_v36, %v9243_v49  ;;  %v2737_v40 = vadd.f32 %v2736_v17, %v2700_v35  ;;  %v2394_v35 = vsub.f32 %v9313_v6, %v9243_v49 }
 0x344   : > { %v7677_v60 = vpop.f32.mrf.mxu1  ;;  %v2443_v17 = vadd.s32 296, %v9239_v62 }
 0x345   : > { %v2654_v37 = vadd.f32 %v2653_v14, %v2383_v0  ;;  %v2701_v31 = vmul.f32 %v2383_v0, %v2383_v0  ;;  %2934 = vst [vmem:[#allocation2 + $0x58] sm:$0xff] %v9348_v16  ;;  %v2712_v0 = vmul.f32 %v2394_v35, %v2394_v35 }
 0x346   : > { %v2353_v9 = vpop.f32.mrf.mxu1  ;;  %vm2520_vm3 = vcmp.lt.s32.totalorder %v2443_v17, 300 }
 0x347   : > { %v2655_v20 = vadd.f32 %v2654_v37, %v2384_v23  ;;  %v2738_v52 = vadd.f32 %v2737_v40, %v2701_v31  ;;  %v9356_v18 = vadd.f32 %v2353_v9, %v9243_v49  ;;  %v2711_v23 = vmul.f32 %v2393_v63, %v2393_v63 }
 0x348   : > { %v7680_v7 = vpop.f32.mrf.mxu1  ;;  %v2713_v37 = vmul.f32 %v2395_v24, %v2395_v24  ;;  %v2714_v9 = vmul.f32 %v2396_v59, %v2396_v59 }
 0x349   : > { %v2656_v41 = vadd.f32 %v2655_v20, %v2385_v15  ;;  %v2739_v44 = vadd.f32 %v2738_v52, %v2702_v53  ;;  %2935 = vst [vmem:[#allocation2 + $0x118] sm:$0xff] %v9356_v18  ;;  %v2397_v15 = vsub.f32 %v9334_v30, %v9243_v49  ;;  %v2399_v52 = vsub.f32 %v9348_v16, %v9243_v49 }
 0x34a   : > { %v2356_v58 = vpop.f32.mrf.mxu1  ;;  %v7370_v30 = vsel %vm2520_vm3, 1.0, %v10858_v48 }
 0x34b   : > { %v2657_v25 = vadd.f32 %v2656_v41, %v2386_v56  ;;  %v2740_v61 = vadd.f32 %v2739_v44, %v2703_v50  ;;  %v2357_v57 = vadd.f32 %v2356_v58, %v9243_v49  ;;  %v2715_v62 = vmul.f32 %v2397_v15, %v2397_v15 }
 0x34c   : > { %v7681_v55 = vpop.f32.mrf.mxu1  ;;  %v2400_v41 = vsub.f32 %v9356_v18, %v9243_v49  ;;  %v2717_v58 = vmul.f32 %v2399_v52, %v2399_v52  ;;  %v2635_v18 = vld [vmem:[#allocation4] sm:$0x1] }
 0x34d   : > { %v2658_v26 = vadd.f32 %v2657_v25, %v2387_v47  ;;  %v2741_v11 = vadd.f32 %v2740_v61, %v2704_v2  ;;  %2936 = vst [vmem:[#allocation2 + $0xb8] sm:$0xff] %v2357_v57  ;;  %v2401_v54 = vsub.f32 %v2357_v57, %v9243_v49  ;;  %v2716_v47 = vmul.f32 %v2398_v4, %v2398_v4 }
 0x34e   : > { %v2718_v61 = vmul.f32 %v2400_v41, %v2400_v41 }
 0x34f   : > { %v2659_v5 = vadd.f32 %v2658_v26, %v2388_v46  ;;  %v2742_v12 = vadd.f32 %v2741_v11, %v2705_v32  ;;  %v2634_v3 = vmul.f32 %v7370_v30, %v2401_v54 }
 0x351   : > { %v2743_v21 = vadd.f32 %v2742_v12, %v2706_v45  ;;  %v2660_v13 = vadd.f32 %v2659_v5, %v2389_v34  ;;  %v2719_v16 = vmul.f32 %v2634_v3, %v2401_v54 }
 0x353   : > { %v2661_v22 = vadd.f32 %v2660_v13, %v2390_v28  ;;  %v2744_v8 = vadd.f32 %v2743_v21, %v2707_v10  ;;  %v2681_v21 = vld [vmem:[#allocation5] sm:$0x1] }
 0x355   : > { %v2662_v42 = vadd.f32 %v2661_v22, %v2391_v38  ;;  %v2745_v27 = vadd.f32 %v2744_v8, %v2708_v19 }
 0x357   : > { %v2663_v29 = vadd.f32 %v2662_v42, %v2392_v39  ;;  %v2746_v51 = vadd.f32 %v2745_v27, %v2709_v43 }
 0x359   : > { %v2664_v1 = vadd.f32 %v2663_v29, %v2393_v63  ;;  %v2747_v36 = vadd.f32 %v2746_v51, %v2710_v33 }
 0x35b   : > { %v2665_v14 = vadd.f32 %v2664_v1, %v2394_v35  ;;  %v2748_v60 = vadd.f32 %v2747_v36, %v2711_v23 }
 0x35d   : > { %v2749_v6 = vadd.f32 %v2748_v60, %v2712_v0  ;;  %v2666_v40 = vadd.f32 %v2665_v14, %v2395_v24 }
 0x35f   : > { %v2750_v31 = vadd.f32 %v2749_v6, %v2713_v37  ;;  %v2667_v56 = vadd.f32 %v2666_v40, %v2396_v59 }
 0x361   : > { %v2751_v53 = vadd.f32 %v2750_v31, %v2714_v9  ;;  %v2668_v20 = vadd.f32 %v2667_v56, %v2397_v15 }
 0x363   : > { %v2752_v7 = vadd.f32 %v2751_v53, %v2715_v62  ;;  %v2669_v50 = vadd.f32 %v2668_v20, %v2398_v4 }
 0x365   : > { %v2753_v44 = vadd.f32 %v2752_v7, %v2716_v47  ;;  %v2670_v2 = vadd.f32 %v2669_v50, %v2399_v52 }
 0x367   : > { %v2754_v46 = vadd.f32 %v2753_v44, %v2717_v58  ;;  %v2671_v25 = vadd.f32 %v2670_v2, %v2400_v41 }
 0x369   : > { %v2755_v55 = vadd.f32 %v2754_v46, %v2718_v61  ;;  %v2672_v32 = vadd.f32 %v2671_v25, %v2634_v3 }
 0x36b   : > { %v2673_v34 = vrot.slane %v2672_v32, 4  ;;  %v2756_v57 = vadd.f32 %v2755_v55, %v2719_v16 }
 0x36d   : > { %v2674_v26 = vadd.f32 %v2673_v34, %v2672_v32  ;;  %v2757_v48 = vrot.slane %v2756_v57, 4 }
 0x36f   : > { %v2675_v11 = vrot.slane %v2674_v26, 2  ;;  %v2758_v45 = vadd.f32 %v2757_v48, %v2756_v57 }
 0x371   : > { %v2676_v28 = vadd.f32 %v2675_v11, %v2674_v26  ;;  %v2759_v5 = vrot.slane %v2758_v45, 2 }
 0x373   : > { %v2677_v12 = vrot.slane %v2676_v28, 1  ;;  %v2760_v49 = vadd.f32 %v2759_v5, %v2758_v45 }
 0x375   : > { %v2678_v10 = vadd.f32 %v2677_v12, %v2676_v28  ;;  %v2761_v38 = vrot.slane %v2760_v49, 1 }
 0x377   : > { %v2679_v13 = vadd.f32 %v2678_v10, %v2635_v18  ;;  %v2762_v19 = vadd.f32 %v2761_v38, %v2760_v49 }
 0x379   : > { %2680 = vst [vmem:[#allocation4] sm:$0x1] %v2679_v13  ;;  %v2763_v39 = vadd.f32 %v2762_v19, %v2681_v21 }
 0x37b   : > { %2764 = vst [vmem:[#allocation5] sm:$0x1] %v2763_v39 }
 0x37c PF: > { %p7371_p7 = scmp.ne.s32.totalorder %s8296_s14, 3 }
 0x37e   : > { %2940 = sbr.rel (%p7371_p7) target bundleno = 1513 (0x5e9), region = 112 }
 0x383   : > { %v2943_v22 = vld [vmem:[#allocation2 + $0xb0] sm:$0xff]  ;;  %v9392_v8 = vld [vmem:[#allocation6] ss:$0 sm:$0xff]  ;;  %v9394_v43 = vld [vmem:[#allocation7] ss:$0 sm:$0xff]  ;;  %v8319_v27 = vmov 0  }
 0x384   : > { %v2988_v63 = vmul.f32 %v9392_v8, %v2943_v22  ;;  %v2944_v42 = vld [vmem:[#allocation2 + $0xd0] sm:$0xff]  ;;  %7984 = vset.pattern.permute.xlu0 %v8319_v27  ;;  %7985 = vset.pattern.permute.xlu1 %v8319_v27  ;;  %v2947_v35 = vld [vmem:[#allocation2 + $0x120] sm:$0xff]  ;;  %v2946_v14 = vld [vmem:[#allocation2 + $0x48] sm:$0xff]  ;;  %vm6824_vm4 = vcmask 130112   ;;  %vm6831_vm5 = vcmask 195712   ;;  %vm6838_vm6 = vcmask 261312  }
 0x385   : > { %v2989_v33 = vmul.f32 %v9392_v8, %v2944_v42  ;;  %v2992_v51 = vmul.f32 %v9392_v8, %v2947_v35  ;;  %v2945_v23 = vld [vmem:[#allocation2 + $0x10] sm:$0xff]  ;;  %v2991_v59 = vmul.f32 %v9392_v8, %v2946_v14  ;;  %v2951_v15 = vld [vmem:[#allocation2 + $0x108] sm:$0xff]  ;;  %v2948_v6 = vld [vmem:[#allocation2 + $0x38] sm:$0xff]  ;;  %vm6845_vm7 = vcmask 326912  }
 0x386   : > { %v9399_v29 = vadd.f32 %v9394_v43, %v2988_v63  ;;  %v2949_v1 = vld [vmem:[#allocation2 + $0x70] sm:$0xff]  ;;  %v2990_v24 = vmul.f32 %v9392_v8, %v2945_v23  ;;  %v2996_v56 = vmul.f32 %v9392_v8, %v2951_v15  ;;  %v2993_v53 = vmul.f32 %v9392_v8, %v2948_v6  ;;  %v2950_v20 = vld [vmem:[#allocation2 + $0x100] sm:$0xff]  ;;  %v2952_v50 = vld [vmem:[#allocation2 + $0x88] sm:$0xff] }
 0x387   : > { %v9403_v36 = vadd.f32 %v9394_v43, %v2989_v33  ;;  %v2994_v17 = vmul.f32 %v9392_v8, %v2949_v1  ;;  %v9409_v60 = vadd.f32 %v9394_v43, %v2992_v51  ;;  %v2953_v9 = vld [vmem:[#allocation2 + $0x110] sm:$0xff]  ;;  %v9422_v62 = vadd.f32 %v9394_v43, %v2991_v59  ;;  %v2955_v52 = vld [vmem:[#allocation2 + $0x40] sm:$0xff]  ;;  %v2959_v26 = vld [vmem:[#allocation2 + $0x128] sm:$0xff] }
 0x388   : > { %v7374_v0 = vmul.f32 -1.442695, %v9399_v29  ;;  %v9414_v37 = vadd.f32 %v9394_v43, %v2990_v24  ;;  %v9428_v7 = vadd.f32 %v9394_v43, %v2996_v56  ;;  %v9432_v41 = vadd.f32 %v9394_v43, %v2993_v53  ;;  %v2957_v2 = vld [vmem:[#allocation2 + $0x30] sm:$0xff]  ;;  %v2956_v28 = vld [vmem:[#allocation2 + $0xc8] sm:$0xff]  ;;  %v2958_v22 = vld [vmem:[#allocation2 + $0x20] sm:$0xff] }
 0x389   : > { %v7375_v40 = vmul.f32 -1.442695, %v9403_v36  ;;  %v9417_v31 = vadd.f32 %v9394_v43, %v2994_v17  ;;  %v7378_v4 = vmul.f32 -1.442695, %v9409_v60  ;;  %v7377_v47 = vmul.f32 -1.442695, %v9422_v62 }
 0x38a   : > { %7986 = vpow2.f32 %v7374_v0  ;;  %v7376_v54 = vmul.f32 -1.442695, %v9414_v37  ;;  %v2998_v44 = vmul.f32 %v9392_v8, %v2953_v9  ;;  %v7382_v58 = vmul.f32 -1.442695, %v9428_v7  ;;  %v2954_v25 = vld [vmem:[#allocation2 + $0xf0] sm:$0xff]  ;;  %v2961_v5 = vld [vmem:[#allocation2 + $0x8] sm:$0xff] }
 0x38b   : > { %7988 = vpow2.f32 %v7375_v40  ;;  %v7380_v30 = vmul.f32 -1.442695, %v9417_v31  ;;  %v2995_v3 = vmul.f32 %v9392_v8, %v2950_v20  ;;  %v3000_v46 = vmul.f32 %v9392_v8, %v2955_v52  ;;  %v2963_v63 = vld [vmem:[#allocation2 + $0xa8] sm:$0xff]  ;;  %v2960_v35 = vld [vmem:[#allocation2 + $0x50] sm:$0xff]  ;;  %v2965_v6 = vld [vmem:[#allocation2 + $0xe0] sm:$0xff] }
 0x38c   : > { %7990 = vpow2.f32 %v7378_v4  ;;  %v7379_v61 = vmul.f32 -1.442695, %v9432_v41  ;;  %v9440_v55 = vadd.f32 %v9394_v43, %v2998_v44  ;;  %v2997_v32 = vmul.f32 %v9392_v8, %v2952_v50  ;;  %v2962_v9 = vld [vmem:[#allocation2 + $0x98] sm:$0xff] }
 0x38d   : > { %7992 = vpow2.f32 %v7376_v54  ;;  %v9444_v16 = vadd.f32 %v9394_v43, %v2995_v3  ;;  %v9447_v34 = vadd.f32 %v9394_v43, %v3000_v46  ;;  %v3002_v57 = vmul.f32 %v9392_v8, %v2957_v2  ;;  %v2967_v54 = vld [vmem:[#allocation2 + $0xa0] sm:$0xff] }
 0x38e   : > { %7994 = vpow2.f32 %v7380_v30  ;;  %v7384_v48 = vmul.f32 -1.442695, %v9440_v55  ;;  %v9452_v11 = vadd.f32 %v9394_v43, %v2997_v32  ;;  %v2999_v45 = vmul.f32 %v9392_v8, %v2954_v25  ;;  %v2964_v30 = vld [vmem:[#allocation2 + $0x90] sm:$0xff] }
 0x38f   : > { %7996 = vpow2.f32 %v7377_v47  ;;  %v7381_v12 = vmul.f32 -1.442695, %v9444_v16  ;;  %v7386_v49 = vmul.f32 -1.442695, %v9447_v34  ;;  %v9458_v18 = vadd.f32 %v9394_v43, %v3002_v57 }
 0x390   : > { %7998 = vpow2.f32 %v7382_v58  ;;  %v7383_v10 = vmul.f32 -1.442695, %v9452_v11  ;;  %v9462_v38 = vadd.f32 %v9394_v43, %v2999_v45  ;;  %v3004_v21 = vmul.f32 %v9392_v8, %v2959_v26 }
 0x391   : > { %8000 = vpow2.f32 %v7379_v61  ;;  %v7388_v13 = vmul.f32 -1.442695, %v9458_v18  ;;  %v3001_v19 = vmul.f32 %v9392_v8, %v2956_v28  ;;  %v3006_v39 = vmul.f32 %v9392_v8, %v2961_v5  ;;  %v2969_v61 = vld [vmem:[#allocation2 + $0xc0] sm:$0xff] }
 0x392   : > { %8002 = vpow2.f32 %v7384_v48  ;;  %v7385_v42 = vmul.f32 -1.442695, %v9462_v38  ;;  %v9470_v27 = vadd.f32 %v9394_v43, %v3004_v21  ;;  %v3003_v23 = vmul.f32 %v9392_v8, %v2958_v22 }
 0x393   : > { %8004 = vpow2.f32 %v7381_v12  ;;  %v9473_v33 = vadd.f32 %v9394_v43, %v3001_v19  ;;  %v3008_v1 = vmul.f32 %v9392_v8, %v2963_v63  ;;  %v9480_v14 = vadd.f32 %v9394_v43, %v3006_v39  ;;  %v2966_v19 = vld [vmem:[#allocation2 + $0xf8] sm:$0xff] }
 0x394   : > { %8006 = vpow2.f32 %v7386_v49  ;;  %v7390_v51 = vmul.f32 -1.442695, %v9470_v27  ;;  %v3005_v15 = vmul.f32 %v9392_v8, %v2960_v35  ;;  %v9484_v20 = vadd.f32 %v9394_v43, %v3003_v23  ;;  %v2971_v35 = vld [vmem:[#allocation2 + $0xe8] sm:$0xff] }
 0x395   : > { %8008 = vpow2.f32 %v7383_v10  ;;  %v7387_v17 = vmul.f32 -1.442695, %v9473_v33  ;;  %v9487_v52 = vadd.f32 %v9394_v43, %v3008_v1  ;;  %v9490_v44 = vmul.f32 -1.442695, %v9480_v14 }
 0x396   : > { %8010 = vpow2.f32 %v7388_v13  ;;  %v3010_v2 = vmul.f32 %v9392_v8, %v2965_v6  ;;  %v9494_v46 = vadd.f32 %v9394_v43, %v3005_v15  ;;  %v3007_v25 = vmul.f32 %v9392_v8, %v2962_v9 }
 0x397   : > { %v7987_v24 = vpop.eup %7986  ;;  %8012 = vpow2.f32 %v7385_v42  ;;  %v3012_v26 = vmul.f32 %v9392_v8, %v2967_v54  ;;  %v3009_v48 = vmul.f32 %v9392_v8, %v2964_v30  ;;  %v9500_v5 = vmul.f32 -1.442695, %v9484_v20 }
 0x398   : > { %v7989_v0 = vpop.eup %7988  ;;  %v3185_v59 = vadd.f32 1.0, %v7987_v24  ;;  %8014 = vpow2.f32 %v7390_v51  ;;  %v9503_v12 = vmul.f32 -1.442695, %v9487_v52  ;;  %v9506_v21 = vadd.f32 %v9394_v43, %v3010_v2 }
 0x399   : > { %v7991_v40 = vpop.eup %7990  ;;  %v3186_v56 = vadd.f32 1.0, %v7989_v0  ;;  %8016 = vpow2.f32 %v7387_v17  ;;  %v3014_v13 = vmul.f32 %v9392_v8, %v2969_v61  ;;  %v9510_v63 = vmul.f32 -1.442695, %v9494_v46  ;;  %v2968_v17 = vld [vmem:[#allocation2 + $0x78] sm:$0xff] }
 0x39a   : > { %v7993_v4 = vpop.eup %7992  ;;  %8018 = vrcp.f32 %v3185_v59  ;;  %v3189_v53 = vadd.f32 1.0, %v7991_v40  ;;  %v9513_v42 = vadd.f32 %v9394_v43, %v3007_v25  ;;  %v9516_v1 = vadd.f32 %v9394_v43, %v3012_v26  ;;  %v2973_v61 = vld [vmem:[#allocation2 + $0xd8] sm:$0xff] }
 0x39b   : > { %v7995_v50 = vpop.eup %7994  ;;  %8020 = vrcp.f32 %v3186_v56  ;;  %v3187_v47 = vadd.f32 1.0, %v7993_v4  ;;  %v9519_v24 = vadd.f32 %v9394_v43, %v3009_v48  ;;  %v9522_v15 = vadd.f32 %v9394_v43, %v3014_v13 }
 0x39c   : > { %v7997_v58 = vpop.eup %7996  ;;  %8022 = vrcp.f32 %v3189_v53  ;;  %v3191_v3 = vadd.f32 1.0, %v7995_v50  ;;  %v3011_v6 = vmul.f32 %v9392_v8, %v2966_v19  ;;  %v9526_v9 = vmul.f32 -1.442695, %v9506_v21 }
 0x39d   : > { %v7999_v32 = vpop.eup %7998  ;;  %8024 = vrcp.f32 %v3187_v47  ;;  %v3188_v57 = vadd.f32 1.0, %v7997_v58  ;;  %v3016_v4 = vmul.f32 %v9392_v8, %v2971_v35  ;;  %v9530_v30 = vmul.f32 -1.442695, %v9513_v42  ;;  %v2975_v47 = vld [vmem:[#allocation2 + $0x60] sm:$0xff]  ;;  %v3339_v35 = vld [vmem:[#allocation3 + $0xc8] sm:$0xff] }
 0x39e   : > { %v8001_v45 = vpop.eup %8000  ;;  %8026 = vrcp.f32 %v3191_v3  ;;  %v3193_v28 = vadd.f32 1.0, %v7999_v32  ;;  %v3013_v50 = vmul.f32 %v9392_v8, %v2968_v17  ;;  %v9534_v3 = vmul.f32 -1.442695, %v9516_v1 }
 0x39f   : > { %v8003_v49 = vpop.eup %8002  ;;  %8028 = vrcp.f32 %v3188_v57  ;;  %v3190_v10 = vadd.f32 1.0, %v8001_v45  ;;  %v9537_v25 = vmul.f32 -1.442695, %v9519_v24  ;;  %v9540_v26 = vmul.f32 -1.442695, %v9522_v15  ;;  %v2970_v45 = vld [vmem:[#allocation2 + $0x80] sm:$0xff] }
 0x3a0   : > { %v8005_v39 = vpop.eup %8004  ;;  %8030 = vrcp.f32 %v3193_v28  ;;  %v3195_v22 = vadd.f32 1.0, %v8003_v49  ;;  %v9543_v48 = vadd.f32 %v9394_v43, %v3011_v6  ;;  %v3338_v49 = vld [vmem:[#allocation3 + $0x80] sm:$0xff]  ;;  %v9546_v13 = vadd.f32 %v9394_v43, %v3016_v4 }
 0x3a1   : > { %v8007_v51 = vpop.eup %8006  ;;  %8032 = vrcp.f32 %v3190_v10  ;;  %v3192_v23 = vadd.f32 1.0, %v8005_v39  ;;  %v3020_v19 = vmul.f32 %v9392_v8, %v2975_v47  ;;  %v3015_v6 = vmul.f32 %v9392_v8, %v2970_v45 }
 0x3a2   : > { %v8009_v0 = vpop.eup %8008  ;;  %8034 = vrcp.f32 %v3195_v22  ;;  %v3197_v59 = vadd.f32 1.0, %v8007_v51  ;;  %v9551_v51 = vadd.f32 %v9394_v43, %v3013_v50  ;;  %vm6852_vm8 = vcmask 392512  }
 0x3a3   : > { %v8011_v40 = vpop.eup %8010  ;;  %8036 = vrcp.f32 %v3192_v23  ;;  %v3194_v56 = vadd.f32 1.0, %v8009_v0  ;;  %v3018_v23 = vmul.f32 %v9392_v8, %v2973_v61  ;;  %v9557_v0 = vld [vmem:[%s10817_s7] ss:$0 sm:$0xff]  ;;  %vm6859_vm9 = vcmask 458112  }
 0x3a4   : > { %v8013_v53 = vpop.eup %8012  ;;  %8038 = vrcp.f32 %v3197_v59  ;;  %v3199_v54 = vadd.f32 1.0, %v8011_v40  ;;  %vm6866_vm10 = vcmask 523712   ;;  %vm6873_vm11 = vcmask 589312  }
 0x3a5   : > { %v8015_v2 = vpop.eup %8014  ;;  %8040 = vrcp.f32 %v3194_v56  ;;  %v3196_v58 = vadd.f32 1.0, %v8013_v53  ;;  %v3340_v53 = vld [vmem:[#allocation3 + $0xb8] sm:$0xff]  ;;  %vm6880_vm12 = vcmask 654912   ;;  %vm6887_vm13 = vcmask 720512  }
 0x3a6   : > { %v8017_v32 = vpop.eup %8016  ;;  %8042 = vrcp.f32 %v3199_v54  ;;  %v3201_v57 = vadd.f32 1.0, %v8015_v2  ;;  %v7397_v54 = vmul.f32 -1.442695, %v9543_v48  ;;  %v3342_v2 = vld [vmem:[#allocation3 + $0x98] sm:$0xff]  ;;  %vm6894_vm14 = vcmask 786112  }
 0x3a7   : > { %v8019_v28 = vpop.eup %8018  ;;  %8044 = vrcp.f32 %v3196_v58  ;;  %v3198_v10 = vadd.f32 1.0, %v8017_v32  ;;  %v7402_v58 = vmul.f32 -1.442695, %v9546_v13  ;;  %vm6901_vm15 = vcmask 851712  }
 0x3a8   : > { %v8021_v39 = vpop.eup %8020  ;;  %v3299_v22 = vmul.f32 %v8019_v28, %v9399_v29  ;;  %8046 = vrcp.f32 %v3201_v57  ;;  %v9562_v29 = vadd.f32 %v9394_v43, %v3020_v19  ;;  %v3341_v57 = vld [vmem:[#allocation3 + $0x70] sm:$0xff]  ;;  %vm6908_vm0 = vcmask 917312  }
 0x3a9   : > { %v8023_v17 = vpop.eup %8022  ;;  %v3300_v59 = vmul.f32 %v8021_v39, %v9403_v36  ;;  %8048 = vrcp.f32 %v3198_v10  ;;  %v3343_v39 = vld [vmem:[#allocation3 + $0xa8] sm:$0xff]  ;;  %vm6915_vm1 = vcmask 982912   ;;  %vm6922_vm2 = vcmask 1048512  }
 0x3aa   : > { %v8025_v40 = vpop.eup %8024  ;;  %v3376_v56 = vadd.f32 %v3338_v49, %v3299_v22  ;;  %v3303_v4 = vmul.f32 %v8023_v17, %v9409_v60  ;;  %8050 = vpow2.f32 %v9490_v44  ;;  %v7399_v60 = vmul.f32 -1.442695, %v9551_v51 }
 0x3ab   : > { %v8027_v50 = vpop.eup %8026  ;;  %v3377_v47 = vadd.f32 %v3339_v35, %v3300_v59  ;;  %v3301_v36 = vmul.f32 %v8025_v40, %v9414_v37  ;;  %8052 = vpow2.f32 %v9500_v5  ;;  %v9574_v44 = vadd.f32 %v9394_v43, %v3018_v23  ;;  %v3344_v23 = vld [vmem:[#allocation3 + $0x120] sm:$0xff] }
 0x3ac   : > { %v8029_v61 = vpop.eup %8028  ;;  %v3421_v32 = vmul.f32 %v9557_v0, %v3376_v56  ;;  %8054 = vpow2.f32 %v9503_v12  ;;  %v9579_v37 = vadd.f32 %v9394_v43, %v3015_v6  ;;  %v3380_v19 = vadd.f32 %v3342_v2, %v3303_v4  ;;  %v3346_v56 = vld [vmem:[#allocation3 + $0xf0] sm:$0xff] }
 0x3ad   : > { %v8031_v45 = vpop.eup %8030  ;;  %v3378_v28 = vadd.f32 %v3340_v53, %v3301_v36  ;;  %v3302_v49 = vmul.f32 %v8029_v61, %v9422_v62  ;;  %8056 = vpow2.f32 %v9510_v63  ;;  %v3422_v10 = vmul.f32 %v9557_v0, %v3377_v47  ;;  %v3348_v53 = vld [vmem:[#allocation3 + $0xf8] sm:$0xff]  ;;  %v3350_v47 = vld [vmem:[#allocation3 + $0x68] sm:$0xff]  ;;  %v3347_v61 = vld [vmem:[#allocation3 + $0x100] sm:$0xff] }
 0x3ae   : > { %v8033_v5 = vpop.eup %8032  ;;  %3459 = vadd.xlane.f32.xlu0 %v3421_v32  ;;  %v3305_v12 = vmul.f32 %v8027_v50, %v9417_v31  ;;  %8058 = vpow2.f32 %v9526_v9  ;;  %v3307_v59 = vmul.f32 %v8031_v45, %v9428_v7  ;;  %v7404_v31 = vmul.f32 -1.442695, %v9574_v44  ;;  %v3345_v50 = vld [vmem:[#allocation3 + $0xd0] sm:$0xff] }
 0x3af   : > { %v8035_v22 = vpop.eup %8034  ;;  %v3423_v35 = vmul.f32 %v9557_v0, %v3378_v28  ;;  %v3379_v62 = vadd.f32 %v3341_v57, %v3302_v49  ;;  %v3304_v63 = vmul.f32 %v8033_v5, %v9432_v41  ;;  %8060 = vpow2.f32 %v9530_v30  ;;  %v2972_v28 = vld [vmem:[#allocation2] sm:$0xff] }
 0x3b0   : > { %v8037_v17 = vpop.eup %8036  ;;  %v3309_v6 = vmul.f32 %v8035_v22, %v9440_v55  ;;  %8062 = vpow2.f32 %v9534_v3  ;;  %v3425_v7 = vmul.f32 %v9557_v0, %v3380_v19  ;;  %v3382_v55 = vadd.f32 %v3344_v23, %v3305_v12 }
 0x3b1   : > { %v8039_v40 = vpop.eup %8038  ;;  %3463 = vadd.xlane.f32.xlu1 %v3423_v35  ;;  %v3424_v9 = vmul.f32 %v9557_v0, %v3379_v62  ;;  %v3381_v4 = vadd.f32 %v3343_v39, %v3304_v63  ;;  %v3306_v41 = vmul.f32 %v8037_v17, %v9444_v16  ;;  %8064 = vpow2.f32 %v9537_v25  ;;  %v2977_v39 = vld [vmem:[#allocation2 + $0x18] sm:$0xff]  ;;  %v3349_v62 = vld [vmem:[#allocation3 + $0x38] sm:$0xff] }
 0x3b2   : > { %v8041_v30 = vpop.eup %8040  ;;  %3461 = vadd.xlane.f32.xlu0 %v3422_v10  ;;  %v3311_v3 = vmul.f32 %v8039_v40, %v9447_v34  ;;  %8066 = vpow2.f32 %v9540_v26  ;;  %v7401_v16 = vmul.f32 -1.442695, %v9579_v37  ;;  %v3384_v25 = vadd.f32 %v3346_v56, %v3307_v59 }
 0x3b3   : > { %v8043_v2 = vpop.eup %8042  ;;  %v3308_v36 = vmul.f32 %v8041_v30, %v9452_v11  ;;  %8068 = vpow2.f32 %v7397_v54  ;;  %v3386_v57 = vadd.f32 %v3348_v53, %v3309_v6  ;;  %v7406_v45 = vmul.f32 -1.442695, %v9562_v29  ;;  %v2976_v53 = vld [vmem:[#allocation2 + $0x68] sm:$0xff] }
 0x3b4   : > { %v8045_v32 = vpop.eup %8044  ;;  %8070 = vpow2.f32 %v7402_v58  ;;  %v3426_v34 = vmul.f32 %v9557_v0, %v3381_v4  ;;  %v3383_v5 = vadd.f32 %v3345_v50, %v3306_v41  ;;  %v3388_v26 = vadd.f32 %v3350_v47, %v3311_v3  ;;  %v2979_v4 = vld [vmem:[#allocation2 + $0x118] sm:$0xff] }
 0x3b5   : > { %v8047_v49 = vpop.eup %8046  ;;  %3465 = vadd.xlane.f32.xlu1 %v3424_v9  ;;  %8072 = vpow2.f32 %v7399_v60  ;;  %v3427_v11 = vmul.f32 %v9557_v0, %v3382_v55  ;;  %v3385_v54 = vadd.f32 %v3347_v61, %v3308_v36  ;;  %v3310_v12 = vmul.f32 %v8045_v32, %v9462_v38 }
 0x3b6   : > { %v8049_v10 = vpop.eup %8048  ;;  %3467 = vadd.xlane.f32.xlu0 %v3425_v7  ;;  %8074 = vpow2.f32 %v7404_v31  ;;  %v9604_v58 = vmul.f32 %v9392_v8, %v2972_v28  ;;  %v3429_v35 = vmul.f32 %v9557_v0, %v3384_v25  ;;  %v3431_v23 = vmul.f32 %v9557_v0, %v3386_v57  ;;  %v2974_v31 = vld [vmem:[#allocation2 + $0x28] sm:$0xff]  ;;  %v2978_v25 = vld [vmem:[#allocation2 + $0x58] sm:$0xff] }
 0x3b7   : > { %v8051_v19 = vpop.eup %8050  ;;  %8076 = vpow2.f32 %v7401_v16  ;;  %v9609_v60 = vmul.f32 %v8043_v2, %v9458_v18  ;;  %v3428_v59 = vmul.f32 %v9557_v0, %v3383_v5  ;;  %v9613_v38 = vmul.f32 %v9557_v0, %v3388_v26  ;;  %v3352_v26 = vld [vmem:[#allocation3 + $0x88] sm:$0xff] }
 0x3b8   : > { %v8053_v22 = vpop.eup %8052  ;;  %v3203_v63 = vadd.f32 1.0, %v8051_v19  ;;  %8078 = vpow2.f32 %v7406_v45  ;;  %v3430_v9 = vmul.f32 %v9557_v0, %v3385_v54  ;;  %v3022_v18 = vmul.f32 %v9392_v8, %v2977_v39  ;;  %v3351_v45 = vld [vmem:[#allocation3 + $0x58] sm:$0xff]  ;;  %v2980_v19 = vld [vmem:[#allocation2 + $0xb8] sm:$0xff] }
 0x3b9   : > { %v8055_v17 = vpop.eup %8054  ;;  %3469 = vadd.xlane.f32.xlu1 %v3426_v34  ;;  %v3200_v6 = vadd.f32 1.0, %v8053_v22  ;;  %v3387_v30 = vadd.f32 %v3349_v62, %v3310_v12  ;;  %v3312_v7 = vmul.f32 %v8049_v10, %v9473_v33  ;;  %v3019_v2 = vmul.f32 %v9392_v8, %v2974_v31 }
 0x3ba   : > { %v8057_v40 = vpop.eup %8056  ;;  %3471 = vadd.xlane.f32.xlu0 %v3427_v11  ;;  %8080 = vrcp.f32 %v3203_v63  ;;  %v3205_v56 = vadd.f32 1.0, %v8055_v17  ;;  %v9619_v47 = vadd.f32 %v9394_v43, %v3022_v18  ;;  %v3024_v16 = vmul.f32 %v9392_v8, %v2979_v4 }
 0x3bb   : > { %v8059_v41 = vpop.eup %8058  ;;  %8082 = vrcp.f32 %v3200_v6  ;;  %v3202_v55 = vadd.f32 1.0, %v8057_v40  ;;  %v3021_v32 = vmul.f32 %v9392_v8, %v2976_v53  ;;  %v3315_v57 = vmul.f32 %v8047_v49, %v9470_v27 }
 0x3bc   : > { %v8061_v50 = vpop.eup %8060  ;;  %8084 = vrcp.f32 %v3205_v56  ;;  %v3207_v3 = vadd.f32 1.0, %v8059_v41  ;;  %v9626_v34 = vadd.f32 %v9394_v43, %v3019_v2  ;;  %v9629_v11 = vadd.f32 %v9394_v43, %v3024_v16 }
 0x3bd   : > { %v8063_v36 = vpop.eup %8062  ;;  %3473 = vadd.xlane.f32.xlu1 %v3428_v59  ;;  %8086 = vrcp.f32 %v3202_v55  ;;  %v3204_v61 = vadd.f32 1.0, %v8061_v50  ;;  %v9632_v54 = vadd.f32 %v9394_v43, %v3021_v32  ;;  %v3432_v27 = vmul.f32 %v9557_v0, %v3387_v30 }
 0x3be   : > { %v8065_v33 = vpop.eup %8064  ;;  %3475 = vadd.xlane.f32.xlu0 %v3429_v35  ;;  %8088 = vrcp.f32 %v3207_v3  ;;  %v3209_v28 = vadd.f32 1.0, %v8063_v36  ;;  %v3023_v39 = vmul.f32 %v9392_v8, %v2978_v25  ;;  %v3354_v35 = vld [vmem:[#allocation3 + $0x10] sm:$0xff]  ;;  %v3389_v62 = vadd.f32 %v3351_v45, %v3312_v7  ;;  %v3356_v3 = vld [vmem:[#allocation3 + $0xe8] sm:$0xff] }
 0x3bf   : > { %v8067_v5 = vpop.eup %8066  ;;  %8090 = vrcp.f32 %v3204_v61  ;;  %v3206_v10 = vadd.f32 1.0, %v8065_v33  ;;  %v9638_v17 = vadd.f32 %v9394_v43, %v9604_v58  ;;  %v3390_v6 = vadd.f32 %v3352_v26, %v9609_v60  ;;  %v3353_v61 = vld [vmem:[#allocation3 + $0x48] sm:$0xff] }
 0x3c0   : > { %v8069_v12 = vpop.eup %8068  ;;  %8092 = vrcp.f32 %v3209_v28  ;;  %v3211_v49 = vadd.f32 1.0, %v8067_v5  ;;  %v9642_v40 = vadd.f32 %v9394_v43, %v3023_v39  ;;  %v3025_v56 = vmul.f32 %v9392_v8, %v2980_v19  ;;  %v3355_v5 = vld [vmem:[#allocation3 + $0x40] sm:$0xff]  ;;  %v3358_v19 = vld [vmem:[#allocation3 + $0xd8] sm:$0xff] }
 0x3c1   : > { %v8071_v22 = vpop.eup %8070  ;;  %3477 = vadd.xlane.f32.xlu1 %v3430_v9  ;;  %8094 = vrcp.f32 %v3206_v10  ;;  %v3208_v63 = vadd.f32 1.0, %v8069_v12  ;;  %v3392_v53 = vadd.f32 %v3354_v35, %v3315_v57  ;;  %v7403_v30 = vmul.f32 -1.442695, %v9638_v17 }
 0x3c2   : > { %v8073_v59 = vpop.eup %8072  ;;  %3479 = vadd.xlane.f32.xlu0 %v3431_v23  ;;  %v3213_v31 = vadd.f32 1.0, %v8071_v22  ;;  %v9646_v58 = vadd.f32 %v9394_v43, %v3025_v56  ;;  %v3434_v23 = vmul.f32 %v9557_v0, %v3389_v62  ;;  %v3435_v8 = vmul.f32 %v9557_v0, %v3390_v6  ;;  %v3360_v56 = vld [vmem:[#allocation3 + $0x118] sm:$0xff] }
 0x3c3   : > { %v8075_v18 = vpop.eup %8074  ;;  %8096 = vrcp.f32 %v3208_v63  ;;  %v3210_v9 = vadd.f32 1.0, %v8073_v59  ;;  %v7408_v55 = vmul.f32 -1.442695, %v9619_v47  ;;  %v7405_v43 = vmul.f32 -1.442695, %v9626_v34 }
 0x3c4   : > { %v8077_v4 = vpop.eup %8076  ;;  %8098 = vrcp.f32 %v3211_v49  ;;  %v3215_v41 = vadd.f32 1.0, %v8075_v18  ;;  %v7410_v16 = vmul.f32 -1.442695, %v9629_v11  ;;  %v7407_v33 = vmul.f32 -1.442695, %v9632_v54  ;;  %v3357_v49 = vld [vmem:[#allocation3 + $0xc0] sm:$0xff] }
 0x3c5   : > { %3481 = vadd.xlane.f32.xlu1 %v3432_v27  ;;  %8100 = vrcp.f32 %v3213_v31  ;;  %v3212_v60 = vadd.f32 1.0, %v8077_v4  ;;  %v8079_v7 = vpop.eup %8078 }
 0x3c6   : > { %3483 = vadd.xlane.f32.xlu0 %v9613_v38  ;;  %8102 = vrcp.f32 %v3210_v9  ;;  %v3437_v38 = vmul.f32 %v9557_v0, %v3392_v53  ;;  %v3217_v39 = vadd.f32 1.0, %v8079_v7  ;;  %v3359_v53 = vld [vmem:[#allocation3 + $0x128] sm:$0xff] }
 0x3c7   : > { %v8081_v50 = vpop.eup %8080  ;;  %8104 = vrcp.f32 %v3215_v41 }
 0x3c8   : > { %v8083_v2 = vpop.eup %8082  ;;  %v3317_v36 = vmul.f32 %v8081_v50, %v9480_v14  ;;  %8106 = vrcp.f32 %v3212_v60  ;;  %v7409_v14 = vmul.f32 -1.442695, %v9642_v40  ;;  %v3361_v50 = vld [vmem:[#allocation3 + $0x78] sm:$0xff] }
 0x3c9   : > { %v8085_v32 = vpop.eup %8084  ;;  %3485 = vadd.xlane.f32.xlu1 %v3434_v23  ;;  %v3314_v25 = vmul.f32 %v8083_v2, %v9484_v20  ;;  %8108 = vpow2.f32 %v7403_v30  ;;  %v7411_v20 = vmul.f32 -1.442695, %v9646_v58 }
 0x3ca   : > { %v8087_v57 = vpop.eup %8086  ;;  %3487 = vadd.xlane.f32.xlu0 %v3435_v8  ;;  %v3394_v45 = vadd.f32 %v3356_v3, %v3317_v36  ;;  %v3319_v28 = vmul.f32 %v8085_v32, %v9487_v52  ;;  %8110 = vpow2.f32 %v7408_v55 }
 0x3cb   : > { %v8089_v26 = vpop.eup %8088  ;;  %v3391_v10 = vadd.f32 %v3353_v61, %v3314_v25  ;;  %v3316_v12 = vmul.f32 %v8087_v57, %v9494_v46  ;;  %8112 = vpow2.f32 %v7405_v43 }
 0x3cc   : > { %v8091_v27 = vpop.eup %8090  ;;  %8114 = vpow2.f32 %v7410_v16  ;;  %v3439_v59 = vmul.f32 %v9557_v0, %v3394_v45  ;;  %v3396_v6 = vadd.f32 %v3358_v19, %v3319_v28  ;;  %v3321_v46 = vmul.f32 %v8089_v26, %v9506_v21  ;;  %v3362_v21 = vld [vmem:[#allocation3 + $0x30] sm:$0xff]  ;;  %v3364_v16 = vld [vmem:[#allocation3] sm:$0xff] }
 0x3cd   : > { %v8093_v22 = vpop.eup %8092  ;;  %v3436_v35 = vmul.f32 %v9557_v0, %v3391_v10  ;;  %v3393_v52 = vadd.f32 %v3355_v5, %v3316_v12  ;;  %v3318_v62 = vmul.f32 %v8091_v27, %v9513_v42  ;;  %8116 = vpow2.f32 %v7407_v33  ;;  %v3363_v45 = vld [vmem:[#allocation3 + $0x110] sm:$0xff] }
 0x3ce   : > { %v8095_v63 = vpop.eup %8094  ;;  %3491 = vadd.xlane.f32.xlu0 %v3437_v38  ;;  %8118 = vpow2.f32 %v7409_v14  ;;  %v3323_v41 = vmul.f32 %v8093_v22, %v9516_v1  ;;  %v3441_v60 = vmul.f32 %v9557_v0, %v3396_v6  ;;  %v3398_v30 = vadd.f32 %v3360_v56, %v3321_v46 }
 0x3cf   : > { %3489 = vadd.xlane.f32.xlu1 %v3436_v35  ;;  %v3438_v31 = vmul.f32 %v9557_v0, %v3393_v52  ;;  %v3395_v18 = vadd.f32 %v3357_v49, %v3318_v62  ;;  %v3320_v9 = vmul.f32 %v8095_v63, %v9519_v24  ;;  %8120 = vpow2.f32 %v7411_v20  ;;  %v3365_v52 = vld [vmem:[#allocation3 + $0x108] sm:$0xff] }
 0x3d0   : > { %v8097_v4 = vpop.eup %8096  ;;  %8122 = vrcp.f32 %v3217_v39  ;;  %v3400_v2 = vadd.f32 %v3362_v21, %v3323_v41  ;;  %v3443_v61 = vmul.f32 %v9557_v0, %v3398_v30 }
 0x3d1   : > { %v8099_v42 = vpop.eup %8098  ;;  %v3322_v7 = vmul.f32 %v8097_v4, %v9543_v48  ;;  %v3440_v55 = vmul.f32 %v9557_v0, %v3395_v18  ;;  %v3397_v24 = vadd.f32 %v3359_v53, %v3320_v9 }
 0x3d2   : > { %v8101_v23 = vpop.eup %8100  ;;  %3495 = vadd.xlane.f32.xlu0 %v3439_v59  ;;  %v3325_v1 = vmul.f32 %v8099_v42, %v9522_v15  ;;  %v3445_v14 = vmul.f32 %v9557_v0, %v3400_v2  ;;  %v3370_v42 = vld [vmem:[#allocation3 + $0x20] sm:$0xff] }
 0x3d3   : > { %v8103_v8 = vpop.eup %8102  ;;  %3493 = vadd.xlane.f32.xlu1 %v3438_v31  ;;  %v3399_v32 = vadd.f32 %v3361_v50, %v3322_v7  ;;  %v3442_v48 = vmul.f32 %v9557_v0, %v3397_v24  ;;  %v3327_v12 = vmul.f32 %v8101_v23, %v9546_v13  ;;  %v3372_v7 = vld [vmem:[#allocation3 + $0xb0] sm:$0xff]  ;;  %v3369_v24 = vld [vmem:[#allocation3 + $0x60] sm:$0xff] }
 0x3d4   : > { %v8105_v3 = vpop.eup %8104  ;;  %v3324_v25 = vmul.f32 %v8103_v8, %v9551_v51  ;;  %v3402_v15 = vadd.f32 %v3364_v16, %v3325_v1  ;;  %v3366_v51 = vld [vmem:[#allocation3 + $0x8] sm:$0xff] }
 0x3d5   : > { %v8107_v43 = vpop.eup %8106  ;;  %v3444_v19 = vmul.f32 %v9557_v0, %v3399_v32  ;;  %v3404_v13 = vadd.f32 %v3366_v51, %v3327_v12  ;;  %v3329_v6 = vmul.f32 %v8105_v3, %v9574_v44 }
 0x3d6   : > { %v8109_v36 = vpop.eup %8108  ;;  %3499 = vadd.xlane.f32.xlu0 %v3441_v60  ;;  %v3401_v49 = vadd.f32 %v3363_v45, %v3324_v25  ;;  %v3326_v39 = vmul.f32 %v8107_v43, %v9579_v37  ;;  %v3447_v59 = vmul.f32 %v9557_v0, %v3402_v15  ;;  %v3368_v37 = vld [vmem:[#allocation3 + $0x50] sm:$0xff]  ;;  %v3367_v60 = vld [vmem:[#allocation3 + $0xe0] sm:$0xff] }
 0x3d7   : > { %v8111_v38 = vpop.eup %8110  ;;  %3497 = vadd.xlane.f32.xlu1 %v3440_v55  ;;  %v3214_v33 = vadd.f32 1.0, %v8109_v36  ;;  %v3449_v18 = vmul.f32 %v9557_v0, %v3404_v13  ;;  %v3406_v9 = vadd.f32 %v3368_v37, %v3329_v6  ;;  %v3375_v15 = vld [vmem:[#allocation3 + $0xa0] sm:$0xff] }
 0x3d8   : > { %v8113_v57 = vpop.eup %8112  ;;  %v3219_v28 = vadd.f32 1.0, %v8111_v38  ;;  %v3446_v31 = vmul.f32 %v9557_v0, %v3401_v49  ;;  %v3403_v56 = vadd.f32 %v3365_v52, %v3326_v39  ;;  %v3374_v38 = vld [vmem:[#allocation3 + $0x90] sm:$0xff] }
 0x3d9   : > { %v8115_v5 = vpop.eup %8114  ;;  %8124 = vrcp.f32 %v3214_v33  ;;  %v3216_v26 = vadd.f32 1.0, %v8113_v57  ;;  %v3451_v44 = vmul.f32 %v9557_v0, %v3406_v9 }
 0x3da   : > { %v8117_v10 = vpop.eup %8116  ;;  %3503 = vadd.xlane.f32.xlu0 %v3443_v61  ;;  %8126 = vrcp.f32 %v3219_v28  ;;  %v3221_v20 = vadd.f32 1.0, %v8115_v5  ;;  %v3448_v53 = vmul.f32 %v9557_v0, %v3403_v56  ;;  %v3371_v61 = vld [vmem:[#allocation3 + $0x18] sm:$0xff] }
 0x3db   : > { %v8119_v27 = vpop.eup %8118  ;;  %3501 = vadd.xlane.f32.xlu1 %v3442_v48  ;;  %8128 = vrcp.f32 %v3216_v26  ;;  %v3218_v22 = vadd.f32 1.0, %v8117_v10 }
 0x3dc   : > { %v8121_v35 = vpop.eup %8120  ;;  %8130 = vrcp.f32 %v3221_v20  ;;  %v3220_v62 = vadd.f32 1.0, %v8119_v27 }
 0x3dd   : > { %8132 = vrcp.f32 %v3218_v22  ;;  %v3222_v63 = vadd.f32 1.0, %v8121_v35  ;;  %v8123_v46 = vpop.eup %8122 }
 0x3de   : > { %3507 = vadd.xlane.f32.xlu0 %v3445_v14  ;;  %8134 = vrcp.f32 %v3220_v62  ;;  %v3331_v4 = vmul.f32 %v8123_v46, %v9562_v29 }
 0x3df   : > { %3505 = vadd.xlane.f32.xlu1 %v3444_v19  ;;  %8136 = vrcp.f32 %v3222_v63  ;;  %v3535_v19 = vld [vmem:[#allocation9] sm:$0x1] }
 0x3e0   : > { %v3408_v23 = vadd.f32 %v3370_v42, %v3331_v4 }
 0x3e2   : > { %3511 = vadd.xlane.f32.xlu0 %v3447_v59  ;;  %v3453_v2 = vmul.f32 %v9557_v0, %v3408_v23 }
 0x3e3   : > { %3509 = vadd.xlane.f32.xlu1 %v3446_v31 }
 0x3e6   : > { %v8125_v41 = vpop.eup %8124  ;;  %3515 = vadd.xlane.f32.xlu0 %v3449_v18 }
 0x3e7   : > { %v8127_v30 = vpop.eup %8126  ;;  %3513 = vadd.xlane.f32.xlu1 %v3448_v53  ;;  %v3328_v21 = vmul.f32 %v8125_v41, %v9638_v17 }
 0x3e8   : > { %v8129_v8 = vpop.eup %8128  ;;  %v3333_v55 = vmul.f32 %v8127_v30, %v9619_v47 }
 0x3e9   : > { %v8131_v29 = vpop.eup %8130  ;;  %v3405_v50 = vadd.f32 %v3367_v60, %v3328_v21  ;;  %v3330_v3 = vmul.f32 %v8129_v8, %v9626_v34  ;;  %v10828_v8 = vlaneseq }
 0x3ea   : > { %v8133_v43 = vpop.eup %8132  ;;  %3519 = vadd.xlane.f32.xlu0 %v3451_v44  ;;  %v3410_v1 = vadd.f32 %v3372_v7, %v3333_v55  ;;  %v3335_v36 = vmul.f32 %v8131_v29, %v9629_v11  ;;  %v3373_v11 = vld [vmem:[#allocation3 + $0x28] sm:$0xff] }
 0x3eb   : > { %v8135_v16 = vpop.eup %8134  ;;  %v3450_v17 = vmul.f32 %v9557_v0, %v3405_v50  ;;  %v3407_v32 = vadd.f32 %v3369_v24, %v3330_v3  ;;  %v3332_v47 = vmul.f32 %v8133_v43, %v9632_v54  ;;  %v9704_v29 = vshrl.u32 %v10828_v8, 7 }
 0x3ec   : > { %v3334_v34 = vmul.f32 %v8135_v16, %v9642_v40  ;;  %v8137_v33 = vpop.eup %8136  ;;  %v3455_v57 = vmul.f32 %v9557_v0, %v3410_v1  ;;  %v3412_v45 = vadd.f32 %v3374_v38, %v3335_v36  ;;  %v8320_v50 = vmov 1966171168  }
 0x3ed   : > { %3517 = vadd.xlane.f32.xlu1 %v3450_v17  ;;  %v3452_v48 = vmul.f32 %v9557_v0, %v3407_v32  ;;  %v3409_v25 = vadd.f32 %v3371_v61, %v3332_v47  ;;  %v3336_v14 = vmul.f32 %v8137_v33, %v9646_v58  ;;  %10860 = vst [vmem:[#allocation22_spill] sm:$0xff] %v9704_v29  ;;  %v4842_v3 = vunpack.c.l.s4 %v8320_v50 }
 0x3ee   : > { %3523 = vadd.xlane.f32.xlu0 %v3453_v2  ;;  %v3411_v5 = vadd.f32 %v3373_v11, %v3334_v34  ;;  %v3457_v54 = vmul.f32 %v9557_v0, %v3412_v45  ;;  %v9707_v1 = vsub.s32 0, %v9704_v29  ;;  %v9710_v16 = vsub.s32 1, %v9704_v29 }
 0x3ef   : > { %v3454_v28 = vmul.f32 %v9557_v0, %v3409_v25  ;;  %v3413_v40 = vadd.f32 %v3375_v15, %v3336_v14  ;;  %v4843_v36 = vunpack.c.0.s8 %v4842_v3  ;;  %v9714_v32 = vsub.s32 2, %v9704_v29 }
 0x3f0   : > { %v3456_v26 = vmul.f32 %v9557_v0, %v3411_v5  ;;  %v9717_v38 = vsub.s32 3, %v9704_v29  ;;  %v9720_v47 = vsub.s32 4, %v9704_v29  ;;  %v9726_v25 = vsub.s32 6, %v9704_v29 }
 0x3f1   : > { %3521 = vadd.xlane.f32.xlu1 %v3452_v48  ;;  %v3458_v10 = vmul.f32 %v9557_v0, %v3413_v40  ;;  %v9723_v48 = vsub.s32 5, %v9704_v29  ;;  %v9729_v34 = vsub.s32 7, %v9704_v29  ;;  %v9732_v33 = vsub.s32 %v4843_v36, %v9704_v29 }
 0x3f2   : > { %3527 = vadd.xlane.f32.xlu0 %v3455_v57 }
 0x3f5   : > { %3525 = vadd.xlane.f32.xlu1 %v3454_v28 }
 0x3f6   : > { %3531 = vadd.xlane.f32.xlu0 %v3457_v54 }
 0x3f9   : > { %3529 = vadd.xlane.f32.xlu1 %v3456_v26 }
 0x3fd   : > { %3533 = vadd.xlane.f32.xlu1 %v3458_v10 }
 0x40c   : > { %3538 = vperm.xlu0 %7984, %v3535_v19  }
 0x437   : > { %v3460_v12 = vpop.xlane.xlu0 %3459 }
 0x43a   : > { %v3464_v20 = vpop.xlane.xlu1 %3463 }
 0x43b   : > { %v3462_v27 = vpop.xlane.xlu0 %3461 }
 0x43e   : > { %v3466_v51 = vpop.xlane.xlu1 %3465 }
 0x43f   : > { %v3468_v58 = vpop.xlane.xlu0 %3467 }
 0x442   : > { %v3470_v49 = vpop.xlane.xlu1 %3469 }
 0x443   : > { %v3472_v39 = vpop.xlane.xlu0 %3471 }
 0x446   : > { %v3474_v22 = vpop.xlane.xlu1 %3473 }
 0x447   : > { %v3476_v35 = vpop.xlane.xlu0 %3475 }
 0x44a   : > { %v3478_v52 = vpop.xlane.xlu1 %3477 }
 0x44b   : > { %v3480_v62 = vpop.xlane.xlu0 %3479 }
 0x44e   : > { %v3482_v63 = vpop.xlane.xlu1 %3481 }
 0x44f   : > { %v3484_v59 = vpop.xlane.xlu0 %3483 }
 0x452   : > { %v3486_v13 = vpop.xlane.xlu1 %3485 }
 0x453   : > { %v3488_v6 = vpop.xlane.xlu0 %3487 }
 0x457   : > { %v3492_v46 = vpop.xlane.xlu0 %3491 }
 0x458   : > { %v3490_v0 = vpop.xlane.xlu1 %3489 }
 0x45b   : > { %v3496_v31 = vpop.xlane.xlu0 %3495 }
 0x45c   : > { %v3494_v37 = vpop.xlane.xlu1 %3493 }
 0x45f   : > { %v3500_v56 = vpop.xlane.xlu0 %3499 }
 0x460   : > { %v3498_v18 = vpop.xlane.xlu1 %3497 }
 0x463   : > { %v3504_v9 = vpop.xlane.xlu0 %3503 }
 0x464   : > { %v3502_v4 = vpop.xlane.xlu1 %3501 }
 0x467   : > { %v3508_v53 = vpop.xlane.xlu0 %3507 }
 0x468   : > { %v3506_v42 = vpop.xlane.xlu1 %3505 }
 0x46b   : > { %v3512_v41 = vpop.xlane.xlu0 %3511 }
 0x46c   : > { %v3510_v44 = vpop.xlane.xlu1 %3509 }
 0x46f   : > { %v3516_v23 = vpop.xlane.xlu0 %3515 }
 0x470   : > { %v3514_v60 = vpop.xlane.xlu1 %3513 }
 0x473   : > { %v3520_v30 = vpop.xlane.xlu0 %3519 }
 0x476   : > { %v3518_v7 = vpop.xlane.xlu1 %3517 }
 0x477   : > { %v3524_v21 = vpop.xlane.xlu0 %3523 }
 0x47a   : > { %v3522_v24 = vpop.xlane.xlu1 %3521 }
 0x47b   : > { %v3528_v55 = vpop.xlane.xlu0 %3527 }
 0x47e   : > { %v3526_v2 = vpop.xlane.xlu1 %3525 }
 0x47f   : > { %v3532_v43 = vpop.xlane.xlu0 %3531 }
 0x482   : > { %v3530_v57 = vpop.xlane.xlu1 %3529 }
 0x487   : > { %v3539_v61 = vpop.permute.xlu0 %3538 }
 0x488   : > { %v3544_v17 = vrot.slane %v3539_v61, %v9707_v1 }
 0x48a   : > { %v9734_v45 = vadd.f32 %v3544_v17, %v3460_v12  ;;  %v9736_v11 = vadd.f32 %v3544_v17, %v3462_v27  ;;  %v9738_v28 = vadd.f32 %v3544_v17, %v3464_v20  ;;  %v9740_v5 = vadd.f32 %v3544_v17, %v3466_v51 }
 0x48b   : > { %v9742_v14 = vadd.f32 %v3544_v17, %v3468_v58  ;;  %v9744_v54 = vadd.f32 %v3544_v17, %v3470_v49  ;;  %v9746_v15 = vadd.f32 %v3544_v17, %v3472_v39  ;;  %v9748_v26 = vadd.f32 %v3544_v17, %v3474_v22 }
 0x48c   : > { %v3553_v40 = vadd.f32 %v3544_v17, %v3476_v35  ;;  %v9750_v10 = vadd.f32 %v3544_v17, %v3478_v52  ;;  %v9752_v19 = vadd.f32 %v3544_v17, %v3480_v62  ;;  %v9754_v12 = vadd.f32 %v3544_v17, %v3482_v63 }
 0x48d   : > { %v9756_v27 = vadd.f32 %v3544_v17, %v3484_v59  ;;  %v9758_v20 = vadd.f32 %v3544_v17, %v3486_v13  ;;  %v9760_v51 = vadd.f32 %v3544_v17, %v3488_v6  ;;  %v9762_v58 = vadd.f32 %v3544_v17, %v3490_v0 }
 0x48e   : > { %v9764_v49 = vadd.f32 %v3544_v17, %v3492_v46  ;;  %v9766_v39 = vadd.f32 %v3544_v17, %v3494_v37  ;;  %v9768_v22 = vadd.f32 %v3544_v17, %v3496_v31  ;;  %v9770_v35 = vadd.f32 %v3544_v17, %v3498_v18  ;;  %v3534_v31 = vpop.xlane.xlu1 %3533 }
 0x48f   : > { %v9772_v52 = vadd.f32 %v3544_v17, %v3500_v56  ;;  %v9774_v62 = vadd.f32 %v3544_v17, %v3502_v4  ;;  %v9776_v63 = vadd.f32 %v3544_v17, %v3504_v9  ;;  %v9778_v59 = vadd.f32 %v3544_v17, %v3506_v42 }
 0x490   : > { %v9780_v13 = vadd.f32 %v3544_v17, %v3508_v53  ;;  %v9782_v6 = vadd.f32 %v3544_v17, %v3510_v44  ;;  %v9784_v46 = vadd.f32 %v3544_v17, %v3512_v41  ;;  %v9786_v0 = vadd.f32 %v3544_v17, %v3514_v60 }
 0x491   : > { %v9788_v37 = vadd.f32 %v3544_v17, %v3516_v23  ;;  %v9790_v18 = vadd.f32 %v3544_v17, %v3518_v7  ;;  %v9792_v56 = vadd.f32 %v3544_v17, %v3520_v30  ;;  %v9794_v4 = vadd.f32 %v3544_v17, %v3522_v24 }
 0x492   : > { %v9796_v9 = vadd.f32 %v3544_v17, %v3524_v21  ;;  %v9798_v42 = vadd.f32 %v3544_v17, %v3526_v2  ;;  %v9800_v53 = vadd.f32 %v3544_v17, %v3528_v55  ;;  %v9802_v44 = vadd.f32 %v3544_v17, %v3530_v57 }
 0x493   : > { %10861 = vst [vmem:[#allocation23_spill] sm:$0xff] %v9790_v18  ;;  %v9804_v41 = vadd.f32 %v3544_v17, %v3532_v43  ;;  %v9806_v60 = vadd.f32 %v3544_v17, %v3534_v31  ;;  %v3880_v23 = vrot.slane %v3553_v40, %v9707_v1  ;;  %v3884_v7 = vrot.slane %v3553_v40, %v9710_v16 }
 0x494   : > { %10862 = vst [vmem:[#allocation24_spill] sm:$0xff] %v9798_v42  ;;  %10863 = vst [vmem:[#allocation25_spill] sm:$0xff] %v9800_v53  ;;  %v3888_v30 = vrot.slane %v3553_v40, %v9714_v32  ;;  %v3892_v24 = vrot.slane %v3553_v40, %v9717_v38  ;;  %v3896_v21 = vrot.slane %v3553_v40, %v9720_v47 }
 0x495   : > { %10864 = vst [vmem:[#allocation26_spill] sm:$0xff] %v9802_v44  ;;  %10865 = vst [vmem:[#allocation27_spill] sm:$0xff] %v9806_v60  ;;  %v3900_v50 = vrot.slane %v3553_v40, %v9723_v48  ;;  %v3904_v55 = vrot.slane %v3553_v40, %v9726_v25  ;;  %v3908_v3 = vrot.slane %v3553_v40, %v9729_v34 }
 0x496   : > { %v5229_v43 = vcombine.low %v3880_v23, %v3884_v7  ;;  %v3624_v2 = vrot.slane %v9734_v45, %v9707_v1  ;;  %v5230_v36 = vcombine.low %v3888_v30, %v3892_v24  ;;  %v3628_v17 = vrot.slane %v9734_v45, %v9710_v16 }
 0x497   : > { %v5231_v61 = vcombine.low %v3896_v21, %v3900_v50  ;;  %v3632_v57 = vrot.slane %v9734_v45, %v9714_v32  ;;  %v5232_v31 = vcombine.low %v3904_v55, %v3908_v3  ;;  %v3636_v29 = vrot.slane %v9734_v45, %v9717_v38 }
 0x498   : > { %v5239_v8 = vrot.slane %v5229_v43, %v9732_v33  ;;  %v3640_v40 = vrot.slane %v9734_v45, %v9720_v47  ;;  %v5246_v23 = vrot.slane %v5230_v36, %v9732_v33  ;;  %v3644_v30 = vrot.slane %v9734_v45, %v9723_v48 }
 0x499   : > { %v5253_v7 = vrot.slane %v5231_v61, %v9732_v33  ;;  %v3648_v24 = vrot.slane %v9734_v45, %v9726_v25  ;;  %v5260_v21 = vrot.slane %v5232_v31, %v9732_v33  ;;  %v3652_v50 = vrot.slane %v9734_v45, %v9729_v34 }
 0x49a   : > { %v4837_v55 = vcombine.low %v3624_v2, %v3628_v17  ;;  %v4838_v3 = vcombine.low %v3632_v57, %v3636_v29  ;;  %v5261_v43 = vcombine.low %v5239_v8, %v5246_v23  ;;  %v4839_v60 = vcombine.low %v3640_v40, %v3644_v30 }
 0x49b   : > { %v3944_v36 = vrot.slane %v9752_v19, %v9707_v1  ;;  %v3948_v61 = vrot.slane %v9752_v19, %v9710_v16  ;;  %v5262_v44 = vcombine.low %v5253_v7, %v5260_v21  ;;  %v4840_v53 = vcombine.low %v3648_v24, %v3652_v50 }
 0x49c   : > { %v4847_v42 = vrot.slane %v4837_v55, %v9732_v33  ;;  %v4854_v18 = vrot.slane %v4838_v3, %v9732_v33  ;;  %v5269_v31 = vrot.slane %v5261_v43, %v9732_v33  ;;  %v4861_v45 = vrot.slane %v4839_v60, %v9732_v33 }
 0x49d   : > { %v3952_v8 = vrot.slane %v9752_v19, %v9714_v32  ;;  %v3956_v29 = vrot.slane %v9752_v19, %v9717_v38  ;;  %v5276_v2 = vrot.slane %v5262_v44, %v9732_v33  ;;  %v4868_v17 = vrot.slane %v4840_v53, %v9732_v33 }
 0x49e   : > { %v4869_v57 = vcombine.low %v4847_v42, %v4854_v18  ;;  %v3960_v40 = vrot.slane %v9752_v19, %v9720_v47  ;;  %v3964_v23 = vrot.slane %v9752_v19, %v9723_v48  ;;  %v3968_v60 = vrot.slane %v9752_v19, %v9726_v25 }
 0x49f   : > { %v3972_v7 = vrot.slane %v9752_v19, %v9729_v34  ;;  %v5327_v30 = vcombine.low %v3944_v36, %v3948_v61  ;;  %v5277_v24 = vcombine.low %v5269_v31, %v5276_v2  ;;  %v4870_v21 = vcombine.low %v4861_v45, %v4868_v17 }
 0x4a0   : > { %v4877_v44 = vrot.slane %v4869_v57, %v9732_v33  ;;  %v5328_v50 = vcombine.low %v3952_v8, %v3956_v29  ;;  %v5329_v53 = vcombine.low %v3960_v40, %v3964_v23  ;;  %v3656_v55 = vrot.slane %v9736_v11, %v9707_v1 }
 0x4a1   : > { %v5330_v18 = vcombine.low %v3968_v60, %v3972_v7  ;;  %v5337_v42 = vrot.slane %v5327_v30, %v9732_v33  ;;  %6724 = vperm.xlu0 %7984, %v5277_v24   ;;  %v4884_v3 = vrot.slane %v4870_v21, %v9732_v33  ;;  %v3660_v19 = vrot.slane %v9736_v11, %v9710_v16 }
 0x4a2   : > { %v5344_v43 = vrot.slane %v5328_v50, %v9732_v33  ;;  %v3664_v36 = vrot.slane %v9736_v11, %v9714_v32  ;;  %v5351_v61 = vrot.slane %v5329_v53, %v9732_v33  ;;  %v3668_v45 = vrot.slane %v9736_v11, %v9717_v38 }
 0x4a3   : > { %v5358_v31 = vrot.slane %v5330_v18, %v9732_v33  ;;  %v3672_v8 = vrot.slane %v9736_v11, %v9720_v47  ;;  %v4885_v29 = vcombine.low %v4877_v44, %v4884_v3  ;;  %v3676_v17 = vrot.slane %v9736_v11, %v9723_v48 }
 0x4a4   : > { %v5359_v2 = vcombine.low %v5337_v42, %v5344_v43  ;;  %v3680_v57 = vrot.slane %v9736_v11, %v9726_v25  ;;  %v3684_v23 = vrot.slane %v9736_v11, %v9729_v34  ;;  %v4886_v60 = vcombine.low %v3656_v55, %v3660_v19 }
 0x4a5   : > { %v5360_v40 = vcombine.low %v5351_v61, %v5358_v31  ;;  %v4887_v7 = vcombine.low %v3664_v36, %v3668_v45  ;;  %6700 = vperm.xlu1 %7985, %v4885_v29   ;;  %v4888_v24 = vcombine.low %v3672_v8, %v3676_v17  ;;  %v4008_v21 = vrot.slane %v9756_v27, %v9707_v1 }
 0x4a6   : > { %v5367_v30 = vrot.slane %v5359_v2, %v9732_v33  ;;  %v4012_v44 = vrot.slane %v9756_v27, %v9710_v16  ;;  %v4889_v53 = vcombine.low %v3680_v57, %v3684_v23  ;;  %v4896_v18 = vrot.slane %v4886_v60, %v9732_v33 }
 0x4a7   : > { %v5374_v50 = vrot.slane %v5360_v40, %v9732_v33  ;;  %v4903_v42 = vrot.slane %v4887_v7, %v9732_v33  ;;  %v4910_v11 = vrot.slane %v4888_v24, %v9732_v33  ;;  %v4016_v55 = vrot.slane %v9756_v27, %v9714_v32 }
 0x4a8   : > { %v4020_v3 = vrot.slane %v9756_v27, %v9717_v38  ;;  %v4024_v43 = vrot.slane %v9756_v27, %v9720_v47  ;;  %v4917_v36 = vrot.slane %v4889_v53, %v9732_v33  ;;  %v4028_v31 = vrot.slane %v9756_v27, %v9723_v48 }
 0x4a9   : > { %v5375_v19 = vcombine.low %v5367_v30, %v5374_v50  ;;  %v4918_v61 = vcombine.low %v4896_v18, %v4903_v42  ;;  %v4032_v45 = vrot.slane %v9756_v27, %v9726_v25  ;;  %v4036_v8 = vrot.slane %v9756_v27, %v9729_v34 }
 0x4aa   : > { %v5425_v29 = vcombine.low %v4008_v21, %v4012_v44  ;;  %v5426_v2 = vcombine.low %v4016_v55, %v4020_v3  ;;  %v4919_v17 = vcombine.low %v4910_v11, %v4917_v36  ;;  %v5427_v40 = vcombine.low %v4024_v43, %v4028_v31 }
 0x4ab   : > { %6730 = vperm.xlu0 %7984, %v5375_v19   ;;  %v4926_v57 = vrot.slane %v4918_v61, %v9732_v33  ;;  %v3688_v23 = vrot.slane %v9738_v28, %v9707_v1  ;;  %v5428_v60 = vcombine.low %v4032_v45, %v4036_v8  ;;  %v3692_v24 = vrot.slane %v9738_v28, %v9710_v16 }
 0x4ac   : > { %v5435_v7 = vrot.slane %v5425_v29, %v9732_v33  ;;  %v5442_v30 = vrot.slane %v5426_v2, %v9732_v33  ;;  %v4933_v27 = vrot.slane %v4919_v17, %v9732_v33  ;;  %v5449_v21 = vrot.slane %v5427_v40, %v9732_v33 }
 0x4ad   : > { %v3696_v44 = vrot.slane %v9738_v28, %v9714_v32  ;;  %v3700_v50 = vrot.slane %v9738_v28, %v9717_v38  ;;  %v5456_v53 = vrot.slane %v5428_v60, %v9732_v33  ;;  %v3704_v42 = vrot.slane %v9738_v28, %v9720_v47 }
 0x4ae   : > { %v5457_v18 = vcombine.low %v5435_v7, %v5442_v30  ;;  %v3708_v11 = vrot.slane %v9738_v28, %v9723_v48  ;;  %v4934_v55 = vcombine.low %v4926_v57, %v4933_v27  ;;  %v3712_v3 = vrot.slane %v9738_v28, %v9726_v25 }
 0x4af   : > { %v3716_v43 = vrot.slane %v9738_v28, %v9729_v34  ;;  %v4935_v19 = vcombine.low %v3688_v23, %v3692_v24  ;;  %v5458_v36 = vcombine.low %v5449_v21, %v5456_v53  ;;  %v4936_v31 = vcombine.low %v3696_v44, %v3700_v50 }
 0x4b0   : > { %v5465_v61 = vrot.slane %v5457_v18, %v9732_v33  ;;  %v4937_v45 = vcombine.low %v3704_v42, %v3708_v11  ;;  %6703 = vperm.xlu1 %7985, %v4934_v55   ;;  %v4072_v2 = vrot.slane %v9760_v51, %v9707_v1  ;;  %v4076_v17 = vrot.slane %v9760_v51, %v9710_v16 }
 0x4b1   : > { %v4938_v8 = vcombine.low %v3712_v3, %v3716_v43  ;;  %v4945_v29 = vrot.slane %v4935_v19, %v9732_v33  ;;  %v5472_v57 = vrot.slane %v5458_v36, %v9732_v33  ;;  %v4952_v28 = vrot.slane %v4936_v31, %v9732_v33 }
 0x4b2   : > { %v4959_v40 = vrot.slane %v4937_v45, %v9732_v33  ;;  %v4080_v23 = vrot.slane %v9760_v51, %v9714_v32  ;;  %v4084_v7 = vrot.slane %v9760_v51, %v9717_v38  ;;  %v4088_v30 = vrot.slane %v9760_v51, %v9720_v47 }
 0x4b3   : > { %v4966_v60 = vrot.slane %v4938_v8, %v9732_v33  ;;  %v4092_v24 = vrot.slane %v9760_v51, %v9723_v48  ;;  %v5473_v27 = vcombine.low %v5465_v61, %v5472_v57  ;;  %v4967_v21 = vcombine.low %v4945_v29, %v4952_v28 }
 0x4b4   : > { %v4096_v44 = vrot.slane %v9760_v51, %v9726_v25  ;;  %v4100_v50 = vrot.slane %v9760_v51, %v9729_v34  ;;  %v5523_v18 = vcombine.low %v4072_v2, %v4076_v17  ;;  %v5524_v42 = vcombine.low %v4080_v23, %v4084_v7 }
 0x4b5   : > { %v4968_v53 = vcombine.low %v4959_v40, %v4966_v60  ;;  %v5525_v11 = vcombine.low %v4088_v30, %v4092_v24  ;;  %6736 = vperm.xlu0 %7984, %v5473_v27   ;;  %v4975_v55 = vrot.slane %v4967_v21, %v9732_v33  ;;  %v3720_v43 = vrot.slane %v9740_v5, %v9707_v1 }
 0x4b6   : > { %v5526_v3 = vcombine.low %v4096_v44, %v4100_v50  ;;  %v3724_v19 = vrot.slane %v9740_v5, %v9710_v16  ;;  %v5533_v61 = vrot.slane %v5523_v18, %v9732_v33  ;;  %v5540_v51 = vrot.slane %v5524_v42, %v9732_v33 }
 0x4b7   : > { %v4982_v36 = vrot.slane %v4968_v53, %v9732_v33  ;;  %v5547_v31 = vrot.slane %v5525_v11, %v9732_v33  ;;  %v3728_v8 = vrot.slane %v9740_v5, %v9714_v32  ;;  %v3732_v29 = vrot.slane %v9740_v5, %v9717_v38 }
 0x4b8   : > { %v5554_v45 = vrot.slane %v5526_v3, %v9732_v33  ;;  %v3736_v2 = vrot.slane %v9740_v5, %v9720_v47  ;;  %v5555_v57 = vcombine.low %v5533_v61, %v5540_v51  ;;  %v3740_v28 = vrot.slane %v9740_v5, %v9723_v48 }
 0x4b9   : > { %v4983_v17 = vcombine.low %v4975_v55, %v4982_v36  ;;  %v3744_v40 = vrot.slane %v9740_v5, %v9726_v25  ;;  %v3748_v60 = vrot.slane %v9740_v5, %v9729_v34  ;;  %v4984_v7 = vcombine.low %v3720_v43, %v3724_v19 }
 0x4ba   : > { %v5556_v23 = vcombine.low %v5547_v31, %v5554_v45  ;;  %v4985_v30 = vcombine.low %v3728_v8, %v3732_v29  ;;  %v5563_v24 = vrot.slane %v5555_v57, %v9732_v33  ;;  %v4986_v27 = vcombine.low %v3736_v2, %v3740_v28 }
 0x4bb   : > { %6706 = vperm.xlu1 %7985, %v4983_v17   ;;  %v4136_v21 = vrot.slane %v9764_v49, %v9707_v1  ;;  %v4140_v44 = vrot.slane %v9764_v49, %v9710_v16  ;;  %v4987_v53 = vcombine.low %v3744_v40, %v3748_v60  ;;  %v4994_v18 = vrot.slane %v4984_v7, %v9732_v33 }
 0x4bc   : > { %v5570_v50 = vrot.slane %v5556_v23, %v9732_v33  ;;  %v5001_v42 = vrot.slane %v4985_v30, %v9732_v33  ;;  %v5008_v5 = vrot.slane %v4986_v27, %v9732_v33  ;;  %v4144_v11 = vrot.slane %v9764_v49, %v9714_v32 }
 0x4bd   : > { %v4148_v55 = vrot.slane %v9764_v49, %v9717_v38  ;;  %v4152_v3 = vrot.slane %v9764_v49, %v9720_v47  ;;  %v5015_v19 = vrot.slane %v4987_v53, %v9732_v33  ;;  %v4156_v61 = vrot.slane %v9764_v49, %v9723_v48 }
 0x4be   : > { %v5571_v43 = vcombine.low %v5563_v24, %v5570_v50  ;;  %v5016_v36 = vcombine.low %v4994_v18, %v5001_v42  ;;  %v4160_v51 = vrot.slane %v9764_v49, %v9726_v25  ;;  %v4164_v31 = vrot.slane %v9764_v49, %v9729_v34 }
 0x4bf   : > { %v5621_v45 = vcombine.low %v4136_v21, %v4140_v44  ;;  %v5622_v8 = vcombine.low %v4144_v11, %v4148_v55  ;;  %v5017_v29 = vcombine.low %v5008_v5, %v5015_v19  ;;  %v5623_v17 = vcombine.low %v4152_v3, %v4156_v61 }
 0x4c0   : > { %6742 = vperm.xlu0 %7984, %v5571_v43   ;;  %v5024_v2 = vrot.slane %v5016_v36, %v9732_v33  ;;  %v3752_v57 = vrot.slane %v9742_v14, %v9707_v1  ;;  %v5624_v28 = vcombine.low %v4160_v51, %v4164_v31  ;;  %v3756_v60 = vrot.slane %v9742_v14, %v9710_v16 }
 0x4c1   : > { %v5631_v40 = vrot.slane %v5621_v45, %v9732_v33  ;;  %v5638_v23 = vrot.slane %v5622_v8, %v9732_v33  ;;  %v5031_v49 = vrot.slane %v5017_v29, %v9732_v33  ;;  %v5645_v7 = vrot.slane %v5623_v17, %v9732_v33 }
 0x4c2   : > { %v3760_v30 = vrot.slane %v9742_v14, %v9714_v32  ;;  %v3764_v24 = vrot.slane %v9742_v14, %v9717_v38  ;;  %v5652_v27 = vrot.slane %v5624_v28, %v9732_v33  ;;  %v3768_v44 = vrot.slane %v9742_v14, %v9720_v47 }
 0x4c3   : > { %v5653_v21 = vcombine.low %v5631_v40, %v5638_v23  ;;  %v3772_v50 = vrot.slane %v9742_v14, %v9723_v48  ;;  %v5032_v53 = vcombine.low %v5024_v2, %v5031_v49  ;;  %v3776_v18 = vrot.slane %v9742_v14, %v9726_v25 }
 0x4c4   : > { %v3780_v42 = vrot.slane %v9742_v14, %v9729_v34  ;;  %v5033_v5 = vcombine.low %v3752_v57, %v3756_v60  ;;  %v5654_v11 = vcombine.low %v5645_v7, %v5652_v27  ;;  %v5034_v3 = vcombine.low %v3760_v30, %v3764_v24 }
 0x4c5   : > { %v5661_v55 = vrot.slane %v5653_v21, %v9732_v33  ;;  %v5035_v43 = vcombine.low %v3768_v44, %v3772_v50  ;;  %6709 = vperm.xlu1 %7985, %v5032_v53   ;;  %v4200_v61 = vrot.slane %v9768_v22, %v9707_v1  ;;  %v4204_v51 = vrot.slane %v9768_v22, %v9710_v16 }
 0x4c6   : > { %v5036_v19 = vcombine.low %v3776_v18, %v3780_v42  ;;  %v5043_v36 = vrot.slane %v5033_v5, %v9732_v33  ;;  %v5668_v31 = vrot.slane %v5654_v11, %v9732_v33  ;;  %v5050_v14 = vrot.slane %v5034_v3, %v9732_v33 }
 0x4c7   : > { %v5057_v45 = vrot.slane %v5035_v43, %v9732_v33  ;;  %v4208_v8 = vrot.slane %v9768_v22, %v9714_v32  ;;  %v4212_v2 = vrot.slane %v9768_v22, %v9717_v38  ;;  %v4216_v17 = vrot.slane %v9768_v22, %v9720_v47 }
 0x4c8   : > { %v5064_v29 = vrot.slane %v5036_v19, %v9732_v33  ;;  %v4220_v57 = vrot.slane %v9768_v22, %v9723_v48  ;;  %v5669_v28 = vcombine.low %v5661_v55, %v5668_v31  ;;  %v5065_v40 = vcombine.low %v5043_v36, %v5050_v14 }
 0x4c9   : > { %v4224_v23 = vrot.slane %v9768_v22, %v9726_v25  ;;  %v4228_v60 = vrot.slane %v9768_v22, %v9729_v34  ;;  %v5719_v7 = vcombine.low %v4200_v61, %v4204_v51  ;;  %v5720_v30 = vcombine.low %v4208_v8, %v4212_v2 }
 0x4ca   : > { %v5066_v49 = vcombine.low %v5057_v45, %v5064_v29  ;;  %v5721_v24 = vcombine.low %v4216_v17, %v4220_v57  ;;  %6748 = vperm.xlu0 %7984, %v5669_v28   ;;  %v5073_v27 = vrot.slane %v5065_v40, %v9732_v33  ;;  %v3784_v44 = vrot.slane %v9744_v54, %v9707_v1 }
 0x4cb   : > { %v5722_v21 = vcombine.low %v4224_v23, %v4228_v60  ;;  %v3788_v50 = vrot.slane %v9744_v54, %v9710_v16  ;;  %v5729_v18 = vrot.slane %v5719_v7, %v9732_v33  ;;  %v5736_v22 = vrot.slane %v5720_v30, %v9732_v33 }
 0x4cc   : > { %v5080_v53 = vrot.slane %v5066_v49, %v9732_v33  ;;  %v5743_v42 = vrot.slane %v5721_v24, %v9732_v33  ;;  %v3792_v11 = vrot.slane %v9744_v54, %v9714_v32  ;;  %v3796_v55 = vrot.slane %v9744_v54, %v9717_v38 }
 0x4cd   : > { %v5750_v5 = vrot.slane %v5722_v21, %v9732_v33  ;;  %v3800_v3 = vrot.slane %v9744_v54, %v9720_v47  ;;  %v5751_v19 = vcombine.low %v5729_v18, %v5736_v22  ;;  %v3804_v36 = vrot.slane %v9744_v54, %v9723_v48 }
 0x4ce   : > { %v5081_v43 = vcombine.low %v5073_v27, %v5080_v53  ;;  %v3808_v61 = vrot.slane %v9744_v54, %v9726_v25  ;;  %v3812_v31 = vrot.slane %v9744_v54, %v9729_v34  ;;  %v5082_v14 = vcombine.low %v3784_v44, %v3788_v50 }
 0x4cf   : > { %v5752_v51 = vcombine.low %v5743_v42, %v5750_v5  ;;  %v5083_v45 = vcombine.low %v3792_v11, %v3796_v55  ;;  %v5759_v8 = vrot.slane %v5751_v19, %v9732_v33  ;;  %v5084_v29 = vcombine.low %v3800_v3, %v3804_v36 }
 0x4d0   : > { %6712 = vperm.xlu1 %7985, %v5081_v43   ;;  %v4264_v2 = vrot.slane %v9772_v52, %v9707_v1  ;;  %v4268_v17 = vrot.slane %v9772_v52, %v9710_v16  ;;  %v5085_v28 = vcombine.low %v3808_v61, %v3812_v31  ;;  %v5092_v40 = vrot.slane %v5082_v14, %v9732_v33 }
 0x4d1   : > { %v5766_v57 = vrot.slane %v5752_v51, %v9732_v33  ;;  %v5099_v23 = vrot.slane %v5083_v45, %v9732_v33  ;;  %v5106_v54 = vrot.slane %v5084_v29, %v9732_v33  ;;  %v4272_v60 = vrot.slane %v9772_v52, %v9714_v32 }
 0x4d2   : > { %v4276_v49 = vrot.slane %v9772_v52, %v9717_v38  ;;  %v4280_v7 = vrot.slane %v9772_v52, %v9720_v47  ;;  %v5113_v24 = vrot.slane %v5085_v28, %v9732_v33  ;;  %v4284_v21 = vrot.slane %v9772_v52, %v9723_v48 }
 0x4d3   : > { %v5767_v30 = vcombine.low %v5759_v8, %v5766_v57  ;;  %v5114_v27 = vcombine.low %v5092_v40, %v5099_v23  ;;  %v4288_v44 = vrot.slane %v9772_v52, %v9726_v25  ;;  %v4292_v50 = vrot.slane %v9772_v52, %v9729_v34 }
 0x4d4   : > { %v5817_v53 = vcombine.low %v4264_v2, %v4268_v17  ;;  %v5818_v18 = vcombine.low %v4272_v60, %v4276_v49  ;;  %v5115_v22 = vcombine.low %v5106_v54, %v5113_v24  ;;  %v5819_v5 = vcombine.low %v4280_v7, %v4284_v21 }
 0x4d5   : > { %6754 = vperm.xlu0 %7984, %v5767_v30   ;;  %v5122_v42 = vrot.slane %v5114_v27, %v9732_v33  ;;  %v3816_v11 = vrot.slane %v9746_v15, %v9707_v1  ;;  %v5820_v55 = vcombine.low %v4288_v44, %v4292_v50  ;;  %v3820_v19 = vrot.slane %v9746_v15, %v9710_v16 }
 0x4d6   : > { %v5827_v3 = vrot.slane %v5817_v53, %v9732_v33  ;;  %v5834_v43 = vrot.slane %v5818_v18, %v9732_v33  ;;  %v5129_v52 = vrot.slane %v5115_v22, %v9732_v33  ;;  %v5841_v36 = vrot.slane %v5819_v5, %v9732_v33 }
 0x4d7   : > { %v3824_v61 = vrot.slane %v9746_v15, %v9714_v32  ;;  %v3828_v51 = vrot.slane %v9746_v15, %v9717_v38  ;;  %v5848_v31 = vrot.slane %v5820_v55, %v9732_v33  ;;  %v3832_v45 = vrot.slane %v9746_v15, %v9720_v47 }
 0x4d8   : > { %v5849_v14 = vcombine.low %v5827_v3, %v5834_v43  ;;  %v3836_v8 = vrot.slane %v9746_v15, %v9723_v48  ;;  %v5130_v29 = vcombine.low %v5122_v42, %v5129_v52  ;;  %v3840_v2 = vrot.slane %v9746_v15, %v9726_v25 }
 0x4d9   : > { %v3844_v17 = vrot.slane %v9746_v15, %v9729_v34  ;;  %v5131_v57 = vcombine.low %v3816_v11, %v3820_v19  ;;  %v5850_v28 = vcombine.low %v5841_v36, %v5848_v31  ;;  %v5132_v23 = vcombine.low %v3824_v61, %v3828_v51 }
 0x4da   : > { %v5857_v40 = vrot.slane %v5849_v14, %v9732_v33  ;;  %v5133_v54 = vcombine.low %v3832_v45, %v3836_v8  ;;  %6715 = vperm.xlu1 %7985, %v5130_v29   ;;  %v4328_v7 = vrot.slane %v9776_v63, %v9707_v1  ;;  %v4332_v30 = vrot.slane %v9776_v63, %v9710_v16 }
 0x4db   : > { %v5134_v60 = vcombine.low %v3840_v2, %v3844_v17  ;;  %v5141_v49 = vrot.slane %v5131_v57, %v9732_v33  ;;  %v5864_v24 = vrot.slane %v5850_v28, %v9732_v33  ;;  %v5148_v15 = vrot.slane %v5132_v23, %v9732_v33 }
 0x4dc   : > { %v5155_v27 = vrot.slane %v5133_v54, %v9732_v33  ;;  %v4336_v21 = vrot.slane %v9776_v63, %v9714_v32  ;;  %v4340_v50 = vrot.slane %v9776_v63, %v9717_v38  ;;  %v4344_v53 = vrot.slane %v9776_v63, %v9720_v47 }
 0x4dd   : > { %v5162_v44 = vrot.slane %v5134_v60, %v9732_v33  ;;  %v4348_v18 = vrot.slane %v9776_v63, %v9723_v48  ;;  %v5865_v22 = vcombine.low %v5857_v40, %v5864_v24  ;;  %v5163_v42 = vcombine.low %v5141_v49, %v5148_v15 }
 0x4de   : > { %v4352_v5 = vrot.slane %v9776_v63, %v9726_v25  ;;  %v4356_v11 = vrot.slane %v9776_v63, %v9729_v34  ;;  %v5915_v3 = vcombine.low %v4328_v7, %v4332_v30  ;;  %v5916_v43 = vcombine.low %v4336_v21, %v4340_v50 }
 0x4df   : > { %v5164_v55 = vcombine.low %v5155_v27, %v5162_v44  ;;  %v5917_v19 = vcombine.low %v4344_v53, %v4348_v18  ;;  %6760 = vperm.xlu0 %7984, %v5865_v22   ;;  %v5171_v52 = vrot.slane %v5163_v42, %v9732_v33  ;;  %v3848_v61 = vrot.slane %v9748_v26, %v9707_v1 }
 0x4e0   : > { %v5918_v36 = vcombine.low %v4352_v5, %v4356_v11  ;;  %v3852_v51 = vrot.slane %v9748_v26, %v9710_v16  ;;  %v5925_v14 = vrot.slane %v5915_v3, %v9732_v33  ;;  %v5932_v63 = vrot.slane %v5916_v43, %v9732_v33 }
 0x4e1   : > { %v5178_v31 = vrot.slane %v5164_v55, %v9732_v33  ;;  %v5939_v45 = vrot.slane %v5917_v19, %v9732_v33  ;;  %v3856_v29 = vrot.slane %v9748_v26, %v9714_v32  ;;  %v3860_v2 = vrot.slane %v9748_v26, %v9717_v38 }
 0x4e2   : > { %v5946_v8 = vrot.slane %v5918_v36, %v9732_v33  ;;  %v3864_v17 = vrot.slane %v9748_v26, %v9720_v47  ;;  %v5947_v28 = vcombine.low %v5925_v14, %v5932_v63  ;;  %v3868_v40 = vrot.slane %v9748_v26, %v9723_v48 }
 0x4e3   : > { %v5179_v57 = vcombine.low %v5171_v52, %v5178_v31  ;;  %v3872_v23 = vrot.slane %v9748_v26, %v9726_v25  ;;  %v3876_v60 = vrot.slane %v9748_v26, %v9729_v34  ;;  %v5180_v49 = vcombine.low %v3848_v61, %v3852_v51 }
 0x4e4   : > { %v5948_v54 = vcombine.low %v5939_v45, %v5946_v8  ;;  %v5181_v7 = vcombine.low %v3856_v29, %v3860_v2  ;;  %v5955_v30 = vrot.slane %v5947_v28, %v9732_v33  ;;  %v5182_v24 = vcombine.low %v3864_v17, %v3868_v40 }
 0x4e5   : > { %6718 = vperm.xlu1 %7985, %v5179_v57   ;;  %v4392_v15 = vrot.slane %v9780_v13, %v9707_v1  ;;  %v4396_v27 = vrot.slane %v9780_v13, %v9710_v16  ;;  %v5183_v44 = vcombine.low %v3872_v23, %v3876_v60  ;;  %v5190_v50 = vrot.slane %v5180_v49, %v9732_v33 }
 0x4e6   : > { %v5962_v21 = vrot.slane %v5948_v54, %v9732_v33  ;;  %v5197_v53 = vrot.slane %v5181_v7, %v9732_v33  ;;  %v5204_v26 = vrot.slane %v5182_v24, %v9732_v33  ;;  %v4400_v18 = vrot.slane %v9780_v13, %v9714_v32 }
 0x4e7   : > { %v4404_v22 = vrot.slane %v9780_v13, %v9717_v38  ;;  %v4408_v42 = vrot.slane %v9780_v13, %v9720_v47  ;;  %v5211_v11 = vrot.slane %v5183_v44, %v9732_v33  ;;  %v4412_v3 = vrot.slane %v9780_v13, %v9723_v48 }
 0x4e8   : > { %v5963_v5 = vcombine.low %v5955_v30, %v5962_v21  ;;  %v5212_v55 = vcombine.low %v5190_v50, %v5197_v53  ;;  %v4416_v43 = vrot.slane %v9780_v13, %v9726_v25  ;;  %v4420_v19 = vrot.slane %v9780_v13, %v9729_v34 }
 0x4e9   : > { %v6013_v52 = vcombine.low %v4392_v15, %v4396_v27  ;;  %v6014_v36 = vcombine.low %v4400_v18, %v4404_v22  ;;  %v5213_v61 = vcombine.low %v5204_v26, %v5211_v11  ;;  %v6015_v31 = vcombine.low %v4408_v42, %v4412_v3 }
 0x4ea   : > { %6766 = vperm.xlu0 %7984, %v5963_v5   ;;  %v5220_v51 = vrot.slane %v5212_v55, %v9732_v33  ;;  %v3912_v14 = vrot.slane %v9750_v10, %v9707_v1  ;;  %v6016_v63 = vcombine.low %v4416_v43, %v4420_v19  ;;  %v3916_v29 = vrot.slane %v9750_v10, %v9710_v16 }
 0x4eb   : > { %v6023_v45 = vrot.slane %v6013_v52, %v9732_v33  ;;  %v6030_v8 = vrot.slane %v6014_v36, %v9732_v33  ;;  %v5227_v13 = vrot.slane %v5213_v61, %v9732_v33  ;;  %v6037_v2 = vrot.slane %v6015_v31, %v9732_v33 }
 0x4ec   : > { %v3920_v17 = vrot.slane %v9750_v10, %v9714_v32  ;;  %v3924_v57 = vrot.slane %v9750_v10, %v9717_v38  ;;  %v6044_v28 = vrot.slane %v6016_v63, %v9732_v33  ;;  %v3928_v23 = vrot.slane %v9750_v10, %v9720_v47 }
 0x4ed   : > { %v6045_v40 = vcombine.low %v6023_v45, %v6030_v8  ;;  %v3932_v54 = vrot.slane %v9750_v10, %v9723_v48  ;;  %v5228_v60 = vcombine.low %v5220_v51, %v5227_v13  ;;  %v3936_v49 = vrot.slane %v9750_v10, %v9726_v25 }
 0x4ee   : > { %v3940_v7 = vrot.slane %v9750_v10, %v9729_v34  ;;  %v5278_v30 = vcombine.low %v3912_v14, %v3916_v29  ;;  %v6046_v24 = vcombine.low %v6037_v2, %v6044_v28  ;;  %v5279_v27 = vcombine.low %v3920_v17, %v3924_v57 }
 0x4ef   : > { %v6053_v15 = vrot.slane %v6045_v40, %v9732_v33  ;;  %v5280_v21 = vcombine.low %v3928_v23, %v3932_v54  ;;  %6721 = vperm.xlu1 %7985, %v5228_v60   ;;  %v4456_v53 = vrot.slane %v9784_v46, %v9707_v1  ;;  %v4460_v26 = vrot.slane %v9784_v46, %v9710_v16 }
 0x4f0   : > { %v5281_v44 = vcombine.low %v3936_v49, %v3940_v7  ;;  %v5288_v50 = vrot.slane %v5278_v30, %v9732_v33  ;;  %v6060_v18 = vrot.slane %v6046_v24, %v9732_v33  ;;  %v5295_v10 = vrot.slane %v5279_v27, %v9732_v33 }
 0x4f1   : > { %v5302_v22 = vrot.slane %v5280_v21, %v9732_v33  ;;  %v4464_v42 = vrot.slane %v9784_v46, %v9714_v32  ;;  %v4468_v11 = vrot.slane %v9784_v46, %v9717_v38  ;;  %v4472_v55 = vrot.slane %v9784_v46, %v9720_v47 }
 0x4f2   : > { %v5309_v5 = vrot.slane %v5281_v44, %v9732_v33  ;;  %v4476_v3 = vrot.slane %v9784_v46, %v9723_v48  ;;  %v6061_v43 = vcombine.low %v6053_v15, %v6060_v18  ;;  %v5310_v19 = vcombine.low %v5288_v50, %v5295_v10 }
 0x4f3   : > { %v4480_v52 = vrot.slane %v9784_v46, %v9726_v25  ;;  %v4484_v36 = vrot.slane %v9784_v46, %v9729_v34  ;;  %v6111_v51 = vcombine.low %v4456_v53, %v4460_v26  ;;  %v6112_v31 = vcombine.low %v4464_v42, %v4468_v11 }
 0x4f4   : > { %v5311_v61 = vcombine.low %v5302_v22, %v5309_v5  ;;  %v6113_v14 = vcombine.low %v4472_v55, %v4476_v3  ;;  %6772 = vperm.xlu0 %7984, %v6061_v43   ;;  %v5318_v63 = vrot.slane %v5310_v19, %v9732_v33  ;;  %v3976_v8 = vrot.slane %v9754_v12, %v9707_v1 }
 0x4f5   : > { %v6114_v45 = vcombine.low %v4480_v52, %v4484_v36  ;;  %v3980_v29 = vrot.slane %v9754_v12, %v9710_v16  ;;  %v6121_v2 = vrot.slane %v6111_v51, %v9732_v33  ;;  %v6128_v46 = vrot.slane %v6112_v31, %v9732_v33 }
 0x4f6   : > { %v5325_v13 = vrot.slane %v5311_v61, %v9732_v33  ;;  %v6135_v17 = vrot.slane %v6113_v14, %v9732_v33  ;;  %v3984_v28 = vrot.slane %v9754_v12, %v9714_v32  ;;  %v3988_v40 = vrot.slane %v9754_v12, %v9717_v38 }
 0x4f7   : > { %v6142_v57 = vrot.slane %v6114_v45, %v9732_v33  ;;  %v3992_v23 = vrot.slane %v9754_v12, %v9720_v47  ;;  %v6143_v60 = vcombine.low %v6121_v2, %v6128_v46  ;;  %v3996_v49 = vrot.slane %v9754_v12, %v9723_v48 }
 0x4f8   : > { %v5326_v54 = vcombine.low %v5318_v63, %v5325_v13  ;;  %v4000_v7 = vrot.slane %v9754_v12, %v9726_v25  ;;  %v4004_v24 = vrot.slane %v9754_v12, %v9729_v34  ;;  %v5376_v15 = vcombine.low %v3976_v8, %v3980_v29 }
 0x4f9   : > { %v6144_v30 = vcombine.low %v6135_v17, %v6142_v57  ;;  %v5377_v27 = vcombine.low %v3984_v28, %v3988_v40  ;;  %v6151_v21 = vrot.slane %v6143_v60, %v9732_v33  ;;  %v5378_v44 = vcombine.low %v3992_v23, %v3996_v49 }
 0x4fa   : > { %6727 = vperm.xlu1 %7985, %v5326_v54   ;;  %v4520_v50 = vrot.slane %v9788_v37, %v9707_v1  ;;  %v4524_v53 = vrot.slane %v9788_v37, %v9710_v16  ;;  %v5379_v18 = vcombine.low %v4000_v7, %v4004_v24  ;;  %v5386_v10 = vrot.slane %v5376_v15, %v9732_v33 }
 0x4fb   : > { %v6158_v26 = vrot.slane %v6144_v30, %v9732_v33  ;;  %v5393_v22 = vrot.slane %v5377_v27, %v9732_v33  ;;  %v5400_v12 = vrot.slane %v5378_v44, %v9732_v33  ;;  %v4528_v42 = vrot.slane %v9788_v37, %v9714_v32 }
 0x4fc   : > { %v4532_v5 = vrot.slane %v9788_v37, %v9717_v38  ;;  %v4536_v11 = vrot.slane %v9788_v37, %v9720_v47  ;;  %v5407_v3 = vrot.slane %v5379_v18, %v9732_v33  ;;  %v4540_v19 = vrot.slane %v9788_v37, %v9723_v48 }
 0x4fd   : > { %v6159_v55 = vcombine.low %v6151_v21, %v6158_v26  ;;  %v5408_v43 = vcombine.low %v5386_v10, %v5393_v22  ;;  %v4544_v52 = vrot.slane %v9788_v37, %v9726_v25  ;;  %v4548_v36 = vrot.slane %v9788_v37, %v9729_v34 }
 0x4fe   : > { %v6209_v61 = vcombine.low %v4520_v50, %v4524_v53  ;;  %v6210_v51 = vcombine.low %v4528_v42, %v4532_v5  ;;  %v5409_v31 = vcombine.low %v5400_v12, %v5407_v3  ;;  %v6211_v63 = vcombine.low %v4536_v11, %v4540_v19 }
 0x4ff   : > { %6778 = vperm.xlu0 %7984, %v6159_v55   ;;  %v5416_v14 = vrot.slane %v5408_v43, %v9732_v33  ;;  %v4040_v45 = vrot.slane %v9758_v20, %v9707_v1  ;;  %v6212_v8 = vcombine.low %v4544_v52, %v4548_v36  ;;  %v4044_v2 = vrot.slane %v9758_v20, %v9710_v16 }
 0x500   : > { %v6219_v29 = vrot.slane %v6209_v61, %v9732_v33  ;;  %v6226_v13 = vrot.slane %v6210_v51, %v9732_v33  ;;  %v5423_v37 = vrot.slane %v5409_v31, %v9732_v33  ;;  %v6233_v46 = vrot.slane %v6211_v63, %v9732_v33 }
 0x501   : > { %v4048_v17 = vrot.slane %v9758_v20, %v9714_v32  ;;  %v4052_v57 = vrot.slane %v9758_v20, %v9717_v38  ;;  %v6240_v28 = vrot.slane %v6212_v8, %v9732_v33  ;;  %v4056_v23 = vrot.slane %v9758_v20, %v9720_v47 }
 0x502   : > { %v6241_v40 = vcombine.low %v6219_v29, %v6226_v13  ;;  %v4060_v54 = vrot.slane %v9758_v20, %v9723_v48  ;;  %v5424_v60 = vcombine.low %v5416_v14, %v5423_v37  ;;  %v4064_v49 = vrot.slane %v9758_v20, %v9726_v25 }
 0x503   : > { %v4068_v7 = vrot.slane %v9758_v20, %v9729_v34  ;;  %v5474_v30 = vcombine.low %v4040_v45, %v4044_v2  ;;  %v6242_v24 = vcombine.low %v6233_v46, %v6240_v28  ;;  %v5475_v27 = vcombine.low %v4048_v17, %v4052_v57 }
 0x504   : > { %v6249_v15 = vrot.slane %v6241_v40, %v9732_v33  ;;  %v5476_v21 = vcombine.low %v4056_v23, %v4060_v54  ;;  %6733 = vperm.xlu1 %7985, %v5424_v60   ;;  %v4648_v53 = vrot.slane %v9796_v9, %v9707_v1  ;;  %v4652_v26 = vrot.slane %v9796_v9, %v9710_v16 }
 0x505   : > { %v5477_v44 = vcombine.low %v4064_v49, %v4068_v7  ;;  %v5484_v50 = vrot.slane %v5474_v30, %v9732_v33  ;;  %v6256_v18 = vrot.slane %v6242_v24, %v9732_v33  ;;  %v5491_v20 = vrot.slane %v5475_v27, %v9732_v33 }
 0x506   : > { %v5498_v10 = vrot.slane %v5476_v21, %v9732_v33  ;;  %v4656_v22 = vrot.slane %v9796_v9, %v9714_v32  ;;  %v4660_v42 = vrot.slane %v9796_v9, %v9717_v38  ;;  %v4664_v5 = vrot.slane %v9796_v9, %v9720_v47 }
 0x507   : > { %v5505_v12 = vrot.slane %v5477_v44, %v9732_v33  ;;  %v4668_v11 = vrot.slane %v9796_v9, %v9723_v48  ;;  %v6257_v55 = vcombine.low %v6249_v15, %v6256_v18  ;;  %v5506_v3 = vcombine.low %v5484_v50, %v5491_v20 }
 0x508   : > { %v4672_v43 = vrot.slane %v9796_v9, %v9726_v25  ;;  %v4676_v19 = vrot.slane %v9796_v9, %v9729_v34  ;;  %v6405_v36 = vcombine.low %v4648_v53, %v4652_v26  ;;  %v6406_v61 = vcombine.low %v4656_v22, %v4660_v42 }
 0x509   : > { %v5507_v52 = vcombine.low %v5498_v10, %v5505_v12  ;;  %v6407_v51 = vcombine.low %v4664_v5, %v4668_v11  ;;  %6784 = vperm.xlu0 %7984, %v6257_v55   ;;  %v5514_v31 = vrot.slane %v5506_v3, %v9732_v33  ;;  %v4104_v63 = vrot.slane %v9762_v58, %v9707_v1 }
 0x50a   : > { %v6408_v14 = vcombine.low %v4672_v43, %v4676_v19  ;;  %v4108_v45 = vrot.slane %v9762_v58, %v9710_v16  ;;  %v6415_v29 = vrot.slane %v6405_v36, %v9732_v33  ;;  %v6422_v9 = vrot.slane %v6406_v61, %v9732_v33 }
 0x50b   : > { %v5521_v8 = vrot.slane %v5507_v52, %v9732_v33  ;;  %v6429_v13 = vrot.slane %v6407_v51, %v9732_v33  ;;  %v4112_v37 = vrot.slane %v9762_v58, %v9714_v32  ;;  %v4116_v46 = vrot.slane %v9762_v58, %v9717_v38 }
 0x50c   : > { %v6436_v2 = vrot.slane %v6408_v14, %v9732_v33  ;;  %v4120_v17 = vrot.slane %v9762_v58, %v9720_v47  ;;  %v6437_v28 = vcombine.low %v6415_v29, %v6422_v9  ;;  %v4124_v40 = vrot.slane %v9762_v58, %v9723_v48 }
 0x50d   : > { %v5522_v57 = vcombine.low %v5514_v31, %v5521_v8  ;;  %v4128_v23 = vrot.slane %v9762_v58, %v9726_v25  ;;  %v4132_v60 = vrot.slane %v9762_v58, %v9729_v34  ;;  %v5572_v49 = vcombine.low %v4104_v63, %v4108_v45 }
 0x50e   : > { %v6438_v54 = vcombine.low %v6429_v13, %v6436_v2  ;;  %v5573_v7 = vcombine.low %v4112_v37, %v4116_v46  ;;  %v6445_v30 = vrot.slane %v6437_v28, %v9732_v33  ;;  %v5574_v24 = vcombine.low %v4120_v17, %v4124_v40 }
 0x50f   : > { %6739 = vperm.xlu1 %7985, %v5522_v57   ;;  %v4584_v15 = vrot.slane %v9792_v56, %v9707_v1  ;;  %v4588_v27 = vrot.slane %v9792_v56, %v9710_v16  ;;  %v5575_v44 = vcombine.low %v4128_v23, %v4132_v60  ;;  %v5582_v50 = vrot.slane %v5572_v49, %v9732_v33 }
 0x510   : > { %v6452_v21 = vrot.slane %v6438_v54, %v9732_v33  ;;  %v5589_v53 = vrot.slane %v5573_v7, %v9732_v33  ;;  %v5596_v58 = vrot.slane %v5574_v24, %v9732_v33  ;;  %v4592_v26 = vrot.slane %v9792_v56, %v9714_v32 }
 0x511   : > { %v4596_v18 = vrot.slane %v9792_v56, %v9717_v38  ;;  %v4600_v20 = vrot.slane %v9792_v56, %v9720_v47  ;;  %v5603_v22 = vrot.slane %v5575_v44, %v9732_v33  ;;  %v4604_v42 = vrot.slane %v9792_v56, %v9723_v48 }
 0x512   : > { %v6453_v10 = vcombine.low %v6445_v30, %v6452_v21  ;;  %v5604_v12 = vcombine.low %v5582_v50, %v5589_v53  ;;  %v4608_v5 = vrot.slane %v9792_v56, %v9726_v25  ;;  %v4612_v11 = vrot.slane %v9792_v56, %v9729_v34 }
 0x513   : > { %v6307_v55 = vcombine.low %v4584_v15, %v4588_v27  ;;  %v6308_v3 = vcombine.low %v4592_v26, %v4596_v18  ;;  %v5605_v43 = vcombine.low %v5596_v58, %v5603_v22  ;;  %v6309_v52 = vcombine.low %v4600_v20, %v4604_v42 }
 0x514   : > { %6796 = vperm.xlu0 %7984, %v6453_v10   ;;  %v5612_v19 = vrot.slane %v5604_v12, %v9732_v33  ;;  %v4168_v36 = vrot.slane %v9766_v39, %v9707_v1  ;;  %v6310_v61 = vcombine.low %v4608_v5, %v4612_v11  ;;  %v4172_v14 = vrot.slane %v9766_v39, %v9710_v16 }
 0x515   : > { %v6317_v51 = vrot.slane %v6307_v55, %v9732_v33  ;;  %v6324_v31 = vrot.slane %v6308_v3, %v9732_v33  ;;  %v5619_v56 = vrot.slane %v5605_v43, %v9732_v33  ;;  %v6331_v63 = vrot.slane %v6309_v52, %v9732_v33 }
 0x516   : > { %v4176_v45 = vrot.slane %v9766_v39, %v9714_v32  ;;  %v4180_v8 = vrot.slane %v9766_v39, %v9717_v38  ;;  %v6338_v29 = vrot.slane %v6310_v61, %v9732_v33  ;;  %v4184_v13 = vrot.slane %v9766_v39, %v9720_v47 }
 0x517   : > { %v6339_v9 = vcombine.low %v6317_v51, %v6324_v31  ;;  %v4188_v2 = vrot.slane %v9766_v39, %v9723_v48  ;;  %v5620_v37 = vcombine.low %v5612_v19, %v5619_v56  ;;  %v4192_v46 = vrot.slane %v9766_v39, %v9726_v25 }
 0x518   : > { %v4196_v17 = vrot.slane %v9766_v39, %v9729_v34  ;;  %v5670_v57 = vcombine.low %v4168_v36, %v4172_v14  ;;  %v6340_v28 = vcombine.low %v6331_v63, %v6338_v29  ;;  %v5671_v23 = vcombine.low %v4176_v45, %v4180_v8 }
 0x519   : > { %v6347_v40 = vrot.slane %v6339_v9, %v9732_v33  ;;  %v5672_v54 = vcombine.low %v4184_v13, %v4188_v2  ;;  %6745 = vperm.xlu1 %7985, %v5620_v37   ;;  %v4616_v7 = vrot.slane %v9794_v4, %v9707_v1  ;;  %v4620_v30 = vrot.slane %v9794_v4, %v9710_v16 }
 0x51a   : > { %v5673_v60 = vcombine.low %v4192_v46, %v4196_v17  ;;  %v5680_v49 = vrot.slane %v5670_v57, %v9732_v33  ;;  %v6354_v24 = vrot.slane %v6340_v28, %v9732_v33  ;;  %v5687_v39 = vrot.slane %v5671_v23, %v9732_v33 }
 0x51b   : > { %v5694_v15 = vrot.slane %v5672_v54, %v9732_v33  ;;  %v4624_v27 = vrot.slane %v9794_v4, %v9714_v32  ;;  %v4628_v44 = vrot.slane %v9794_v4, %v9717_v38  ;;  %v4632_v50 = vrot.slane %v9794_v4, %v9720_v47 }
 0x51c   : > { %v5701_v21 = vrot.slane %v5673_v60, %v9732_v33  ;;  %v4636_v53 = vrot.slane %v9794_v4, %v9723_v48  ;;  %v6355_v58 = vcombine.low %v6347_v40, %v6354_v24  ;;  %v5702_v26 = vcombine.low %v5680_v49, %v5687_v39 }
 0x51d   : > { %v4640_v18 = vrot.slane %v9794_v4, %v9726_v25  ;;  %v4644_v20 = vrot.slane %v9794_v4, %v9729_v34  ;;  %v6356_v22 = vcombine.low %v4616_v7, %v4620_v30  ;;  %v6357_v12 = vcombine.low %v4624_v27, %v4628_v44 }
 0x51e   : > { %v5703_v10 = vcombine.low %v5694_v15, %v5701_v21  ;;  %v6358_v42 = vcombine.low %v4632_v50, %v4636_v53  ;;  %6790 = vperm.xlu0 %7984, %v6355_v58   ;;  %v5710_v5 = vrot.slane %v5702_v26, %v9732_v33  ;;  %v4232_v55 = vrot.slane %v9770_v35, %v9707_v1 }
 0x51f   : > { %v6359_v11 = vcombine.low %v4640_v18, %v4644_v20  ;;  %v4236_v3 = vrot.slane %v9770_v35, %v9710_v16  ;;  %v6366_v19 = vrot.slane %v6356_v22, %v9732_v33  ;;  %v6373_v4 = vrot.slane %v6357_v12, %v9732_v33 }
 0x520   : > { %v5717_v43 = vrot.slane %v5703_v10, %v9732_v33  ;;  %v6380_v52 = vrot.slane %v6358_v42, %v9732_v33  ;;  %v4240_v61 = vrot.slane %v9770_v35, %v9714_v32  ;;  %v4244_v51 = vrot.slane %v9770_v35, %v9717_v38 }
 0x521   : > { %v6387_v36 = vrot.slane %v6359_v11, %v9732_v33  ;;  %v4248_v31 = vrot.slane %v9770_v35, %v9720_v47  ;;  %v6388_v56 = vcombine.low %v6366_v19, %v6373_v4  ;;  %v4252_v63 = vrot.slane %v9770_v35, %v9723_v48 }
 0x522   : > { %v5718_v14 = vcombine.low %v5710_v5, %v5717_v43  ;;  %v4256_v45 = vrot.slane %v9770_v35, %v9726_v25  ;;  %v4260_v29 = vrot.slane %v9770_v35, %v9729_v34  ;;  %v5768_v9 = vcombine.low %v4232_v55, %v4236_v3 }
 0x523   : > { %v6389_v8 = vcombine.low %v6380_v52, %v6387_v36  ;;  %v5769_v13 = vcombine.low %v4240_v61, %v4244_v51  ;;  %v6396_v2 = vrot.slane %v6388_v56, %v9732_v33  ;;  %v5770_v37 = vcombine.low %v4248_v31, %v4252_v63 }
 0x524   : > { %6751 = vperm.xlu1 %7985, %v5718_v14   ;;  %v4776_v46 = vrot.slane %v9804_v41, %v9707_v1  ;;  %v4780_v17 = vrot.slane %v9804_v41, %v9710_v16  ;;  %v5771_v28 = vcombine.low %v4256_v45, %v4260_v29  ;;  %v5778_v40 = vrot.slane %v5768_v9, %v9732_v33 }
 0x525   : > { %v6403_v57 = vrot.slane %v6389_v8, %v9732_v33  ;;  %v5785_v23 = vrot.slane %v5769_v13, %v9732_v33  ;;  %v5792_v35 = vrot.slane %v5770_v37, %v9732_v33  ;;  %v4784_v54 = vrot.slane %v9804_v41, %v9714_v32 }
 0x526   : > { %v4788_v60 = vrot.slane %v9804_v41, %v9717_v38  ;;  %v4792_v49 = vrot.slane %v9804_v41, %v9720_v47  ;;  %v5799_v30 = vrot.slane %v5771_v28, %v9732_v33  ;;  %v4796_v39 = vrot.slane %v9804_v41, %v9723_v48 }
 0x527   : > { %v6404_v7 = vcombine.low %v6396_v2, %v6403_v57  ;;  %v5800_v24 = vcombine.low %v5778_v40, %v5785_v23  ;;  %v4800_v15 = vrot.slane %v9804_v41, %v9726_v25  ;;  %v4804_v27 = vrot.slane %v9804_v41, %v9729_v34 }
 0x528   : > { %v6601_v21 = vcombine.low %v4776_v46, %v4780_v17  ;;  %v6602_v44 = vcombine.low %v4784_v54, %v4788_v60  ;;  %v5801_v50 = vcombine.low %v5792_v35, %v5799_v30  ;;  %v6603_v58 = vcombine.low %v4792_v49, %v4796_v39 }
 0x529   : > { %6793 = vperm.xlu0 %7984, %v6404_v7   ;;  %v5808_v53 = vrot.slane %v5800_v24, %v9732_v33  ;;  %v4296_v26 = vrot.slane %v9774_v62, %v9707_v1  ;;  %v6604_v18 = vcombine.low %v4800_v15, %v4804_v27  ;;  %v4300_v22 = vrot.slane %v9774_v62, %v9710_v16 }
 0x52a   : > { %v6611_v20 = vrot.slane %v6601_v21, %v9732_v33  ;;  %v6618_v10 = vrot.slane %v6602_v44, %v9732_v33  ;;  %v5815_v41 = vrot.slane %v5801_v50, %v9732_v33  ;;  %v6625_v12 = vrot.slane %v6603_v58, %v9732_v33 }
 0x52b   : > { %v4304_v42 = vrot.slane %v9774_v62, %v9714_v32  ;;  %v4308_v5 = vrot.slane %v9774_v62, %v9717_v38  ;;  %v6632_v11 = vrot.slane %v6604_v18, %v9732_v33  ;;  %v4312_v3 = vrot.slane %v9774_v62, %v9720_v47 }
 0x52c   : > { %v6633_v55 = vcombine.low %v6611_v20, %v6618_v10  ;;  %v4316_v43 = vrot.slane %v9774_v62, %v9723_v48  ;;  %v5816_v19 = vcombine.low %v5808_v53, %v5815_v41  ;;  %v4320_v4 = vrot.slane %v9774_v62, %v9726_v25 }
 0x52d   : > { %v4324_v52 = vrot.slane %v9774_v62, %v9729_v34  ;;  %v5866_v36 = vcombine.low %v4296_v26, %v4300_v22  ;;  %v6634_v61 = vcombine.low %v6625_v12, %v6632_v11  ;;  %v5867_v31 = vcombine.low %v4304_v42, %v4308_v5 }
 0x52e   : > { %v6641_v51 = vrot.slane %v6633_v55, %v9732_v33  ;;  %v5868_v14 = vcombine.low %v4312_v3, %v4316_v43  ;;  %6757 = vperm.xlu1 %7985, %v5816_v19   ;;  %v4360_v45 = vrot.slane %v9778_v59, %v9707_v1  ;;  %v4364_v8 = vrot.slane %v9778_v59, %v9710_v16 }
 0x52f   : > { %v5869_v56 = vcombine.low %v4320_v4, %v4324_v52  ;;  %v5876_v63 = vrot.slane %v5866_v36, %v9732_v33  ;;  %v6648_v29 = vrot.slane %v6634_v61, %v9732_v33  ;;  %v5883_v62 = vrot.slane %v5867_v31, %v9732_v33 }
 0x530   : > { %v5890_v9 = vrot.slane %v5868_v14, %v9732_v33  ;;  %v4368_v13 = vrot.slane %v9778_v59, %v9714_v32  ;;  %v4372_v37 = vrot.slane %v9778_v59, %v9717_v38  ;;  %v4376_v46 = vrot.slane %v9778_v59, %v9720_v47 }
 0x531   : > { %v5897_v2 = vrot.slane %v5869_v56, %v9732_v33  ;;  %v4380_v17 = vrot.slane %v9778_v59, %v9723_v48  ;;  %v6649_v57 = vcombine.low %v6641_v51, %v6648_v29  ;;  %v5898_v28 = vcombine.low %v5876_v63, %v5883_v62 }
 0x532   : > { %v4384_v40 = vrot.slane %v9778_v59, %v9726_v25  ;;  %v4388_v23 = vrot.slane %v9778_v59, %v9729_v34  ;;  %v5964_v54 = vcombine.low %v4360_v45, %v4364_v8  ;;  %v5965_v60 = vcombine.low %v4368_v13, %v4372_v37  ;;  %v10866_v37 = vld [vmem:[#allocation23_spill] sm:$0xff] }
 0x533   : > { %v5899_v35 = vcombine.low %v5890_v9, %v5897_v2  ;;  %v5966_v49 = vcombine.low %v4376_v46, %v4380_v17  ;;  %6808 = vperm.xlu0 %7984, %v6649_v57   ;;  %v5906_v7 = vrot.slane %v5898_v28, %v9732_v33  ;;  %v4424_v24 = vrot.slane %v9782_v6, %v9707_v1 }
 0x534   : > { %v5967_v30 = vcombine.low %v4384_v40, %v4388_v23  ;;  %v4428_v39 = vrot.slane %v9782_v6, %v9710_v16  ;;  %v5974_v27 = vrot.slane %v5964_v54, %v9732_v33  ;;  %v5981_v59 = vrot.slane %v5965_v60, %v9732_v33 }
 0x535   : > { %v5913_v15 = vrot.slane %v5899_v35, %v9732_v33  ;;  %v5988_v21 = vrot.slane %v5966_v49, %v9732_v33  ;;  %v4432_v50 = vrot.slane %v9782_v6, %v9714_v32  ;;  %v4436_v53 = vrot.slane %v9782_v6, %v9717_v38 }
 0x536   : > { %v5995_v44 = vrot.slane %v5967_v30, %v9732_v33  ;;  %v4440_v58 = vrot.slane %v9782_v6, %v9720_v47  ;;  %v5996_v18 = vcombine.low %v5974_v27, %v5981_v59  ;;  %v4444_v20 = vrot.slane %v9782_v6, %v9723_v48 }
 0x537   : > { %v5914_v26 = vcombine.low %v5906_v7, %v5913_v15  ;;  %v4448_v10 = vrot.slane %v9782_v6, %v9726_v25  ;;  %v4452_v41 = vrot.slane %v9782_v6, %v9729_v34  ;;  %v6062_v12 = vcombine.low %v4424_v24, %v4428_v39 }
 0x538   : > { %v5997_v22 = vcombine.low %v5988_v21, %v5995_v44  ;;  %v6063_v42 = vcombine.low %v4432_v50, %v4436_v53  ;;  %v6004_v5 = vrot.slane %v5996_v18, %v9732_v33  ;;  %v6064_v11 = vcombine.low %v4440_v58, %v4444_v20 }
 0x539   : > { %6763 = vperm.xlu1 %7985, %v5914_v26   ;;  %v4488_v55 = vrot.slane %v9786_v0, %v9707_v1  ;;  %v4492_v3 = vrot.slane %v9786_v0, %v9710_v16  ;;  %v6065_v19 = vcombine.low %v4448_v10, %v4452_v41  ;;  %v6072_v4 = vrot.slane %v6062_v12, %v9732_v33  ;;  %v10867_v26 = vld [vmem:[#allocation24_spill] sm:$0xff] }
 0x53a   : > { %v6011_v43 = vrot.slane %v5997_v22, %v9732_v33  ;;  %v6079_v52 = vrot.slane %v6063_v42, %v9732_v33  ;;  %v6086_v6 = vrot.slane %v6064_v11, %v9732_v33  ;;  %v4496_v36 = vrot.slane %v9786_v0, %v9714_v32 }
 0x53b   : > { %v4500_v61 = vrot.slane %v9786_v0, %v9717_v38  ;;  %v4504_v51 = vrot.slane %v9786_v0, %v9720_v47  ;;  %v6093_v14 = vrot.slane %v6065_v19, %v9732_v33  ;;  %v4508_v63 = vrot.slane %v9786_v0, %v9723_v48 }
 0x53c   : > { %v6012_v31 = vcombine.low %v6004_v5, %v6011_v43  ;;  %v6094_v56 = vcombine.low %v6072_v4, %v6079_v52  ;;  %v4512_v45 = vrot.slane %v9786_v0, %v9726_v25  ;;  %v4516_v8 = vrot.slane %v9786_v0, %v9729_v34 }
 0x53d   : > { %v6160_v29 = vcombine.low %v4488_v55, %v4492_v3  ;;  %v6161_v62 = vcombine.low %v4496_v36, %v4500_v61  ;;  %v6095_v9 = vcombine.low %v6086_v6, %v6093_v14  ;;  %v6162_v2 = vcombine.low %v4504_v51, %v4508_v63  ;;  %v10868_v14 = vld [vmem:[#allocation25_spill] sm:$0xff] }
 0x53e   : > { %6769 = vperm.xlu1 %7985, %v6012_v31   ;;  %v6102_v13 = vrot.slane %v6094_v56, %v9732_v33  ;;  %v4552_v46 = vrot.slane %v10866_v37, %v9707_v1  ;;  %v6163_v17 = vcombine.low %v4512_v45, %v4516_v8  ;;  %v4556_v40 = vrot.slane %v10866_v37, %v9710_v16 }
 0x53f   : > { %v6170_v57 = vrot.slane %v6160_v29, %v9732_v33  ;;  %v6177_v28 = vrot.slane %v6161_v62, %v9732_v33  ;;  %v6109_v0 = vrot.slane %v6095_v9, %v9732_v33  ;;  %v6184_v23 = vrot.slane %v6162_v2, %v9732_v33 }
 0x540   : > { %v4560_v35 = vrot.slane %v10866_v37, %v9714_v32  ;;  %v4564_v54 = vrot.slane %v10866_v37, %v9717_v38  ;;  %v6191_v60 = vrot.slane %v6163_v17, %v9732_v33  ;;  %v4568_v7 = vrot.slane %v10866_v37, %v9720_v47 }
 0x541   : > { %v6192_v49 = vcombine.low %v6170_v57, %v6177_v28  ;;  %v4572_v30 = vrot.slane %v10866_v37, %v9723_v48  ;;  %v6110_v24 = vcombine.low %v6102_v13, %v6109_v0  ;;  %v4576_v39 = vrot.slane %v10866_v37, %v9726_v25 }
 0x542   : > { %v4580_v15 = vrot.slane %v10866_v37, %v9729_v34  ;;  %v6258_v27 = vcombine.low %v4552_v46, %v4556_v40  ;;  %v6193_v59 = vcombine.low %v6184_v23, %v6191_v60  ;;  %v6259_v44 = vcombine.low %v4560_v35, %v4564_v54 }
 0x543   : > { %v6200_v21 = vrot.slane %v6192_v49, %v9732_v33  ;;  %v6260_v50 = vcombine.low %v4568_v7, %v4572_v30  ;;  %6775 = vperm.xlu1 %7985, %v6110_v24   ;;  %v4680_v18 = vrot.slane %v10867_v26, %v9707_v1  ;;  %v4684_v20 = vrot.slane %v10867_v26, %v9710_v16  ;;  %v10869_v49 = vld [vmem:[#allocation26_spill] sm:$0xff] }
 0x544   : > { %v6261_v53 = vcombine.low %v4576_v39, %v4580_v15  ;;  %v6268_v58 = vrot.slane %v6258_v27, %v9732_v33  ;;  %v6207_v10 = vrot.slane %v6193_v59, %v9732_v33  ;;  %v6275_v22 = vrot.slane %v6259_v44, %v9732_v33 }
 0x545   : > { %v6282_v41 = vrot.slane %v6260_v50, %v9732_v33  ;;  %v4688_v12 = vrot.slane %v10867_v26, %v9714_v32  ;;  %v4692_v5 = vrot.slane %v10867_v26, %v9717_v38  ;;  %v4696_v11 = vrot.slane %v10867_v26, %v9720_v47 }
 0x546   : > { %v6289_v42 = vrot.slane %v6261_v53, %v9732_v33  ;;  %v4700_v55 = vrot.slane %v10867_v26, %v9723_v48  ;;  %v6208_v3 = vcombine.low %v6200_v21, %v6207_v10  ;;  %v6290_v43 = vcombine.low %v6268_v58, %v6275_v22 }
 0x547   : > { %v4704_v19 = vrot.slane %v10867_v26, %v9726_v25  ;;  %v4708_v4 = vrot.slane %v10867_v26, %v9729_v34  ;;  %v6454_v6 = vcombine.low %v4680_v18, %v4684_v20  ;;  %v6455_v36 = vcombine.low %v4688_v12, %v4692_v5 }
 0x548   : > { %v6291_v52 = vcombine.low %v6282_v41, %v6289_v42  ;;  %v6456_v61 = vcombine.low %v4696_v11, %v4700_v55  ;;  %6781 = vperm.xlu1 %7985, %v6208_v3   ;;  %v6298_v51 = vrot.slane %v6290_v43, %v9732_v33  ;;  %v4712_v56 = vrot.slane %v10868_v14, %v9707_v1  ;;  %v10870_v11 = vld [vmem:[#allocation27_spill] sm:$0xff]  ;;  %v6701_v3 = vpop.permute.xlu1 %6700 }
 0x549   : > { %v6457_v31 = vcombine.low %v4704_v19, %v4708_v4  ;;  %v4716_v63 = vrot.slane %v10868_v14, %v9710_v16  ;;  %v6464_v8 = vrot.slane %v6454_v6, %v9732_v33  ;;  %v6471_v29 = vrot.slane %v6455_v36, %v9732_v33 }
 0x54a   : > { %v6305_v45 = vrot.slane %v6291_v52, %v9732_v33  ;;  %v6478_v62 = vrot.slane %v6456_v61, %v9732_v33  ;;  %v4720_v13 = vrot.slane %v10868_v14, %v9714_v32  ;;  %v4724_v2 = vrot.slane %v10868_v14, %v9717_v38 }
 0x54b   : > { %v6485_v9 = vrot.slane %v6457_v31, %v9732_v33  ;;  %v4728_v37 = vrot.slane %v10868_v14, %v9720_v47  ;;  %v6486_v17 = vcombine.low %v6464_v8, %v6471_v29  ;;  %v4732_v57 = vrot.slane %v10868_v14, %v9723_v48 }
 0x54c   : > { %v6306_v46 = vcombine.low %v6298_v51, %v6305_v45  ;;  %v4736_v28 = vrot.slane %v10868_v14, %v9726_v25  ;;  %v4740_v0 = vrot.slane %v10868_v14, %v9729_v34  ;;  %v6503_v23 = vcombine.low %v4712_v56, %v4716_v63 }
 0x54d   : > { %v6487_v40 = vcombine.low %v6478_v62, %v6485_v9  ;;  %v6504_v35 = vcombine.low %v4720_v13, %v4724_v2  ;;  %v6494_v54 = vrot.slane %v6486_v17, %v9732_v33  ;;  %v6505_v60 = vcombine.low %v4728_v37, %v4732_v57  ;;  %v6704_v13 = vpop.permute.xlu1 %6703 }
 0x54e   : > { %6787 = vperm.xlu1 %7985, %v6306_v46   ;;  %v4744_v7 = vrot.slane %v10869_v49, %v9707_v1  ;;  %v4748_v30 = vrot.slane %v10869_v49, %v9710_v16  ;;  %v6506_v39 = vcombine.low %v4736_v28, %v4740_v0  ;;  %v6513_v15 = vrot.slane %v6503_v23, %v9732_v33  ;;  %v10872_v28 = vld [vmem:[#allocation22_spill] sm:$0xff] }
 0x54f   : > { %v6501_v24 = vrot.slane %v6487_v40, %v9732_v33  ;;  %v6520_v27 = vrot.slane %v6504_v35, %v9732_v33  ;;  %v6527_v59 = vrot.slane %v6505_v60, %v9732_v33  ;;  %v4752_v21 = vrot.slane %v10869_v49, %v9714_v32 }
 0x550   : > { %v4756_v44 = vrot.slane %v10869_v49, %v9717_v38  ;;  %v4760_v50 = vrot.slane %v10869_v49, %v9720_v47  ;;  %v6534_v58 = vrot.slane %v6506_v39, %v9732_v33  ;;  %v4764_v18 = vrot.slane %v10869_v49, %v9723_v48 }
 0x551   : > { %v6502_v53 = vcombine.low %v6494_v54, %v6501_v24  ;;  %v6535_v26 = vcombine.low %v6513_v15, %v6520_v27  ;;  %v4768_v20 = vrot.slane %v10869_v49, %v9726_v25  ;;  %v4772_v10 = vrot.slane %v10869_v49, %v9729_v34 }
 0x552   : > { %v6552_v22 = vcombine.low %v4744_v7, %v4748_v30  ;;  %v6553_v41 = vcombine.low %v4752_v21, %v4756_v44  ;;  %v6536_v12 = vcombine.low %v6527_v59, %v6534_v58  ;;  %v6554_v5 = vcombine.low %v4760_v50, %v4764_v18  ;;  %v6707_v7 = vpop.permute.xlu1 %6706 }
 0x553   : > { %6799 = vperm.xlu1 %7985, %v6502_v53   ;;  %v6543_v42 = vrot.slane %v6535_v26, %v9732_v33  ;;  %v4808_v55 = vrot.slane %v10870_v11, %v9707_v1  ;;  %v6555_v43 = vcombine.low %v4768_v20, %v4772_v10  ;;  %v4812_v52 = vrot.slane %v10870_v11, %v9710_v16  ;;  %v10666_v26 = vpop.permute.xlu0 %6724 }
 0x554   : > { %v6562_v19 = vrot.slane %v6552_v22, %v9732_v33  ;;  %v6569_v4 = vrot.slane %v6553_v41, %v9732_v33  ;;  %v6550_v6 = vrot.slane %v6536_v12, %v9732_v33  ;;  %v6576_v36 = vrot.slane %v6554_v5, %v9732_v33 }
 0x555   : > { %v4816_v61 = vrot.slane %v10870_v11, %v9714_v32  ;;  %v4820_v51 = vrot.slane %v10870_v11, %v9717_v38  ;;  %v6583_v1 = vrot.slane %v6555_v43, %v9732_v33  ;;  %v4824_v14 = vrot.slane %v10870_v11, %v9720_v47 }
 0x556   : > { %v6584_v31 = vcombine.low %v6562_v19, %v6569_v4  ;;  %v4828_v56 = vrot.slane %v10870_v11, %v9723_v48  ;;  %v6551_v16 = vcombine.low %v6543_v42, %v6550_v6  ;;  %v4832_v63 = vrot.slane %v10870_v11, %v9726_v25  ;;  %v10658_v44 = vpop.permute.xlu1 %6709 }
 0x557   : > { %v4836_v45 = vrot.slane %v10870_v11, %v9729_v34  ;;  %v6650_v32 = vcombine.low %v4808_v55, %v4812_v52  ;;  %v6585_v8 = vcombine.low %v6576_v36, %v6583_v1  ;;  %v6651_v29 = vcombine.low %v4816_v61, %v4820_v51  ;;  %v10670_v20 = vpop.permute.xlu0 %6730 }
 0x558   : > { %v6592_v38 = vrot.slane %v6584_v31, %v9732_v33  ;;  %v6652_v62 = vcombine.low %v4824_v14, %v4828_v56  ;;  %6802 = vperm.xlu1 %7985, %v6551_v16   ;;  %v10871_v37 = vlaneseq }
 0x559   : > { %v6653_v9 = vcombine.low %v4832_v63, %v4836_v45  ;;  %v6660_v47 = vrot.slane %v6650_v32, %v9732_v33  ;;  %v6599_v48 = vrot.slane %v6585_v8, %v9732_v33  ;;  %v6667_v2 = vrot.slane %v6651_v29, %v9732_v33 }
 0x55a   : > { %v6674_v25 = vrot.slane %v6652_v62, %v9732_v33  ;;  %v10634_v46 = vand.u32 127, %v10871_v37  ;;  %v10660_v50 = vpop.permute.xlu1 %6712  ;;  %vm7058_vm3 = vcmp.lt.s32.totalorder %v10871_v37, 304 }
 0x55b   : > { %v6681_v34 = vrot.slane %v6653_v9, %v9732_v33  ;;  %v6600_v17 = vcombine.low %v6592_v38, %v6599_v48  ;;  %v6682_v57 = vcombine.low %v6660_v47, %v6667_v2  ;;  %v10674_v22 = vpop.permute.xlu0 %6736 }
 0x55c   : > { %v10639_v40 = vsub.s32 %v10634_v46, %v10872_v28  ;;  %v6819_v0 = vadd.s32 4294967288, %v10634_v46  ;;  %v6826_v60 = vadd.s32 4294967280, %v10634_v46  ;;  %v6833_v6 = vadd.s32 4294967272, %v10634_v46 }
 0x55d   : > { %v6683_v23 = vcombine.low %v6674_v25, %v6681_v34  ;;  %6805 = vperm.xlu1 %7985, %v6600_v17   ;;  %v6690_v35 = vrot.slane %v6682_v57, %v9732_v33  ;;  %v6847_v14 = vadd.s32 4294967256, %v10634_v46  ;;  %v6840_v56 = vadd.s32 4294967264, %v10634_v46 }
 0x55e   : > { %v10644_v54 = vsub.s32 %v6819_v0, %v10872_v28  ;;  %v6818_v30 = vrot.slane %v6701_v3, %v10639_v40  ;;  %v10651_v39 = vsub.s32 %v6826_v60, %v10872_v28  ;;  %v10662_v53 = vpop.permute.xlu1 %6715  ;;  %v10687_v1 = vsub.s32 %v6833_v6, %v10872_v28 }
 0x55f   : > { %v6697_v49 = vrot.slane %v6683_v23, %v9732_v33  ;;  %v10678_v12 = vpop.permute.xlu0 %6742  ;;  %v10698_v8 = vsub.s32 %v6847_v14, %v10872_v28  ;;  %v6861_v38 = vadd.s32 4294967240, %v10634_v46  ;;  %v10702_v62 = vsub.s32 %v6840_v56, %v10872_v28 }
 0x560   : > { %v6823_v24 = vrot.slane %v6704_v13, %v10644_v54  ;;  %v6830_v59 = vrot.slane %v6707_v7, %v10651_v39  ;;  %v6854_v9 = vadd.s32 4294967248, %v10634_v46  ;;  %v6875_v34 = vadd.s32 4294967224, %v10634_v46 }
 0x561   : > { %v6698_v15 = vcombine.low %v6690_v35, %v6697_v49  ;;  %v6864_v25 = vsub.s32 %v6861_v38, %v10872_v28  ;;  %v6868_v57 = vadd.s32 4294967232, %v10634_v46  ;;  %v6837_v60 = vrot.slane %v10658_v44, %v10687_v1 }
 0x562   : > { %v6825_v27 = vsel %vm6824_vm4, %v6823_v24, %v6818_v30  ;;  %v10664_v58 = vpop.permute.xlu1 %6718  ;;  %v6857_v0 = vsub.s32 %v6854_v9, %v10872_v28  ;;  %v6882_v30 = vadd.s32 4294967216, %v10634_v46  ;;  %v6844_v24 = vrot.slane %v10660_v50, %v10702_v62 }
 0x563   : > { %6811 = vperm.xlu1 %7985, %v6698_v15   ;;  %v10656_v21 = vsel %vm6831_vm5, %v6830_v59, %v6825_v27  ;;  %v6749_v5 = vpop.permute.xlu0 %6748  ;;  %v6851_v27 = vrot.slane %v10662_v53, %v10698_v8  ;;  %v6878_v59 = vsub.s32 %v6875_v34, %v10872_v28  ;;  %v6896_v6 = vadd.s32 4294967200, %v10634_v46 }
 0x564   : > { %v6927_v31 = vrot.slane %v6749_v5, %v10639_v40  ;;  %v6889_v5 = vadd.s32 4294967208, %v10634_v46  ;;  %v6858_v44 = vrot.slane %v10664_v58, %v6857_v0 }
 0x567   : > { %v6755_v55 = vpop.permute.xlu0 %6754 }
 0x568   : > { %v6936_v32 = vrot.slane %v6755_v55, %v10651_v39  ;;  %v6871_v55 = vsub.s32 %v6868_v57, %v10872_v28 }
 0x56a   : > { %v10668_v18 = vpop.permute.xlu1 %6721  ;;  %v6872_v38 = vrot.slane %v10666_v26, %v6871_v55 }
 0x56b   : > { %v6761_v43 = vpop.permute.xlu0 %6760  ;;  %v6865_v50 = vrot.slane %v10668_v18, %v6864_v25  ;;  %v6885_v18 = vsub.s32 %v6882_v30, %v10872_v28 }
 0x56c   : > { %v6946_v2 = vrot.slane %v6761_v43, %v10702_v62  ;;  %v6839_v43 = vsel %vm6838_vm6, %v6837_v60, %v10656_v21  ;;  %v6903_v21 = vadd.s32 4294967192, %v10634_v46 }
 0x56f   : > { %v6767_v4 = vpop.permute.xlu0 %6766 }
 0x570   : > { %v6956_v15 = vrot.slane %v6767_v4, %v6857_v0 }
 0x573   : > { %v6773_v36 = vpop.permute.xlu0 %6772 }
 0x575   : > { %v10672_v10 = vpop.permute.xlu1 %6727 }
 0x57a   : > { %v10692_v16 = vpop.permute.xlu0 %6778 }
 0x57f   : > { %v10676_v41 = vpop.permute.xlu1 %6733 }
 0x584   : > { %v10711_v17 = vpop.permute.xlu0 %6784 }
 0x58a   : > { %v10680_v42 = vpop.permute.xlu1 %6739 }
 0x594   : > { %v10682_v11 = vpop.permute.xlu1 %6745 }
 0x59f   : > { %v6752_v3 = vpop.permute.xlu1 %6751 }
 0x5a0   : > { %v6931_v61 = vrot.slane %v6752_v3, %v10644_v54 }
 0x5a2   : > { %v6932_v63 = vsel %vm6824_vm4, %v6931_v61, %v6927_v31  ;;  %v6846_v61 = vsel %vm6845_vm7, %v6844_v24, %v6839_v43  ;;  %v6892_v31 = vsub.s32 %v6889_v5, %v10872_v28 }
 0x5a3   : > { %v6937_v47 = vsel %vm6831_vm5, %v6936_v32, %v6932_v63  ;;  %v6853_v58 = vsel %vm6852_vm8, %v6851_v27, %v6846_v61 }
 0x5a4   : > { %v6860_v14 = vsel %vm6859_vm9, %v6858_v44, %v6853_v58  ;;  %v6893_v26 = vrot.slane %v10676_v41, %v6892_v31 }
 0x5a5   : > { %v6867_v63 = vsel %vm6866_vm10, %v6865_v50, %v6860_v14 }
 0x5a9   : > { %v6758_v19 = vpop.permute.xlu1 %6757 }
 0x5aa   : > { %v6941_v45 = vrot.slane %v6758_v19, %v10687_v1  ;;  %v10732_v19 = vpop.permute.xlu0 %6796 }
 0x5ab   : > { %v7006_v43 = vrot.slane %v10732_v19, %v10639_v40 }
 0x5ac   : > { %v6942_v13 = vsel %vm6838_vm6, %v6941_v45, %v6937_v47  ;;  %v6879_v45 = vrot.slane %v10672_v10, %v6878_v59  ;;  %v6899_v47 = vsub.s32 %v6896_v6, %v10872_v28  ;;  %v6917_v10 = vadd.s32 4294967176, %v10634_v46 }
 0x5ad   : > { %v6947_v23 = vsel %vm6845_vm7, %v6946_v2, %v6942_v13  ;;  %v6910_v13 = vadd.s32 4294967184, %v10634_v46 }
 0x5ae   : > { %v6791_v2 = vpop.permute.xlu0 %6790 }
 0x5af   : > { %v6913_v60 = vsub.s32 %v6910_v13, %v10872_v28 }
 0x5b1   : > { %v6996_v5 = vrot.slane %v6791_v2, %v6913_v60 }
 0x5b2   : > { %v6794_v27 = vpop.permute.xlu0 %6793 }
 0x5b4   : > { %v6764_v52 = vpop.permute.xlu1 %6763 }
 0x5b5   : > { %v6951_v48 = vrot.slane %v6764_v52, %v10698_v8 }
 0x5b7   : > { %v6952_v49 = vsel %vm6852_vm8, %v6951_v48, %v6947_v23  ;;  %v6906_v48 = vsub.s32 %v6903_v21, %v10872_v28  ;;  %v6886_v23 = vrot.slane %v10670_v20, %v6885_v18 }
 0x5b8   : > { %v6957_v3 = vsel %vm6859_vm9, %v6956_v15, %v6952_v49  ;;  %v6920_v15 = vsub.s32 %v6917_v10, %v10872_v28 }
 0x5b9   : > { %v6770_v51 = vpop.permute.xlu1 %6769  ;;  %v6907_v46 = vrot.slane %v10680_v42, %v6906_v48 }
 0x5ba   : > { %v6961_v7 = vrot.slane %v6770_v51, %v6864_v25  ;;  %v6966_v51 = vrot.slane %v6773_v36, %v6871_v55  ;;  %v6874_v25 = vsel %vm6873_vm11, %v6872_v38, %v6867_v63  ;;  %v6921_v42 = vrot.slane %v10682_v11, %v6920_v15 }
 0x5bb   : > { %v6881_v57 = vsel %vm6880_vm12, %v6879_v45, %v6874_v25  ;;  %v7001_v28 = vrot.slane %v6794_v27, %v6920_v15 }
 0x5bc   : > { %v6962_v53 = vsel %vm6866_vm10, %v6961_v7, %v6957_v3  ;;  %v6888_v49 = vsel %vm6887_vm13, %v6886_v23, %v6881_v57 }
 0x5bd   : > { %v6967_v56 = vsel %vm6873_vm11, %v6966_v51, %v6962_v53  ;;  %v6895_v24 = vsel %vm6894_vm14, %v6893_v26, %v6888_v49  ;;  %v6914_v53 = vrot.slane %v10678_v12, %v6913_v60 }
 0x5be   : > { %v6776_v29 = vpop.permute.xlu1 %6775 }
 0x5bf   : > { %v6971_v4 = vrot.slane %v6776_v29, %v6878_v59  ;;  %v6976_v29 = vrot.slane %v10692_v16, %v6885_v18  ;;  %v6900_v59 = vrot.slane %v10674_v22, %v6899_v47 }
 0x5c1   : > { %v6972_v36 = vsel %vm6880_vm12, %v6971_v4, %v6967_v56  ;;  %v6809_v4 = vpop.permute.xlu0 %6808 }
 0x5c2   : > { %v6977_v34 = vsel %vm6887_vm13, %v6976_v29, %v6972_v36  ;;  %v7025_v11 = vrot.slane %v6809_v4, %v10702_v62 }
 0x5c3   : > { %v6782_v35 = vpop.permute.xlu1 %6781 }
 0x5c4   : > { %v6981_v32 = vrot.slane %v6782_v35, %v6892_v31  ;;  %v6986_v35 = vrot.slane %v10711_v17, %v6899_v47  ;;  %v6902_v17 = vsel %vm6901_vm15, %v6900_v59, %v6895_v24 }
 0x5c5   : > { %v6909_v3 = vsel %vm6908_vm0, %v6907_v46, %v6902_v17 }
 0x5c6   : > { %v6982_v16 = vsel %vm6894_vm14, %v6981_v32, %v6977_v34  ;;  %v6916_v6 = vsel %vm6915_vm1, %v6914_v53, %v6909_v3 }
 0x5c7   : > { %v6987_v7 = vsel %vm6901_vm15, %v6986_v35, %v6982_v16  ;;  %v6923_v61 = vsel %vm6922_vm2, %v6921_v42, %v6916_v6 }
 0x5c9   : > { %v6788_v52 = vpop.permute.xlu1 %6787 }
 0x5ca   : > { %v6991_v0 = vrot.slane %v6788_v52, %v6906_v48 }
 0x5cc   : > { %v6992_v41 = vsel %vm6908_vm0, %v6991_v0, %v6987_v7 }
 0x5cd   : > { %v6997_v55 = vsel %vm6915_vm1, %v6996_v5, %v6992_v41 }
 0x5ce   : > { %v6800_v9 = vpop.permute.xlu1 %6799 }
 0x5cf   : > { %v7010_v20 = vrot.slane %v6800_v9, %v10644_v54  ;;  %v7002_v54 = vsel %vm6922_vm2, %v7001_v28, %v6997_v55 }
 0x5d0   : > { %v7032_v19 = vcombine.low %v6923_v61, %v7002_v54 }
 0x5d1   : > { %v7011_v52 = vsel %vm6824_vm4, %v7010_v20, %v7006_v43 }
 0x5d2   : > { %v7039_v31 = vrot.slane %v7032_v19, %v9732_v33 }
 0x5d3   : > { %v6803_v30 = vpop.permute.xlu1 %6802 }
 0x5d4   : > { %v7015_v44 = vrot.slane %v6803_v30, %v10651_v39 }
 0x5d6   : > { %v7016_v39 = vsel %vm6831_vm5, %v7015_v44, %v7011_v52 }
 0x5d8   : > { %v6806_v50 = vpop.permute.xlu1 %6805 }
 0x5d9   : > { %v7020_v22 = vrot.slane %v6806_v50, %v10687_v1 }
 0x5db   : > { %v7021_v40 = vsel %vm6838_vm6, %v7020_v22, %v7016_v39 }
 0x5dc   : > { %v7026_v58 = vsel %vm6845_vm7, %v7025_v11, %v7021_v40 }
 0x5de   : > { %v6812_v51 = vpop.permute.xlu1 %6811 }
 0x5df   : > { %v7030_v12 = vrot.slane %v6812_v51, %v10698_v8 }
 0x5e1   : > { %v7031_v1 = vsel %vm6852_vm8, %v7030_v12, %v7026_v58 }
 0x5e2   : > { %v7046_v21 = vrot.slane %v7031_v1, %v9732_v33 }
 0x5e4   : > { %v7047_v18 = vcombine.low %v7039_v31, %v7046_v21 }
 0x5e6   : > { %v7054_v14 = vrot.slane %v7047_v18, %v9732_v33 }
 0x5e8   : > { %7060 = vst.msk [vmem:[#allocation16] sm:$0x7] %vm7058_vm3, %v7054_v14 }
 0x5e9 PF: > { %p7748_p1 = scmp.eq.s32.totalorder %s8428_s28, 3  ;;  %s8321_s24 = smov [#allocation16]  }
 0x5ea   : > { %s7078_s25 = sshll.u32 %s8321_s24, 4  ;;  %s7079_s25 = int_to_ptr.vmem [resolvable:$true] %s7078_s25 }
 0x5eb   : > { %s8218_s0 = scalar_lea.vmem %s7079_s25, 48  ;;  %s8224_s27 = scalar_lea.vmem %s7079_s25, 96 }
 0x5ec   : > { %p8219_p8 = scmp.ne.s32.totalorder %s7079_s25, %s8218_s0  ;;  %p8225_p4 = scmp.lt.s32.totalorder %s7079_s25, %s7079_s25 }
 0x5ed   : > { %p8226_p6 = scmp.lt.s32.totalorder %s8224_s27, %s8218_s0 }
 0x5ee   : > { %p8220_p0 = pnand %p8219_p8, %p7748_p1 }
 0x5ef   : > { %p8227_p5 = por %p8226_p6, %p8225_p4 }
 0x5f0   : > { %p8221_p3 = pneg %p8220_p0 }
 0x5f2   : > { %p8228_p2 = pnand %p8227_p5, %p8221_p3 }
 0x5f4   : > { %8231 = shalt.err (!%p8228_p2)
}
 0x5f5   : > { %7725 = dma.vmem_to_hbm [thread:$0]  (%p7748_p1), %s7079_s25, 48, %s10819_s9, [#allocation12]  }
 0x5f6 PF: > { %p7749_p10 = scmp.ge.s32.totalorder %s8304_s16, 2  ;;  %s10873_s22 = sadd.s32 4294967294, %s8304_s16  }
 0x5f7   : > { %p7750_p11 = scmp.eq.s32.totalorder %s10873_s22, 3 }
 0x5f9   : > { %p7740_p9 = pnand %p7750_p11, %p7749_p10 }
 0x5fb   : > { %p7741_p12 = pneg %p7740_p9 }
 0x5fd   : > { %8279 = dma.done.wait (%p7741_p12), [#allocation12], 48  }
 0x5fe   : > { %8281 = vsyncadd (%p7741_p12), [#allocation12], 4294967248  ;;  %s28_s16 = sadd.s32 1, %s8304_s16   ;;  %s10874_s11 = smov %s8288_s12 }
 0x5ff   : > { %p25_p13 = scmp.ge.s32.totalorder %s28_s16, 6   ;;  %s10875_s12 = smov %s8292_s13 }
 0x600   : > { %s10876_s13 = smov %s8514_s18  ;;  %s10877_s14 = smov %s8300_s15 }
 0x601   : > { %s10878_s15 = smov %s10880_s19  ;;  %27 = sbr.rel (!%p25_p13) target bundleno = 10 (0xa), region = 175 }
 0x606   :  { %7096 = vsyncpa [#allocation11], 1 }
 0x607   :  { %7098 = vsyncpa [#allocation11 + $0x1], 1 }
 0x608   :  { %7099 = vsyncpa [#allocation14], 1 }
 0x609   :  { %7100 = vsyncpa [#allocation12], 1 }
 0x60a   :  { %7102 = vsyncpa [#allocation12 + $0x1], 1 }

</bundles_post_ra>
